<compile_context>
chip_gen: v5e
topology: v5e:2x2
jax: 0.10.0
libtpu: 0.0.40
codegen_flags: <defaults>
</compile_context>

<pallas_src>
import numpy as np
import jax
import jax.numpy as jnp
from jax.experimental import pallas as pl
from jax.experimental.pallas import tpu as pltpu

# ----------------------------- scaled-down config -----------------------------------
IMG = 16          # original: 224
PATCH = 4
IN_CHANS = 3
EMBED = 32        # original: 96
DEPTHS = (2, 2)   # original: (2, 2, 6, 2)
HEADS = (2, 4)    # original: (3, 6, 12, 24)
WINDOW = 2        # original: 7
MLP_RATIO = 4.0
NUM_CLASSES = 3
CLS_HIDDEN = (48, 24)   # stand-ins for the original (512, 256) classifier widths
DTYPE = jnp.float32
LN_EPS = 1e-5
MXU_DTYPE = jnp.bfloat16   # MXU operand dtype (f32 accumulation). Use jnp.float32 for parity.
MAX_BATCH_TILE = 8         # batch rows folded into one grid step
N_BLOCK_PARAMS = 13


# ----------------------------- in-kernel helpers ------------------------------------
def _erf(x):
    # Abramowitz & Stegun 7.1.26 (|err| < 1.5e-7) — built only from ops Mosaic lowers.
    a1, a2, a3, a4, a5 = 0.254829592, -0.284496736, 1.421413741, -1.453152027, 1.061405429
    p = 0.3275911
    s = jnp.where(x >= 0.0, 1.0, -1.0)
    ax = jnp.abs(x)
    t = 1.0 / (1.0 + p * ax)
    poly = ((((a5 * t + a4) * t + a3) * t + a2) * t + a1) * t
    return s * (1.0 - poly * jnp.exp(-ax * ax))


def _gelu(x):
    # exact (erf-based) GELU, matching torch.nn.GELU() to ~1e-7 (keep f32 for v5e VPU/EUP)
    return 0.5 * x * (1.0 + _erf(x * 0.7071067811865476))


def _ln(x, w, b):
    mu = jnp.mean(x, axis=-1, keepdims=True)
    xc = x - mu
    var = jnp.mean(xc * xc, axis=-1, keepdims=True)
    return xc * jax.lax.rsqrt(var + LN_EPS) * w + b


def _mxu_dot(a, b):
    return jnp.dot(a.astype(MXU_DTYPE), b.astype(MXU_DTYPE),
                   preferred_element_type=jnp.float32)


def _bmm(a, b, ca, cb):
    # batch dim 0, contract a-dim `ca` with b-dim `cb`, bf16 operands, f32 accumulation
    return jax.lax.dot_general(a.astype(MXU_DTYPE), b.astype(MXU_DTYPE),
                               (((ca,), (cb,)), ((0,), (0,))),
                               preferred_element_type=jnp.float32)


def _swin_block(x, bt, L, C, nheads, refs):
    """One Swin block on a VMEM-resident (bt*L, C) f32 slab. Fully fused."""
    hd = C // nheads
    (n1w, n1b, qkvw, qkvb, bias, projw, projb,
     n2w, n2b, f1w, f1b, f2w, f2b) = refs

    xn = _ln(x, n1w[...], n1b[...])
    # Fused lane-dense QKV (scale pre-folded into the q columns / bias).
    qkv = _mxu_dot(xn, qkvw[...]) + qkvb[...]                       # (bt*L, 3C)
    head_out = []
    for h in range(nheads):                                         # static unroll (2 or 4)
        q = qkv[:, h * hd:(h + 1) * hd].reshape(bt, L, hd)
        k = qkv[:, C + h * hd:C + (h + 1) * hd].reshape(bt, L, hd)
        v = qkv[:, 2 * C + h * hd:2 * C + (h + 1) * hd].reshape(bt, L, hd)
        att = _bmm(q, k, 2, 2) + bias[h]                            # (bt, L, L) + rel-pos/shift mask
        att = att - jnp.max(att, axis=-1, keepdims=True)
        p = jnp.exp(att)
        p = p * pl.reciprocal(jnp.sum(p, axis=-1, keepdims=True), approx=True)
        head_out.append(_bmm(p, v, 2, 1).reshape(bt * L, hd))       # (bt*L, hd)
    attn = jnp.concatenate(head_out, axis=-1)                       # (bt*L, C), head-major
    x = x + _mxu_dot(attn, projw[...]) + projb[...]                 # single lane-dense proj + residual

    xm = _ln(x, n2w[...], n2b[...])
    xm = _gelu(_mxu_dot(xm, f1w[...]) + f1b[...])
    return x + _mxu_dot(xm, f2w[...]) + f2b[...]                    # fused residual


# ----------------------------- host-side constants ------------------------------------
def _full_window_bias_meta(H, W, ws, shift):
    """Fold roll + window partition + shift mask into a full (L, L) pair structure."""
    hh, ww = np.meshgrid(np.arange(H), np.arange(W), indexing="ij")
    h = hh.reshape(-1)
    w = ww.reshape(-1)
    hr = (h - shift) % H                 # rolled coordinates (torch.roll(x, -shift))
    wr = (w - shift) % W
    win_id = (hr // ws) * (W // ws) + (wr // ws)
    in_h = hr % ws
    in_w = wr % ws
    rel_idx = ((in_h[:, None] - in_h[None, :] + ws - 1) * (2 * ws - 1)
               + (in_w[:, None] - in_w[None, :] + ws - 1)).astype(np.int32)
    same_win = win_id[:, None] == win_id[None, :]
    mask = np.where(same_win, 0.0, -1e9).astype(np.float32)
    if shift > 0:
        def region(c, size):
            return np.where(c < size - ws, 0, np.where(c < size - shift, 1, 2))
        reg = region(hr, H) * 3 + region(wr, W)
        diff = reg[:, None] != reg[None, :]
        mask = mask + np.where(same_win & diff, -100.0, 0.0).astype(np.float32)
    return rel_idx, mask


def _expand_bias(rpb_table, rel_idx, mask, nheads):
    L = rel_idx.shape[0]
    rpb = jnp.take(rpb_table, jnp.asarray(rel_idx.reshape(-1)), axis=0)   # (L*L, nH)
    rpb = rpb.reshape(L, L, nheads).transpose(2, 0, 1)                    # (nH, L, L)
    return (rpb + jnp.asarray(mask)[None]).astype(DTYPE)


def _merge_select_mats(res, bt):
    """Exact 0/1 selection matrices folding PatchMerging's 2x2 gather (torch order
    x0,x1,x2,x3) into 4 in-kernel f32 matmuls over the whole batch tile."""
    l0, rh = res * res, res // 2
    l1 = rh * rh
    mats = []
    for dh, dw in ((0, 0), (1, 0), (0, 1), (1, 1)):
        s = np.zeros((bt * l1, bt * l0), np.float32)
        for b in range(bt):
            for i in range(rh):
                for j in range(rh):
                    s[b * l1 + i * rh + j,
                      b * l0 + (2 * i + dh) * res + (2 * j + dw)] = 1.0
        mats.append(s)
    return mats


# ----------------------------- parameters --------------------------------------------
def init_params(key):
    keys = iter(jax.random.split(key, 256))

    def normal(shape, std=0.02):
        return jax.random.normal(next(keys), shape, DTYPE) * std

    params = {
        "patch_embed": dict(
            w=normal((EMBED, IN_CHANS, PATCH, PATCH)),
            b=jnp.zeros((EMBED,), DTYPE),
            norm_w=jnp.ones((EMBED,), DTYPE),
            norm_b=jnp.zeros((EMBED,), DTYPE),
        )
    }

    layers = []
    dim, res = EMBED, IMG // PATCH
    for si, (depth, nheads) in enumerate(zip(DEPTHS, HEADS)):
        ws = min(WINDOW, res)
        hidden = int(dim * MLP_RATIO)
        blocks = []
        for _ in range(depth):
            blocks.append(dict(
                norm1_w=jnp.ones((dim,), DTYPE), norm1_b=jnp.zeros((dim,), DTYPE),
                qkv_w=normal((3 * dim, dim)), qkv_b=jnp.zeros((3 * dim,), DTYPE),
                rpb_table=normal(((2 * ws - 1) ** 2, nheads)),
                proj_w=normal((dim, dim)), proj_b=jnp.zeros((dim,), DTYPE),
                norm2_w=jnp.ones((dim,), DTYPE), norm2_b=jnp.zeros((dim,), DTYPE),
                fc1_w=normal((hidden, dim)), fc1_b=jnp.zeros((hidden,), DTYPE),
                fc2_w=normal((dim, hidden)), fc2_b=jnp.zeros((dim,), DTYPE),
            ))
        layer = dict(blocks=blocks)
        if si < len(DEPTHS) - 1:
            layer["downsample"] = dict(
                norm_w=jnp.ones((4 * dim,), DTYPE), norm_b=jnp.zeros((4 * dim,), DTYPE),
                red_w=normal((2 * dim, 4 * dim)),   # bias=False in Swin PatchMerging
            )
            dim *= 2
            res //= 2
        layers.append(layer)
    params["layers"] = layers
    params["norm_w"] = jnp.ones((dim,), DTYPE)
    params["norm_b"] = jnp.zeros((dim,), DTYPE)

    h1, h2 = CLS_HIDDEN
    params["classifier"] = dict(
        fc1_w=normal((h1, dim)), fc1_b=jnp.zeros((h1,), DTYPE),
        ln1_w=jnp.ones((h1,), DTYPE), ln1_b=jnp.zeros((h1,), DTYPE),
        fc2_w=normal((h2, h1)), fc2_b=jnp.zeros((h2,), DTYPE),
        ln2_w=jnp.ones((h2,), DTYPE), ln2_b=jnp.zeros((h2,), DTYPE),
        fc3_w=normal((NUM_CLASSES, h2)), fc3_b=jnp.zeros((NUM_CLASSES,), DTYPE),
    )
    return params


def prepare_params(params):
    """One-time (outside jit): pre-transpose weights, fold the attention scale into the q
    columns of the fused QKV, expand rel-pos bias + shift/window masks to (heads, L, L)."""
    prep = {}
    pe = params["patch_embed"]
    prep["front0"] = (
        jnp.asarray(pe["w"].reshape(EMBED, -1).T, MXU_DTYPE),
        pe["b"].reshape(1, -1),
        pe["norm_w"].reshape(1, -1), pe["norm_b"].reshape(1, -1),
    )
    res, dim = IMG // PATCH, EMBED
    stages_blocks = []
    for si, layer in enumerate(params["layers"]):
        nheads = HEADS[si]
        if si > 0:
            dp = params["layers"][si - 1]["downsample"]
            prep["merge"] = (dp["norm_w"].reshape(1, -1), dp["norm_b"].reshape(1, -1),
                             jnp.asarray(dp["red_w"].T, MXU_DTYPE))
            res //= 2
            dim *= 2
        ws = min(WINDOW, res)
        hd = dim // nheads
        scale = float(hd) ** -0.5
        qscale = jnp.concatenate([jnp.full((dim,), scale, DTYPE),
                                  jnp.ones((2 * dim,), DTYPE)])
        blocks = []
        for bi, bp in enumerate(layer["blocks"]):
            shift = 0 if (bi % 2 == 0 or res <= ws) else ws // 2
            rel_idx, mask = _full_window_bias_meta(res, res, ws, shift)
            blocks.append((
                bp["norm1_w"].reshape(1, -1), bp["norm1_b"].reshape(1, -1),
                jnp.asarray(bp["qkv_w"].T * qscale[None, :], MXU_DTYPE),   # (C, 3C)
                (bp["qkv_b"] * qscale).reshape(1, -1),
                _expand_bias(bp["rpb_table"], rel_idx, mask, nheads),
                jnp.asarray(bp["proj_w"].T, MXU_DTYPE), bp["proj_b"].reshape(1, -1),
                bp["norm2_w"].reshape(1, -1), bp["norm2_b"].reshape(1, -1),
                jnp.asarray(bp["fc1_w"].T, MXU_DTYPE), bp["fc1_b"].reshape(1, -1),
                jnp.asarray(bp["fc2_w"].T, MXU_DTYPE), bp["fc2_b"].reshape(1, -1),
            ))
        stages_blocks.append(blocks)
    prep["blocks0"], prep["blocks1"] = stages_blocks
    prep["norm"] = (params["norm_w"].reshape(1, -1), params["norm_b"].reshape(1, -1))
    c = params["classifier"]
    prep["classifier"] = (
        jnp.asarray(c["fc1_w"].T, MXU_DTYPE), c["fc1_b"].reshape(1, -1),
        c["ln1_w"].reshape(1, -1), c["ln1_b"].reshape(1, -1),
        jnp.asarray(c["fc2_w"].T, MXU_DTYPE), c["fc2_b"].reshape(1, -1),
        c["ln2_w"].reshape(1, -1), c["ln2_b"].reshape(1, -1),
        jnp.asarray(c["fc3_w"].T, MXU_DTYPE), c["fc3_b"].reshape(1, -1),
    )
    return prep


# ----------------------------- fully fused forward kernel ------------------------------
def _const_index_map(ndim):
    return lambda b: (0,) * ndim


def swin_fused_forward(prep, patches, bt):
    B, L0, CP = patches.shape
    res0 = IMG // PATCH
    L1 = (res0 // 2) ** 2
    C0, C1 = EMBED, 2 * EMBED
    nH0, nH1 = HEADS
    d0, d1 = DEPTHS

    sel = [jnp.asarray(s) for s in _merge_select_mats(res0, bt)]
    flat = (list(prep["front0"])
            + [p for blk in prep["blocks0"] for p in blk]
            + sel + list(prep["merge"])
            + [p for blk in prep["blocks1"] for p in blk]
            + list(prep["norm"]) + list(prep["classifier"]))

    def kernel(*refs):
        x_ref = refs[0]
        feat_ref, logit_ref = refs[-2], refs[-1]
        w = refs[1:-2]
        pos = [0]

        def take(n):
            out = w[pos[0]:pos[0] + n]
            pos[0] += n
            return out

        # ---- patch embed: matmul + bias + LN ----
        pe_w, pe_b, pe_lw, pe_lb = take(4)
        xv = x_ref[...].astype(jnp.float32).reshape(bt * L0, CP)
        xv = _ln(_mxu_dot(xv, pe_w[...]) + pe_b[...], pe_lw[...], pe_lb[...])

        # ---- stage 0 blocks ----
        for _ in range(d0):
            xv = _swin_block(xv, bt, L0, C0, nH0, take(N_BLOCK_PARAMS))

        # ---- patch merging: in-kernel 2x2 gather (exact f32 selection matmuls),
        # LN + bias-free reduction — no HBM round-trip between stages ----
        s_g = take(4)
        mg_lw, mg_lb, red_w = take(3)
        gathered = jnp.concatenate(
            [jnp.dot(s[...], xv, preferred_element_type=jnp.float32) for s in s_g],
            axis=-1)                                                   # (bt*L1, 4*C0)
        xv = _mxu_dot(_ln(gathered, mg_lw[...], mg_lb[...]), red_w[...])  # (bt*L1, C1)

        # ---- stage 1 blocks ----
        for _ in range(d1):
            xv = _swin_block(xv, bt, L1, C1, nH1, take(N_BLOCK_PARAMS))

        # ---- final LN + token average pool (single reduction) ----
        nw, nb = take(2)
        xv = _ln(xv, nw[...], nb[...])
        feats = jnp.mean(xv.reshape(bt, L1, C1), axis=1)               # (bt, C1)

        # ---- classifier head (Dropout = identity at inference) ----
        f1w, f1b, l1w, l1b, f2w, f2b, l2w, l2b, f3w, f3b = take(10)
        y = _gelu(_ln(_mxu_dot(feats, f1w[...]) + f1b[...], l1w[...], l1b[...]))
        y = _gelu(_ln(_mxu_dot(y, f2w[...]) + f2b[...], l2w[...], l2b[...]))
        logits = _mxu_dot(y, f3w[...]) + f3b[...]

        feat_ref[...] = feats.astype(feat_ref.dtype)
        logit_ref[...] = logits.astype(logit_ref.dtype)

    in_specs = [pl.BlockSpec((bt, L0, CP), lambda b: (b, 0, 0))]
    # Weights / biases / attn masks: full-array blocks, constant index_map -> VMEM-resident.
    in_specs += [pl.BlockSpec(p.shape, _const_index_map(p.ndim)) for p in flat]

    return pl.pallas_call(
        kernel,
        out_shape=(jax.ShapeDtypeStruct((B, C1), patches.dtype),
                   jax.ShapeDtypeStruct((B, NUM_CLASSES), patches.dtype)),
        grid=(B // bt,),
        in_specs=in_specs,
        out_specs=(pl.BlockSpec((bt, C1), lambda b: (b, 0)),
                   pl.BlockSpec((bt, NUM_CLASSES), lambda b: (b, 0))),
        compiler_params=pltpu.CompilerParams(dimension_semantics=("parallel",)),
    )(patches, *flat)


def _pick_batch_tile(B):
    bt = min(B, MAX_BATCH_TILE)
    while B % bt:
        bt -= 1
    return bt


def model_forward(prep, x, return_features=False):
    B = x.shape[0]
    hp = IMG // PATCH
    # Patch-embed conv (kernel==stride) as a pure-layout patch gather (XLA) + in-kernel matmul.
    patches = (x.reshape(B, IN_CHANS, hp, PATCH, hp, PATCH)
               .transpose(0, 2, 4, 1, 3, 5)
               .reshape(B, hp * hp, IN_CHANS * PATCH * PATCH))
    feats, logits = swin_fused_forward(prep, patches, _pick_batch_tile(B))
    if return_features:
        return feats, logits
    return logits


# ----------------------------- main ---------------------------------------------------
if __name__ == "__main__":
    key = jax.random.PRNGKey(0)
    pkey, xkey = jax.random.split(key)
    params = init_params(pkey)
    prep = prepare_params(params)     # one-time weight re-layout + bias/mask expansion
    x = jax.random.normal(xkey, (2, IN_CHANS, IMG, IMG), DTYPE)   # NCHW, like PyTorch

    fwd = jax.jit(lambda p, xx: model_forward(p, xx, return_features=True))
    feats, logits = fwd(prep, x)
    jax.block_until_ready(logits)

    assert feats.shape == (2, EMBED * 2 ** (len(DEPTHS) - 1))
    assert logits.shape == (2, NUM_CLASSES)
    assert bool(jnp.all(jnp.isfinite(logits)))
    print("KERNEL_OK")
</pallas_src>

<mosaic_0001>
module attributes {stable_mosaic.version = 11 : i64} {
  func.func @kernel(%arg0: i32, %arg1: memref<2x16x48xf32, #tpu.memory_space<vmem>>, %arg2: memref<48x32xbf16, #tpu.memory_space<vmem>>, %arg3: memref<1x32xf32, #tpu.memory_space<vmem>>, %arg4: memref<1x32xf32, #tpu.memory_space<vmem>>, %arg5: memref<1x32xf32, #tpu.memory_space<vmem>>, %arg6: memref<1x32xf32, #tpu.memory_space<vmem>>, %arg7: memref<1x32xf32, #tpu.memory_space<vmem>>, %arg8: memref<32x96xbf16, #tpu.memory_space<vmem>>, %arg9: memref<1x96xf32, #tpu.memory_space<vmem>>, %arg10: memref<2x16x16xf32, #tpu.memory_space<vmem>>, %arg11: memref<32x32xbf16, #tpu.memory_space<vmem>>, %arg12: memref<1x32xf32, #tpu.memory_space<vmem>>, %arg13: memref<1x32xf32, #tpu.memory_space<vmem>>, %arg14: memref<1x32xf32, #tpu.memory_space<vmem>>, %arg15: memref<32x128xbf16, #tpu.memory_space<vmem>>, %arg16: memref<1x128xf32, #tpu.memory_space<vmem>>, %arg17: memref<128x32xbf16, #tpu.memory_space<vmem>>, %arg18: memref<1x32xf32, #tpu.memory_space<vmem>>, %arg19: memref<1x32xf32, #tpu.memory_space<vmem>>, %arg20: memref<1x32xf32, #tpu.memory_space<vmem>>, %arg21: memref<32x96xbf16, #tpu.memory_space<vmem>>, %arg22: memref<1x96xf32, #tpu.memory_space<vmem>>, %arg23: memref<2x16x16xf32, #tpu.memory_space<vmem>>, %arg24: memref<32x32xbf16, #tpu.memory_space<vmem>>, %arg25: memref<1x32xf32, #tpu.memory_space<vmem>>, %arg26: memref<1x32xf32, #tpu.memory_space<vmem>>, %arg27: memref<1x32xf32, #tpu.memory_space<vmem>>, %arg28: memref<32x128xbf16, #tpu.memory_space<vmem>>, %arg29: memref<1x128xf32, #tpu.memory_space<vmem>>, %arg30: memref<128x32xbf16, #tpu.memory_space<vmem>>, %arg31: memref<1x32xf32, #tpu.memory_space<vmem>>, %arg32: memref<8x32xf32, #tpu.memory_space<vmem>>, %arg33: memref<8x32xf32, #tpu.memory_space<vmem>>, %arg34: memref<8x32xf32, #tpu.memory_space<vmem>>, %arg35: memref<8x32xf32, #tpu.memory_space<vmem>>, %arg36: memref<1x128xf32, #tpu.memory_space<vmem>>, %arg37: memref<1x128xf32, #tpu.memory_space<vmem>>, %arg38: memref<128x64xbf16, #tpu.memory_space<vmem>>, %arg39: memref<1x64xf32, #tpu.memory_space<vmem>>, %arg40: memref<1x64xf32, #tpu.memory_space<vmem>>, %arg41: memref<64x192xbf16, #tpu.memory_space<vmem>>, %arg42: memref<1x192xf32, #tpu.memory_space<vmem>>, %arg43: memref<4x4x4xf32, #tpu.memory_space<vmem>>, %arg44: memref<64x64xbf16, #tpu.memory_space<vmem>>, %arg45: memref<1x64xf32, #tpu.memory_space<vmem>>, %arg46: memref<1x64xf32, #tpu.memory_space<vmem>>, %arg47: memref<1x64xf32, #tpu.memory_space<vmem>>, %arg48: memref<64x256xbf16, #tpu.memory_space<vmem>>, %arg49: memref<1x256xf32, #tpu.memory_space<vmem>>, %arg50: memref<256x64xbf16, #tpu.memory_space<vmem>>, %arg51: memref<1x64xf32, #tpu.memory_space<vmem>>, %arg52: memref<1x64xf32, #tpu.memory_space<vmem>>, %arg53: memref<1x64xf32, #tpu.memory_space<vmem>>, %arg54: memref<64x192xbf16, #tpu.memory_space<vmem>>, %arg55: memref<1x192xf32, #tpu.memory_space<vmem>>, %arg56: memref<4x4x4xf32, #tpu.memory_space<vmem>>, %arg57: memref<64x64xbf16, #tpu.memory_space<vmem>>, %arg58: memref<1x64xf32, #tpu.memory_space<vmem>>, %arg59: memref<1x64xf32, #tpu.memory_space<vmem>>, %arg60: memref<1x64xf32, #tpu.memory_space<vmem>>, %arg61: memref<64x256xbf16, #tpu.memory_space<vmem>>, %arg62: memref<1x256xf32, #tpu.memory_space<vmem>>, %arg63: memref<256x64xbf16, #tpu.memory_space<vmem>>, %arg64: memref<1x64xf32, #tpu.memory_space<vmem>>, %arg65: memref<1x64xf32, #tpu.memory_space<vmem>>, %arg66: memref<1x64xf32, #tpu.memory_space<vmem>>, %arg67: memref<64x48xbf16, #tpu.memory_space<vmem>>, %arg68: memref<1x48xf32, #tpu.memory_space<vmem>>, %arg69: memref<1x48xf32, #tpu.memory_space<vmem>>, %arg70: memref<1x48xf32, #tpu.memory_space<vmem>>, %arg71: memref<48x24xbf16, #tpu.memory_space<vmem>>, %arg72: memref<1x24xf32, #tpu.memory_space<vmem>>, %arg73: memref<1x24xf32, #tpu.memory_space<vmem>>, %arg74: memref<1x24xf32, #tpu.memory_space<vmem>>, %arg75: memref<24x3xbf16, #tpu.memory_space<vmem>>, %arg76: memref<1x3xf32, #tpu.memory_space<vmem>>, %arg77: memref<2x64xf32, #tpu.memory_space<vmem>>, %arg78: memref<2x3xf32, #tpu.memory_space<vmem>>) attributes {dimension_semantics = [#tpu.dimension_semantics<parallel>], iteration_bounds = array<i64: 1>, scalar_prefetch = 0 : i64, scratch_operands = 0 : i64, tpu.core_type = #tpu.core_type<tc>, window_params = [{transform_indices = @transform_0, window_bounds = array<i64: 2, 16, 48>}, {pipeline_mode = #tpu.pipeline_mode<synchronous>, transform_indices = @transform_1, window_bounds = array<i64: 48, 32>}, {pipeline_mode = #tpu.pipeline_mode<synchronous>, transform_indices = @transform_2, window_bounds = array<i64: 1, 32>}, {pipeline_mode = #tpu.pipeline_mode<synchronous>, transform_indices = @transform_3, window_bounds = array<i64: 1, 32>}, {pipeline_mode = #tpu.pipeline_mode<synchronous>, transform_indices = @transform_4, window_bounds = array<i64: 1, 32>}, {pipeline_mode = #tpu.pipeline_mode<synchronous>, transform_indices = @transform_5, window_bounds = array<i64: 1, 32>}, {pipeline_mode = #tpu.pipeline_mode<synchronous>, transform_indices = @transform_6, window_bounds = array<i64: 1, 32>}, {pipeline_mode = #tpu.pipeline_mode<synchronous>, transform_indices = @transform_7, window_bounds = array<i64: 32, 96>}, {pipeline_mode = #tpu.pipeline_mode<synchronous>, transform_indices = @transform_8, window_bounds = array<i64: 1, 96>}, {pipeline_mode = #tpu.pipeline_mode<synchronous>, transform_indices = @transform_9, window_bounds = array<i64: 2, 16, 16>}, {pipeline_mode = #tpu.pipeline_mode<synchronous>, transform_indices = @transform_10, window_bounds = array<i64: 32, 32>}, {pipeline_mode = #tpu.pipeline_mode<synchronous>, transform_indices = @transform_11, window_bounds = array<i64: 1, 32>}, {pipeline_mode = #tpu.pipeline_mode<synchronous>, transform_indices = @transform_12, window_bounds = array<i64: 1, 32>}, {pipeline_mode = #tpu.pipeline_mode<synchronous>, transform_indices = @transform_13, window_bounds = array<i64: 1, 32>}, {pipeline_mode = #tpu.pipeline_mode<synchronous>, transform_indices = @transform_14, window_bounds = array<i64: 32, 128>}, {pipeline_mode = #tpu.pipeline_mode<synchronous>, transform_indices = @transform_15, window_bounds = array<i64: 1, 128>}, {pipeline_mode = #tpu.pipeline_mode<synchronous>, transform_indices = @transform_16, window_bounds = array<i64: 128, 32>}, {pipeline_mode = #tpu.pipeline_mode<synchronous>, transform_indices = @transform_17, window_bounds = array<i64: 1, 32>}, {pipeline_mode = #tpu.pipeline_mode<synchronous>, transform_indices = @transform_18, window_bounds = array<i64: 1, 32>}, {pipeline_mode = #tpu.pipeline_mode<synchronous>, transform_indices = @transform_19, window_bounds = array<i64: 1, 32>}, {pipeline_mode = #tpu.pipeline_mode<synchronous>, transform_indices = @transform_20, window_bounds = array<i64: 32, 96>}, {pipeline_mode = #tpu.pipeline_mode<synchronous>, transform_indices = @transform_21, window_bounds = array<i64: 1, 96>}, {pipeline_mode = #tpu.pipeline_mode<synchronous>, transform_indices = @transform_22, window_bounds = array<i64: 2, 16, 16>}, {pipeline_mode = #tpu.pipeline_mode<synchronous>, transform_indices = @transform_23, window_bounds = array<i64: 32, 32>}, {pipeline_mode = #tpu.pipeline_mode<synchronous>, transform_indices = @transform_24, window_bounds = array<i64: 1, 32>}, {pipeline_mode = #tpu.pipeline_mode<synchronous>, transform_indices = @transform_25, window_bounds = array<i64: 1, 32>}, {pipeline_mode = #tpu.pipeline_mode<synchronous>, transform_indices = @transform_26, window_bounds = array<i64: 1, 32>}, {pipeline_mode = #tpu.pipeline_mode<synchronous>, transform_indices = @transform_27, window_bounds = array<i64: 32, 128>}, {pipeline_mode = #tpu.pipeline_mode<synchronous>, transform_indices = @transform_28, window_bounds = array<i64: 1, 128>}, {pipeline_mode = #tpu.pipeline_mode<synchronous>, transform_indices = @transform_29, window_bounds = array<i64: 128, 32>}, {pipeline_mode = #tpu.pipeline_mode<synchronous>, transform_indices = @transform_30, window_bounds = array<i64: 1, 32>}, {pipeline_mode = #tpu.pipeline_mode<synchronous>, transform_indices = @transform_31, window_bounds = array<i64: 8, 32>}, {pipeline_mode = #tpu.pipeline_mode<synchronous>, transform_indices = @transform_32, window_bounds = array<i64: 8, 32>}, {pipeline_mode = #tpu.pipeline_mode<synchronous>, transform_indices = @transform_33, window_bounds = array<i64: 8, 32>}, {pipeline_mode = #tpu.pipeline_mode<synchronous>, transform_indices = @transform_34, window_bounds = array<i64: 8, 32>}, {pipeline_mode = #tpu.pipeline_mode<synchronous>, transform_indices = @transform_35, window_bounds = array<i64: 1, 128>}, {pipeline_mode = #tpu.pipeline_mode<synchronous>, transform_indices = @transform_36, window_bounds = array<i64: 1, 128>}, {pipeline_mode = #tpu.pipeline_mode<synchronous>, transform_indices = @transform_37, window_bounds = array<i64: 128, 64>}, {pipeline_mode = #tpu.pipeline_mode<synchronous>, transform_indices = @transform_38, window_bounds = array<i64: 1, 64>}, {pipeline_mode = #tpu.pipeline_mode<synchronous>, transform_indices = @transform_39, window_bounds = array<i64: 1, 64>}, {pipeline_mode = #tpu.pipeline_mode<synchronous>, transform_indices = @transform_40, window_bounds = array<i64: 64, 192>}, {pipeline_mode = #tpu.pipeline_mode<synchronous>, transform_indices = @transform_41, window_bounds = array<i64: 1, 192>}, {pipeline_mode = #tpu.pipeline_mode<synchronous>, transform_indices = @transform_42, window_bounds = array<i64: 4, 4, 4>}, {pipeline_mode = #tpu.pipeline_mode<synchronous>, transform_indices = @transform_43, window_bounds = array<i64: 64, 64>}, {pipeline_mode = #tpu.pipeline_mode<synchronous>, transform_indices = @transform_44, window_bounds = array<i64: 1, 64>}, {pipeline_mode = #tpu.pipeline_mode<synchronous>, transform_indices = @transform_45, window_bounds = array<i64: 1, 64>}, {pipeline_mode = #tpu.pipeline_mode<synchronous>, transform_indices = @transform_46, window_bounds = array<i64: 1, 64>}, {pipeline_mode = #tpu.pipeline_mode<synchronous>, transform_indices = @transform_47, window_bounds = array<i64: 64, 256>}, {pipeline_mode = #tpu.pipeline_mode<synchronous>, transform_indices = @transform_48, window_bounds = array<i64: 1, 256>}, {pipeline_mode = #tpu.pipeline_mode<synchronous>, transform_indices = @transform_49, window_bounds = array<i64: 256, 64>}, {pipeline_mode = #tpu.pipeline_mode<synchronous>, transform_indices = @transform_50, window_bounds = array<i64: 1, 64>}, {pipeline_mode = #tpu.pipeline_mode<synchronous>, transform_indices = @transform_51, window_bounds = array<i64: 1, 64>}, {pipeline_mode = #tpu.pipeline_mode<synchronous>, transform_indices = @transform_52, window_bounds = array<i64: 1, 64>}, {pipeline_mode = #tpu.pipeline_mode<synchronous>, transform_indices = @transform_53, window_bounds = array<i64: 64, 192>}, {pipeline_mode = #tpu.pipeline_mode<synchronous>, transform_indices = @transform_54, window_bounds = array<i64: 1, 192>}, {pipeline_mode = #tpu.pipeline_mode<synchronous>, transform_indices = @transform_55, window_bounds = array<i64: 4, 4, 4>}, {pipeline_mode = #tpu.pipeline_mode<synchronous>, transform_indices = @transform_56, window_bounds = array<i64: 64, 64>}, {pipeline_mode = #tpu.pipeline_mode<synchronous>, transform_indices = @transform_57, window_bounds = array<i64: 1, 64>}, {pipeline_mode = #tpu.pipeline_mode<synchronous>, transform_indices = @transform_58, window_bounds = array<i64: 1, 64>}, {pipeline_mode = #tpu.pipeline_mode<synchronous>, transform_indices = @transform_59, window_bounds = array<i64: 1, 64>}, {pipeline_mode = #tpu.pipeline_mode<synchronous>, transform_indices = @transform_60, window_bounds = array<i64: 64, 256>}, {pipeline_mode = #tpu.pipeline_mode<synchronous>, transform_indices = @transform_61, window_bounds = array<i64: 1, 256>}, {pipeline_mode = #tpu.pipeline_mode<synchronous>, transform_indices = @transform_62, window_bounds = array<i64: 256, 64>}, {pipeline_mode = #tpu.pipeline_mode<synchronous>, transform_indices = @transform_63, window_bounds = array<i64: 1, 64>}, {pipeline_mode = #tpu.pipeline_mode<synchronous>, transform_indices = @transform_64, window_bounds = array<i64: 1, 64>}, {pipeline_mode = #tpu.pipeline_mode<synchronous>, transform_indices = @transform_65, window_bounds = array<i64: 1, 64>}, {pipeline_mode = #tpu.pipeline_mode<synchronous>, transform_indices = @transform_66, window_bounds = array<i64: 64, 48>}, {pipeline_mode = #tpu.pipeline_mode<synchronous>, transform_indices = @transform_67, window_bounds = array<i64: 1, 48>}, {pipeline_mode = #tpu.pipeline_mode<synchronous>, transform_indices = @transform_68, window_bounds = array<i64: 1, 48>}, {pipeline_mode = #tpu.pipeline_mode<synchronous>, transform_indices = @transform_69, window_bounds = array<i64: 1, 48>}, {pipeline_mode = #tpu.pipeline_mode<synchronous>, transform_indices = @transform_70, window_bounds = array<i64: 48, 24>}, {pipeline_mode = #tpu.pipeline_mode<synchronous>, transform_indices = @transform_71, window_bounds = array<i64: 1, 24>}, {pipeline_mode = #tpu.pipeline_mode<synchronous>, transform_indices = @transform_72, window_bounds = array<i64: 1, 24>}, {pipeline_mode = #tpu.pipeline_mode<synchronous>, transform_indices = @transform_73, window_bounds = array<i64: 1, 24>}, {pipeline_mode = #tpu.pipeline_mode<synchronous>, transform_indices = @transform_74, window_bounds = array<i64: 24, 3>}, {pipeline_mode = #tpu.pipeline_mode<synchronous>, transform_indices = @transform_75, window_bounds = array<i64: 1, 3>}, {transform_indices = @transform_76, window_bounds = array<i64: 2, 64>}, {transform_indices = @transform_77, window_bounds = array<i64: 2, 3>}]} {
    %c0 = arith.constant 0 : index
    %c0_0 = arith.constant 0 : index
    %c0_1 = arith.constant 0 : index
    %0 = vector.load %arg1[%c0, %c0_0, %c0_1] : memref<2x16x48xf32, #tpu.memory_space<vmem>>, vector<2x16x48xf32>
    %1 = vector.shape_cast %0 : vector<2x16x48xf32> to vector<32x48xf32>
    %c0_2 = arith.constant 0 : index
    %c0_3 = arith.constant 0 : index
    %2 = vector.load %arg2[%c0_2, %c0_3] : memref<48x32xbf16, #tpu.memory_space<vmem>>, vector<48x32xbf16>
    %3 = arith.truncf %1 : vector<32x48xf32> to vector<32x48xbf16>
    %cst = arith.constant dense<0.000000e+00> : vector<32x32xf32>
    %4 = tpu.matmul %3, %2, %cst {dimension_numbers = #tpu.dot_dimension_numbers<[1], [0], [0], [1], [0, 0, 1, 1], [], []>} : vector<32x48xbf16>, vector<48x32xbf16>, vector<32x32xf32> -> vector<32x32xf32>
    %c0_4 = arith.constant 0 : index
    %c0_5 = arith.constant 0 : index
    %5 = vector.load %arg3[%c0_4, %c0_5] : memref<1x32xf32, #tpu.memory_space<vmem>>, vector<1x32xf32>
    %6 = vector.broadcast %5 : vector<1x32xf32> to vector<32x32xf32>
    %7 = arith.addf %4, %6 : vector<32x32xf32>
    %c0_6 = arith.constant 0 : index
    %c0_7 = arith.constant 0 : index
    %8 = vector.load %arg4[%c0_6, %c0_7] : memref<1x32xf32, #tpu.memory_space<vmem>>, vector<1x32xf32>
    %c0_8 = arith.constant 0 : index
    %c0_9 = arith.constant 0 : index
    %9 = vector.load %arg5[%c0_8, %c0_9] : memref<1x32xf32, #tpu.memory_space<vmem>>, vector<1x32xf32>
    %cst_10 = arith.constant dense<0.000000e+00> : vector<32xf32>
    %10 = vector.multi_reduction <add>, %7, %cst_10 [1] : vector<32x32xf32> to vector<32xf32>
    %11 = vector.shape_cast %10 : vector<32xf32> to vector<32x1xf32>
    %cst_11 = arith.constant 3.200000e+01 : f32
    %12 = vector.broadcast %cst_11 : f32 to vector<32x1xf32>
    %13 = arith.divf %11, %12 : vector<32x1xf32>
    %14 = vector.broadcast %13 : vector<32x1xf32> to vector<32x32xf32>
    %15 = arith.subf %7, %14 : vector<32x32xf32>
    %16 = arith.mulf %15, %15 : vector<32x32xf32>
    %cst_12 = arith.constant dense<0.000000e+00> : vector<32xf32>
    %17 = vector.multi_reduction <add>, %16, %cst_12 [1] : vector<32x32xf32> to vector<32xf32>
    %18 = vector.shape_cast %17 : vector<32xf32> to vector<32x1xf32>
    %cst_13 = arith.constant 3.200000e+01 : f32
    %19 = vector.broadcast %cst_13 : f32 to vector<32x1xf32>
    %20 = arith.divf %18, %19 : vector<32x1xf32>
    %cst_14 = arith.constant 9.99999974E-6 : f32
    %21 = vector.broadcast %cst_14 : f32 to vector<32x1xf32>
    %22 = arith.addf %20, %21 : vector<32x1xf32>
    %23 = math.rsqrt %22 : vector<32x1xf32>
    %24 = vector.broadcast %23 : vector<32x1xf32> to vector<32x32xf32>
    %25 = arith.mulf %15, %24 : vector<32x32xf32>
    %26 = vector.broadcast %8 : vector<1x32xf32> to vector<32x32xf32>
    %27 = arith.mulf %25, %26 : vector<32x32xf32>
    %28 = vector.broadcast %9 : vector<1x32xf32> to vector<32x32xf32>
    %29 = arith.addf %27, %28 : vector<32x32xf32>
    %c0_15 = arith.constant 0 : index
    %c0_16 = arith.constant 0 : index
    %30 = vector.load %arg6[%c0_15, %c0_16] : memref<1x32xf32, #tpu.memory_space<vmem>>, vector<1x32xf32>
    %c0_17 = arith.constant 0 : index
    %c0_18 = arith.constant 0 : index
    %31 = vector.load %arg7[%c0_17, %c0_18] : memref<1x32xf32, #tpu.memory_space<vmem>>, vector<1x32xf32>
    %cst_19 = arith.constant dense<0.000000e+00> : vector<32xf32>
    %32 = vector.multi_reduction <add>, %29, %cst_19 [1] : vector<32x32xf32> to vector<32xf32>
    %33 = vector.shape_cast %32 : vector<32xf32> to vector<32x1xf32>
    %cst_20 = arith.constant 3.200000e+01 : f32
    %34 = vector.broadcast %cst_20 : f32 to vector<32x1xf32>
    %35 = arith.divf %33, %34 : vector<32x1xf32>
    %36 = vector.broadcast %35 : vector<32x1xf32> to vector<32x32xf32>
    %37 = arith.subf %29, %36 : vector<32x32xf32>
    %38 = arith.mulf %37, %37 : vector<32x32xf32>
    %cst_21 = arith.constant dense<0.000000e+00> : vector<32xf32>
    %39 = vector.multi_reduction <add>, %38, %cst_21 [1] : vector<32x32xf32> to vector<32xf32>
    %40 = vector.shape_cast %39 : vector<32xf32> to vector<32x1xf32>
    %cst_22 = arith.constant 3.200000e+01 : f32
    %41 = vector.broadcast %cst_22 : f32 to vector<32x1xf32>
    %42 = arith.divf %40, %41 : vector<32x1xf32>
    %cst_23 = arith.constant 9.99999974E-6 : f32
    %43 = vector.broadcast %cst_23 : f32 to vector<32x1xf32>
    %44 = arith.addf %42, %43 : vector<32x1xf32>
    %45 = math.rsqrt %44 : vector<32x1xf32>
    %46 = vector.broadcast %45 : vector<32x1xf32> to vector<32x32xf32>
    %47 = arith.mulf %37, %46 : vector<32x32xf32>
    %48 = vector.broadcast %30 : vector<1x32xf32> to vector<32x32xf32>
    %49 = arith.mulf %47, %48 : vector<32x32xf32>
    %50 = vector.broadcast %31 : vector<1x32xf32> to vector<32x32xf32>
    %51 = arith.addf %49, %50 : vector<32x32xf32>
    %c0_24 = arith.constant 0 : index
    %c0_25 = arith.constant 0 : index
    %52 = vector.load %arg8[%c0_24, %c0_25] : memref<32x96xbf16, #tpu.memory_space<vmem>>, vector<32x96xbf16>
    %53 = arith.truncf %51 : vector<32x32xf32> to vector<32x32xbf16>
    %cst_26 = arith.constant dense<0.000000e+00> : vector<32x96xf32>
    %54 = tpu.matmul %53, %52, %cst_26 {dimension_numbers = #tpu.dot_dimension_numbers<[1], [0], [0], [1], [0, 0, 1, 1], [], []>} : vector<32x32xbf16>, vector<32x96xbf16>, vector<32x96xf32> -> vector<32x96xf32>
    %c0_27 = arith.constant 0 : index
    %c0_28 = arith.constant 0 : index
    %55 = vector.load %arg9[%c0_27, %c0_28] : memref<1x96xf32, #tpu.memory_space<vmem>>, vector<1x96xf32>
    %56 = vector.broadcast %55 : vector<1x96xf32> to vector<32x96xf32>
    %57 = arith.addf %54, %56 : vector<32x96xf32>
    %58 = vector.extract_strided_slice %57 {offsets = [0, 0], sizes = [32, 16], strides = [1, 1]} : vector<32x96xf32> to vector<32x16xf32>
    %59 = vector.shape_cast %58 : vector<32x16xf32> to vector<2x16x16xf32>
    %60 = vector.extract_strided_slice %57 {offsets = [0, 32], sizes = [32, 16], strides = [1, 1]} : vector<32x96xf32> to vector<32x16xf32>
    %61 = vector.shape_cast %60 : vector<32x16xf32> to vector<2x16x16xf32>
    %62 = vector.extract_strided_slice %57 {offsets = [0, 64], sizes = [32, 16], strides = [1, 1]} : vector<32x96xf32> to vector<32x16xf32>
    %63 = vector.shape_cast %62 : vector<32x16xf32> to vector<2x16x16xf32>
    %64 = arith.truncf %59 : vector<2x16x16xf32> to vector<2x16x16xbf16>
    %65 = arith.truncf %61 : vector<2x16x16xf32> to vector<2x16x16xbf16>
    %cst_29 = arith.constant dense<0.000000e+00> : vector<2x16x16xf32>
    %66 = tpu.matmul %64, %65, %cst_29 {dimension_numbers = #tpu.dot_dimension_numbers<[2], [2], [1], [1], [0, 0, 0, 1, 1, 1], [0], [0]>} : vector<2x16x16xbf16>, vector<2x16x16xbf16>, vector<2x16x16xf32> -> vector<2x16x16xf32>
    %c0_30 = arith.constant 0 : index
    %c0_31 = arith.constant 0 : index
    %c0_32 = arith.constant 0 : index
    %67 = vector.load %arg10[%c0_30, %c0_31, %c0_32] : memref<2x16x16xf32, #tpu.memory_space<vmem>>, vector<1x16x16xf32>
    %68 = vector.shape_cast %67 : vector<1x16x16xf32> to vector<16x16xf32>
    %69 = vector.shape_cast %68 : vector<16x16xf32> to vector<1x16x16xf32>
    %70 = vector.broadcast %69 : vector<1x16x16xf32> to vector<2x16x16xf32>
    %71 = arith.addf %66, %70 : vector<2x16x16xf32>
    %cst_33 = arith.constant dense<0xFF800000> : vector<2x16xf32>
    %72 = vector.multi_reduction <maximumf>, %71, %cst_33 [2] : vector<2x16x16xf32> to vector<2x16xf32>
    %73 = vector.shape_cast %72 : vector<2x16xf32> to vector<2x16x1xf32>
    %74 = vector.broadcast %73 : vector<2x16x1xf32> to vector<2x16x16xf32>
    %75 = arith.subf %71, %74 : vector<2x16x16xf32>
    %76 = math.exp %75 : vector<2x16x16xf32>
    %cst_34 = arith.constant dense<0.000000e+00> : vector<2x16xf32>
    %77 = vector.multi_reduction <add>, %76, %cst_34 [2] : vector<2x16x16xf32> to vector<2x16xf32>
    %78 = vector.shape_cast %77 : vector<2x16xf32> to vector<2x16x1xf32>
    %79 = tpu.reciprocal %78 {approx = true} : vector<2x16x1xf32> -> vector<2x16x1xf32>
    %80 = vector.broadcast %79 : vector<2x16x1xf32> to vector<2x16x16xf32>
    %81 = arith.mulf %76, %80 : vector<2x16x16xf32>
    %82 = arith.truncf %81 : vector<2x16x16xf32> to vector<2x16x16xbf16>
    %83 = arith.truncf %63 : vector<2x16x16xf32> to vector<2x16x16xbf16>
    %cst_35 = arith.constant dense<0.000000e+00> : vector<2x16x16xf32>
    %84 = tpu.matmul %82, %83, %cst_35 {dimension_numbers = #tpu.dot_dimension_numbers<[2], [1], [1], [2], [0, 0, 0, 1, 1, 2], [0], [0]>} : vector<2x16x16xbf16>, vector<2x16x16xbf16>, vector<2x16x16xf32> -> vector<2x16x16xf32>
    %85 = vector.shape_cast %84 : vector<2x16x16xf32> to vector<32x16xf32>
    %86 = vector.extract_strided_slice %57 {offsets = [0, 16], sizes = [32, 16], strides = [1, 1]} : vector<32x96xf32> to vector<32x16xf32>
    %87 = vector.shape_cast %86 : vector<32x16xf32> to vector<2x16x16xf32>
    %88 = vector.extract_strided_slice %57 {offsets = [0, 48], sizes = [32, 16], strides = [1, 1]} : vector<32x96xf32> to vector<32x16xf32>
    %89 = vector.shape_cast %88 : vector<32x16xf32> to vector<2x16x16xf32>
    %90 = vector.extract_strided_slice %57 {offsets = [0, 80], sizes = [32, 16], strides = [1, 1]} : vector<32x96xf32> to vector<32x16xf32>
    %91 = vector.shape_cast %90 : vector<32x16xf32> to vector<2x16x16xf32>
    %92 = arith.truncf %87 : vector<2x16x16xf32> to vector<2x16x16xbf16>
    %93 = arith.truncf %89 : vector<2x16x16xf32> to vector<2x16x16xbf16>
    %cst_36 = arith.constant dense<0.000000e+00> : vector<2x16x16xf32>
    %94 = tpu.matmul %92, %93, %cst_36 {dimension_numbers = #tpu.dot_dimension_numbers<[2], [2], [1], [1], [0, 0, 0, 1, 1, 1], [0], [0]>} : vector<2x16x16xbf16>, vector<2x16x16xbf16>, vector<2x16x16xf32> -> vector<2x16x16xf32>
    %c1 = arith.constant 1 : index
    %c0_37 = arith.constant 0 : index
    %c0_38 = arith.constant 0 : index
    %95 = vector.load %arg10[%c1, %c0_37, %c0_38] : memref<2x16x16xf32, #tpu.memory_space<vmem>>, vector<1x16x16xf32>
    %96 = vector.shape_cast %95 : vector<1x16x16xf32> to vector<16x16xf32>
    %97 = vector.shape_cast %96 : vector<16x16xf32> to vector<1x16x16xf32>
    %98 = vector.broadcast %97 : vector<1x16x16xf32> to vector<2x16x16xf32>
    %99 = arith.addf %94, %98 : vector<2x16x16xf32>
    %cst_39 = arith.constant dense<0xFF800000> : vector<2x16xf32>
    %100 = vector.multi_reduction <maximumf>, %99, %cst_39 [2] : vector<2x16x16xf32> to vector<2x16xf32>
    %101 = vector.shape_cast %100 : vector<2x16xf32> to vector<2x16x1xf32>
    %102 = vector.broadcast %101 : vector<2x16x1xf32> to vector<2x16x16xf32>
    %103 = arith.subf %99, %102 : vector<2x16x16xf32>
    %104 = math.exp %103 : vector<2x16x16xf32>
    %cst_40 = arith.constant dense<0.000000e+00> : vector<2x16xf32>
    %105 = vector.multi_reduction <add>, %104, %cst_40 [2] : vector<2x16x16xf32> to vector<2x16xf32>
    %106 = vector.shape_cast %105 : vector<2x16xf32> to vector<2x16x1xf32>
    %107 = tpu.reciprocal %106 {approx = true} : vector<2x16x1xf32> -> vector<2x16x1xf32>
    %108 = vector.broadcast %107 : vector<2x16x1xf32> to vector<2x16x16xf32>
    %109 = arith.mulf %104, %108 : vector<2x16x16xf32>
    %110 = arith.truncf %109 : vector<2x16x16xf32> to vector<2x16x16xbf16>
    %111 = arith.truncf %91 : vector<2x16x16xf32> to vector<2x16x16xbf16>
    %cst_41 = arith.constant dense<0.000000e+00> : vector<2x16x16xf32>
    %112 = tpu.matmul %110, %111, %cst_41 {dimension_numbers = #tpu.dot_dimension_numbers<[2], [1], [1], [2], [0, 0, 0, 1, 1, 2], [0], [0]>} : vector<2x16x16xbf16>, vector<2x16x16xbf16>, vector<2x16x16xf32> -> vector<2x16x16xf32>
    %113 = vector.shape_cast %112 : vector<2x16x16xf32> to vector<32x16xf32>
    %114 = tpu.concatenate %85, %113 in 1 : vector<32x16xf32>, vector<32x16xf32> -> vector<32x32xf32>
    %c0_42 = arith.constant 0 : index
    %c0_43 = arith.constant 0 : index
    %115 = vector.load %arg11[%c0_42, %c0_43] : memref<32x32xbf16, #tpu.memory_space<vmem>>, vector<32x32xbf16>
    %116 = arith.truncf %114 : vector<32x32xf32> to vector<32x32xbf16>
    %cst_44 = arith.constant dense<0.000000e+00> : vector<32x32xf32>
    %117 = tpu.matmul %116, %115, %cst_44 {dimension_numbers = #tpu.dot_dimension_numbers<[1], [0], [0], [1], [0, 0, 1, 1], [], []>} : vector<32x32xbf16>, vector<32x32xbf16>, vector<32x32xf32> -> vector<32x32xf32>
    %118 = arith.addf %29, %117 : vector<32x32xf32>
    %c0_45 = arith.constant 0 : index
    %c0_46 = arith.constant 0 : index
    %119 = vector.load %arg12[%c0_45, %c0_46] : memref<1x32xf32, #tpu.memory_space<vmem>>, vector<1x32xf32>
    %120 = vector.broadcast %119 : vector<1x32xf32> to vector<32x32xf32>
    %121 = arith.addf %118, %120 : vector<32x32xf32>
    %c0_47 = arith.constant 0 : index
    %c0_48 = arith.constant 0 : index
    %122 = vector.load %arg13[%c0_47, %c0_48] : memref<1x32xf32, #tpu.memory_space<vmem>>, vector<1x32xf32>
    %c0_49 = arith.constant 0 : index
    %c0_50 = arith.constant 0 : index
    %123 = vector.load %arg14[%c0_49, %c0_50] : memref<1x32xf32, #tpu.memory_space<vmem>>, vector<1x32xf32>
    %cst_51 = arith.constant dense<0.000000e+00> : vector<32xf32>
    %124 = vector.multi_reduction <add>, %121, %cst_51 [1] : vector<32x32xf32> to vector<32xf32>
    %125 = vector.shape_cast %124 : vector<32xf32> to vector<32x1xf32>
    %cst_52 = arith.constant 3.200000e+01 : f32
    %126 = vector.broadcast %cst_52 : f32 to vector<32x1xf32>
    %127 = arith.divf %125, %126 : vector<32x1xf32>
    %128 = vector.broadcast %127 : vector<32x1xf32> to vector<32x32xf32>
    %129 = arith.subf %121, %128 : vector<32x32xf32>
    %130 = arith.mulf %129, %129 : vector<32x32xf32>
    %cst_53 = arith.constant dense<0.000000e+00> : vector<32xf32>
    %131 = vector.multi_reduction <add>, %130, %cst_53 [1] : vector<32x32xf32> to vector<32xf32>
    %132 = vector.shape_cast %131 : vector<32xf32> to vector<32x1xf32>
    %cst_54 = arith.constant 3.200000e+01 : f32
    %133 = vector.broadcast %cst_54 : f32 to vector<32x1xf32>
    %134 = arith.divf %132, %133 : vector<32x1xf32>
    %cst_55 = arith.constant 9.99999974E-6 : f32
    %135 = vector.broadcast %cst_55 : f32 to vector<32x1xf32>
    %136 = arith.addf %134, %135 : vector<32x1xf32>
    %137 = math.rsqrt %136 : vector<32x1xf32>
    %138 = vector.broadcast %137 : vector<32x1xf32> to vector<32x32xf32>
    %139 = arith.mulf %129, %138 : vector<32x32xf32>
    %140 = vector.broadcast %122 : vector<1x32xf32> to vector<32x32xf32>
    %141 = arith.mulf %139, %140 : vector<32x32xf32>
    %142 = vector.broadcast %123 : vector<1x32xf32> to vector<32x32xf32>
    %143 = arith.addf %141, %142 : vector<32x32xf32>
    %c0_56 = arith.constant 0 : index
    %c0_57 = arith.constant 0 : index
    %144 = vector.load %arg15[%c0_56, %c0_57] : memref<32x128xbf16, #tpu.memory_space<vmem>>, vector<32x128xbf16>
    %145 = arith.truncf %143 : vector<32x32xf32> to vector<32x32xbf16>
    %cst_58 = arith.constant dense<0.000000e+00> : vector<32x128xf32>
    %146 = tpu.matmul %145, %144, %cst_58 {dimension_numbers = #tpu.dot_dimension_numbers<[1], [0], [0], [1], [0, 0, 1, 1], [], []>} : vector<32x32xbf16>, vector<32x128xbf16>, vector<32x128xf32> -> vector<32x128xf32>
    %c0_59 = arith.constant 0 : index
    %c0_60 = arith.constant 0 : index
    %147 = vector.load %arg16[%c0_59, %c0_60] : memref<1x128xf32, #tpu.memory_space<vmem>>, vector<1x128xf32>
    %148 = vector.broadcast %147 : vector<1x128xf32> to vector<32x128xf32>
    %149 = arith.addf %146, %148 : vector<32x128xf32>
    %cst_61 = arith.constant 5.000000e-01 : f32
    %150 = vector.broadcast %cst_61 : f32 to vector<32x128xf32>
    %151 = arith.mulf %150, %149 : vector<32x128xf32>
    %cst_62 = arith.constant 0.707106769 : f32
    %152 = vector.broadcast %cst_62 : f32 to vector<32x128xf32>
    %153 = arith.mulf %149, %152 : vector<32x128xf32>
    %cst_63 = arith.constant 0.000000e+00 : f32
    %154 = vector.broadcast %cst_63 : f32 to vector<32x128xf32>
    %155 = arith.cmpf oge, %153, %154 : vector<32x128xf32>
    %cst_64 = arith.constant 1.000000e+00 : f32
    %cst_65 = arith.constant -1.000000e+00 : f32
    %156 = vector.broadcast %cst_64 : f32 to vector<32x128xf32>
    %157 = vector.broadcast %cst_65 : f32 to vector<32x128xf32>
    %158 = arith.select %155, %156, %157 : vector<32x128xi1>, vector<32x128xf32>
    %159 = math.absf %153 : vector<32x128xf32>
    %cst_66 = arith.constant 0.327591091 : f32
    %160 = vector.broadcast %cst_66 : f32 to vector<32x128xf32>
    %161 = arith.mulf %160, %159 : vector<32x128xf32>
    %cst_67 = arith.constant 1.000000e+00 : f32
    %162 = vector.broadcast %cst_67 : f32 to vector<32x128xf32>
    %163 = arith.addf %162, %161 : vector<32x128xf32>
    %cst_68 = arith.constant 1.000000e+00 : f32
    %164 = vector.broadcast %cst_68 : f32 to vector<32x128xf32>
    %165 = arith.divf %164, %163 : vector<32x128xf32>
    %cst_69 = arith.constant 1.06140542 : f32
    %166 = vector.broadcast %cst_69 : f32 to vector<32x128xf32>
    %167 = arith.mulf %166, %165 : vector<32x128xf32>
    %cst_70 = arith.constant -1.45315206 : f32
    %168 = vector.broadcast %cst_70 : f32 to vector<32x128xf32>
    %169 = arith.addf %167, %168 : vector<32x128xf32>
    %170 = arith.mulf %169, %165 : vector<32x128xf32>
    %cst_71 = arith.constant 1.42141378 : f32
    %171 = vector.broadcast %cst_71 : f32 to vector<32x128xf32>
    %172 = arith.addf %170, %171 : vector<32x128xf32>
    %173 = arith.mulf %172, %165 : vector<32x128xf32>
    %cst_72 = arith.constant -0.284496725 : f32
    %174 = vector.broadcast %cst_72 : f32 to vector<32x128xf32>
    %175 = arith.addf %173, %174 : vector<32x128xf32>
    %176 = arith.mulf %175, %165 : vector<32x128xf32>
    %cst_73 = arith.constant 0.254829586 : f32
    %177 = vector.broadcast %cst_73 : f32 to vector<32x128xf32>
    %178 = arith.addf %176, %177 : vector<32x128xf32>
    %179 = arith.mulf %178, %165 : vector<32x128xf32>
    %cst_74 = arith.constant 0.000000e+00 : f32
    %180 = vector.broadcast %cst_74 : f32 to vector<32x128xf32>
    %181 = arith.subf %180, %159 : vector<32x128xf32>
    %182 = arith.mulf %181, %159 : vector<32x128xf32>
    %183 = math.exp %182 : vector<32x128xf32>
    %184 = arith.mulf %179, %183 : vector<32x128xf32>
    %cst_75 = arith.constant 1.000000e+00 : f32
    %185 = vector.broadcast %cst_75 : f32 to vector<32x128xf32>
    %186 = arith.subf %185, %184 : vector<32x128xf32>
    %187 = arith.mulf %158, %186 : vector<32x128xf32>
    %cst_76 = arith.constant 1.000000e+00 : f32
    %188 = vector.broadcast %cst_76 : f32 to vector<32x128xf32>
    %189 = arith.addf %188, %187 : vector<32x128xf32>
    %190 = arith.mulf %151, %189 : vector<32x128xf32>
    %c0_77 = arith.constant 0 : index
    %c0_78 = arith.constant 0 : index
    %191 = vector.load %arg17[%c0_77, %c0_78] : memref<128x32xbf16, #tpu.memory_space<vmem>>, vector<128x32xbf16>
    %192 = arith.truncf %190 : vector<32x128xf32> to vector<32x128xbf16>
    %cst_79 = arith.constant dense<0.000000e+00> : vector<32x32xf32>
    %193 = tpu.matmul %192, %191, %cst_79 {dimension_numbers = #tpu.dot_dimension_numbers<[1], [0], [0], [1], [0, 0, 1, 1], [], []>} : vector<32x128xbf16>, vector<128x32xbf16>, vector<32x32xf32> -> vector<32x32xf32>
    %194 = arith.addf %121, %193 : vector<32x32xf32>
    %c0_80 = arith.constant 0 : index
    %c0_81 = arith.constant 0 : index
    %195 = vector.load %arg18[%c0_80, %c0_81] : memref<1x32xf32, #tpu.memory_space<vmem>>, vector<1x32xf32>
    %196 = vector.broadcast %195 : vector<1x32xf32> to vector<32x32xf32>
    %197 = arith.addf %194, %196 : vector<32x32xf32>
    %c0_82 = arith.constant 0 : index
    %c0_83 = arith.constant 0 : index
    %198 = vector.load %arg19[%c0_82, %c0_83] : memref<1x32xf32, #tpu.memory_space<vmem>>, vector<1x32xf32>
    %c0_84 = arith.constant 0 : index
    %c0_85 = arith.constant 0 : index
    %199 = vector.load %arg20[%c0_84, %c0_85] : memref<1x32xf32, #tpu.memory_space<vmem>>, vector<1x32xf32>
    %cst_86 = arith.constant dense<0.000000e+00> : vector<32xf32>
    %200 = vector.multi_reduction <add>, %197, %cst_86 [1] : vector<32x32xf32> to vector<32xf32>
    %201 = vector.shape_cast %200 : vector<32xf32> to vector<32x1xf32>
    %cst_87 = arith.constant 3.200000e+01 : f32
    %202 = vector.broadcast %cst_87 : f32 to vector<32x1xf32>
    %203 = arith.divf %201, %202 : vector<32x1xf32>
    %204 = vector.broadcast %203 : vector<32x1xf32> to vector<32x32xf32>
    %205 = arith.subf %197, %204 : vector<32x32xf32>
    %206 = arith.mulf %205, %205 : vector<32x32xf32>
    %cst_88 = arith.constant dense<0.000000e+00> : vector<32xf32>
    %207 = vector.multi_reduction <add>, %206, %cst_88 [1] : vector<32x32xf32> to vector<32xf32>
    %208 = vector.shape_cast %207 : vector<32xf32> to vector<32x1xf32>
    %cst_89 = arith.constant 3.200000e+01 : f32
    %209 = vector.broadcast %cst_89 : f32 to vector<32x1xf32>
    %210 = arith.divf %208, %209 : vector<32x1xf32>
    %cst_90 = arith.constant 9.99999974E-6 : f32
    %211 = vector.broadcast %cst_90 : f32 to vector<32x1xf32>
    %212 = arith.addf %210, %211 : vector<32x1xf32>
    %213 = math.rsqrt %212 : vector<32x1xf32>
    %214 = vector.broadcast %213 : vector<32x1xf32> to vector<32x32xf32>
    %215 = arith.mulf %205, %214 : vector<32x32xf32>
    %216 = vector.broadcast %198 : vector<1x32xf32> to vector<32x32xf32>
    %217 = arith.mulf %215, %216 : vector<32x32xf32>
    %218 = vector.broadcast %199 : vector<1x32xf32> to vector<32x32xf32>
    %219 = arith.addf %217, %218 : vector<32x32xf32>
    %c0_91 = arith.constant 0 : index
    %c0_92 = arith.constant 0 : index
    %220 = vector.load %arg21[%c0_91, %c0_92] : memref<32x96xbf16, #tpu.memory_space<vmem>>, vector<32x96xbf16>
    %221 = arith.truncf %219 : vector<32x32xf32> to vector<32x32xbf16>
    %cst_93 = arith.constant dense<0.000000e+00> : vector<32x96xf32>
    %222 = tpu.matmul %221, %220, %cst_93 {dimension_numbers = #tpu.dot_dimension_numbers<[1], [0], [0], [1], [0, 0, 1, 1], [], []>} : vector<32x32xbf16>, vector<32x96xbf16>, vector<32x96xf32> -> vector<32x96xf32>
    %c0_94 = arith.constant 0 : index
    %c0_95 = arith.constant 0 : index
    %223 = vector.load %arg22[%c0_94, %c0_95] : memref<1x96xf32, #tpu.memory_space<vmem>>, vector<1x96xf32>
    %224 = vector.broadcast %223 : vector<1x96xf32> to vector<32x96xf32>
    %225 = arith.addf %222, %224 : vector<32x96xf32>
    %226 = vector.extract_strided_slice %225 {offsets = [0, 0], sizes = [32, 16], strides = [1, 1]} : vector<32x96xf32> to vector<32x16xf32>
    %227 = vector.shape_cast %226 : vector<32x16xf32> to vector<2x16x16xf32>
    %228 = vector.extract_strided_slice %225 {offsets = [0, 32], sizes = [32, 16], strides = [1, 1]} : vector<32x96xf32> to vector<32x16xf32>
    %229 = vector.shape_cast %228 : vector<32x16xf32> to vector<2x16x16xf32>
    %230 = vector.extract_strided_slice %225 {offsets = [0, 64], sizes = [32, 16], strides = [1, 1]} : vector<32x96xf32> to vector<32x16xf32>
    %231 = vector.shape_cast %230 : vector<32x16xf32> to vector<2x16x16xf32>
    %232 = arith.truncf %227 : vector<2x16x16xf32> to vector<2x16x16xbf16>
    %233 = arith.truncf %229 : vector<2x16x16xf32> to vector<2x16x16xbf16>
    %cst_96 = arith.constant dense<0.000000e+00> : vector<2x16x16xf32>
    %234 = tpu.matmul %232, %233, %cst_96 {dimension_numbers = #tpu.dot_dimension_numbers<[2], [2], [1], [1], [0, 0, 0, 1, 1, 1], [0], [0]>} : vector<2x16x16xbf16>, vector<2x16x16xbf16>, vector<2x16x16xf32> -> vector<2x16x16xf32>
    %c0_97 = arith.constant 0 : index
    %c0_98 = arith.constant 0 : index
    %c0_99 = arith.constant 0 : index
    %235 = vector.load %arg23[%c0_97, %c0_98, %c0_99] : memref<2x16x16xf32, #tpu.memory_space<vmem>>, vector<1x16x16xf32>
    %236 = vector.shape_cast %235 : vector<1x16x16xf32> to vector<16x16xf32>
    %237 = vector.shape_cast %236 : vector<16x16xf32> to vector<1x16x16xf32>
    %238 = vector.broadcast %237 : vector<1x16x16xf32> to vector<2x16x16xf32>
    %239 = arith.addf %234, %238 : vector<2x16x16xf32>
    %cst_100 = arith.constant dense<0xFF800000> : vector<2x16xf32>
    %240 = vector.multi_reduction <maximumf>, %239, %cst_100 [2] : vector<2x16x16xf32> to vector<2x16xf32>
    %241 = vector.shape_cast %240 : vector<2x16xf32> to vector<2x16x1xf32>
    %242 = vector.broadcast %241 : vector<2x16x1xf32> to vector<2x16x16xf32>
    %243 = arith.subf %239, %242 : vector<2x16x16xf32>
    %244 = math.exp %243 : vector<2x16x16xf32>
    %cst_101 = arith.constant dense<0.000000e+00> : vector<2x16xf32>
    %245 = vector.multi_reduction <add>, %244, %cst_101 [2] : vector<2x16x16xf32> to vector<2x16xf32>
    %246 = vector.shape_cast %245 : vector<2x16xf32> to vector<2x16x1xf32>
    %247 = tpu.reciprocal %246 {approx = true} : vector<2x16x1xf32> -> vector<2x16x1xf32>
    %248 = vector.broadcast %247 : vector<2x16x1xf32> to vector<2x16x16xf32>
    %249 = arith.mulf %244, %248 : vector<2x16x16xf32>
    %250 = arith.truncf %249 : vector<2x16x16xf32> to vector<2x16x16xbf16>
    %251 = arith.truncf %231 : vector<2x16x16xf32> to vector<2x16x16xbf16>
    %cst_102 = arith.constant dense<0.000000e+00> : vector<2x16x16xf32>
    %252 = tpu.matmul %250, %251, %cst_102 {dimension_numbers = #tpu.dot_dimension_numbers<[2], [1], [1], [2], [0, 0, 0, 1, 1, 2], [0], [0]>} : vector<2x16x16xbf16>, vector<2x16x16xbf16>, vector<2x16x16xf32> -> vector<2x16x16xf32>
    %253 = vector.shape_cast %252 : vector<2x16x16xf32> to vector<32x16xf32>
    %254 = vector.extract_strided_slice %225 {offsets = [0, 16], sizes = [32, 16], strides = [1, 1]} : vector<32x96xf32> to vector<32x16xf32>
    %255 = vector.shape_cast %254 : vector<32x16xf32> to vector<2x16x16xf32>
    %256 = vector.extract_strided_slice %225 {offsets = [0, 48], sizes = [32, 16], strides = [1, 1]} : vector<32x96xf32> to vector<32x16xf32>
    %257 = vector.shape_cast %256 : vector<32x16xf32> to vector<2x16x16xf32>
    %258 = vector.extract_strided_slice %225 {offsets = [0, 80], sizes = [32, 16], strides = [1, 1]} : vector<32x96xf32> to vector<32x16xf32>
    %259 = vector.shape_cast %258 : vector<32x16xf32> to vector<2x16x16xf32>
    %260 = arith.truncf %255 : vector<2x16x16xf32> to vector<2x16x16xbf16>
    %261 = arith.truncf %257 : vector<2x16x16xf32> to vector<2x16x16xbf16>
    %cst_103 = arith.constant dense<0.000000e+00> : vector<2x16x16xf32>
    %262 = tpu.matmul %260, %261, %cst_103 {dimension_numbers = #tpu.dot_dimension_numbers<[2], [2], [1], [1], [0, 0, 0, 1, 1, 1], [0], [0]>} : vector<2x16x16xbf16>, vector<2x16x16xbf16>, vector<2x16x16xf32> -> vector<2x16x16xf32>
    %c1_104 = arith.constant 1 : index
    %c0_105 = arith.constant 0 : index
    %c0_106 = arith.constant 0 : index
    %263 = vector.load %arg23[%c1_104, %c0_105, %c0_106] : memref<2x16x16xf32, #tpu.memory_space<vmem>>, vector<1x16x16xf32>
    %264 = vector.shape_cast %263 : vector<1x16x16xf32> to vector<16x16xf32>
    %265 = vector.shape_cast %264 : vector<16x16xf32> to vector<1x16x16xf32>
    %266 = vector.broadcast %265 : vector<1x16x16xf32> to vector<2x16x16xf32>
    %267 = arith.addf %262, %266 : vector<2x16x16xf32>
    %cst_107 = arith.constant dense<0xFF800000> : vector<2x16xf32>
    %268 = vector.multi_reduction <maximumf>, %267, %cst_107 [2] : vector<2x16x16xf32> to vector<2x16xf32>
    %269 = vector.shape_cast %268 : vector<2x16xf32> to vector<2x16x1xf32>
    %270 = vector.broadcast %269 : vector<2x16x1xf32> to vector<2x16x16xf32>
    %271 = arith.subf %267, %270 : vector<2x16x16xf32>
    %272 = math.exp %271 : vector<2x16x16xf32>
    %cst_108 = arith.constant dense<0.000000e+00> : vector<2x16xf32>
    %273 = vector.multi_reduction <add>, %272, %cst_108 [2] : vector<2x16x16xf32> to vector<2x16xf32>
    %274 = vector.shape_cast %273 : vector<2x16xf32> to vector<2x16x1xf32>
    %275 = tpu.reciprocal %274 {approx = true} : vector<2x16x1xf32> -> vector<2x16x1xf32>
    %276 = vector.broadcast %275 : vector<2x16x1xf32> to vector<2x16x16xf32>
    %277 = arith.mulf %272, %276 : vector<2x16x16xf32>
    %278 = arith.truncf %277 : vector<2x16x16xf32> to vector<2x16x16xbf16>
    %279 = arith.truncf %259 : vector<2x16x16xf32> to vector<2x16x16xbf16>
    %cst_109 = arith.constant dense<0.000000e+00> : vector<2x16x16xf32>
    %280 = tpu.matmul %278, %279, %cst_109 {dimension_numbers = #tpu.dot_dimension_numbers<[2], [1], [1], [2], [0, 0, 0, 1, 1, 2], [0], [0]>} : vector<2x16x16xbf16>, vector<2x16x16xbf16>, vector<2x16x16xf32> -> vector<2x16x16xf32>
    %281 = vector.shape_cast %280 : vector<2x16x16xf32> to vector<32x16xf32>
    %282 = tpu.concatenate %253, %281 in 1 : vector<32x16xf32>, vector<32x16xf32> -> vector<32x32xf32>
    %c0_110 = arith.constant 0 : index
    %c0_111 = arith.constant 0 : index
    %283 = vector.load %arg24[%c0_110, %c0_111] : memref<32x32xbf16, #tpu.memory_space<vmem>>, vector<32x32xbf16>
    %284 = arith.truncf %282 : vector<32x32xf32> to vector<32x32xbf16>
    %cst_112 = arith.constant dense<0.000000e+00> : vector<32x32xf32>
    %285 = tpu.matmul %284, %283, %cst_112 {dimension_numbers = #tpu.dot_dimension_numbers<[1], [0], [0], [1], [0, 0, 1, 1], [], []>} : vector<32x32xbf16>, vector<32x32xbf16>, vector<32x32xf32> -> vector<32x32xf32>
    %286 = arith.addf %197, %285 : vector<32x32xf32>
    %c0_113 = arith.constant 0 : index
    %c0_114 = arith.constant 0 : index
    %287 = vector.load %arg25[%c0_113, %c0_114] : memref<1x32xf32, #tpu.memory_space<vmem>>, vector<1x32xf32>
    %288 = vector.broadcast %287 : vector<1x32xf32> to vector<32x32xf32>
    %289 = arith.addf %286, %288 : vector<32x32xf32>
    %c0_115 = arith.constant 0 : index
    %c0_116 = arith.constant 0 : index
    %290 = vector.load %arg26[%c0_115, %c0_116] : memref<1x32xf32, #tpu.memory_space<vmem>>, vector<1x32xf32>
    %c0_117 = arith.constant 0 : index
    %c0_118 = arith.constant 0 : index
    %291 = vector.load %arg27[%c0_117, %c0_118] : memref<1x32xf32, #tpu.memory_space<vmem>>, vector<1x32xf32>
    %cst_119 = arith.constant dense<0.000000e+00> : vector<32xf32>
    %292 = vector.multi_reduction <add>, %289, %cst_119 [1] : vector<32x32xf32> to vector<32xf32>
    %293 = vector.shape_cast %292 : vector<32xf32> to vector<32x1xf32>
    %cst_120 = arith.constant 3.200000e+01 : f32
    %294 = vector.broadcast %cst_120 : f32 to vector<32x1xf32>
    %295 = arith.divf %293, %294 : vector<32x1xf32>
    %296 = vector.broadcast %295 : vector<32x1xf32> to vector<32x32xf32>
    %297 = arith.subf %289, %296 : vector<32x32xf32>
    %298 = arith.mulf %297, %297 : vector<32x32xf32>
    %cst_121 = arith.constant dense<0.000000e+00> : vector<32xf32>
    %299 = vector.multi_reduction <add>, %298, %cst_121 [1] : vector<32x32xf32> to vector<32xf32>
    %300 = vector.shape_cast %299 : vector<32xf32> to vector<32x1xf32>
    %cst_122 = arith.constant 3.200000e+01 : f32
    %301 = vector.broadcast %cst_122 : f32 to vector<32x1xf32>
    %302 = arith.divf %300, %301 : vector<32x1xf32>
    %cst_123 = arith.constant 9.99999974E-6 : f32
    %303 = vector.broadcast %cst_123 : f32 to vector<32x1xf32>
    %304 = arith.addf %302, %303 : vector<32x1xf32>
    %305 = math.rsqrt %304 : vector<32x1xf32>
    %306 = vector.broadcast %305 : vector<32x1xf32> to vector<32x32xf32>
    %307 = arith.mulf %297, %306 : vector<32x32xf32>
    %308 = vector.broadcast %290 : vector<1x32xf32> to vector<32x32xf32>
    %309 = arith.mulf %307, %308 : vector<32x32xf32>
    %310 = vector.broadcast %291 : vector<1x32xf32> to vector<32x32xf32>
    %311 = arith.addf %309, %310 : vector<32x32xf32>
    %c0_124 = arith.constant 0 : index
    %c0_125 = arith.constant 0 : index
    %312 = vector.load %arg28[%c0_124, %c0_125] : memref<32x128xbf16, #tpu.memory_space<vmem>>, vector<32x128xbf16>
    %313 = arith.truncf %311 : vector<32x32xf32> to vector<32x32xbf16>
    %cst_126 = arith.constant dense<0.000000e+00> : vector<32x128xf32>
    %314 = tpu.matmul %313, %312, %cst_126 {dimension_numbers = #tpu.dot_dimension_numbers<[1], [0], [0], [1], [0, 0, 1, 1], [], []>} : vector<32x32xbf16>, vector<32x128xbf16>, vector<32x128xf32> -> vector<32x128xf32>
    %c0_127 = arith.constant 0 : index
    %c0_128 = arith.constant 0 : index
    %315 = vector.load %arg29[%c0_127, %c0_128] : memref<1x128xf32, #tpu.memory_space<vmem>>, vector<1x128xf32>
    %316 = vector.broadcast %315 : vector<1x128xf32> to vector<32x128xf32>
    %317 = arith.addf %314, %316 : vector<32x128xf32>
    %cst_129 = arith.constant 5.000000e-01 : f32
    %318 = vector.broadcast %cst_129 : f32 to vector<32x128xf32>
    %319 = arith.mulf %318, %317 : vector<32x128xf32>
    %cst_130 = arith.constant 0.707106769 : f32
    %320 = vector.broadcast %cst_130 : f32 to vector<32x128xf32>
    %321 = arith.mulf %317, %320 : vector<32x128xf32>
    %cst_131 = arith.constant 0.000000e+00 : f32
    %322 = vector.broadcast %cst_131 : f32 to vector<32x128xf32>
    %323 = arith.cmpf oge, %321, %322 : vector<32x128xf32>
    %cst_132 = arith.constant 1.000000e+00 : f32
    %cst_133 = arith.constant -1.000000e+00 : f32
    %324 = vector.broadcast %cst_132 : f32 to vector<32x128xf32>
    %325 = vector.broadcast %cst_133 : f32 to vector<32x128xf32>
    %326 = arith.select %323, %324, %325 : vector<32x128xi1>, vector<32x128xf32>
    %327 = math.absf %321 : vector<32x128xf32>
    %cst_134 = arith.constant 0.327591091 : f32
    %328 = vector.broadcast %cst_134 : f32 to vector<32x128xf32>
    %329 = arith.mulf %328, %327 : vector<32x128xf32>
    %cst_135 = arith.constant 1.000000e+00 : f32
    %330 = vector.broadcast %cst_135 : f32 to vector<32x128xf32>
    %331 = arith.addf %330, %329 : vector<32x128xf32>
    %cst_136 = arith.constant 1.000000e+00 : f32
    %332 = vector.broadcast %cst_136 : f32 to vector<32x128xf32>
    %333 = arith.divf %332, %331 : vector<32x128xf32>
    %cst_137 = arith.constant 1.06140542 : f32
    %334 = vector.broadcast %cst_137 : f32 to vector<32x128xf32>
    %335 = arith.mulf %334, %333 : vector<32x128xf32>
    %cst_138 = arith.constant -1.45315206 : f32
    %336 = vector.broadcast %cst_138 : f32 to vector<32x128xf32>
    %337 = arith.addf %335, %336 : vector<32x128xf32>
    %338 = arith.mulf %337, %333 : vector<32x128xf32>
    %cst_139 = arith.constant 1.42141378 : f32
    %339 = vector.broadcast %cst_139 : f32 to vector<32x128xf32>
    %340 = arith.addf %338, %339 : vector<32x128xf32>
    %341 = arith.mulf %340, %333 : vector<32x128xf32>
    %cst_140 = arith.constant -0.284496725 : f32
    %342 = vector.broadcast %cst_140 : f32 to vector<32x128xf32>
    %343 = arith.addf %341, %342 : vector<32x128xf32>
    %344 = arith.mulf %343, %333 : vector<32x128xf32>
    %cst_141 = arith.constant 0.254829586 : f32
    %345 = vector.broadcast %cst_141 : f32 to vector<32x128xf32>
    %346 = arith.addf %344, %345 : vector<32x128xf32>
    %347 = arith.mulf %346, %333 : vector<32x128xf32>
    %cst_142 = arith.constant 0.000000e+00 : f32
    %348 = vector.broadcast %cst_142 : f32 to vector<32x128xf32>
    %349 = arith.subf %348, %327 : vector<32x128xf32>
    %350 = arith.mulf %349, %327 : vector<32x128xf32>
    %351 = math.exp %350 : vector<32x128xf32>
    %352 = arith.mulf %347, %351 : vector<32x128xf32>
    %cst_143 = arith.constant 1.000000e+00 : f32
    %353 = vector.broadcast %cst_143 : f32 to vector<32x128xf32>
    %354 = arith.subf %353, %352 : vector<32x128xf32>
    %355 = arith.mulf %326, %354 : vector<32x128xf32>
    %cst_144 = arith.constant 1.000000e+00 : f32
    %356 = vector.broadcast %cst_144 : f32 to vector<32x128xf32>
    %357 = arith.addf %356, %355 : vector<32x128xf32>
    %358 = arith.mulf %319, %357 : vector<32x128xf32>
    %c0_145 = arith.constant 0 : index
    %c0_146 = arith.constant 0 : index
    %359 = vector.load %arg30[%c0_145, %c0_146] : memref<128x32xbf16, #tpu.memory_space<vmem>>, vector<128x32xbf16>
    %360 = arith.truncf %358 : vector<32x128xf32> to vector<32x128xbf16>
    %cst_147 = arith.constant dense<0.000000e+00> : vector<32x32xf32>
    %361 = tpu.matmul %360, %359, %cst_147 {dimension_numbers = #tpu.dot_dimension_numbers<[1], [0], [0], [1], [0, 0, 1, 1], [], []>} : vector<32x128xbf16>, vector<128x32xbf16>, vector<32x32xf32> -> vector<32x32xf32>
    %362 = arith.addf %289, %361 : vector<32x32xf32>
    %c0_148 = arith.constant 0 : index
    %c0_149 = arith.constant 0 : index
    %363 = vector.load %arg31[%c0_148, %c0_149] : memref<1x32xf32, #tpu.memory_space<vmem>>, vector<1x32xf32>
    %364 = vector.broadcast %363 : vector<1x32xf32> to vector<32x32xf32>
    %365 = arith.addf %362, %364 : vector<32x32xf32>
    %c0_150 = arith.constant 0 : index
    %c0_151 = arith.constant 0 : index
    %366 = vector.load %arg32[%c0_150, %c0_151] : memref<8x32xf32, #tpu.memory_space<vmem>>, vector<8x32xf32>
    %cst_152 = arith.constant dense<0.000000e+00> : vector<8x32xf32>
    %367 = tpu.matmul %366, %365, %cst_152 {dimension_numbers = #tpu.dot_dimension_numbers<[1], [0], [0], [1], [0, 0, 1, 1], [], []>} : vector<8x32xf32>, vector<32x32xf32>, vector<8x32xf32> -> vector<8x32xf32>
    %c0_153 = arith.constant 0 : index
    %c0_154 = arith.constant 0 : index
    %368 = vector.load %arg33[%c0_153, %c0_154] : memref<8x32xf32, #tpu.memory_space<vmem>>, vector<8x32xf32>
    %cst_155 = arith.constant dense<0.000000e+00> : vector<8x32xf32>
    %369 = tpu.matmul %368, %365, %cst_155 {dimension_numbers = #tpu.dot_dimension_numbers<[1], [0], [0], [1], [0, 0, 1, 1], [], []>} : vector<8x32xf32>, vector<32x32xf32>, vector<8x32xf32> -> vector<8x32xf32>
    %c0_156 = arith.constant 0 : index
    %c0_157 = arith.constant 0 : index
    %370 = vector.load %arg34[%c0_156, %c0_157] : memref<8x32xf32, #tpu.memory_space<vmem>>, vector<8x32xf32>
    %cst_158 = arith.constant dense<0.000000e+00> : vector<8x32xf32>
    %371 = tpu.matmul %370, %365, %cst_158 {dimension_numbers = #tpu.dot_dimension_numbers<[1], [0], [0], [1], [0, 0, 1, 1], [], []>} : vector<8x32xf32>, vector<32x32xf32>, vector<8x32xf32> -> vector<8x32xf32>
    %c0_159 = arith.constant 0 : index
    %c0_160 = arith.constant 0 : index
    %372 = vector.load %arg35[%c0_159, %c0_160] : memref<8x32xf32, #tpu.memory_space<vmem>>, vector<8x32xf32>
    %cst_161 = arith.constant dense<0.000000e+00> : vector<8x32xf32>
    %373 = tpu.matmul %372, %365, %cst_161 {dimension_numbers = #tpu.dot_dimension_numbers<[1], [0], [0], [1], [0, 0, 1, 1], [], []>} : vector<8x32xf32>, vector<32x32xf32>, vector<8x32xf32> -> vector<8x32xf32>
    %374 = tpu.concatenate %367, %369, %371, %373 in 1 : vector<8x32xf32>, vector<8x32xf32>, vector<8x32xf32>, vector<8x32xf32> -> vector<8x128xf32>
    %c0_162 = arith.constant 0 : index
    %c0_163 = arith.constant 0 : index
    %375 = vector.load %arg36[%c0_162, %c0_163] : memref<1x128xf32, #tpu.memory_space<vmem>>, vector<1x128xf32>
    %c0_164 = arith.constant 0 : index
    %c0_165 = arith.constant 0 : index
    %376 = vector.load %arg37[%c0_164, %c0_165] : memref<1x128xf32, #tpu.memory_space<vmem>>, vector<1x128xf32>
    %cst_166 = arith.constant dense<0.000000e+00> : vector<8xf32>
    %377 = vector.multi_reduction <add>, %374, %cst_166 [1] : vector<8x128xf32> to vector<8xf32>
    %378 = vector.shape_cast %377 : vector<8xf32> to vector<8x1xf32>
    %cst_167 = arith.constant 1.280000e+02 : f32
    %379 = vector.broadcast %cst_167 : f32 to vector<8x1xf32>
    %380 = arith.divf %378, %379 : vector<8x1xf32>
    %381 = vector.broadcast %380 : vector<8x1xf32> to vector<8x128xf32>
    %382 = arith.subf %374, %381 : vector<8x128xf32>
    %383 = arith.mulf %382, %382 : vector<8x128xf32>
    %cst_168 = arith.constant dense<0.000000e+00> : vector<8xf32>
    %384 = vector.multi_reduction <add>, %383, %cst_168 [1] : vector<8x128xf32> to vector<8xf32>
    %385 = vector.shape_cast %384 : vector<8xf32> to vector<8x1xf32>
    %cst_169 = arith.constant 1.280000e+02 : f32
    %386 = vector.broadcast %cst_169 : f32 to vector<8x1xf32>
    %387 = arith.divf %385, %386 : vector<8x1xf32>
    %cst_170 = arith.constant 9.99999974E-6 : f32
    %388 = vector.broadcast %cst_170 : f32 to vector<8x1xf32>
    %389 = arith.addf %387, %388 : vector<8x1xf32>
    %390 = math.rsqrt %389 : vector<8x1xf32>
    %391 = vector.broadcast %390 : vector<8x1xf32> to vector<8x128xf32>
    %392 = arith.mulf %382, %391 : vector<8x128xf32>
    %393 = vector.broadcast %375 : vector<1x128xf32> to vector<8x128xf32>
    %394 = arith.mulf %392, %393 : vector<8x128xf32>
    %395 = vector.broadcast %376 : vector<1x128xf32> to vector<8x128xf32>
    %396 = arith.addf %394, %395 : vector<8x128xf32>
    %c0_171 = arith.constant 0 : index
    %c0_172 = arith.constant 0 : index
    %397 = vector.load %arg38[%c0_171, %c0_172] : memref<128x64xbf16, #tpu.memory_space<vmem>>, vector<128x64xbf16>
    %398 = arith.truncf %396 : vector<8x128xf32> to vector<8x128xbf16>
    %cst_173 = arith.constant dense<0.000000e+00> : vector<8x64xf32>
    %399 = tpu.matmul %398, %397, %cst_173 {dimension_numbers = #tpu.dot_dimension_numbers<[1], [0], [0], [1], [0, 0, 1, 1], [], []>} : vector<8x128xbf16>, vector<128x64xbf16>, vector<8x64xf32> -> vector<8x64xf32>
    %c0_174 = arith.constant 0 : index
    %c0_175 = arith.constant 0 : index
    %400 = vector.load %arg39[%c0_174, %c0_175] : memref<1x64xf32, #tpu.memory_space<vmem>>, vector<1x64xf32>
    %c0_176 = arith.constant 0 : index
    %c0_177 = arith.constant 0 : index
    %401 = vector.load %arg40[%c0_176, %c0_177] : memref<1x64xf32, #tpu.memory_space<vmem>>, vector<1x64xf32>
    %cst_178 = arith.constant dense<0.000000e+00> : vector<8xf32>
    %402 = vector.multi_reduction <add>, %399, %cst_178 [1] : vector<8x64xf32> to vector<8xf32>
    %403 = vector.shape_cast %402 : vector<8xf32> to vector<8x1xf32>
    %cst_179 = arith.constant 6.400000e+01 : f32
    %404 = vector.broadcast %cst_179 : f32 to vector<8x1xf32>
    %405 = arith.divf %403, %404 : vector<8x1xf32>
    %406 = vector.broadcast %405 : vector<8x1xf32> to vector<8x64xf32>
    %407 = arith.subf %399, %406 : vector<8x64xf32>
    %408 = arith.mulf %407, %407 : vector<8x64xf32>
    %cst_180 = arith.constant dense<0.000000e+00> : vector<8xf32>
    %409 = vector.multi_reduction <add>, %408, %cst_180 [1] : vector<8x64xf32> to vector<8xf32>
    %410 = vector.shape_cast %409 : vector<8xf32> to vector<8x1xf32>
    %cst_181 = arith.constant 6.400000e+01 : f32
    %411 = vector.broadcast %cst_181 : f32 to vector<8x1xf32>
    %412 = arith.divf %410, %411 : vector<8x1xf32>
    %cst_182 = arith.constant 9.99999974E-6 : f32
    %413 = vector.broadcast %cst_182 : f32 to vector<8x1xf32>
    %414 = arith.addf %412, %413 : vector<8x1xf32>
    %415 = math.rsqrt %414 : vector<8x1xf32>
    %416 = vector.broadcast %415 : vector<8x1xf32> to vector<8x64xf32>
    %417 = arith.mulf %407, %416 : vector<8x64xf32>
    %418 = vector.broadcast %400 : vector<1x64xf32> to vector<8x64xf32>
    %419 = arith.mulf %417, %418 : vector<8x64xf32>
    %420 = vector.broadcast %401 : vector<1x64xf32> to vector<8x64xf32>
    %421 = arith.addf %419, %420 : vector<8x64xf32>
    %c0_183 = arith.constant 0 : index
    %c0_184 = arith.constant 0 : index
    %422 = vector.load %arg41[%c0_183, %c0_184] : memref<64x192xbf16, #tpu.memory_space<vmem>>, vector<64x192xbf16>
    %423 = arith.truncf %421 : vector<8x64xf32> to vector<8x64xbf16>
    %cst_185 = arith.constant dense<0.000000e+00> : vector<8x192xf32>
    %424 = tpu.matmul %423, %422, %cst_185 {dimension_numbers = #tpu.dot_dimension_numbers<[1], [0], [0], [1], [0, 0, 1, 1], [], []>} : vector<8x64xbf16>, vector<64x192xbf16>, vector<8x192xf32> -> vector<8x192xf32>
    %c0_186 = arith.constant 0 : index
    %c0_187 = arith.constant 0 : index
    %425 = vector.load %arg42[%c0_186, %c0_187] : memref<1x192xf32, #tpu.memory_space<vmem>>, vector<1x192xf32>
    %426 = vector.broadcast %425 : vector<1x192xf32> to vector<8x192xf32>
    %427 = arith.addf %424, %426 : vector<8x192xf32>
    %428 = vector.extract_strided_slice %427 {offsets = [0, 0], sizes = [8, 16], strides = [1, 1]} : vector<8x192xf32> to vector<8x16xf32>
    %429 = vector.shape_cast %428 : vector<8x16xf32> to vector<2x4x16xf32>
    %430 = vector.extract_strided_slice %427 {offsets = [0, 64], sizes = [8, 16], strides = [1, 1]} : vector<8x192xf32> to vector<8x16xf32>
    %431 = vector.shape_cast %430 : vector<8x16xf32> to vector<2x4x16xf32>
    %432 = vector.extract_strided_slice %427 {offsets = [0, 128], sizes = [8, 16], strides = [1, 1]} : vector<8x192xf32> to vector<8x16xf32>
    %433 = vector.shape_cast %432 : vector<8x16xf32> to vector<2x4x16xf32>
    %434 = arith.truncf %429 : vector<2x4x16xf32> to vector<2x4x16xbf16>
    %435 = arith.truncf %431 : vector<2x4x16xf32> to vector<2x4x16xbf16>
    %cst_188 = arith.constant dense<0.000000e+00> : vector<2x4x4xf32>
    %436 = tpu.matmul %434, %435, %cst_188 {dimension_numbers = #tpu.dot_dimension_numbers<[2], [2], [1], [1], [0, 0, 0, 1, 1, 1], [0], [0]>} : vector<2x4x16xbf16>, vector<2x4x16xbf16>, vector<2x4x4xf32> -> vector<2x4x4xf32>
    %c0_189 = arith.constant 0 : index
    %c0_190 = arith.constant 0 : index
    %c0_191 = arith.constant 0 : index
    %437 = vector.load %arg43[%c0_189, %c0_190, %c0_191] : memref<4x4x4xf32, #tpu.memory_space<vmem>>, vector<1x4x4xf32>
    %438 = vector.shape_cast %437 : vector<1x4x4xf32> to vector<4x4xf32>
    %439 = vector.shape_cast %438 : vector<4x4xf32> to vector<1x4x4xf32>
    %440 = vector.broadcast %439 : vector<1x4x4xf32> to vector<2x4x4xf32>
    %441 = arith.addf %436, %440 : vector<2x4x4xf32>
    %cst_192 = arith.constant dense<0xFF800000> : vector<2x4xf32>
    %442 = vector.multi_reduction <maximumf>, %441, %cst_192 [2] : vector<2x4x4xf32> to vector<2x4xf32>
    %443 = vector.shape_cast %442 : vector<2x4xf32> to vector<2x4x1xf32>
    %444 = vector.broadcast %443 : vector<2x4x1xf32> to vector<2x4x4xf32>
    %445 = arith.subf %441, %444 : vector<2x4x4xf32>
    %446 = math.exp %445 : vector<2x4x4xf32>
    %cst_193 = arith.constant dense<0.000000e+00> : vector<2x4xf32>
    %447 = vector.multi_reduction <add>, %446, %cst_193 [2] : vector<2x4x4xf32> to vector<2x4xf32>
    %448 = vector.shape_cast %447 : vector<2x4xf32> to vector<2x4x1xf32>
    %449 = tpu.reciprocal %448 {approx = true} : vector<2x4x1xf32> -> vector<2x4x1xf32>
    %450 = vector.broadcast %449 : vector<2x4x1xf32> to vector<2x4x4xf32>
    %451 = arith.mulf %446, %450 : vector<2x4x4xf32>
    %452 = arith.truncf %451 : vector<2x4x4xf32> to vector<2x4x4xbf16>
    %453 = arith.truncf %433 : vector<2x4x16xf32> to vector<2x4x16xbf16>
    %cst_194 = arith.constant dense<0.000000e+00> : vector<2x4x16xf32>
    %454 = tpu.matmul %452, %453, %cst_194 {dimension_numbers = #tpu.dot_dimension_numbers<[2], [1], [1], [2], [0, 0, 0, 1, 1, 2], [0], [0]>} : vector<2x4x4xbf16>, vector<2x4x16xbf16>, vector<2x4x16xf32> -> vector<2x4x16xf32>
    %455 = vector.shape_cast %454 : vector<2x4x16xf32> to vector<8x16xf32>
    %456 = vector.extract_strided_slice %427 {offsets = [0, 16], sizes = [8, 16], strides = [1, 1]} : vector<8x192xf32> to vector<8x16xf32>
    %457 = vector.shape_cast %456 : vector<8x16xf32> to vector<2x4x16xf32>
    %458 = vector.extract_strided_slice %427 {offsets = [0, 80], sizes = [8, 16], strides = [1, 1]} : vector<8x192xf32> to vector<8x16xf32>
    %459 = vector.shape_cast %458 : vector<8x16xf32> to vector<2x4x16xf32>
    %460 = vector.extract_strided_slice %427 {offsets = [0, 144], sizes = [8, 16], strides = [1, 1]} : vector<8x192xf32> to vector<8x16xf32>
    %461 = vector.shape_cast %460 : vector<8x16xf32> to vector<2x4x16xf32>
    %462 = arith.truncf %457 : vector<2x4x16xf32> to vector<2x4x16xbf16>
    %463 = arith.truncf %459 : vector<2x4x16xf32> to vector<2x4x16xbf16>
    %cst_195 = arith.constant dense<0.000000e+00> : vector<2x4x4xf32>
    %464 = tpu.matmul %462, %463, %cst_195 {dimension_numbers = #tpu.dot_dimension_numbers<[2], [2], [1], [1], [0, 0, 0, 1, 1, 1], [0], [0]>} : vector<2x4x16xbf16>, vector<2x4x16xbf16>, vector<2x4x4xf32> -> vector<2x4x4xf32>
    %c1_196 = arith.constant 1 : index
    %c0_197 = arith.constant 0 : index
    %c0_198 = arith.constant 0 : index
    %465 = vector.load %arg43[%c1_196, %c0_197, %c0_198] : memref<4x4x4xf32, #tpu.memory_space<vmem>>, vector<1x4x4xf32>
    %466 = vector.shape_cast %465 : vector<1x4x4xf32> to vector<4x4xf32>
    %467 = vector.shape_cast %466 : vector<4x4xf32> to vector<1x4x4xf32>
    %468 = vector.broadcast %467 : vector<1x4x4xf32> to vector<2x4x4xf32>
    %469 = arith.addf %464, %468 : vector<2x4x4xf32>
    %cst_199 = arith.constant dense<0xFF800000> : vector<2x4xf32>
    %470 = vector.multi_reduction <maximumf>, %469, %cst_199 [2] : vector<2x4x4xf32> to vector<2x4xf32>
    %471 = vector.shape_cast %470 : vector<2x4xf32> to vector<2x4x1xf32>
    %472 = vector.broadcast %471 : vector<2x4x1xf32> to vector<2x4x4xf32>
    %473 = arith.subf %469, %472 : vector<2x4x4xf32>
    %474 = math.exp %473 : vector<2x4x4xf32>
    %cst_200 = arith.constant dense<0.000000e+00> : vector<2x4xf32>
    %475 = vector.multi_reduction <add>, %474, %cst_200 [2] : vector<2x4x4xf32> to vector<2x4xf32>
    %476 = vector.shape_cast %475 : vector<2x4xf32> to vector<2x4x1xf32>
    %477 = tpu.reciprocal %476 {approx = true} : vector<2x4x1xf32> -> vector<2x4x1xf32>
    %478 = vector.broadcast %477 : vector<2x4x1xf32> to vector<2x4x4xf32>
    %479 = arith.mulf %474, %478 : vector<2x4x4xf32>
    %480 = arith.truncf %479 : vector<2x4x4xf32> to vector<2x4x4xbf16>
    %481 = arith.truncf %461 : vector<2x4x16xf32> to vector<2x4x16xbf16>
    %cst_201 = arith.constant dense<0.000000e+00> : vector<2x4x16xf32>
    %482 = tpu.matmul %480, %481, %cst_201 {dimension_numbers = #tpu.dot_dimension_numbers<[2], [1], [1], [2], [0, 0, 0, 1, 1, 2], [0], [0]>} : vector<2x4x4xbf16>, vector<2x4x16xbf16>, vector<2x4x16xf32> -> vector<2x4x16xf32>
    %483 = vector.shape_cast %482 : vector<2x4x16xf32> to vector<8x16xf32>
    %484 = vector.extract_strided_slice %427 {offsets = [0, 32], sizes = [8, 16], strides = [1, 1]} : vector<8x192xf32> to vector<8x16xf32>
    %485 = vector.shape_cast %484 : vector<8x16xf32> to vector<2x4x16xf32>
    %486 = vector.extract_strided_slice %427 {offsets = [0, 96], sizes = [8, 16], strides = [1, 1]} : vector<8x192xf32> to vector<8x16xf32>
    %487 = vector.shape_cast %486 : vector<8x16xf32> to vector<2x4x16xf32>
    %488 = vector.extract_strided_slice %427 {offsets = [0, 160], sizes = [8, 16], strides = [1, 1]} : vector<8x192xf32> to vector<8x16xf32>
    %489 = vector.shape_cast %488 : vector<8x16xf32> to vector<2x4x16xf32>
    %490 = arith.truncf %485 : vector<2x4x16xf32> to vector<2x4x16xbf16>
    %491 = arith.truncf %487 : vector<2x4x16xf32> to vector<2x4x16xbf16>
    %cst_202 = arith.constant dense<0.000000e+00> : vector<2x4x4xf32>
    %492 = tpu.matmul %490, %491, %cst_202 {dimension_numbers = #tpu.dot_dimension_numbers<[2], [2], [1], [1], [0, 0, 0, 1, 1, 1], [0], [0]>} : vector<2x4x16xbf16>, vector<2x4x16xbf16>, vector<2x4x4xf32> -> vector<2x4x4xf32>
    %c2 = arith.constant 2 : index
    %c0_203 = arith.constant 0 : index
    %c0_204 = arith.constant 0 : index
    %493 = vector.load %arg43[%c2, %c0_203, %c0_204] : memref<4x4x4xf32, #tpu.memory_space<vmem>>, vector<1x4x4xf32>
    %494 = vector.shape_cast %493 : vector<1x4x4xf32> to vector<4x4xf32>
    %495 = vector.shape_cast %494 : vector<4x4xf32> to vector<1x4x4xf32>
    %496 = vector.broadcast %495 : vector<1x4x4xf32> to vector<2x4x4xf32>
    %497 = arith.addf %492, %496 : vector<2x4x4xf32>
    %cst_205 = arith.constant dense<0xFF800000> : vector<2x4xf32>
    %498 = vector.multi_reduction <maximumf>, %497, %cst_205 [2] : vector<2x4x4xf32> to vector<2x4xf32>
    %499 = vector.shape_cast %498 : vector<2x4xf32> to vector<2x4x1xf32>
    %500 = vector.broadcast %499 : vector<2x4x1xf32> to vector<2x4x4xf32>
    %501 = arith.subf %497, %500 : vector<2x4x4xf32>
    %502 = math.exp %501 : vector<2x4x4xf32>
    %cst_206 = arith.constant dense<0.000000e+00> : vector<2x4xf32>
    %503 = vector.multi_reduction <add>, %502, %cst_206 [2] : vector<2x4x4xf32> to vector<2x4xf32>
    %504 = vector.shape_cast %503 : vector<2x4xf32> to vector<2x4x1xf32>
    %505 = tpu.reciprocal %504 {approx = true} : vector<2x4x1xf32> -> vector<2x4x1xf32>
    %506 = vector.broadcast %505 : vector<2x4x1xf32> to vector<2x4x4xf32>
    %507 = arith.mulf %502, %506 : vector<2x4x4xf32>
    %508 = arith.truncf %507 : vector<2x4x4xf32> to vector<2x4x4xbf16>
    %509 = arith.truncf %489 : vector<2x4x16xf32> to vector<2x4x16xbf16>
    %cst_207 = arith.constant dense<0.000000e+00> : vector<2x4x16xf32>
    %510 = tpu.matmul %508, %509, %cst_207 {dimension_numbers = #tpu.dot_dimension_numbers<[2], [1], [1], [2], [0, 0, 0, 1, 1, 2], [0], [0]>} : vector<2x4x4xbf16>, vector<2x4x16xbf16>, vector<2x4x16xf32> -> vector<2x4x16xf32>
    %511 = vector.shape_cast %510 : vector<2x4x16xf32> to vector<8x16xf32>
    %512 = vector.extract_strided_slice %427 {offsets = [0, 48], sizes = [8, 16], strides = [1, 1]} : vector<8x192xf32> to vector<8x16xf32>
    %513 = vector.shape_cast %512 : vector<8x16xf32> to vector<2x4x16xf32>
    %514 = vector.extract_strided_slice %427 {offsets = [0, 112], sizes = [8, 16], strides = [1, 1]} : vector<8x192xf32> to vector<8x16xf32>
    %515 = vector.shape_cast %514 : vector<8x16xf32> to vector<2x4x16xf32>
    %516 = vector.extract_strided_slice %427 {offsets = [0, 176], sizes = [8, 16], strides = [1, 1]} : vector<8x192xf32> to vector<8x16xf32>
    %517 = vector.shape_cast %516 : vector<8x16xf32> to vector<2x4x16xf32>
    %518 = arith.truncf %513 : vector<2x4x16xf32> to vector<2x4x16xbf16>
    %519 = arith.truncf %515 : vector<2x4x16xf32> to vector<2x4x16xbf16>
    %cst_208 = arith.constant dense<0.000000e+00> : vector<2x4x4xf32>
    %520 = tpu.matmul %518, %519, %cst_208 {dimension_numbers = #tpu.dot_dimension_numbers<[2], [2], [1], [1], [0, 0, 0, 1, 1, 1], [0], [0]>} : vector<2x4x16xbf16>, vector<2x4x16xbf16>, vector<2x4x4xf32> -> vector<2x4x4xf32>
    %c3 = arith.constant 3 : index
    %c0_209 = arith.constant 0 : index
    %c0_210 = arith.constant 0 : index
    %521 = vector.load %arg43[%c3, %c0_209, %c0_210] : memref<4x4x4xf32, #tpu.memory_space<vmem>>, vector<1x4x4xf32>
    %522 = vector.shape_cast %521 : vector<1x4x4xf32> to vector<4x4xf32>
    %523 = vector.shape_cast %522 : vector<4x4xf32> to vector<1x4x4xf32>
    %524 = vector.broadcast %523 : vector<1x4x4xf32> to vector<2x4x4xf32>
    %525 = arith.addf %520, %524 : vector<2x4x4xf32>
    %cst_211 = arith.constant dense<0xFF800000> : vector<2x4xf32>
    %526 = vector.multi_reduction <maximumf>, %525, %cst_211 [2] : vector<2x4x4xf32> to vector<2x4xf32>
    %527 = vector.shape_cast %526 : vector<2x4xf32> to vector<2x4x1xf32>
    %528 = vector.broadcast %527 : vector<2x4x1xf32> to vector<2x4x4xf32>
    %529 = arith.subf %525, %528 : vector<2x4x4xf32>
    %530 = math.exp %529 : vector<2x4x4xf32>
    %cst_212 = arith.constant dense<0.000000e+00> : vector<2x4xf32>
    %531 = vector.multi_reduction <add>, %530, %cst_212 [2] : vector<2x4x4xf32> to vector<2x4xf32>
    %532 = vector.shape_cast %531 : vector<2x4xf32> to vector<2x4x1xf32>
    %533 = tpu.reciprocal %532 {approx = true} : vector<2x4x1xf32> -> vector<2x4x1xf32>
    %534 = vector.broadcast %533 : vector<2x4x1xf32> to vector<2x4x4xf32>
    %535 = arith.mulf %530, %534 : vector<2x4x4xf32>
    %536 = arith.truncf %535 : vector<2x4x4xf32> to vector<2x4x4xbf16>
    %537 = arith.truncf %517 : vector<2x4x16xf32> to vector<2x4x16xbf16>
    %cst_213 = arith.constant dense<0.000000e+00> : vector<2x4x16xf32>
    %538 = tpu.matmul %536, %537, %cst_213 {dimension_numbers = #tpu.dot_dimension_numbers<[2], [1], [1], [2], [0, 0, 0, 1, 1, 2], [0], [0]>} : vector<2x4x4xbf16>, vector<2x4x16xbf16>, vector<2x4x16xf32> -> vector<2x4x16xf32>
    %539 = vector.shape_cast %538 : vector<2x4x16xf32> to vector<8x16xf32>
    %540 = tpu.concatenate %455, %483, %511, %539 in 1 : vector<8x16xf32>, vector<8x16xf32>, vector<8x16xf32>, vector<8x16xf32> -> vector<8x64xf32>
    %c0_214 = arith.constant 0 : index
    %c0_215 = arith.constant 0 : index
    %541 = vector.load %arg44[%c0_214, %c0_215] : memref<64x64xbf16, #tpu.memory_space<vmem>>, vector<64x64xbf16>
    %542 = arith.truncf %540 : vector<8x64xf32> to vector<8x64xbf16>
    %cst_216 = arith.constant dense<0.000000e+00> : vector<8x64xf32>
    %543 = tpu.matmul %542, %541, %cst_216 {dimension_numbers = #tpu.dot_dimension_numbers<[1], [0], [0], [1], [0, 0, 1, 1], [], []>} : vector<8x64xbf16>, vector<64x64xbf16>, vector<8x64xf32> -> vector<8x64xf32>
    %544 = arith.addf %399, %543 : vector<8x64xf32>
    %c0_217 = arith.constant 0 : index
    %c0_218 = arith.constant 0 : index
    %545 = vector.load %arg45[%c0_217, %c0_218] : memref<1x64xf32, #tpu.memory_space<vmem>>, vector<1x64xf32>
    %546 = vector.broadcast %545 : vector<1x64xf32> to vector<8x64xf32>
    %547 = arith.addf %544, %546 : vector<8x64xf32>
    %c0_219 = arith.constant 0 : index
    %c0_220 = arith.constant 0 : index
    %548 = vector.load %arg46[%c0_219, %c0_220] : memref<1x64xf32, #tpu.memory_space<vmem>>, vector<1x64xf32>
    %c0_221 = arith.constant 0 : index
    %c0_222 = arith.constant 0 : index
    %549 = vector.load %arg47[%c0_221, %c0_222] : memref<1x64xf32, #tpu.memory_space<vmem>>, vector<1x64xf32>
    %cst_223 = arith.constant dense<0.000000e+00> : vector<8xf32>
    %550 = vector.multi_reduction <add>, %547, %cst_223 [1] : vector<8x64xf32> to vector<8xf32>
    %551 = vector.shape_cast %550 : vector<8xf32> to vector<8x1xf32>
    %cst_224 = arith.constant 6.400000e+01 : f32
    %552 = vector.broadcast %cst_224 : f32 to vector<8x1xf32>
    %553 = arith.divf %551, %552 : vector<8x1xf32>
    %554 = vector.broadcast %553 : vector<8x1xf32> to vector<8x64xf32>
    %555 = arith.subf %547, %554 : vector<8x64xf32>
    %556 = arith.mulf %555, %555 : vector<8x64xf32>
    %cst_225 = arith.constant dense<0.000000e+00> : vector<8xf32>
    %557 = vector.multi_reduction <add>, %556, %cst_225 [1] : vector<8x64xf32> to vector<8xf32>
    %558 = vector.shape_cast %557 : vector<8xf32> to vector<8x1xf32>
    %cst_226 = arith.constant 6.400000e+01 : f32
    %559 = vector.broadcast %cst_226 : f32 to vector<8x1xf32>
    %560 = arith.divf %558, %559 : vector<8x1xf32>
    %cst_227 = arith.constant 9.99999974E-6 : f32
    %561 = vector.broadcast %cst_227 : f32 to vector<8x1xf32>
    %562 = arith.addf %560, %561 : vector<8x1xf32>
    %563 = math.rsqrt %562 : vector<8x1xf32>
    %564 = vector.broadcast %563 : vector<8x1xf32> to vector<8x64xf32>
    %565 = arith.mulf %555, %564 : vector<8x64xf32>
    %566 = vector.broadcast %548 : vector<1x64xf32> to vector<8x64xf32>
    %567 = arith.mulf %565, %566 : vector<8x64xf32>
    %568 = vector.broadcast %549 : vector<1x64xf32> to vector<8x64xf32>
    %569 = arith.addf %567, %568 : vector<8x64xf32>
    %c0_228 = arith.constant 0 : index
    %c0_229 = arith.constant 0 : index
    %570 = vector.load %arg48[%c0_228, %c0_229] : memref<64x256xbf16, #tpu.memory_space<vmem>>, vector<64x256xbf16>
    %571 = arith.truncf %569 : vector<8x64xf32> to vector<8x64xbf16>
    %cst_230 = arith.constant dense<0.000000e+00> : vector<8x256xf32>
    %572 = tpu.matmul %571, %570, %cst_230 {dimension_numbers = #tpu.dot_dimension_numbers<[1], [0], [0], [1], [0, 0, 1, 1], [], []>} : vector<8x64xbf16>, vector<64x256xbf16>, vector<8x256xf32> -> vector<8x256xf32>
    %c0_231 = arith.constant 0 : index
    %c0_232 = arith.constant 0 : index
    %573 = vector.load %arg49[%c0_231, %c0_232] : memref<1x256xf32, #tpu.memory_space<vmem>>, vector<1x256xf32>
    %574 = vector.broadcast %573 : vector<1x256xf32> to vector<8x256xf32>
    %575 = arith.addf %572, %574 : vector<8x256xf32>
    %cst_233 = arith.constant 5.000000e-01 : f32
    %576 = vector.broadcast %cst_233 : f32 to vector<8x256xf32>
    %577 = arith.mulf %576, %575 : vector<8x256xf32>
    %cst_234 = arith.constant 0.707106769 : f32
    %578 = vector.broadcast %cst_234 : f32 to vector<8x256xf32>
    %579 = arith.mulf %575, %578 : vector<8x256xf32>
    %cst_235 = arith.constant 0.000000e+00 : f32
    %580 = vector.broadcast %cst_235 : f32 to vector<8x256xf32>
    %581 = arith.cmpf oge, %579, %580 : vector<8x256xf32>
    %cst_236 = arith.constant 1.000000e+00 : f32
    %cst_237 = arith.constant -1.000000e+00 : f32
    %582 = vector.broadcast %cst_236 : f32 to vector<8x256xf32>
    %583 = vector.broadcast %cst_237 : f32 to vector<8x256xf32>
    %584 = arith.select %581, %582, %583 : vector<8x256xi1>, vector<8x256xf32>
    %585 = math.absf %579 : vector<8x256xf32>
    %cst_238 = arith.constant 0.327591091 : f32
    %586 = vector.broadcast %cst_238 : f32 to vector<8x256xf32>
    %587 = arith.mulf %586, %585 : vector<8x256xf32>
    %cst_239 = arith.constant 1.000000e+00 : f32
    %588 = vector.broadcast %cst_239 : f32 to vector<8x256xf32>
    %589 = arith.addf %588, %587 : vector<8x256xf32>
    %cst_240 = arith.constant 1.000000e+00 : f32
    %590 = vector.broadcast %cst_240 : f32 to vector<8x256xf32>
    %591 = arith.divf %590, %589 : vector<8x256xf32>
    %cst_241 = arith.constant 1.06140542 : f32
    %592 = vector.broadcast %cst_241 : f32 to vector<8x256xf32>
    %593 = arith.mulf %592, %591 : vector<8x256xf32>
    %cst_242 = arith.constant -1.45315206 : f32
    %594 = vector.broadcast %cst_242 : f32 to vector<8x256xf32>
    %595 = arith.addf %593, %594 : vector<8x256xf32>
    %596 = arith.mulf %595, %591 : vector<8x256xf32>
    %cst_243 = arith.constant 1.42141378 : f32
    %597 = vector.broadcast %cst_243 : f32 to vector<8x256xf32>
    %598 = arith.addf %596, %597 : vector<8x256xf32>
    %599 = arith.mulf %598, %591 : vector<8x256xf32>
    %cst_244 = arith.constant -0.284496725 : f32
    %600 = vector.broadcast %cst_244 : f32 to vector<8x256xf32>
    %601 = arith.addf %599, %600 : vector<8x256xf32>
    %602 = arith.mulf %601, %591 : vector<8x256xf32>
    %cst_245 = arith.constant 0.254829586 : f32
    %603 = vector.broadcast %cst_245 : f32 to vector<8x256xf32>
    %604 = arith.addf %602, %603 : vector<8x256xf32>
    %605 = arith.mulf %604, %591 : vector<8x256xf32>
    %cst_246 = arith.constant 0.000000e+00 : f32
    %606 = vector.broadcast %cst_246 : f32 to vector<8x256xf32>
    %607 = arith.subf %606, %585 : vector<8x256xf32>
    %608 = arith.mulf %607, %585 : vector<8x256xf32>
    %609 = math.exp %608 : vector<8x256xf32>
    %610 = arith.mulf %605, %609 : vector<8x256xf32>
    %cst_247 = arith.constant 1.000000e+00 : f32
    %611 = vector.broadcast %cst_247 : f32 to vector<8x256xf32>
    %612 = arith.subf %611, %610 : vector<8x256xf32>
    %613 = arith.mulf %584, %612 : vector<8x256xf32>
    %cst_248 = arith.constant 1.000000e+00 : f32
    %614 = vector.broadcast %cst_248 : f32 to vector<8x256xf32>
    %615 = arith.addf %614, %613 : vector<8x256xf32>
    %616 = arith.mulf %577, %615 : vector<8x256xf32>
    %c0_249 = arith.constant 0 : index
    %c0_250 = arith.constant 0 : index
    %617 = vector.load %arg50[%c0_249, %c0_250] : memref<256x64xbf16, #tpu.memory_space<vmem>>, vector<256x64xbf16>
    %618 = arith.truncf %616 : vector<8x256xf32> to vector<8x256xbf16>
    %cst_251 = arith.constant dense<0.000000e+00> : vector<8x64xf32>
    %619 = tpu.matmul %618, %617, %cst_251 {dimension_numbers = #tpu.dot_dimension_numbers<[1], [0], [0], [1], [0, 0, 1, 1], [], []>} : vector<8x256xbf16>, vector<256x64xbf16>, vector<8x64xf32> -> vector<8x64xf32>
    %620 = arith.addf %547, %619 : vector<8x64xf32>
    %c0_252 = arith.constant 0 : index
    %c0_253 = arith.constant 0 : index
    %621 = vector.load %arg51[%c0_252, %c0_253] : memref<1x64xf32, #tpu.memory_space<vmem>>, vector<1x64xf32>
    %622 = vector.broadcast %621 : vector<1x64xf32> to vector<8x64xf32>
    %623 = arith.addf %620, %622 : vector<8x64xf32>
    %c0_254 = arith.constant 0 : index
    %c0_255 = arith.constant 0 : index
    %624 = vector.load %arg52[%c0_254, %c0_255] : memref<1x64xf32, #tpu.memory_space<vmem>>, vector<1x64xf32>
    %c0_256 = arith.constant 0 : index
    %c0_257 = arith.constant 0 : index
    %625 = vector.load %arg53[%c0_256, %c0_257] : memref<1x64xf32, #tpu.memory_space<vmem>>, vector<1x64xf32>
    %cst_258 = arith.constant dense<0.000000e+00> : vector<8xf32>
    %626 = vector.multi_reduction <add>, %623, %cst_258 [1] : vector<8x64xf32> to vector<8xf32>
    %627 = vector.shape_cast %626 : vector<8xf32> to vector<8x1xf32>
    %cst_259 = arith.constant 6.400000e+01 : f32
    %628 = vector.broadcast %cst_259 : f32 to vector<8x1xf32>
    %629 = arith.divf %627, %628 : vector<8x1xf32>
    %630 = vector.broadcast %629 : vector<8x1xf32> to vector<8x64xf32>
    %631 = arith.subf %623, %630 : vector<8x64xf32>
    %632 = arith.mulf %631, %631 : vector<8x64xf32>
    %cst_260 = arith.constant dense<0.000000e+00> : vector<8xf32>
    %633 = vector.multi_reduction <add>, %632, %cst_260 [1] : vector<8x64xf32> to vector<8xf32>
    %634 = vector.shape_cast %633 : vector<8xf32> to vector<8x1xf32>
    %cst_261 = arith.constant 6.400000e+01 : f32
    %635 = vector.broadcast %cst_261 : f32 to vector<8x1xf32>
    %636 = arith.divf %634, %635 : vector<8x1xf32>
    %cst_262 = arith.constant 9.99999974E-6 : f32
    %637 = vector.broadcast %cst_262 : f32 to vector<8x1xf32>
    %638 = arith.addf %636, %637 : vector<8x1xf32>
    %639 = math.rsqrt %638 : vector<8x1xf32>
    %640 = vector.broadcast %639 : vector<8x1xf32> to vector<8x64xf32>
    %641 = arith.mulf %631, %640 : vector<8x64xf32>
    %642 = vector.broadcast %624 : vector<1x64xf32> to vector<8x64xf32>
    %643 = arith.mulf %641, %642 : vector<8x64xf32>
    %644 = vector.broadcast %625 : vector<1x64xf32> to vector<8x64xf32>
    %645 = arith.addf %643, %644 : vector<8x64xf32>
    %c0_263 = arith.constant 0 : index
    %c0_264 = arith.constant 0 : index
    %646 = vector.load %arg54[%c0_263, %c0_264] : memref<64x192xbf16, #tpu.memory_space<vmem>>, vector<64x192xbf16>
    %647 = arith.truncf %645 : vector<8x64xf32> to vector<8x64xbf16>
    %cst_265 = arith.constant dense<0.000000e+00> : vector<8x192xf32>
    %648 = tpu.matmul %647, %646, %cst_265 {dimension_numbers = #tpu.dot_dimension_numbers<[1], [0], [0], [1], [0, 0, 1, 1], [], []>} : vector<8x64xbf16>, vector<64x192xbf16>, vector<8x192xf32> -> vector<8x192xf32>
    %c0_266 = arith.constant 0 : index
    %c0_267 = arith.constant 0 : index
    %649 = vector.load %arg55[%c0_266, %c0_267] : memref<1x192xf32, #tpu.memory_space<vmem>>, vector<1x192xf32>
    %650 = vector.broadcast %649 : vector<1x192xf32> to vector<8x192xf32>
    %651 = arith.addf %648, %650 : vector<8x192xf32>
    %652 = vector.extract_strided_slice %651 {offsets = [0, 0], sizes = [8, 16], strides = [1, 1]} : vector<8x192xf32> to vector<8x16xf32>
    %653 = vector.shape_cast %652 : vector<8x16xf32> to vector<2x4x16xf32>
    %654 = vector.extract_strided_slice %651 {offsets = [0, 64], sizes = [8, 16], strides = [1, 1]} : vector<8x192xf32> to vector<8x16xf32>
    %655 = vector.shape_cast %654 : vector<8x16xf32> to vector<2x4x16xf32>
    %656 = vector.extract_strided_slice %651 {offsets = [0, 128], sizes = [8, 16], strides = [1, 1]} : vector<8x192xf32> to vector<8x16xf32>
    %657 = vector.shape_cast %656 : vector<8x16xf32> to vector<2x4x16xf32>
    %658 = arith.truncf %653 : vector<2x4x16xf32> to vector<2x4x16xbf16>
    %659 = arith.truncf %655 : vector<2x4x16xf32> to vector<2x4x16xbf16>
    %cst_268 = arith.constant dense<0.000000e+00> : vector<2x4x4xf32>
    %660 = tpu.matmul %658, %659, %cst_268 {dimension_numbers = #tpu.dot_dimension_numbers<[2], [2], [1], [1], [0, 0, 0, 1, 1, 1], [0], [0]>} : vector<2x4x16xbf16>, vector<2x4x16xbf16>, vector<2x4x4xf32> -> vector<2x4x4xf32>
    %c0_269 = arith.constant 0 : index
    %c0_270 = arith.constant 0 : index
    %c0_271 = arith.constant 0 : index
    %661 = vector.load %arg56[%c0_269, %c0_270, %c0_271] : memref<4x4x4xf32, #tpu.memory_space<vmem>>, vector<1x4x4xf32>
    %662 = vector.shape_cast %661 : vector<1x4x4xf32> to vector<4x4xf32>
    %663 = vector.shape_cast %662 : vector<4x4xf32> to vector<1x4x4xf32>
    %664 = vector.broadcast %663 : vector<1x4x4xf32> to vector<2x4x4xf32>
    %665 = arith.addf %660, %664 : vector<2x4x4xf32>
    %cst_272 = arith.constant dense<0xFF800000> : vector<2x4xf32>
    %666 = vector.multi_reduction <maximumf>, %665, %cst_272 [2] : vector<2x4x4xf32> to vector<2x4xf32>
    %667 = vector.shape_cast %666 : vector<2x4xf32> to vector<2x4x1xf32>
    %668 = vector.broadcast %667 : vector<2x4x1xf32> to vector<2x4x4xf32>
    %669 = arith.subf %665, %668 : vector<2x4x4xf32>
    %670 = math.exp %669 : vector<2x4x4xf32>
    %cst_273 = arith.constant dense<0.000000e+00> : vector<2x4xf32>
    %671 = vector.multi_reduction <add>, %670, %cst_273 [2] : vector<2x4x4xf32> to vector<2x4xf32>
    %672 = vector.shape_cast %671 : vector<2x4xf32> to vector<2x4x1xf32>
    %673 = tpu.reciprocal %672 {approx = true} : vector<2x4x1xf32> -> vector<2x4x1xf32>
    %674 = vector.broadcast %673 : vector<2x4x1xf32> to vector<2x4x4xf32>
    %675 = arith.mulf %670, %674 : vector<2x4x4xf32>
    %676 = arith.truncf %675 : vector<2x4x4xf32> to vector<2x4x4xbf16>
    %677 = arith.truncf %657 : vector<2x4x16xf32> to vector<2x4x16xbf16>
    %cst_274 = arith.constant dense<0.000000e+00> : vector<2x4x16xf32>
    %678 = tpu.matmul %676, %677, %cst_274 {dimension_numbers = #tpu.dot_dimension_numbers<[2], [1], [1], [2], [0, 0, 0, 1, 1, 2], [0], [0]>} : vector<2x4x4xbf16>, vector<2x4x16xbf16>, vector<2x4x16xf32> -> vector<2x4x16xf32>
    %679 = vector.shape_cast %678 : vector<2x4x16xf32> to vector<8x16xf32>
    %680 = vector.extract_strided_slice %651 {offsets = [0, 16], sizes = [8, 16], strides = [1, 1]} : vector<8x192xf32> to vector<8x16xf32>
    %681 = vector.shape_cast %680 : vector<8x16xf32> to vector<2x4x16xf32>
    %682 = vector.extract_strided_slice %651 {offsets = [0, 80], sizes = [8, 16], strides = [1, 1]} : vector<8x192xf32> to vector<8x16xf32>
    %683 = vector.shape_cast %682 : vector<8x16xf32> to vector<2x4x16xf32>
    %684 = vector.extract_strided_slice %651 {offsets = [0, 144], sizes = [8, 16], strides = [1, 1]} : vector<8x192xf32> to vector<8x16xf32>
    %685 = vector.shape_cast %684 : vector<8x16xf32> to vector<2x4x16xf32>
    %686 = arith.truncf %681 : vector<2x4x16xf32> to vector<2x4x16xbf16>
    %687 = arith.truncf %683 : vector<2x4x16xf32> to vector<2x4x16xbf16>
    %cst_275 = arith.constant dense<0.000000e+00> : vector<2x4x4xf32>
    %688 = tpu.matmul %686, %687, %cst_275 {dimension_numbers = #tpu.dot_dimension_numbers<[2], [2], [1], [1], [0, 0, 0, 1, 1, 1], [0], [0]>} : vector<2x4x16xbf16>, vector<2x4x16xbf16>, vector<2x4x4xf32> -> vector<2x4x4xf32>
    %c1_276 = arith.constant 1 : index
    %c0_277 = arith.constant 0 : index
    %c0_278 = arith.constant 0 : index
    %689 = vector.load %arg56[%c1_276, %c0_277, %c0_278] : memref<4x4x4xf32, #tpu.memory_space<vmem>>, vector<1x4x4xf32>
    %690 = vector.shape_cast %689 : vector<1x4x4xf32> to vector<4x4xf32>
    %691 = vector.shape_cast %690 : vector<4x4xf32> to vector<1x4x4xf32>
    %692 = vector.broadcast %691 : vector<1x4x4xf32> to vector<2x4x4xf32>
    %693 = arith.addf %688, %692 : vector<2x4x4xf32>
    %cst_279 = arith.constant dense<0xFF800000> : vector<2x4xf32>
    %694 = vector.multi_reduction <maximumf>, %693, %cst_279 [2] : vector<2x4x4xf32> to vector<2x4xf32>
    %695 = vector.shape_cast %694 : vector<2x4xf32> to vector<2x4x1xf32>
    %696 = vector.broadcast %695 : vector<2x4x1xf32> to vector<2x4x4xf32>
    %697 = arith.subf %693, %696 : vector<2x4x4xf32>
    %698 = math.exp %697 : vector<2x4x4xf32>
    %cst_280 = arith.constant dense<0.000000e+00> : vector<2x4xf32>
    %699 = vector.multi_reduction <add>, %698, %cst_280 [2] : vector<2x4x4xf32> to vector<2x4xf32>
    %700 = vector.shape_cast %699 : vector<2x4xf32> to vector<2x4x1xf32>
    %701 = tpu.reciprocal %700 {approx = true} : vector<2x4x1xf32> -> vector<2x4x1xf32>
    %702 = vector.broadcast %701 : vector<2x4x1xf32> to vector<2x4x4xf32>
    %703 = arith.mulf %698, %702 : vector<2x4x4xf32>
    %704 = arith.truncf %703 : vector<2x4x4xf32> to vector<2x4x4xbf16>
    %705 = arith.truncf %685 : vector<2x4x16xf32> to vector<2x4x16xbf16>
    %cst_281 = arith.constant dense<0.000000e+00> : vector<2x4x16xf32>
    %706 = tpu.matmul %704, %705, %cst_281 {dimension_numbers = #tpu.dot_dimension_numbers<[2], [1], [1], [2], [0, 0, 0, 1, 1, 2], [0], [0]>} : vector<2x4x4xbf16>, vector<2x4x16xbf16>, vector<2x4x16xf32> -> vector<2x4x16xf32>
    %707 = vector.shape_cast %706 : vector<2x4x16xf32> to vector<8x16xf32>
    %708 = vector.extract_strided_slice %651 {offsets = [0, 32], sizes = [8, 16], strides = [1, 1]} : vector<8x192xf32> to vector<8x16xf32>
    %709 = vector.shape_cast %708 : vector<8x16xf32> to vector<2x4x16xf32>
    %710 = vector.extract_strided_slice %651 {offsets = [0, 96], sizes = [8, 16], strides = [1, 1]} : vector<8x192xf32> to vector<8x16xf32>
    %711 = vector.shape_cast %710 : vector<8x16xf32> to vector<2x4x16xf32>
    %712 = vector.extract_strided_slice %651 {offsets = [0, 160], sizes = [8, 16], strides = [1, 1]} : vector<8x192xf32> to vector<8x16xf32>
    %713 = vector.shape_cast %712 : vector<8x16xf32> to vector<2x4x16xf32>
    %714 = arith.truncf %709 : vector<2x4x16xf32> to vector<2x4x16xbf16>
    %715 = arith.truncf %711 : vector<2x4x16xf32> to vector<2x4x16xbf16>
    %cst_282 = arith.constant dense<0.000000e+00> : vector<2x4x4xf32>
    %716 = tpu.matmul %714, %715, %cst_282 {dimension_numbers = #tpu.dot_dimension_numbers<[2], [2], [1], [1], [0, 0, 0, 1, 1, 1], [0], [0]>} : vector<2x4x16xbf16>, vector<2x4x16xbf16>, vector<2x4x4xf32> -> vector<2x4x4xf32>
    %c2_283 = arith.constant 2 : index
    %c0_284 = arith.constant 0 : index
    %c0_285 = arith.constant 0 : index
    %717 = vector.load %arg56[%c2_283, %c0_284, %c0_285] : memref<4x4x4xf32, #tpu.memory_space<vmem>>, vector<1x4x4xf32>
    %718 = vector.shape_cast %717 : vector<1x4x4xf32> to vector<4x4xf32>
    %719 = vector.shape_cast %718 : vector<4x4xf32> to vector<1x4x4xf32>
    %720 = vector.broadcast %719 : vector<1x4x4xf32> to vector<2x4x4xf32>
    %721 = arith.addf %716, %720 : vector<2x4x4xf32>
    %cst_286 = arith.constant dense<0xFF800000> : vector<2x4xf32>
    %722 = vector.multi_reduction <maximumf>, %721, %cst_286 [2] : vector<2x4x4xf32> to vector<2x4xf32>
    %723 = vector.shape_cast %722 : vector<2x4xf32> to vector<2x4x1xf32>
    %724 = vector.broadcast %723 : vector<2x4x1xf32> to vector<2x4x4xf32>
    %725 = arith.subf %721, %724 : vector<2x4x4xf32>
    %726 = math.exp %725 : vector<2x4x4xf32>
    %cst_287 = arith.constant dense<0.000000e+00> : vector<2x4xf32>
    %727 = vector.multi_reduction <add>, %726, %cst_287 [2] : vector<2x4x4xf32> to vector<2x4xf32>
    %728 = vector.shape_cast %727 : vector<2x4xf32> to vector<2x4x1xf32>
    %729 = tpu.reciprocal %728 {approx = true} : vector<2x4x1xf32> -> vector<2x4x1xf32>
    %730 = vector.broadcast %729 : vector<2x4x1xf32> to vector<2x4x4xf32>
    %731 = arith.mulf %726, %730 : vector<2x4x4xf32>
    %732 = arith.truncf %731 : vector<2x4x4xf32> to vector<2x4x4xbf16>
    %733 = arith.truncf %713 : vector<2x4x16xf32> to vector<2x4x16xbf16>
    %cst_288 = arith.constant dense<0.000000e+00> : vector<2x4x16xf32>
    %734 = tpu.matmul %732, %733, %cst_288 {dimension_numbers = #tpu.dot_dimension_numbers<[2], [1], [1], [2], [0, 0, 0, 1, 1, 2], [0], [0]>} : vector<2x4x4xbf16>, vector<2x4x16xbf16>, vector<2x4x16xf32> -> vector<2x4x16xf32>
    %735 = vector.shape_cast %734 : vector<2x4x16xf32> to vector<8x16xf32>
    %736 = vector.extract_strided_slice %651 {offsets = [0, 48], sizes = [8, 16], strides = [1, 1]} : vector<8x192xf32> to vector<8x16xf32>
    %737 = vector.shape_cast %736 : vector<8x16xf32> to vector<2x4x16xf32>
    %738 = vector.extract_strided_slice %651 {offsets = [0, 112], sizes = [8, 16], strides = [1, 1]} : vector<8x192xf32> to vector<8x16xf32>
    %739 = vector.shape_cast %738 : vector<8x16xf32> to vector<2x4x16xf32>
    %740 = vector.extract_strided_slice %651 {offsets = [0, 176], sizes = [8, 16], strides = [1, 1]} : vector<8x192xf32> to vector<8x16xf32>
    %741 = vector.shape_cast %740 : vector<8x16xf32> to vector<2x4x16xf32>
    %742 = arith.truncf %737 : vector<2x4x16xf32> to vector<2x4x16xbf16>
    %743 = arith.truncf %739 : vector<2x4x16xf32> to vector<2x4x16xbf16>
    %cst_289 = arith.constant dense<0.000000e+00> : vector<2x4x4xf32>
    %744 = tpu.matmul %742, %743, %cst_289 {dimension_numbers = #tpu.dot_dimension_numbers<[2], [2], [1], [1], [0, 0, 0, 1, 1, 1], [0], [0]>} : vector<2x4x16xbf16>, vector<2x4x16xbf16>, vector<2x4x4xf32> -> vector<2x4x4xf32>
    %c3_290 = arith.constant 3 : index
    %c0_291 = arith.constant 0 : index
    %c0_292 = arith.constant 0 : index
    %745 = vector.load %arg56[%c3_290, %c0_291, %c0_292] : memref<4x4x4xf32, #tpu.memory_space<vmem>>, vector<1x4x4xf32>
    %746 = vector.shape_cast %745 : vector<1x4x4xf32> to vector<4x4xf32>
    %747 = vector.shape_cast %746 : vector<4x4xf32> to vector<1x4x4xf32>
    %748 = vector.broadcast %747 : vector<1x4x4xf32> to vector<2x4x4xf32>
    %749 = arith.addf %744, %748 : vector<2x4x4xf32>
    %cst_293 = arith.constant dense<0xFF800000> : vector<2x4xf32>
    %750 = vector.multi_reduction <maximumf>, %749, %cst_293 [2] : vector<2x4x4xf32> to vector<2x4xf32>
    %751 = vector.shape_cast %750 : vector<2x4xf32> to vector<2x4x1xf32>
    %752 = vector.broadcast %751 : vector<2x4x1xf32> to vector<2x4x4xf32>
    %753 = arith.subf %749, %752 : vector<2x4x4xf32>
    %754 = math.exp %753 : vector<2x4x4xf32>
    %cst_294 = arith.constant dense<0.000000e+00> : vector<2x4xf32>
    %755 = vector.multi_reduction <add>, %754, %cst_294 [2] : vector<2x4x4xf32> to vector<2x4xf32>
    %756 = vector.shape_cast %755 : vector<2x4xf32> to vector<2x4x1xf32>
    %757 = tpu.reciprocal %756 {approx = true} : vector<2x4x1xf32> -> vector<2x4x1xf32>
    %758 = vector.broadcast %757 : vector<2x4x1xf32> to vector<2x4x4xf32>
    %759 = arith.mulf %754, %758 : vector<2x4x4xf32>
    %760 = arith.truncf %759 : vector<2x4x4xf32> to vector<2x4x4xbf16>
    %761 = arith.truncf %741 : vector<2x4x16xf32> to vector<2x4x16xbf16>
    %cst_295 = arith.constant dense<0.000000e+00> : vector<2x4x16xf32>
    %762 = tpu.matmul %760, %761, %cst_295 {dimension_numbers = #tpu.dot_dimension_numbers<[2], [1], [1], [2], [0, 0, 0, 1, 1, 2], [0], [0]>} : vector<2x4x4xbf16>, vector<2x4x16xbf16>, vector<2x4x16xf32> -> vector<2x4x16xf32>
    %763 = vector.shape_cast %762 : vector<2x4x16xf32> to vector<8x16xf32>
    %764 = tpu.concatenate %679, %707, %735, %763 in 1 : vector<8x16xf32>, vector<8x16xf32>, vector<8x16xf32>, vector<8x16xf32> -> vector<8x64xf32>
    %c0_296 = arith.constant 0 : index
    %c0_297 = arith.constant 0 : index
    %765 = vector.load %arg57[%c0_296, %c0_297] : memref<64x64xbf16, #tpu.memory_space<vmem>>, vector<64x64xbf16>
    %766 = arith.truncf %764 : vector<8x64xf32> to vector<8x64xbf16>
    %cst_298 = arith.constant dense<0.000000e+00> : vector<8x64xf32>
    %767 = tpu.matmul %766, %765, %cst_298 {dimension_numbers = #tpu.dot_dimension_numbers<[1], [0], [0], [1], [0, 0, 1, 1], [], []>} : vector<8x64xbf16>, vector<64x64xbf16>, vector<8x64xf32> -> vector<8x64xf32>
    %768 = arith.addf %623, %767 : vector<8x64xf32>
    %c0_299 = arith.constant 0 : index
    %c0_300 = arith.constant 0 : index
    %769 = vector.load %arg58[%c0_299, %c0_300] : memref<1x64xf32, #tpu.memory_space<vmem>>, vector<1x64xf32>
    %770 = vector.broadcast %769 : vector<1x64xf32> to vector<8x64xf32>
    %771 = arith.addf %768, %770 : vector<8x64xf32>
    %c0_301 = arith.constant 0 : index
    %c0_302 = arith.constant 0 : index
    %772 = vector.load %arg59[%c0_301, %c0_302] : memref<1x64xf32, #tpu.memory_space<vmem>>, vector<1x64xf32>
    %c0_303 = arith.constant 0 : index
    %c0_304 = arith.constant 0 : index
    %773 = vector.load %arg60[%c0_303, %c0_304] : memref<1x64xf32, #tpu.memory_space<vmem>>, vector<1x64xf32>
    %cst_305 = arith.constant dense<0.000000e+00> : vector<8xf32>
    %774 = vector.multi_reduction <add>, %771, %cst_305 [1] : vector<8x64xf32> to vector<8xf32>
    %775 = vector.shape_cast %774 : vector<8xf32> to vector<8x1xf32>
    %cst_306 = arith.constant 6.400000e+01 : f32
    %776 = vector.broadcast %cst_306 : f32 to vector<8x1xf32>
    %777 = arith.divf %775, %776 : vector<8x1xf32>
    %778 = vector.broadcast %777 : vector<8x1xf32> to vector<8x64xf32>
    %779 = arith.subf %771, %778 : vector<8x64xf32>
    %780 = arith.mulf %779, %779 : vector<8x64xf32>
    %cst_307 = arith.constant dense<0.000000e+00> : vector<8xf32>
    %781 = vector.multi_reduction <add>, %780, %cst_307 [1] : vector<8x64xf32> to vector<8xf32>
    %782 = vector.shape_cast %781 : vector<8xf32> to vector<8x1xf32>
    %cst_308 = arith.constant 6.400000e+01 : f32
    %783 = vector.broadcast %cst_308 : f32 to vector<8x1xf32>
    %784 = arith.divf %782, %783 : vector<8x1xf32>
    %cst_309 = arith.constant 9.99999974E-6 : f32
    %785 = vector.broadcast %cst_309 : f32 to vector<8x1xf32>
    %786 = arith.addf %784, %785 : vector<8x1xf32>
    %787 = math.rsqrt %786 : vector<8x1xf32>
    %788 = vector.broadcast %787 : vector<8x1xf32> to vector<8x64xf32>
    %789 = arith.mulf %779, %788 : vector<8x64xf32>
    %790 = vector.broadcast %772 : vector<1x64xf32> to vector<8x64xf32>
    %791 = arith.mulf %789, %790 : vector<8x64xf32>
    %792 = vector.broadcast %773 : vector<1x64xf32> to vector<8x64xf32>
    %793 = arith.addf %791, %792 : vector<8x64xf32>
    %c0_310 = arith.constant 0 : index
    %c0_311 = arith.constant 0 : index
    %794 = vector.load %arg61[%c0_310, %c0_311] : memref<64x256xbf16, #tpu.memory_space<vmem>>, vector<64x256xbf16>
    %795 = arith.truncf %793 : vector<8x64xf32> to vector<8x64xbf16>
    %cst_312 = arith.constant dense<0.000000e+00> : vector<8x256xf32>
    %796 = tpu.matmul %795, %794, %cst_312 {dimension_numbers = #tpu.dot_dimension_numbers<[1], [0], [0], [1], [0, 0, 1, 1], [], []>} : vector<8x64xbf16>, vector<64x256xbf16>, vector<8x256xf32> -> vector<8x256xf32>
    %c0_313 = arith.constant 0 : index
    %c0_314 = arith.constant 0 : index
    %797 = vector.load %arg62[%c0_313, %c0_314] : memref<1x256xf32, #tpu.memory_space<vmem>>, vector<1x256xf32>
    %798 = vector.broadcast %797 : vector<1x256xf32> to vector<8x256xf32>
    %799 = arith.addf %796, %798 : vector<8x256xf32>
    %cst_315 = arith.constant 5.000000e-01 : f32
    %800 = vector.broadcast %cst_315 : f32 to vector<8x256xf32>
    %801 = arith.mulf %800, %799 : vector<8x256xf32>
    %cst_316 = arith.constant 0.707106769 : f32
    %802 = vector.broadcast %cst_316 : f32 to vector<8x256xf32>
    %803 = arith.mulf %799, %802 : vector<8x256xf32>
    %cst_317 = arith.constant 0.000000e+00 : f32
    %804 = vector.broadcast %cst_317 : f32 to vector<8x256xf32>
    %805 = arith.cmpf oge, %803, %804 : vector<8x256xf32>
    %cst_318 = arith.constant 1.000000e+00 : f32
    %cst_319 = arith.constant -1.000000e+00 : f32
    %806 = vector.broadcast %cst_318 : f32 to vector<8x256xf32>
    %807 = vector.broadcast %cst_319 : f32 to vector<8x256xf32>
    %808 = arith.select %805, %806, %807 : vector<8x256xi1>, vector<8x256xf32>
    %809 = math.absf %803 : vector<8x256xf32>
    %cst_320 = arith.constant 0.327591091 : f32
    %810 = vector.broadcast %cst_320 : f32 to vector<8x256xf32>
    %811 = arith.mulf %810, %809 : vector<8x256xf32>
    %cst_321 = arith.constant 1.000000e+00 : f32
    %812 = vector.broadcast %cst_321 : f32 to vector<8x256xf32>
    %813 = arith.addf %812, %811 : vector<8x256xf32>
    %cst_322 = arith.constant 1.000000e+00 : f32
    %814 = vector.broadcast %cst_322 : f32 to vector<8x256xf32>
    %815 = arith.divf %814, %813 : vector<8x256xf32>
    %cst_323 = arith.constant 1.06140542 : f32
    %816 = vector.broadcast %cst_323 : f32 to vector<8x256xf32>
    %817 = arith.mulf %816, %815 : vector<8x256xf32>
    %cst_324 = arith.constant -1.45315206 : f32
    %818 = vector.broadcast %cst_324 : f32 to vector<8x256xf32>
    %819 = arith.addf %817, %818 : vector<8x256xf32>
    %820 = arith.mulf %819, %815 : vector<8x256xf32>
    %cst_325 = arith.constant 1.42141378 : f32
    %821 = vector.broadcast %cst_325 : f32 to vector<8x256xf32>
    %822 = arith.addf %820, %821 : vector<8x256xf32>
    %823 = arith.mulf %822, %815 : vector<8x256xf32>
    %cst_326 = arith.constant -0.284496725 : f32
    %824 = vector.broadcast %cst_326 : f32 to vector<8x256xf32>
    %825 = arith.addf %823, %824 : vector<8x256xf32>
    %826 = arith.mulf %825, %815 : vector<8x256xf32>
    %cst_327 = arith.constant 0.254829586 : f32
    %827 = vector.broadcast %cst_327 : f32 to vector<8x256xf32>
    %828 = arith.addf %826, %827 : vector<8x256xf32>
    %829 = arith.mulf %828, %815 : vector<8x256xf32>
    %cst_328 = arith.constant 0.000000e+00 : f32
    %830 = vector.broadcast %cst_328 : f32 to vector<8x256xf32>
    %831 = arith.subf %830, %809 : vector<8x256xf32>
    %832 = arith.mulf %831, %809 : vector<8x256xf32>
    %833 = math.exp %832 : vector<8x256xf32>
    %834 = arith.mulf %829, %833 : vector<8x256xf32>
    %cst_329 = arith.constant 1.000000e+00 : f32
    %835 = vector.broadcast %cst_329 : f32 to vector<8x256xf32>
    %836 = arith.subf %835, %834 : vector<8x256xf32>
    %837 = arith.mulf %808, %836 : vector<8x256xf32>
    %cst_330 = arith.constant 1.000000e+00 : f32
    %838 = vector.broadcast %cst_330 : f32 to vector<8x256xf32>
    %839 = arith.addf %838, %837 : vector<8x256xf32>
    %840 = arith.mulf %801, %839 : vector<8x256xf32>
    %c0_331 = arith.constant 0 : index
    %c0_332 = arith.constant 0 : index
    %841 = vector.load %arg63[%c0_331, %c0_332] : memref<256x64xbf16, #tpu.memory_space<vmem>>, vector<256x64xbf16>
    %842 = arith.truncf %840 : vector<8x256xf32> to vector<8x256xbf16>
    %cst_333 = arith.constant dense<0.000000e+00> : vector<8x64xf32>
    %843 = tpu.matmul %842, %841, %cst_333 {dimension_numbers = #tpu.dot_dimension_numbers<[1], [0], [0], [1], [0, 0, 1, 1], [], []>} : vector<8x256xbf16>, vector<256x64xbf16>, vector<8x64xf32> -> vector<8x64xf32>
    %844 = arith.addf %771, %843 : vector<8x64xf32>
    %c0_334 = arith.constant 0 : index
    %c0_335 = arith.constant 0 : index
    %845 = vector.load %arg64[%c0_334, %c0_335] : memref<1x64xf32, #tpu.memory_space<vmem>>, vector<1x64xf32>
    %846 = vector.broadcast %845 : vector<1x64xf32> to vector<8x64xf32>
    %847 = arith.addf %844, %846 : vector<8x64xf32>
    %c0_336 = arith.constant 0 : index
    %c0_337 = arith.constant 0 : index
    %848 = vector.load %arg65[%c0_336, %c0_337] : memref<1x64xf32, #tpu.memory_space<vmem>>, vector<1x64xf32>
    %c0_338 = arith.constant 0 : index
    %c0_339 = arith.constant 0 : index
    %849 = vector.load %arg66[%c0_338, %c0_339] : memref<1x64xf32, #tpu.memory_space<vmem>>, vector<1x64xf32>
    %cst_340 = arith.constant dense<0.000000e+00> : vector<8xf32>
    %850 = vector.multi_reduction <add>, %847, %cst_340 [1] : vector<8x64xf32> to vector<8xf32>
    %851 = vector.shape_cast %850 : vector<8xf32> to vector<8x1xf32>
    %cst_341 = arith.constant 6.400000e+01 : f32
    %852 = vector.broadcast %cst_341 : f32 to vector<8x1xf32>
    %853 = arith.divf %851, %852 : vector<8x1xf32>
    %854 = vector.broadcast %853 : vector<8x1xf32> to vector<8x64xf32>
    %855 = arith.subf %847, %854 : vector<8x64xf32>
    %856 = arith.mulf %855, %855 : vector<8x64xf32>
    %cst_342 = arith.constant dense<0.000000e+00> : vector<8xf32>
    %857 = vector.multi_reduction <add>, %856, %cst_342 [1] : vector<8x64xf32> to vector<8xf32>
    %858 = vector.shape_cast %857 : vector<8xf32> to vector<8x1xf32>
    %cst_343 = arith.constant 6.400000e+01 : f32
    %859 = vector.broadcast %cst_343 : f32 to vector<8x1xf32>
    %860 = arith.divf %858, %859 : vector<8x1xf32>
    %cst_344 = arith.constant 9.99999974E-6 : f32
    %861 = vector.broadcast %cst_344 : f32 to vector<8x1xf32>
    %862 = arith.addf %860, %861 : vector<8x1xf32>
    %863 = math.rsqrt %862 : vector<8x1xf32>
    %864 = vector.broadcast %863 : vector<8x1xf32> to vector<8x64xf32>
    %865 = arith.mulf %855, %864 : vector<8x64xf32>
    %866 = vector.broadcast %848 : vector<1x64xf32> to vector<8x64xf32>
    %867 = arith.mulf %865, %866 : vector<8x64xf32>
    %868 = vector.broadcast %849 : vector<1x64xf32> to vector<8x64xf32>
    %869 = arith.addf %867, %868 : vector<8x64xf32>
    %870 = vector.shape_cast %869 : vector<8x64xf32> to vector<2x4x64xf32>
    %cst_345 = arith.constant dense<0.000000e+00> : vector<2x64xf32>
    %871 = vector.multi_reduction <add>, %870, %cst_345 [1] : vector<2x4x64xf32> to vector<2x64xf32>
    %cst_346 = arith.constant 4.000000e+00 : f32
    %872 = vector.broadcast %cst_346 : f32 to vector<2x64xf32>
    %873 = arith.divf %871, %872 : vector<2x64xf32>
    %c0_347 = arith.constant 0 : index
    %c0_348 = arith.constant 0 : index
    %874 = vector.load %arg67[%c0_347, %c0_348] : memref<64x48xbf16, #tpu.memory_space<vmem>>, vector<64x48xbf16>
    %875 = arith.truncf %873 : vector<2x64xf32> to vector<2x64xbf16>
    %cst_349 = arith.constant dense<0.000000e+00> : vector<2x48xf32>
    %876 = tpu.matmul %875, %874, %cst_349 {dimension_numbers = #tpu.dot_dimension_numbers<[1], [0], [0], [1], [0, 0, 1, 1], [], []>} : vector<2x64xbf16>, vector<64x48xbf16>, vector<2x48xf32> -> vector<2x48xf32>
    %c0_350 = arith.constant 0 : index
    %c0_351 = arith.constant 0 : index
    %877 = vector.load %arg68[%c0_350, %c0_351] : memref<1x48xf32, #tpu.memory_space<vmem>>, vector<1x48xf32>
    %878 = vector.broadcast %877 : vector<1x48xf32> to vector<2x48xf32>
    %879 = arith.addf %876, %878 : vector<2x48xf32>
    %c0_352 = arith.constant 0 : index
    %c0_353 = arith.constant 0 : index
    %880 = vector.load %arg69[%c0_352, %c0_353] : memref<1x48xf32, #tpu.memory_space<vmem>>, vector<1x48xf32>
    %c0_354 = arith.constant 0 : index
    %c0_355 = arith.constant 0 : index
    %881 = vector.load %arg70[%c0_354, %c0_355] : memref<1x48xf32, #tpu.memory_space<vmem>>, vector<1x48xf32>
    %cst_356 = arith.constant dense<0.000000e+00> : vector<2xf32>
    %882 = vector.multi_reduction <add>, %879, %cst_356 [1] : vector<2x48xf32> to vector<2xf32>
    %883 = vector.shape_cast %882 : vector<2xf32> to vector<2x1xf32>
    %cst_357 = arith.constant 4.800000e+01 : f32
    %884 = vector.broadcast %cst_357 : f32 to vector<2x1xf32>
    %885 = arith.divf %883, %884 : vector<2x1xf32>
    %886 = vector.broadcast %885 : vector<2x1xf32> to vector<2x48xf32>
    %887 = arith.subf %879, %886 : vector<2x48xf32>
    %888 = arith.mulf %887, %887 : vector<2x48xf32>
    %cst_358 = arith.constant dense<0.000000e+00> : vector<2xf32>
    %889 = vector.multi_reduction <add>, %888, %cst_358 [1] : vector<2x48xf32> to vector<2xf32>
    %890 = vector.shape_cast %889 : vector<2xf32> to vector<2x1xf32>
    %cst_359 = arith.constant 4.800000e+01 : f32
    %891 = vector.broadcast %cst_359 : f32 to vector<2x1xf32>
    %892 = arith.divf %890, %891 : vector<2x1xf32>
    %cst_360 = arith.constant 9.99999974E-6 : f32
    %893 = vector.broadcast %cst_360 : f32 to vector<2x1xf32>
    %894 = arith.addf %892, %893 : vector<2x1xf32>
    %895 = math.rsqrt %894 : vector<2x1xf32>
    %896 = vector.broadcast %895 : vector<2x1xf32> to vector<2x48xf32>
    %897 = arith.mulf %887, %896 : vector<2x48xf32>
    %898 = vector.broadcast %880 : vector<1x48xf32> to vector<2x48xf32>
    %899 = arith.mulf %897, %898 : vector<2x48xf32>
    %900 = vector.broadcast %881 : vector<1x48xf32> to vector<2x48xf32>
    %901 = arith.addf %899, %900 : vector<2x48xf32>
    %cst_361 = arith.constant 5.000000e-01 : f32
    %902 = vector.broadcast %cst_361 : f32 to vector<2x48xf32>
    %903 = arith.mulf %902, %901 : vector<2x48xf32>
    %cst_362 = arith.constant 0.707106769 : f32
    %904 = vector.broadcast %cst_362 : f32 to vector<2x48xf32>
    %905 = arith.mulf %901, %904 : vector<2x48xf32>
    %cst_363 = arith.constant 0.000000e+00 : f32
    %906 = vector.broadcast %cst_363 : f32 to vector<2x48xf32>
    %907 = arith.cmpf oge, %905, %906 : vector<2x48xf32>
    %cst_364 = arith.constant 1.000000e+00 : f32
    %cst_365 = arith.constant -1.000000e+00 : f32
    %908 = vector.broadcast %cst_364 : f32 to vector<2x48xf32>
    %909 = vector.broadcast %cst_365 : f32 to vector<2x48xf32>
    %910 = arith.select %907, %908, %909 : vector<2x48xi1>, vector<2x48xf32>
    %911 = math.absf %905 : vector<2x48xf32>
    %cst_366 = arith.constant 0.327591091 : f32
    %912 = vector.broadcast %cst_366 : f32 to vector<2x48xf32>
    %913 = arith.mulf %912, %911 : vector<2x48xf32>
    %cst_367 = arith.constant 1.000000e+00 : f32
    %914 = vector.broadcast %cst_367 : f32 to vector<2x48xf32>
    %915 = arith.addf %914, %913 : vector<2x48xf32>
    %cst_368 = arith.constant 1.000000e+00 : f32
    %916 = vector.broadcast %cst_368 : f32 to vector<2x48xf32>
    %917 = arith.divf %916, %915 : vector<2x48xf32>
    %cst_369 = arith.constant 1.06140542 : f32
    %918 = vector.broadcast %cst_369 : f32 to vector<2x48xf32>
    %919 = arith.mulf %918, %917 : vector<2x48xf32>
    %cst_370 = arith.constant -1.45315206 : f32
    %920 = vector.broadcast %cst_370 : f32 to vector<2x48xf32>
    %921 = arith.addf %919, %920 : vector<2x48xf32>
    %922 = arith.mulf %921, %917 : vector<2x48xf32>
    %cst_371 = arith.constant 1.42141378 : f32
    %923 = vector.broadcast %cst_371 : f32 to vector<2x48xf32>
    %924 = arith.addf %922, %923 : vector<2x48xf32>
    %925 = arith.mulf %924, %917 : vector<2x48xf32>
    %cst_372 = arith.constant -0.284496725 : f32
    %926 = vector.broadcast %cst_372 : f32 to vector<2x48xf32>
    %927 = arith.addf %925, %926 : vector<2x48xf32>
    %928 = arith.mulf %927, %917 : vector<2x48xf32>
    %cst_373 = arith.constant 0.254829586 : f32
    %929 = vector.broadcast %cst_373 : f32 to vector<2x48xf32>
    %930 = arith.addf %928, %929 : vector<2x48xf32>
    %931 = arith.mulf %930, %917 : vector<2x48xf32>
    %cst_374 = arith.constant 0.000000e+00 : f32
    %932 = vector.broadcast %cst_374 : f32 to vector<2x48xf32>
    %933 = arith.subf %932, %911 : vector<2x48xf32>
    %934 = arith.mulf %933, %911 : vector<2x48xf32>
    %935 = math.exp %934 : vector<2x48xf32>
    %936 = arith.mulf %931, %935 : vector<2x48xf32>
    %cst_375 = arith.constant 1.000000e+00 : f32
    %937 = vector.broadcast %cst_375 : f32 to vector<2x48xf32>
    %938 = arith.subf %937, %936 : vector<2x48xf32>
    %939 = arith.mulf %910, %938 : vector<2x48xf32>
    %cst_376 = arith.constant 1.000000e+00 : f32
    %940 = vector.broadcast %cst_376 : f32 to vector<2x48xf32>
    %941 = arith.addf %940, %939 : vector<2x48xf32>
    %942 = arith.mulf %903, %941 : vector<2x48xf32>
    %c0_377 = arith.constant 0 : index
    %c0_378 = arith.constant 0 : index
    %943 = vector.load %arg71[%c0_377, %c0_378] : memref<48x24xbf16, #tpu.memory_space<vmem>>, vector<48x24xbf16>
    %944 = arith.truncf %942 : vector<2x48xf32> to vector<2x48xbf16>
    %cst_379 = arith.constant dense<0.000000e+00> : vector<2x24xf32>
    %945 = tpu.matmul %944, %943, %cst_379 {dimension_numbers = #tpu.dot_dimension_numbers<[1], [0], [0], [1], [0, 0, 1, 1], [], []>} : vector<2x48xbf16>, vector<48x24xbf16>, vector<2x24xf32> -> vector<2x24xf32>
    %c0_380 = arith.constant 0 : index
    %c0_381 = arith.constant 0 : index
    %946 = vector.load %arg72[%c0_380, %c0_381] : memref<1x24xf32, #tpu.memory_space<vmem>>, vector<1x24xf32>
    %947 = vector.broadcast %946 : vector<1x24xf32> to vector<2x24xf32>
    %948 = arith.addf %945, %947 : vector<2x24xf32>
    %c0_382 = arith.constant 0 : index
    %c0_383 = arith.constant 0 : index
    %949 = vector.load %arg73[%c0_382, %c0_383] : memref<1x24xf32, #tpu.memory_space<vmem>>, vector<1x24xf32>
    %c0_384 = arith.constant 0 : index
    %c0_385 = arith.constant 0 : index
    %950 = vector.load %arg74[%c0_384, %c0_385] : memref<1x24xf32, #tpu.memory_space<vmem>>, vector<1x24xf32>
    %cst_386 = arith.constant dense<0.000000e+00> : vector<2xf32>
    %951 = vector.multi_reduction <add>, %948, %cst_386 [1] : vector<2x24xf32> to vector<2xf32>
    %952 = vector.shape_cast %951 : vector<2xf32> to vector<2x1xf32>
    %cst_387 = arith.constant 2.400000e+01 : f32
    %953 = vector.broadcast %cst_387 : f32 to vector<2x1xf32>
    %954 = arith.divf %952, %953 : vector<2x1xf32>
    %955 = vector.broadcast %954 : vector<2x1xf32> to vector<2x24xf32>
    %956 = arith.subf %948, %955 : vector<2x24xf32>
    %957 = arith.mulf %956, %956 : vector<2x24xf32>
    %cst_388 = arith.constant dense<0.000000e+00> : vector<2xf32>
    %958 = vector.multi_reduction <add>, %957, %cst_388 [1] : vector<2x24xf32> to vector<2xf32>
    %959 = vector.shape_cast %958 : vector<2xf32> to vector<2x1xf32>
    %cst_389 = arith.constant 2.400000e+01 : f32
    %960 = vector.broadcast %cst_389 : f32 to vector<2x1xf32>
    %961 = arith.divf %959, %960 : vector<2x1xf32>
    %cst_390 = arith.constant 9.99999974E-6 : f32
    %962 = vector.broadcast %cst_390 : f32 to vector<2x1xf32>
    %963 = arith.addf %961, %962 : vector<2x1xf32>
    %964 = math.rsqrt %963 : vector<2x1xf32>
    %965 = vector.broadcast %964 : vector<2x1xf32> to vector<2x24xf32>
    %966 = arith.mulf %956, %965 : vector<2x24xf32>
    %967 = vector.broadcast %949 : vector<1x24xf32> to vector<2x24xf32>
    %968 = arith.mulf %966, %967 : vector<2x24xf32>
    %969 = vector.broadcast %950 : vector<1x24xf32> to vector<2x24xf32>
    %970 = arith.addf %968, %969 : vector<2x24xf32>
    %cst_391 = arith.constant 5.000000e-01 : f32
    %971 = vector.broadcast %cst_391 : f32 to vector<2x24xf32>
    %972 = arith.mulf %971, %970 : vector<2x24xf32>
    %cst_392 = arith.constant 0.707106769 : f32
    %973 = vector.broadcast %cst_392 : f32 to vector<2x24xf32>
    %974 = arith.mulf %970, %973 : vector<2x24xf32>
    %cst_393 = arith.constant 0.000000e+00 : f32
    %975 = vector.broadcast %cst_393 : f32 to vector<2x24xf32>
    %976 = arith.cmpf oge, %974, %975 : vector<2x24xf32>
    %cst_394 = arith.constant 1.000000e+00 : f32
    %cst_395 = arith.constant -1.000000e+00 : f32
    %977 = vector.broadcast %cst_394 : f32 to vector<2x24xf32>
    %978 = vector.broadcast %cst_395 : f32 to vector<2x24xf32>
    %979 = arith.select %976, %977, %978 : vector<2x24xi1>, vector<2x24xf32>
    %980 = math.absf %974 : vector<2x24xf32>
    %cst_396 = arith.constant 0.327591091 : f32
    %981 = vector.broadcast %cst_396 : f32 to vector<2x24xf32>
    %982 = arith.mulf %981, %980 : vector<2x24xf32>
    %cst_397 = arith.constant 1.000000e+00 : f32
    %983 = vector.broadcast %cst_397 : f32 to vector<2x24xf32>
    %984 = arith.addf %983, %982 : vector<2x24xf32>
    %cst_398 = arith.constant 1.000000e+00 : f32
    %985 = vector.broadcast %cst_398 : f32 to vector<2x24xf32>
    %986 = arith.divf %985, %984 : vector<2x24xf32>
    %cst_399 = arith.constant 1.06140542 : f32
    %987 = vector.broadcast %cst_399 : f32 to vector<2x24xf32>
    %988 = arith.mulf %987, %986 : vector<2x24xf32>
    %cst_400 = arith.constant -1.45315206 : f32
    %989 = vector.broadcast %cst_400 : f32 to vector<2x24xf32>
    %990 = arith.addf %988, %989 : vector<2x24xf32>
    %991 = arith.mulf %990, %986 : vector<2x24xf32>
    %cst_401 = arith.constant 1.42141378 : f32
    %992 = vector.broadcast %cst_401 : f32 to vector<2x24xf32>
    %993 = arith.addf %991, %992 : vector<2x24xf32>
    %994 = arith.mulf %993, %986 : vector<2x24xf32>
    %cst_402 = arith.constant -0.284496725 : f32
    %995 = vector.broadcast %cst_402 : f32 to vector<2x24xf32>
    %996 = arith.addf %994, %995 : vector<2x24xf32>
    %997 = arith.mulf %996, %986 : vector<2x24xf32>
    %cst_403 = arith.constant 0.254829586 : f32
    %998 = vector.broadcast %cst_403 : f32 to vector<2x24xf32>
    %999 = arith.addf %997, %998 : vector<2x24xf32>
    %1000 = arith.mulf %999, %986 : vector<2x24xf32>
    %cst_404 = arith.constant 0.000000e+00 : f32
    %1001 = vector.broadcast %cst_404 : f32 to vector<2x24xf32>
    %1002 = arith.subf %1001, %980 : vector<2x24xf32>
    %1003 = arith.mulf %1002, %980 : vector<2x24xf32>
    %1004 = math.exp %1003 : vector<2x24xf32>
    %1005 = arith.mulf %1000, %1004 : vector<2x24xf32>
    %cst_405 = arith.constant 1.000000e+00 : f32
    %1006 = vector.broadcast %cst_405 : f32 to vector<2x24xf32>
    %1007 = arith.subf %1006, %1005 : vector<2x24xf32>
    %1008 = arith.mulf %979, %1007 : vector<2x24xf32>
    %cst_406 = arith.constant 1.000000e+00 : f32
    %1009 = vector.broadcast %cst_406 : f32 to vector<2x24xf32>
    %1010 = arith.addf %1009, %1008 : vector<2x24xf32>
    %1011 = arith.mulf %972, %1010 : vector<2x24xf32>
    %c0_407 = arith.constant 0 : index
    %c0_408 = arith.constant 0 : index
    %1012 = vector.load %arg75[%c0_407, %c0_408] : memref<24x3xbf16, #tpu.memory_space<vmem>>, vector<24x3xbf16>
    %1013 = arith.truncf %1011 : vector<2x24xf32> to vector<2x24xbf16>
    %cst_409 = arith.constant dense<0.000000e+00> : vector<2x3xf32>
    %1014 = tpu.matmul %1013, %1012, %cst_409 {dimension_numbers = #tpu.dot_dimension_numbers<[1], [0], [0], [1], [0, 0, 1, 1], [], []>} : vector<2x24xbf16>, vector<24x3xbf16>, vector<2x3xf32> -> vector<2x3xf32>
    %c0_410 = arith.constant 0 : index
    %c0_411 = arith.constant 0 : index
    %1015 = vector.load %arg76[%c0_410, %c0_411] : memref<1x3xf32, #tpu.memory_space<vmem>>, vector<1x3xf32>
    %1016 = vector.broadcast %1015 : vector<1x3xf32> to vector<2x3xf32>
    %1017 = arith.addf %1014, %1016 : vector<2x3xf32>
    %c0_412 = arith.constant 0 : index
    %c0_413 = arith.constant 0 : index
    %1018 = vector.load %arg77[%c0_412, %c0_413] : memref<2x64xf32, #tpu.memory_space<vmem>>, vector<2x64xf32>
    tpu.vector_store %arg77[%c0_412, %c0_413], %873 {strides = array<i32>} : memref<2x64xf32, #tpu.memory_space<vmem>>, vector<2x64xf32>,
    %c0_414 = arith.constant 0 : index
    %c0_415 = arith.constant 0 : index
    %1019 = vector.load %arg78[%c0_414, %c0_415] : memref<2x3xf32, #tpu.memory_space<vmem>>, vector<2x3xf32>
    tpu.vector_store %arg78[%c0_414, %c0_415], %1017 {strides = array<i32>} : memref<2x3xf32, #tpu.memory_space<vmem>>, vector<2x3xf32>,
    return
  }
  func.func @transform_0(%arg0: i32) -> (i32, i32, i32) {
    %c0_i32 = arith.constant 0 : i32
    %c0_i32_0 = arith.constant 0 : i32
    %c0_i32_1 = arith.constant 0 : i32
    return %arg0, %c0_i32, %c0_i32_0 : i32, i32, i32
  }
  func.func @transform_1(%arg0: i32) -> (i32, i32) {
    %c0_i32 = arith.constant 0 : i32
    %c0_i32_0 = arith.constant 0 : i32
    %c0_i32_1 = arith.constant 0 : i32
    return %c0_i32, %c0_i32_0 : i32, i32
  }
  func.func @transform_2(%arg0: i32) -> (i32, i32) {
    %c0_i32 = arith.constant 0 : i32
    %c0_i32_0 = arith.constant 0 : i32
    %c0_i32_1 = arith.constant 0 : i32
    return %c0_i32, %c0_i32_0 : i32, i32
  }
  func.func @transform_3(%arg0: i32) -> (i32, i32) {
    %c0_i32 = arith.constant 0 : i32
    %c0_i32_0 = arith.constant 0 : i32
    %c0_i32_1 = arith.constant 0 : i32
    return %c0_i32, %c0_i32_0 : i32, i32
  }
  func.func @transform_4(%arg0: i32) -> (i32, i32) {
    %c0_i32 = arith.constant 0 : i32
    %c0_i32_0 = arith.constant 0 : i32
    %c0_i32_1 = arith.constant 0 : i32
    return %c0_i32, %c0_i32_0 : i32, i32
  }
  func.func @transform_5(%arg0: i32) -> (i32, i32) {
    %c0_i32 = arith.constant 0 : i32
    %c0_i32_0 = arith.constant 0 : i32
    %c0_i32_1 = arith.constant 0 : i32
    return %c0_i32, %c0_i32_0 : i32, i32
  }
  func.func @transform_6(%arg0: i32) -> (i32, i32) {
    %c0_i32 = arith.constant 0 : i32
    %c0_i32_0 = arith.constant 0 : i32
    %c0_i32_1 = arith.constant 0 : i32
    return %c0_i32, %c0_i32_0 : i32, i32
  }
  func.func @transform_7(%arg0: i32) -> (i32, i32) {
    %c0_i32 = arith.constant 0 : i32
    %c0_i32_0 = arith.constant 0 : i32
    %c0_i32_1 = arith.constant 0 : i32
    return %c0_i32, %c0_i32_0 : i32, i32
  }
  func.func @transform_8(%arg0: i32) -> (i32, i32) {
    %c0_i32 = arith.constant 0 : i32
    %c0_i32_0 = arith.constant 0 : i32
    %c0_i32_1 = arith.constant 0 : i32
    return %c0_i32, %c0_i32_0 : i32, i32
  }
  func.func @transform_9(%arg0: i32) -> (i32, i32, i32) {
    %c0_i32 = arith.constant 0 : i32
    %c0_i32_0 = arith.constant 0 : i32
    %c0_i32_1 = arith.constant 0 : i32
    %c0_i32_2 = arith.constant 0 : i32
    return %c0_i32, %c0_i32_0, %c0_i32_1 : i32, i32, i32
  }
  func.func @transform_10(%arg0: i32) -> (i32, i32) {
    %c0_i32 = arith.constant 0 : i32
    %c0_i32_0 = arith.constant 0 : i32
    %c0_i32_1 = arith.constant 0 : i32
    return %c0_i32, %c0_i32_0 : i32, i32
  }
  func.func @transform_11(%arg0: i32) -> (i32, i32) {
    %c0_i32 = arith.constant 0 : i32
    %c0_i32_0 = arith.constant 0 : i32
    %c0_i32_1 = arith.constant 0 : i32
    return %c0_i32, %c0_i32_0 : i32, i32
  }
  func.func @transform_12(%arg0: i32) -> (i32, i32) {
    %c0_i32 = arith.constant 0 : i32
    %c0_i32_0 = arith.constant 0 : i32
    %c0_i32_1 = arith.constant 0 : i32
    return %c0_i32, %c0_i32_0 : i32, i32
  }
  func.func @transform_13(%arg0: i32) -> (i32, i32) {
    %c0_i32 = arith.constant 0 : i32
    %c0_i32_0 = arith.constant 0 : i32
    %c0_i32_1 = arith.constant 0 : i32
    return %c0_i32, %c0_i32_0 : i32, i32
  }
  func.func @transform_14(%arg0: i32) -> (i32, i32) {
    %c0_i32 = arith.constant 0 : i32
    %c0_i32_0 = arith.constant 0 : i32
    %c0_i32_1 = arith.constant 0 : i32
    return %c0_i32, %c0_i32_0 : i32, i32
  }
  func.func @transform_15(%arg0: i32) -> (i32, i32) {
    %c0_i32 = arith.constant 0 : i32
    %c0_i32_0 = arith.constant 0 : i32
    %c0_i32_1 = arith.constant 0 : i32
    return %c0_i32, %c0_i32_0 : i32, i32
  }
  func.func @transform_16(%arg0: i32) -> (i32, i32) {
    %c0_i32 = arith.constant 0 : i32
    %c0_i32_0 = arith.constant 0 : i32
    %c0_i32_1 = arith.constant 0 : i32
    return %c0_i32, %c0_i32_0 : i32, i32
  }
  func.func @transform_17(%arg0: i32) -> (i32, i32) {
    %c0_i32 = arith.constant 0 : i32
    %c0_i32_0 = arith.constant 0 : i32
    %c0_i32_1 = arith.constant 0 : i32
    return %c0_i32, %c0_i32_0 : i32, i32
  }
  func.func @transform_18(%arg0: i32) -> (i32, i32) {
    %c0_i32 = arith.constant 0 : i32
    %c0_i32_0 = arith.constant 0 : i32
    %c0_i32_1 = arith.constant 0 : i32
    return %c0_i32, %c0_i32_0 : i32, i32
  }
  func.func @transform_19(%arg0: i32) -> (i32, i32) {
    %c0_i32 = arith.constant 0 : i32
    %c0_i32_0 = arith.constant 0 : i32
    %c0_i32_1 = arith.constant 0 : i32
    return %c0_i32, %c0_i32_0 : i32, i32
  }
  func.func @transform_20(%arg0: i32) -> (i32, i32) {
    %c0_i32 = arith.constant 0 : i32
    %c0_i32_0 = arith.constant 0 : i32
    %c0_i32_1 = arith.constant 0 : i32
    return %c0_i32, %c0_i32_0 : i32, i32
  }
  func.func @transform_21(%arg0: i32) -> (i32, i32) {
    %c0_i32 = arith.constant 0 : i32
    %c0_i32_0 = arith.constant 0 : i32
    %c0_i32_1 = arith.constant 0 : i32
    return %c0_i32, %c0_i32_0 : i32, i32
  }
  func.func @transform_22(%arg0: i32) -> (i32, i32, i32) {
    %c0_i32 = arith.constant 0 : i32
    %c0_i32_0 = arith.constant 0 : i32
    %c0_i32_1 = arith.constant 0 : i32
    %c0_i32_2 = arith.constant 0 : i32
    return %c0_i32, %c0_i32_0, %c0_i32_1 : i32, i32, i32
  }
  func.func @transform_23(%arg0: i32) -> (i32, i32) {
    %c0_i32 = arith.constant 0 : i32
    %c0_i32_0 = arith.constant 0 : i32
    %c0_i32_1 = arith.constant 0 : i32
    return %c0_i32, %c0_i32_0 : i32, i32
  }
  func.func @transform_24(%arg0: i32) -> (i32, i32) {
    %c0_i32 = arith.constant 0 : i32
    %c0_i32_0 = arith.constant 0 : i32
    %c0_i32_1 = arith.constant 0 : i32
    return %c0_i32, %c0_i32_0 : i32, i32
  }
  func.func @transform_25(%arg0: i32) -> (i32, i32) {
    %c0_i32 = arith.constant 0 : i32
    %c0_i32_0 = arith.constant 0 : i32
    %c0_i32_1 = arith.constant 0 : i32
    return %c0_i32, %c0_i32_0 : i32, i32
  }
  func.func @transform_26(%arg0: i32) -> (i32, i32) {
    %c0_i32 = arith.constant 0 : i32
    %c0_i32_0 = arith.constant 0 : i32
    %c0_i32_1 = arith.constant 0 : i32
    return %c0_i32, %c0_i32_0 : i32, i32
  }
  func.func @transform_27(%arg0: i32) -> (i32, i32) {
    %c0_i32 = arith.constant 0 : i32
    %c0_i32_0 = arith.constant 0 : i32
    %c0_i32_1 = arith.constant 0 : i32
    return %c0_i32, %c0_i32_0 : i32, i32
  }
  func.func @transform_28(%arg0: i32) -> (i32, i32) {
    %c0_i32 = arith.constant 0 : i32
    %c0_i32_0 = arith.constant 0 : i32
    %c0_i32_1 = arith.constant 0 : i32
    return %c0_i32, %c0_i32_0 : i32, i32
  }
  func.func @transform_29(%arg0: i32) -> (i32, i32) {
    %c0_i32 = arith.constant 0 : i32
    %c0_i32_0 = arith.constant 0 : i32
    %c0_i32_1 = arith.constant 0 : i32
    return %c0_i32, %c0_i32_0 : i32, i32
  }
  func.func @transform_30(%arg0: i32) -> (i32, i32) {
    %c0_i32 = arith.constant 0 : i32
    %c0_i32_0 = arith.constant 0 : i32
    %c0_i32_1 = arith.constant 0 : i32
    return %c0_i32, %c0_i32_0 : i32, i32
  }
  func.func @transform_31(%arg0: i32) -> (i32, i32) {
    %c0_i32 = arith.constant 0 : i32
    %c0_i32_0 = arith.constant 0 : i32
    %c0_i32_1 = arith.constant 0 : i32
    return %c0_i32, %c0_i32_0 : i32, i32
  }
  func.func @transform_32(%arg0: i32) -> (i32, i32) {
    %c0_i32 = arith.constant 0 : i32
    %c0_i32_0 = arith.constant 0 : i32
    %c0_i32_1 = arith.constant 0 : i32
    return %c0_i32, %c0_i32_0 : i32, i32
  }
  func.func @transform_33(%arg0: i32) -> (i32, i32) {
    %c0_i32 = arith.constant 0 : i32
    %c0_i32_0 = arith.constant 0 : i32
    %c0_i32_1 = arith.constant 0 : i32
    return %c0_i32, %c0_i32_0 : i32, i32
  }
  func.func @transform_34(%arg0: i32) -> (i32, i32) {
    %c0_i32 = arith.constant 0 : i32
    %c0_i32_0 = arith.constant 0 : i32
    %c0_i32_1 = arith.constant 0 : i32
    return %c0_i32, %c0_i32_0 : i32, i32
  }
  func.func @transform_35(%arg0: i32) -> (i32, i32) {
    %c0_i32 = arith.constant 0 : i32
    %c0_i32_0 = arith.constant 0 : i32
    %c0_i32_1 = arith.constant 0 : i32
    return %c0_i32, %c0_i32_0 : i32, i32
  }
  func.func @transform_36(%arg0: i32) -> (i32, i32) {
    %c0_i32 = arith.constant 0 : i32
    %c0_i32_0 = arith.constant 0 : i32
    %c0_i32_1 = arith.constant 0 : i32
    return %c0_i32, %c0_i32_0 : i32, i32
  }
  func.func @transform_37(%arg0: i32) -> (i32, i32) {
    %c0_i32 = arith.constant 0 : i32
    %c0_i32_0 = arith.constant 0 : i32
    %c0_i32_1 = arith.constant 0 : i32
    return %c0_i32, %c0_i32_0 : i32, i32
  }
  func.func @transform_38(%arg0: i32) -> (i32, i32) {
    %c0_i32 = arith.constant 0 : i32
    %c0_i32_0 = arith.constant 0 : i32
    %c0_i32_1 = arith.constant 0 : i32
    return %c0_i32, %c0_i32_0 : i32, i32
  }
  func.func @transform_39(%arg0: i32) -> (i32, i32) {
    %c0_i32 = arith.constant 0 : i32
    %c0_i32_0 = arith.constant 0 : i32
    %c0_i32_1 = arith.constant 0 : i32
    return %c0_i32, %c0_i32_0 : i32, i32
  }
  func.func @transform_40(%arg0: i32) -> (i32, i32) {
    %c0_i32 = arith.constant 0 : i32
    %c0_i32_0 = arith.constant 0 : i32
    %c0_i32_1 = arith.constant 0 : i32
    return %c0_i32, %c0_i32_0 : i32, i32
  }
  func.func @transform_41(%arg0: i32) -> (i32, i32) {
    %c0_i32 = arith.constant 0 : i32
    %c0_i32_0 = arith.constant 0 : i32
    %c0_i32_1 = arith.constant 0 : i32
    return %c0_i32, %c0_i32_0 : i32, i32
  }
  func.func @transform_42(%arg0: i32) -> (i32, i32, i32) {
    %c0_i32 = arith.constant 0 : i32
    %c0_i32_0 = arith.constant 0 : i32
    %c0_i32_1 = arith.constant 0 : i32
    %c0_i32_2 = arith.constant 0 : i32
    return %c0_i32, %c0_i32_0, %c0_i32_1 : i32, i32, i32
  }
  func.func @transform_43(%arg0: i32) -> (i32, i32) {
    %c0_i32 = arith.constant 0 : i32
    %c0_i32_0 = arith.constant 0 : i32
    %c0_i32_1 = arith.constant 0 : i32
    return %c0_i32, %c0_i32_0 : i32, i32
  }
  func.func @transform_44(%arg0: i32) -> (i32, i32) {
    %c0_i32 = arith.constant 0 : i32
    %c0_i32_0 = arith.constant 0 : i32
    %c0_i32_1 = arith.constant 0 : i32
    return %c0_i32, %c0_i32_0 : i32, i32
  }
  func.func @transform_45(%arg0: i32) -> (i32, i32) {
    %c0_i32 = arith.constant 0 : i32
    %c0_i32_0 = arith.constant 0 : i32
    %c0_i32_1 = arith.constant 0 : i32
    return %c0_i32, %c0_i32_0 : i32, i32
  }
  func.func @transform_46(%arg0: i32) -> (i32, i32) {
    %c0_i32 = arith.constant 0 : i32
    %c0_i32_0 = arith.constant 0 : i32
    %c0_i32_1 = arith.constant 0 : i32
    return %c0_i32, %c0_i32_0 : i32, i32
  }
  func.func @transform_47(%arg0: i32) -> (i32, i32) {
    %c0_i32 = arith.constant 0 : i32
    %c0_i32_0 = arith.constant 0 : i32
    %c0_i32_1 = arith.constant 0 : i32
    return %c0_i32, %c0_i32_0 : i32, i32
  }
  func.func @transform_48(%arg0: i32) -> (i32, i32) {
    %c0_i32 = arith.constant 0 : i32
    %c0_i32_0 = arith.constant 0 : i32
    %c0_i32_1 = arith.constant 0 : i32
    return %c0_i32, %c0_i32_0 : i32, i32
  }
  func.func @transform_49(%arg0: i32) -> (i32, i32) {
    %c0_i32 = arith.constant 0 : i32
    %c0_i32_0 = arith.constant 0 : i32
    %c0_i32_1 = arith.constant 0 : i32
    return %c0_i32, %c0_i32_0 : i32, i32
  }
  func.func @transform_50(%arg0: i32) -> (i32, i32) {
    %c0_i32 = arith.constant 0 : i32
    %c0_i32_0 = arith.constant 0 : i32
    %c0_i32_1 = arith.constant 0 : i32
    return %c0_i32, %c0_i32_0 : i32, i32
  }
  func.func @transform_51(%arg0: i32) -> (i32, i32) {
    %c0_i32 = arith.constant 0 : i32
    %c0_i32_0 = arith.constant 0 : i32
    %c0_i32_1 = arith.constant 0 : i32
    return %c0_i32, %c0_i32_0 : i32, i32
  }
  func.func @transform_52(%arg0: i32) -> (i32, i32) {
    %c0_i32 = arith.constant 0 : i32
    %c0_i32_0 = arith.constant 0 : i32
    %c0_i32_1 = arith.constant 0 : i32
    return %c0_i32, %c0_i32_0 : i32, i32
  }
  func.func @transform_53(%arg0: i32) -> (i32, i32) {
    %c0_i32 = arith.constant 0 : i32
    %c0_i32_0 = arith.constant 0 : i32
    %c0_i32_1 = arith.constant 0 : i32
    return %c0_i32, %c0_i32_0 : i32, i32
  }
  func.func @transform_54(%arg0: i32) -> (i32, i32) {
    %c0_i32 = arith.constant 0 : i32
    %c0_i32_0 = arith.constant 0 : i32
    %c0_i32_1 = arith.constant 0 : i32
    return %c0_i32, %c0_i32_0 : i32, i32
  }
  func.func @transform_55(%arg0: i32) -> (i32, i32, i32) {
    %c0_i32 = arith.constant 0 : i32
    %c0_i32_0 = arith.constant 0 : i32
    %c0_i32_1 = arith.constant 0 : i32
    %c0_i32_2 = arith.constant 0 : i32
    return %c0_i32, %c0_i32_0, %c0_i32_1 : i32, i32, i32
  }
  func.func @transform_56(%arg0: i32) -> (i32, i32) {
    %c0_i32 = arith.constant 0 : i32
    %c0_i32_0 = arith.constant 0 : i32
    %c0_i32_1 = arith.constant 0 : i32
    return %c0_i32, %c0_i32_0 : i32, i32
  }
  func.func @transform_57(%arg0: i32) -> (i32, i32) {
    %c0_i32 = arith.constant 0 : i32
    %c0_i32_0 = arith.constant 0 : i32
    %c0_i32_1 = arith.constant 0 : i32
    return %c0_i32, %c0_i32_0 : i32, i32
  }
  func.func @transform_58(%arg0: i32) -> (i32, i32) {
    %c0_i32 = arith.constant 0 : i32
    %c0_i32_0 = arith.constant 0 : i32
    %c0_i32_1 = arith.constant 0 : i32
    return %c0_i32, %c0_i32_0 : i32, i32
  }
  func.func @transform_59(%arg0: i32) -> (i32, i32) {
    %c0_i32 = arith.constant 0 : i32
    %c0_i32_0 = arith.constant 0 : i32
    %c0_i32_1 = arith.constant 0 : i32
    return %c0_i32, %c0_i32_0 : i32, i32
  }
  func.func @transform_60(%arg0: i32) -> (i32, i32) {
    %c0_i32 = arith.constant 0 : i32
    %c0_i32_0 = arith.constant 0 : i32
    %c0_i32_1 = arith.constant 0 : i32
    return %c0_i32, %c0_i32_0 : i32, i32
  }
  func.func @transform_61(%arg0: i32) -> (i32, i32) {
    %c0_i32 = arith.constant 0 : i32
    %c0_i32_0 = arith.constant 0 : i32
    %c0_i32_1 = arith.constant 0 : i32
    return %c0_i32, %c0_i32_0 : i32, i32
  }
  func.func @transform_62(%arg0: i32) -> (i32, i32) {
    %c0_i32 = arith.constant 0 : i32
    %c0_i32_0 = arith.constant 0 : i32
    %c0_i32_1 = arith.constant 0 : i32
    return %c0_i32, %c0_i32_0 : i32, i32
  }
  func.func @transform_63(%arg0: i32) -> (i32, i32) {
    %c0_i32 = arith.constant 0 : i32
    %c0_i32_0 = arith.constant 0 : i32
    %c0_i32_1 = arith.constant 0 : i32
    return %c0_i32, %c0_i32_0 : i32, i32
  }
  func.func @transform_64(%arg0: i32) -> (i32, i32) {
    %c0_i32 = arith.constant 0 : i32
    %c0_i32_0 = arith.constant 0 : i32
    %c0_i32_1 = arith.constant 0 : i32
    return %c0_i32, %c0_i32_0 : i32, i32
  }
  func.func @transform_65(%arg0: i32) -> (i32, i32) {
    %c0_i32 = arith.constant 0 : i32
    %c0_i32_0 = arith.constant 0 : i32
    %c0_i32_1 = arith.constant 0 : i32
    return %c0_i32, %c0_i32_0 : i32, i32
  }
  func.func @transform_66(%arg0: i32) -> (i32, i32) {
    %c0_i32 = arith.constant 0 : i32
    %c0_i32_0 = arith.constant 0 : i32
    %c0_i32_1 = arith.constant 0 : i32
    return %c0_i32, %c0_i32_0 : i32, i32
  }
  func.func @transform_67(%arg0: i32) -> (i32, i32) {
    %c0_i32 = arith.constant 0 : i32
    %c0_i32_0 = arith.constant 0 : i32
    %c0_i32_1 = arith.constant 0 : i32
    return %c0_i32, %c0_i32_0 : i32, i32
  }
  func.func @transform_68(%arg0: i32) -> (i32, i32) {
    %c0_i32 = arith.constant 0 : i32
    %c0_i32_0 = arith.constant 0 : i32
    %c0_i32_1 = arith.constant 0 : i32
    return %c0_i32, %c0_i32_0 : i32, i32
  }
  func.func @transform_69(%arg0: i32) -> (i32, i32) {
    %c0_i32 = arith.constant 0 : i32
    %c0_i32_0 = arith.constant 0 : i32
    %c0_i32_1 = arith.constant 0 : i32
    return %c0_i32, %c0_i32_0 : i32, i32
  }
  func.func @transform_70(%arg0: i32) -> (i32, i32) {
    %c0_i32 = arith.constant 0 : i32
    %c0_i32_0 = arith.constant 0 : i32
    %c0_i32_1 = arith.constant 0 : i32
    return %c0_i32, %c0_i32_0 : i32, i32
  }
  func.func @transform_71(%arg0: i32) -> (i32, i32) {
    %c0_i32 = arith.constant 0 : i32
    %c0_i32_0 = arith.constant 0 : i32
    %c0_i32_1 = arith.constant 0 : i32
    return %c0_i32, %c0_i32_0 : i32, i32
  }
  func.func @transform_72(%arg0: i32) -> (i32, i32) {
    %c0_i32 = arith.constant 0 : i32
    %c0_i32_0 = arith.constant 0 : i32
    %c0_i32_1 = arith.constant 0 : i32
    return %c0_i32, %c0_i32_0 : i32, i32
  }
  func.func @transform_73(%arg0: i32) -> (i32, i32) {
    %c0_i32 = arith.constant 0 : i32
    %c0_i32_0 = arith.constant 0 : i32
    %c0_i32_1 = arith.constant 0 : i32
    return %c0_i32, %c0_i32_0 : i32, i32
  }
  func.func @transform_74(%arg0: i32) -> (i32, i32) {
    %c0_i32 = arith.constant 0 : i32
    %c0_i32_0 = arith.constant 0 : i32
    %c0_i32_1 = arith.constant 0 : i32
    return %c0_i32, %c0_i32_0 : i32, i32
  }
  func.func @transform_75(%arg0: i32) -> (i32, i32) {
    %c0_i32 = arith.constant 0 : i32
    %c0_i32_0 = arith.constant 0 : i32
    %c0_i32_1 = arith.constant 0 : i32
    return %c0_i32, %c0_i32_0 : i32, i32
  }
  func.func @transform_76(%arg0: i32) -> (i32, i32) {
    %c0_i32 = arith.constant 0 : i32
    %c0_i32_0 = arith.constant 0 : i32
    return %arg0, %c0_i32 : i32, i32
  }
  func.func @transform_77(%arg0: i32) -> (i32, i32) {
    %c0_i32 = arith.constant 0 : i32
    %c0_i32_0 = arith.constant 0 : i32
    return %arg0, %c0_i32 : i32, i32
  }
}

</mosaic_0001>

<bundles_post_ra>
// kernel: _lambda_.1
= control target key start
LH: loop header
LB: loop body
LE: loop exit
PB: predicated region body
PF: predicated region fallthrough
CT: control target
= control target key end

     0   :  { %s7704_s6 = smov 1   ;;  %s7705_s10 = smov 2   ;;  %s9368_s0 = inlined_call_operand.smem [shape: u32[78], index: -1, kind: input, shape index: {}] }
   0x1   :  { %s7840_s5 = sld [smem:[%s9368_s0]]   ;;  %s7706_s14 = smov 3  }
   0x2   :  { %s7845_s9 = sld [smem:[%s9368_s0 + %s7704_s6]]   ;;  %s7707_s18 = smov 4  }
   0x3   :  { %s7850_s13 = sld [smem:[%s9368_s0 + %s7705_s10]]   ;;  %s7708_s22 = smov 5  }
   0x4   :  { %s7855_s17 = sld [smem:[%s9368_s0 + %s7706_s14]]   ;;  %s7709_s26 = smov 6  }
   0x5   :  { %s7860_s21 = sld [smem:[%s9368_s0 + %s7707_s18]]   ;;  %s7710_s30 = smov 7  }
   0x6   :  { %s7865_s25 = sld [smem:[%s9368_s0 + %s7708_s22]]   ;;  %s7711_s4 = smov 8  }
   0x7   :  { %9414 = sst [smem:[#allocation79_spill]] %s7840_s5  ;;  %s7712_s10 = smov 9  }
   0x8   :  { %9415 = sst [smem:[#allocation80_spill]] %s7845_s9  ;;  %s7713_s15 = smov 10  }
   0x9   :  { %9416 = sst [smem:[#allocation81_spill]] %s7850_s13  ;;  %s7714_s20 = smov 11  }
   0xa   :  { %9417 = sst [smem:[#allocation82_spill]] %s7855_s17  ;;  %s7716_s1 = smov 13  }
   0xb   :  { %9418 = sst [smem:[#allocation83_spill]] %s7860_s21  ;;  %s7717_s7 = smov 14  }
   0xc   :  { %9419 = sst [smem:[#allocation84_spill]] %s7865_s25  ;;  %s7719_s22 = smov 16  }
   0xd   :  { %s7870_s29 = sld [smem:[%s9368_s0 + %s7709_s26]]   ;;  %s7715_s26 = smov 12  }
   0xe   :  { %s7875_s3 = sld [smem:[%s9368_s0 + %s7710_s30]]   ;;  %s7720_s28 = smov 17  }
   0xf   :  { %s7880_s8 = sld [smem:[%s9368_s0 + %s7711_s4]]  }
  0x10   :  { %s7885_s14 = sld [smem:[%s9368_s0 + %s7712_s10]]  }
  0x11   :  { %s7890_s19 = sld [smem:[%s9368_s0 + %s7713_s15]]   ;;  %s7718_s15 = smov 15  }
  0x12   :  { %s7895_s24 = sld [smem:[%s9368_s0 + %s7714_s20]]  }
  0x13   :  { %9420 = sst [smem:[#allocation85_spill]] %s7870_s29 }
  0x14   :  { %9421 = sst [smem:[#allocation86_spill]] %s7875_s3 }
  0x15   :  { %9422 = sst [smem:[#allocation87_spill]] %s7880_s8 }
  0x16   :  { %9423 = sst [smem:[#allocation88_spill]] %s7885_s14 }
  0x17   :  { %9424 = sst [smem:[#allocation89_spill]] %s7890_s19 }
  0x18   :  { %9425 = sst [smem:[#allocation90_spill]] %s7895_s24 }
  0x19   :  { %s7900_s30 = sld [smem:[%s9368_s0 + %s7715_s26]]  }
  0x1a   :  { %s7905_s6 = sld [smem:[%s9368_s0 + %s7716_s1]]  }
  0x1b   :  { %s7910_s12 = sld [smem:[%s9368_s0 + %s7717_s7]]   ;;  %s7721_s7 = smov 18  }
  0x1c   :  { %s7915_s20 = sld [smem:[%s9368_s0 + %s7718_s15]]   ;;  %s7722_s15 = smov 19  }
  0x1d   :  { %s7920_s27 = sld [smem:[%s9368_s0 + %s7719_s22]]   ;;  %s7723_s22 = smov 20  }
  0x1e   :  { %s7925_s4 = sld [smem:[%s9368_s0 + %s7720_s28]]   ;;  %s7724_s28 = smov 21  }
  0x1f   :  { %9426 = sst [smem:[#allocation91_spill]] %s7900_s30 }
  0x20   :  { %s7935_s24 = sld [smem:[%s9368_s0 + %s7722_s15]]   ;;  %s7726_s15 = smov 23  }
  0x21   :  { %9427 = sst [smem:[#allocation92_spill]] %s7910_s12 }
  0x22   :  { %9428 = sst [smem:[#allocation93_spill]] %s7915_s20 }
  0x23   :  { %9429 = sst [smem:[#allocation94_spill]] %s7920_s27 }
  0x24   :  { %s7930_s12 = sld [smem:[%s9368_s0 + %s7721_s7]]   ;;  %s7725_s7 = smov 22  }
  0x25   :  { %s7940_s27 = sld [smem:[%s9368_s0 + %s7723_s22]]   ;;  %s7727_s22 = smov 24  }
  0x26   :  { %s7945_s19 = sld [smem:[%s9368_s0 + %s7724_s28]]   ;;  %s7728_s28 = smov 25  }
  0x27   :  { %s7950_s14 = sld [smem:[%s9368_s0 + %s7725_s7]]   ;;  %s7729_s7 = smov 26  }
  0x28   :  { %s7955_s8 = sld [smem:[%s9368_s0 + %s7726_s15]]   ;;  %s7730_s15 = smov 27  }
  0x29   :  { %s7965_s29 = sld [smem:[%s9368_s0 + %s7728_s28]]   ;;  %s7732_s28 = smov 29  }
  0x2a   :  { %9430 = sst [smem:[#allocation95_spill]] %s7930_s12 }
  0x2b   :  { %9431 = sst [smem:[#allocation96_spill]] %s7940_s27 }
  0x2c   :  { %9432 = sst [smem:[#allocation97_spill]] %s7945_s19 }
  0x2d   :  { %9433 = sst [smem:[#allocation98_spill]] %s7950_s14 }
  0x2e   :  { %9434 = sst [smem:[#allocation99_spill]] %s7955_s8 }
  0x2f   :  { %s7960_s27 = sld [smem:[%s9368_s0 + %s7727_s22]]   ;;  %s7731_s22 = smov 28  }
  0x30   :  { %9435 = sst [smem:[#allocation100_spill]] %s7965_s29 }
  0x31   :  { %s7970_s14 = sld [smem:[%s9368_s0 + %s7729_s7]]   ;;  %s7733_s7 = smov 30  }
  0x32   :  { %s7975_s8 = sld [smem:[%s9368_s0 + %s7730_s15]]   ;;  %s7734_s15 = smov 31  }
  0x33   :  { %s7980_s25 = sld [smem:[%s9368_s0 + %s7731_s22]]   ;;  %s7735_s22 = smov 32  }
  0x34   :  { %s7985_s3 = sld [smem:[%s9368_s0 + %s7732_s28]]   ;;  %s7736_s28 = smov 33  }
  0x35   :  { %s7990_s21 = sld [smem:[%s9368_s0 + %s7733_s7]]   ;;  %s7737_s7 = smov 34  }
  0x36   :  { %s8000_s17 = sld [smem:[%s9368_s0 + %s7735_s22]]   ;;  %s7739_s22 = smov 36  }
  0x37   :  { %s8010_s13 = sld [smem:[%s9368_s0 + %s7737_s7]]   ;;  %s7741_s7 = smov 38  }
  0x38   :  { %9436 = sst [smem:[#allocation101_spill]] %s7975_s8 }
  0x39   :  { %9437 = sst [smem:[#allocation102_spill]] %s7980_s25 }
  0x3a   :  { %9438 = sst [smem:[#allocation103_spill]] %s7985_s3 }
  0x3b   :  { %s7995_s8 = sld [smem:[%s9368_s0 + %s7734_s15]]   ;;  %s7738_s15 = smov 35  }
  0x3c   :  { %9440 = sst [smem:[#allocation105_spill]] %s8000_s17 }
  0x3d   :  { %s8005_s3 = sld [smem:[%s9368_s0 + %s7736_s28]]   ;;  %s7740_s28 = smov 37  }
  0x3e   :  { %9442 = sst [smem:[#allocation107_spill]] %s8010_s13 }
  0x3f   :  { %s8020_s17 = sld [smem:[%s9368_s0 + %s7739_s22]]   ;;  %s7743_s22 = smov 40  }
  0x40   :  { %s8030_s13 = sld [smem:[%s9368_s0 + %s7741_s7]]   ;;  %s7745_s7 = smov 42  }
  0x41   :  { %9439 = sst [smem:[#allocation104_spill]] %s7995_s8 }
  0x42   :  { %s8015_s8 = sld [smem:[%s9368_s0 + %s7738_s15]]   ;;  %s7742_s15 = smov 39  }
  0x43   :  { %9441 = sst [smem:[#allocation106_spill]] %s8005_s3 }
  0x44   :  { %s8025_s3 = sld [smem:[%s9368_s0 + %s7740_s28]]   ;;  %s7744_s28 = smov 41  }
  0x45   :  { %s8035_s5 = sld [smem:[%s9368_s0 + %s7742_s15]]   ;;  %s7746_s15 = smov 43  }
  0x46   :  { %9445 = sst [smem:[#allocation110_spill]] %s8030_s13 }
  0x47   :  { %s8040_s9 = sld [smem:[%s9368_s0 + %s7743_s22]]   ;;  %s7747_s22 = smov 44  }
  0x48   :  { %9443 = sst [smem:[#allocation108_spill]] %s8015_s8 }
  0x49   :  { %s8050_s13 = sld [smem:[%s9368_s0 + %s7745_s7]]   ;;  %s7749_s7 = smov 46  }
  0x4a   :  { %9444 = sst [smem:[#allocation109_spill]] %s8025_s3 }
  0x4b   :  { %s8045_s3 = sld [smem:[%s9368_s0 + %s7744_s28]]   ;;  %s7748_s28 = smov 45  }
  0x4c   :  { %s8055_s8 = sld [smem:[%s9368_s0 + %s7746_s15]]   ;;  %s7750_s15 = smov 47  }
  0x4d   :  { %9446 = sst [smem:[#allocation111_spill]] %s8040_s9 }
  0x4e   :  { %s8060_s9 = sld [smem:[%s9368_s0 + %s7747_s22]]   ;;  %s7751_s22 = smov 48  }
  0x4f   :  { %9448 = sst [smem:[#allocation113_spill]] %s8050_s13 }
  0x50   :  { %s8070_s13 = sld [smem:[%s9368_s0 + %s7749_s7]]   ;;  %s7753_s7 = smov 50  }
  0x51   :  { %9447 = sst [smem:[#allocation112_spill]] %s8045_s3 }
  0x52   :  { %9449 = sst [smem:[#allocation114_spill]] %s8055_s8 }
  0x53   :  { %s8065_s3 = sld [smem:[%s9368_s0 + %s7748_s28]]   ;;  %s7752_s28 = smov 49  }
  0x54   :  { %9450 = sst [smem:[#allocation115_spill]] %s8060_s9 }
  0x55   :  { %s8075_s8 = sld [smem:[%s9368_s0 + %s7750_s15]]   ;;  %s7754_s15 = smov 51  }
  0x56   :  { %9451 = sst [smem:[#allocation116_spill]] %s8070_s13 }
  0x57   :  { %s8080_s9 = sld [smem:[%s9368_s0 + %s7751_s22]]   ;;  %s7755_s22 = smov 52  }
  0x58   :  { %s8085_s25 = sld [smem:[%s9368_s0 + %s7752_s28]]   ;;  %s7756_s28 = smov 53  }
  0x59   :  { %s8090_s13 = sld [smem:[%s9368_s0 + %s7753_s7]]   ;;  %s7757_s7 = smov 54  }
  0x5a   :  { %s8110_s29 = sld [smem:[%s9368_s0 + %s7757_s7]]   ;;  %s7761_s7 = smov 58  }
  0x5b   :  { %9452 = sst [smem:[#allocation117_spill]] %s8075_s8 }
  0x5c   :  { %s8095_s8 = sld [smem:[%s9368_s0 + %s7754_s15]]   ;;  %s7758_s15 = smov 55  }
  0x5d   :  { %9453 = sst [smem:[#allocation118_spill]] %s8080_s9 }
  0x5e   :  { %9454 = sst [smem:[#allocation119_spill]] %s8085_s25 }
  0x5f   :  { %s8100_s9 = sld [smem:[%s9368_s0 + %s7755_s22]]   ;;  %s7759_s22 = smov 56  }
  0x60   :  { %s8105_s25 = sld [smem:[%s9368_s0 + %s7756_s28]]   ;;  %s7760_s28 = smov 57  }
  0x61   :  { %9457 = sst [smem:[#allocation122_spill]] %s8110_s29 }
  0x62   :  { %9455 = sst [smem:[#allocation120_spill]] %s8095_s8 }
  0x63   :  { %s8115_s8 = sld [smem:[%s9368_s0 + %s7758_s15]]   ;;  %s7762_s15 = smov 59  }
  0x64   :  { %s8120_s19 = sld [smem:[%s9368_s0 + %s7759_s22]]   ;;  %s7763_s22 = smov 60  }
  0x65   :  { %s8130_s29 = sld [smem:[%s9368_s0 + %s7761_s7]]   ;;  %s7765_s7 = smov 62  }
  0x66   :  { %9456 = sst [smem:[#allocation121_spill]] %s8105_s25 }
  0x67   :  { %s8125_s25 = sld [smem:[%s9368_s0 + %s7760_s28]]   ;;  %s7764_s28 = smov 61  }
  0x68   :  { %s8150_s12 = sld [smem:[%s9368_s0 + %s7765_s7]]   ;;  %s7769_s7 = smov 66  }
  0x69   :  { %9458 = sst [smem:[#allocation123_spill]] %s8115_s8 }
  0x6a   :  { %9459 = sst [smem:[#allocation124_spill]] %s8120_s19 }
  0x6b   :  { %s8135_s8 = sld [smem:[%s9368_s0 + %s7762_s15]]   ;;  %s7766_s15 = smov 63  }
  0x6c   :  { %s8140_s19 = sld [smem:[%s9368_s0 + %s7763_s22]]   ;;  %s7767_s22 = smov 64  }
  0x6d   :  { %9460 = sst [smem:[#allocation125_spill]] %s8125_s25 }
  0x6e   :  { %s8145_s25 = sld [smem:[%s9368_s0 + %s7764_s28]]   ;;  %s7768_s28 = smov 65  }
  0x6f   :  { %9464 = sst [smem:[#allocation129_spill]] %s8150_s12 }
  0x70   :  { %s8170_s12 = sld [smem:[%s9368_s0 + %s7769_s7]]   ;;  %s7773_s7 = smov 70  }
  0x71   :  { %9461 = sst [smem:[#allocation126_spill]] %s8135_s8 }
  0x72   :  { %9462 = sst [smem:[#allocation127_spill]] %s8140_s19 }
  0x73   :  { %s8155_s8 = sld [smem:[%s9368_s0 + %s7766_s15]]   ;;  %s7770_s15 = smov 67  }
  0x74   :  { %9463 = sst [smem:[#allocation128_spill]] %s8145_s25 }
  0x75   :  { %s8160_s19 = sld [smem:[%s9368_s0 + %s7767_s22]]   ;;  %s7771_s22 = smov 68  }
  0x76   :  { %s8165_s25 = sld [smem:[%s9368_s0 + %s7768_s28]]   ;;  %s7772_s28 = smov 69  }
  0x77   :  { %9466 = sst [smem:[#allocation131_spill]] %s8170_s12 }
  0x78   :  { %s8175_s20 = sld [smem:[%s9368_s0 + %s7770_s15]]   ;;  %s7774_s15 = smov 71  }
  0x79   :  { %s8185_s30 = sld [smem:[%s9368_s0 + %s7772_s28]]   ;;  %s7776_s28 = smov 73  }
  0x7a   :  { %s8190_s12 = sld [smem:[%s9368_s0 + %s7773_s7]]   ;;  %s7777_s7 = smov 74  }
  0x7b   :  { %9465 = sst [smem:[#allocation130_spill]] %s8160_s19 }
  0x7c   :  { %s8180_s19 = sld [smem:[%s9368_s0 + %s7771_s22]]   ;;  %s7775_s22 = smov 72  }
  0x7e   :  { %9467 = sst [smem:[#allocation132_spill]] %s8175_s20 }
  0x7f   :  { %9469 = sst [smem:[#allocation134_spill]] %s8185_s30 }
  0x80   :  { %9470 = sst [smem:[#allocation135_spill]] %s8190_s12 }
  0x81   :  { %s8195_s20 = sld [smem:[%s9368_s0 + %s7774_s15]]   ;;  %s7778_s15 = smov 75  }
  0x82   :  { %9468 = sst [smem:[#allocation133_spill]] %s8180_s19 }
  0x83   :  { %s8200_s19 = sld [smem:[%s9368_s0 + %s7775_s22]]   ;;  %s7779_s22 = smov 76  }
  0x84   :  { %s8205_s30 = sld [smem:[%s9368_s0 + %s7776_s28]]   ;;  %s7780_s28 = smov 77  }
  0x85   :  { %s8210_s12 = sld [smem:[%s9368_s0 + %s7777_s7]]  }
  0x87   :  { %9471 = sst [smem:[#allocation136_spill]] %s8195_s20 }
  0x88   :  { %s8215_s20 = sld [smem:[%s9368_s0 + %s7778_s15]]  }
  0x89   :  { %9472 = sst [smem:[#allocation137_spill]] %s8200_s19 }
  0x8a   :  { %9473 = sst [smem:[#allocation138_spill]] %s8205_s30 }
  0x8b   :  { %s8220_s19 = sld [smem:[%s9368_s0 + %s7779_s22]]  }
  0x8c   :  { %s8225_s30 = sld [smem:[%s9368_s0 + %s7780_s28]]  }
  0x8d   :  { %161 = vsyncpa [#allocation3], 0 }
  0x8e   :  { %162 = vsyncpa [#allocation6], 0 }
  0x8f   :  { %163 = vsyncpa [#allocation9], 0 }
  0x90   :  { %164 = vsyncpa [#allocation12], 0 }
  0x91   :  { %165 = vsyncpa [#allocation15], 0 }
  0x92   :  { %166 = vsyncpa [#allocation18], 0 }
  0x93   :  { %167 = vsyncpa [#allocation21], 0 }
  0x94   :  { %168 = vsyncpa [#allocation24], 0 }
  0x95   :  { %169 = vsyncpa [#allocation27], 0 }
  0x96   :  { %170 = vsyncpa [#allocation30], 0 }
  0x97   :  { %171 = vsyncpa [#allocation33], 0 }
  0x98   :  { %172 = vsyncpa [#allocation36], 0 }
  0x99   :  { %173 = vsyncpa [#allocation39], 0 }
  0x9a   :  { %174 = vsyncpa [#allocation42], 0 }
  0x9b   :  { %175 = vsyncpa [#allocation45], 0 }
  0x9c   :  { %176 = vsyncpa [#allocation48], 0 }
  0x9d   :  { %177 = vsyncpa [#allocation51], 0 }
  0x9e   :  { %178 = vsyncpa [#allocation54], 0 }
  0x9f   :  { %179 = vsyncpa [#allocation4], 0  ;;  %s221_s0 = sshll.u32 %s7905_s6, 4  ;;  %s222_s0 = int_to_ptr.hbm [resolvable:$true] %s221_s0 }
  0xa0   :  { %180 = vsyncpa [#allocation58], 0  ;;  %s7781_s7 = smov [#allocation5]   ;;  %s247_s11 = sshll.u32 %s7925_s4, 4  ;;  %s248_s11 = int_to_ptr.hbm [resolvable:$true] %s247_s11 }
  0xa1   :  { %s223_s10 = sshll.u32 %s7781_s7, 4  ;;  %s6776_s15 = sshra.s32 %s222_s0, 4  ;;  %s224_s10 = int_to_ptr.vmem [resolvable:$true] %s223_s10  ;;  %s6777_s15 = int_to_ptr.hbm [resolvable:$true] %s6776_s15 }
  0xa2   :  { %s6778_s16 = scalar_lea.hbm %s6777_s15, 1  ;;  %s6780_s18 = scalar_lea.hbm %s7905_s6, 1 }
  0xa3   :  { %p6779_p0 = scmp.ne.s32.totalorder %s6777_s15, %s6778_s16  ;;  %p6781_p1 = scmp.lt.s32.totalorder %s6777_s15, %s7905_s6 }
  0xa4   :  { %p6782_p2 = scmp.lt.s32.totalorder %s6780_s18, %s6778_s16 }
  0xa6   :  { %p6783_p3 = por %p6782_p2, %p6781_p1 }
  0xa8   :  { %p6784_p4 = pnand %p6783_p3, %p6779_p0 }
  0xaa   :  { %6787 = shalt.err (!%p6784_p4)
}
  0xab   :  { %226 = dma.hbm_to_vmem [thread:$0]  %s222_s0, 16, %s224_s10, [#allocation6]  }
  0xac   :  { %s7782_s22 = smov [#allocation8]   ;;  %s269_s26 = sshll.u32 %s7935_s24, 4  ;;  %s270_s26 = int_to_ptr.hbm [resolvable:$true] %s269_s26 }
  0xad   :  { %s249_s23 = sshll.u32 %s7782_s22, 4  ;;  %s6800_s28 = sshra.s32 %s248_s11, 4  ;;  %s250_s23 = int_to_ptr.vmem [resolvable:$true] %s249_s23  ;;  %s6801_s28 = int_to_ptr.hbm [resolvable:$true] %s6800_s28 }
  0xae   :  { %s6802_s1 = scalar_lea.hbm %s6801_s28, 1  ;;  %s6804_s2 = scalar_lea.hbm %s7925_s4, 1 }
  0xaf   :  { %p6803_p5 = scmp.ne.s32.totalorder %s6801_s28, %s6802_s1  ;;  %p6805_p6 = scmp.lt.s32.totalorder %s6801_s28, %s7925_s4 }
  0xb0   :  { %p6806_p7 = scmp.lt.s32.totalorder %s6804_s2, %s6802_s1 }
  0xb2   :  { %p6807_p8 = por %p6806_p7, %p6805_p6 }
  0xb4   :  { %p6808_p9 = pnand %p6807_p8, %p6803_p5 }
  0xb6   :  { %6811 = shalt.err (!%p6808_p9)
}
  0xb7   :  { %252 = dma.hbm_to_vmem [thread:$0]  %s248_s11, 16, %s250_s23, [#allocation9]  }
  0xb8   :  { %s297_s6 = sshll.u32 %s7960_s27, 4  ;;  %s7783_s0 = smov [#allocation11]   ;;  %s298_s6 = int_to_ptr.hbm [resolvable:$true] %s297_s6 }
  0xb9   :  { %s271_s7 = sshll.u32 %s7783_s0, 4  ;;  %s6824_s10 = sshra.s32 %s270_s26, 4  ;;  %s272_s7 = int_to_ptr.vmem [resolvable:$true] %s271_s7  ;;  %s6825_s10 = int_to_ptr.hbm [resolvable:$true] %s6824_s10 }
  0xba   :  { %s6826_s15 = scalar_lea.hbm %s6825_s10, 1  ;;  %s6828_s16 = scalar_lea.hbm %s7935_s24, 1 }
  0xbb   :  { %p6827_p10 = scmp.ne.s32.totalorder %s6825_s10, %s6826_s15  ;;  %p6829_p11 = scmp.lt.s32.totalorder %s6825_s10, %s7935_s24 }
  0xbc   :  { %p6830_p12 = scmp.lt.s32.totalorder %s6828_s16, %s6826_s15 }
  0xbe   :  { %p6831_p13 = por %p6830_p12, %p6829_p11 }
  0xc0   :  { %p6832_p0 = pnand %p6831_p13, %p6827_p10 }
  0xc2   :  { %6835 = shalt.err (!%p6832_p0)
}
  0xc3   :  { %274 = dma.hbm_to_vmem [thread:$0]  %s270_s26, 16, %s272_s7, [#allocation12]  }
  0xc4   :  { %s7784_s4 = smov [#allocation14]   ;;  %s319_s18 = sshll.u32 %s7970_s14, 4  ;;  %s320_s18 = int_to_ptr.hbm [resolvable:$true] %s319_s18 }
  0xc5   :  { %s299_s11 = sshll.u32 %s7784_s4, 4  ;;  %s6848_s22 = sshra.s32 %s298_s6, 4  ;;  %s300_s11 = int_to_ptr.vmem [resolvable:$true] %s299_s11  ;;  %s6849_s22 = int_to_ptr.hbm [resolvable:$true] %s6848_s22 }
  0xc6   :  { %s6850_s23 = scalar_lea.hbm %s6849_s22, 1  ;;  %s6852_s28 = scalar_lea.hbm %s7960_s27, 1 }
  0xc7   :  { %p6851_p1 = scmp.ne.s32.totalorder %s6849_s22, %s6850_s23  ;;  %p6853_p2 = scmp.lt.s32.totalorder %s6849_s22, %s7960_s27 }
  0xc8   :  { %p6854_p3 = scmp.lt.s32.totalorder %s6852_s28, %s6850_s23 }
  0xca   :  { %p6855_p4 = por %p6854_p3, %p6853_p2 }
  0xcc   :  { %p6856_p5 = pnand %p6855_p4, %p6851_p1 }
  0xce   :  { %6859 = shalt.err (!%p6856_p5)
}
  0xcf   :  { %302 = dma.hbm_to_vmem [thread:$0]  %s298_s6, 16, %s300_s11, [#allocation15]  }
  0xd0   :  { %s345_s24 = sshll.u32 %s7990_s21, 4  ;;  %s7785_s26 = smov [#allocation17]   ;;  %s346_s24 = int_to_ptr.hbm [resolvable:$true] %s345_s24 }
  0xd1   :  { %s321_s1 = sshll.u32 %s7785_s26, 4  ;;  %s6872_s2 = sshra.s32 %s320_s18, 4  ;;  %s322_s1 = int_to_ptr.vmem [resolvable:$true] %s321_s1  ;;  %s6873_s2 = int_to_ptr.hbm [resolvable:$true] %s6872_s2 }
  0xd2   :  { %s6874_s0 = scalar_lea.hbm %s6873_s2, 1  ;;  %s6876_s7 = scalar_lea.hbm %s7970_s14, 1 }
  0xd3   :  { %p6875_p6 = scmp.ne.s32.totalorder %s6873_s2, %s6874_s0  ;;  %p6877_p7 = scmp.lt.s32.totalorder %s6873_s2, %s7970_s14 }
  0xd4   :  { %p6878_p8 = scmp.lt.s32.totalorder %s6876_s7, %s6874_s0 }
  0xd6   :  { %p6879_p9 = por %p6878_p8, %p6877_p7 }
  0xd8   :  { %p6880_p10 = pnand %p6879_p9, %p6875_p6 }
  0xda   :  { %6883 = shalt.err (!%p6880_p10)
}
  0xdb   :  { %324 = dma.hbm_to_vmem [thread:$0]  %s320_s18, 16, %s322_s1, [#allocation18]  }
  0xdc   :  { %s7786_s27 = smov [#allocation20]   ;;  %s375_s10 = sshll.u32 %s8020_s17, 4  ;;  %s376_s10 = int_to_ptr.hbm [resolvable:$true] %s375_s10 }
  0xdd   :  { %s347_s6 = sshll.u32 %s7786_s27, 4  ;;  %s6896_s15 = sshra.s32 %s346_s24, 4  ;;  %s348_s6 = int_to_ptr.vmem [resolvable:$true] %s347_s6  ;;  %s6897_s15 = int_to_ptr.hbm [resolvable:$true] %s6896_s15 }
  0xde   :  { %s6898_s16 = scalar_lea.hbm %s6897_s15, 1  ;;  %s6900_s4 = scalar_lea.hbm %s7990_s21, 1 }
  0xdf   :  { %p6899_p11 = scmp.ne.s32.totalorder %s6897_s15, %s6898_s16  ;;  %p6901_p12 = scmp.lt.s32.totalorder %s6897_s15, %s7990_s21 }
  0xe0   :  { %p6902_p13 = scmp.lt.s32.totalorder %s6900_s4, %s6898_s16 }
  0xe2   :  { %p6903_p0 = por %p6902_p13, %p6901_p12 }
  0xe4   :  { %p6904_p1 = pnand %p6903_p0, %p6899_p11 }
  0xe6   :  { %6907 = shalt.err (!%p6904_p1)
}
  0xe7   :  { %350 = dma.hbm_to_vmem [thread:$0]  %s346_s24, 16, %s348_s6, [#allocation21]  }
  0xe8   :  { %s399_s14 = sshll.u32 %s8035_s5, 4  ;;  %s7787_s11 = smov [#allocation23]   ;;  %s400_s14 = int_to_ptr.hbm [resolvable:$true] %s399_s14 }
  0xe9   :  { %s377_s18 = sshll.u32 %s7787_s11, 4  ;;  %s6920_s22 = sshra.s32 %s376_s10, 4  ;;  %s378_s18 = int_to_ptr.vmem [resolvable:$true] %s377_s18  ;;  %s6921_s22 = int_to_ptr.hbm [resolvable:$true] %s6920_s22 }
  0xea   :  { %s6922_s23 = scalar_lea.hbm %s6921_s22, 1  ;;  %s6924_s28 = scalar_lea.hbm %s8020_s17, 1 }
  0xeb   :  { %p6923_p2 = scmp.ne.s32.totalorder %s6921_s22, %s6922_s23  ;;  %p6925_p3 = scmp.lt.s32.totalorder %s6921_s22, %s8020_s17 }
  0xec   :  { %p6926_p4 = scmp.lt.s32.totalorder %s6924_s28, %s6922_s23 }
  0xee   :  { %p6927_p5 = por %p6926_p4, %p6925_p3 }
  0xf0   :  { %p6928_p6 = pnand %p6927_p5, %p6923_p2 }
  0xf2   :  { %6931 = shalt.err (!%p6928_p6)
}
  0xf3   :  { %380 = dma.hbm_to_vmem [thread:$0]  %s376_s10, 16, %s378_s18, [#allocation24]  }
  0xf4   :  { %s7788_s21 = smov [#allocation26]   ;;  %s429_s26 = sshll.u32 %s8065_s3, 4  ;;  %s430_s26 = int_to_ptr.hbm [resolvable:$true] %s429_s26 }
  0xf5   :  { %s401_s24 = sshll.u32 %s7788_s21, 4  ;;  %s6944_s1 = sshra.s32 %s400_s14, 4  ;;  %s402_s24 = int_to_ptr.vmem [resolvable:$true] %s401_s24  ;;  %s6945_s1 = int_to_ptr.hbm [resolvable:$true] %s6944_s1 }
  0xf6   :  { %s6946_s2 = scalar_lea.hbm %s6945_s1, 1  ;;  %s6948_s0 = scalar_lea.hbm %s8035_s5, 1 }
  0xf7   :  { %p6947_p7 = scmp.ne.s32.totalorder %s6945_s1, %s6946_s2  ;;  %p6949_p8 = scmp.lt.s32.totalorder %s6945_s1, %s8035_s5 }
  0xf8   :  { %p6950_p9 = scmp.lt.s32.totalorder %s6948_s0, %s6946_s2 }
  0xfa   :  { %p6951_p10 = por %p6950_p9, %p6949_p8 }
  0xfc   :  { %p6952_p11 = pnand %p6951_p10, %p6947_p7 }
  0xfe   :  { %6955 = shalt.err (!%p6952_p11)
}
  0xff   :  { %404 = dma.hbm_to_vmem [thread:$0]  %s400_s14, 16, %s402_s24, [#allocation27]  }
 0x100   :  { %s457_s17 = sshll.u32 %s8090_s13, 4  ;;  %s7789_s7 = smov [#allocation29]   ;;  %s458_s17 = int_to_ptr.hbm [resolvable:$true] %s457_s17 }
 0x101   :  { %s431_s27 = sshll.u32 %s7789_s7, 4  ;;  %s6968_s6 = sshra.s32 %s430_s26, 4  ;;  %s432_s27 = int_to_ptr.vmem [resolvable:$true] %s431_s27  ;;  %s6969_s6 = int_to_ptr.hbm [resolvable:$true] %s6968_s6 }
 0x102   :  { %s6970_s10 = scalar_lea.hbm %s6969_s6, 1  ;;  %s6972_s15 = scalar_lea.hbm %s8065_s3, 1 }
 0x103   :  { %p6971_p12 = scmp.ne.s32.totalorder %s6969_s6, %s6970_s10  ;;  %p6973_p13 = scmp.lt.s32.totalorder %s6969_s6, %s8065_s3 }
 0x104   :  { %p6974_p0 = scmp.lt.s32.totalorder %s6972_s15, %s6970_s10 }
 0x106   :  { %p6975_p1 = por %p6974_p0, %p6973_p13 }
 0x108   :  { %p6976_p2 = pnand %p6975_p1, %p6971_p12 }
 0x10a   :  { %6979 = shalt.err (!%p6976_p2)
}
 0x10b   :  { %434 = dma.hbm_to_vmem [thread:$0]  %s430_s26, 16, %s432_s27, [#allocation30]  }
 0x10c   :  { %s7790_s5 = smov [#allocation32]   ;;  %s479_s4 = sshll.u32 %s8100_s9, 4  ;;  %s480_s4 = int_to_ptr.hbm [resolvable:$true] %s479_s4 }
 0x10d   :  { %s459_s16 = sshll.u32 %s7790_s5, 4  ;;  %s6992_s14 = sshra.s32 %s458_s17, 4  ;;  %s460_s16 = int_to_ptr.vmem [resolvable:$true] %s459_s16  ;;  %s6993_s14 = int_to_ptr.hbm [resolvable:$true] %s6992_s14 }
 0x10e   :  { %s6994_s11 = scalar_lea.hbm %s6993_s14, 1  ;;  %s6996_s18 = scalar_lea.hbm %s8090_s13, 1 }
 0x10f   :  { %p6995_p3 = scmp.ne.s32.totalorder %s6993_s14, %s6994_s11  ;;  %p6997_p4 = scmp.lt.s32.totalorder %s6993_s14, %s8090_s13 }
 0x110   :  { %p6998_p5 = scmp.lt.s32.totalorder %s6996_s18, %s6994_s11 }
 0x112   :  { %p6999_p6 = por %p6998_p5, %p6997_p4 }
 0x114   :  { %p7000_p7 = pnand %p6999_p6, %p6995_p3 }
 0x116   :  { %7003 = shalt.err (!%p7000_p7)
}
 0x117   :  { %462 = dma.hbm_to_vmem [thread:$0]  %s458_s17, 16, %s460_s16, [#allocation33]  }
 0x118   :  { %s509_s3 = sshll.u32 %s8130_s29, 4  ;;  %s7791_s22 = smov [#allocation35]   ;;  %s510_s3 = int_to_ptr.hbm [resolvable:$true] %s509_s3 }
 0x119   :  { %s481_s23 = sshll.u32 %s7791_s22, 4  ;;  %s7016_s28 = sshra.s32 %s480_s4, 4  ;;  %s482_s23 = int_to_ptr.vmem [resolvable:$true] %s481_s23  ;;  %s7017_s28 = int_to_ptr.hbm [resolvable:$true] %s7016_s28 }
 0x11a   :  { %s7018_s21 = scalar_lea.hbm %s7017_s28, 1  ;;  %s7020_s24 = scalar_lea.hbm %s8100_s9, 1 }
 0x11b   :  { %p7019_p8 = scmp.ne.s32.totalorder %s7017_s28, %s7018_s21  ;;  %p7021_p9 = scmp.lt.s32.totalorder %s7017_s28, %s8100_s9 }
 0x11c   :  { %p7022_p10 = scmp.lt.s32.totalorder %s7020_s24, %s7018_s21 }
 0x11e   :  { %p7023_p11 = por %p7022_p10, %p7021_p9 }
 0x120   :  { %p7024_p12 = pnand %p7023_p11, %p7019_p8 }
 0x122   :  { %7027 = shalt.err (!%p7024_p12)
}
 0x123   :  { %484 = dma.hbm_to_vmem [thread:$0]  %s480_s4, 16, %s482_s23, [#allocation36]  }
 0x124   :  { %s7792_s13 = smov [#allocation38]   ;;  %s537_s1 = sshll.u32 %s8155_s8, 4  ;;  %s538_s1 = int_to_ptr.hbm [resolvable:$true] %s537_s1 }
 0x125   :  { %s511_s26 = sshll.u32 %s7792_s13, 4  ;;  %s7040_s2 = sshra.s32 %s510_s3, 4  ;;  %s512_s26 = int_to_ptr.vmem [resolvable:$true] %s511_s26  ;;  %s7041_s2 = int_to_ptr.hbm [resolvable:$true] %s7040_s2 }
 0x126   :  { %s7042_s0 = scalar_lea.hbm %s7041_s2, 1  ;;  %s7044_s17 = scalar_lea.hbm %s8130_s29, 1 }
 0x127   :  { %p7043_p13 = scmp.ne.s32.totalorder %s7041_s2, %s7042_s0  ;;  %p7045_p0 = scmp.lt.s32.totalorder %s7041_s2, %s8130_s29 }
 0x128   :  { %p7046_p1 = scmp.lt.s32.totalorder %s7044_s17, %s7042_s0 }
 0x12a   :  { %p7047_p2 = por %p7046_p1, %p7045_p0 }
 0x12c   :  { %p7048_p3 = pnand %p7047_p2, %p7043_p13 }
 0x12e   :  { %7051 = shalt.err (!%p7048_p3)
}
 0x12f   :  { %514 = dma.hbm_to_vmem [thread:$0]  %s510_s3, 16, %s512_s26, [#allocation39]  }
 0x130   :  { %s559_s9 = sshll.u32 %s8165_s25, 4  ;;  %s7793_s7 = smov [#allocation41]   ;;  %s560_s9 = int_to_ptr.hbm [resolvable:$true] %s559_s9 }
 0x131   :  { %s539_s27 = sshll.u32 %s7793_s7, 4  ;;  %s7064_s6 = sshra.s32 %s538_s1, 4  ;;  %s540_s27 = int_to_ptr.vmem [resolvable:$true] %s539_s27  ;;  %s7065_s6 = int_to_ptr.hbm [resolvable:$true] %s7064_s6 }
 0x132   :  { %s7066_s10 = scalar_lea.hbm %s7065_s6, 1  ;;  %s7068_s15 = scalar_lea.hbm %s8155_s8, 1 }
 0x133   :  { %p7067_p4 = scmp.ne.s32.totalorder %s7065_s6, %s7066_s10  ;;  %p7069_p5 = scmp.lt.s32.totalorder %s7065_s6, %s8155_s8 }
 0x134   :  { %p7070_p6 = scmp.lt.s32.totalorder %s7068_s15, %s7066_s10 }
 0x136   :  { %p7071_p7 = por %p7070_p6, %p7069_p5 }
 0x138   :  { %p7072_p8 = pnand %p7071_p7, %p7067_p4 }
 0x13a   :  { %7075 = shalt.err (!%p7072_p8)
}
 0x13b   :  { %542 = dma.hbm_to_vmem [thread:$0]  %s538_s1, 16, %s540_s27, [#allocation42]  }
 0x13c   :  { %s9474_s29 = sld [smem:[#allocation133_spill]]  ;;  %s7794_s5 = smov [#allocation44]  }
 0x13d   :  { %s561_s16 = sshll.u32 %s7794_s5, 4  ;;  %s7088_s14 = sshra.s32 %s560_s9, 4  ;;  %s562_s16 = int_to_ptr.vmem [resolvable:$true] %s561_s16  ;;  %s7089_s14 = int_to_ptr.hbm [resolvable:$true] %s7088_s14 }
 0x13e   :  { %s7090_s11 = scalar_lea.hbm %s7089_s14, 1  ;;  %s7092_s18 = scalar_lea.hbm %s8165_s25, 1 }
 0x13f   :  { %p7091_p9 = scmp.ne.s32.totalorder %s7089_s14, %s7090_s11  ;;  %p7093_p10 = scmp.lt.s32.totalorder %s7089_s14, %s8165_s25 }
 0x140   :  { %p7094_p11 = scmp.lt.s32.totalorder %s7092_s18, %s7090_s11 }
 0x142   :  { %s583_s4 = sshll.u32 %s9474_s29, 4  ;;  %p7095_p12 = por %p7094_p11, %p7093_p10  ;;  %s584_s4 = int_to_ptr.hbm [resolvable:$true] %s583_s4 }
 0x144   :  { %p7096_p13 = pnand %p7095_p12, %p7091_p9 }
 0x146   :  { %7099 = shalt.err (!%p7096_p13)
}
 0x147   :  { %564 = dma.hbm_to_vmem [thread:$0]  %s560_s9, 16, %s562_s16, [#allocation45]  }
 0x148   :  { %s9475_s8 = sld [smem:[#allocation136_spill]]  ;;  %s7795_s22 = smov [#allocation47]  }
 0x149   :  { %s585_s23 = sshll.u32 %s7795_s22, 4  ;;  %s7112_s28 = sshra.s32 %s584_s4, 4  ;;  %s586_s23 = int_to_ptr.vmem [resolvable:$true] %s585_s23  ;;  %s7113_s28 = int_to_ptr.hbm [resolvable:$true] %s7112_s28 }
 0x14a   :  { %s7114_s21 = scalar_lea.hbm %s7113_s28, 1  ;;  %s7116_s24 = scalar_lea.hbm %s9474_s29, 1 }
 0x14b   :  { %p7115_p0 = scmp.ne.s32.totalorder %s7113_s28, %s7114_s21  ;;  %p7117_p1 = scmp.lt.s32.totalorder %s7113_s28, %s9474_s29 }
 0x14c   :  { %p7118_p2 = scmp.lt.s32.totalorder %s7116_s24, %s7114_s21 }
 0x14e   :  { %s607_s3 = sshll.u32 %s9475_s8, 4  ;;  %p7119_p3 = por %p7118_p2, %p7117_p1  ;;  %s608_s3 = int_to_ptr.hbm [resolvable:$true] %s607_s3 }
 0x150   :  { %p7120_p4 = pnand %p7119_p3, %p7115_p0 }
 0x152   :  { %7123 = shalt.err (!%p7120_p4)
}
 0x153   :  { %588 = dma.hbm_to_vmem [thread:$0]  %s584_s4, 16, %s586_s23, [#allocation48]  }
 0x154   :  { %s9476_s25 = sld [smem:[#allocation138_spill]]  ;;  %s7796_s13 = smov [#allocation50]  }
 0x155   :  { %s609_s26 = sshll.u32 %s7796_s13, 4  ;;  %s7136_s2 = sshra.s32 %s608_s3, 4  ;;  %s610_s26 = int_to_ptr.vmem [resolvable:$true] %s609_s26  ;;  %s7137_s2 = int_to_ptr.hbm [resolvable:$true] %s7136_s2 }
 0x156   :  { %s7138_s0 = scalar_lea.hbm %s7137_s2, 1  ;;  %s7140_s17 = scalar_lea.hbm %s9475_s8, 1 }
 0x157   :  { %p7139_p5 = scmp.ne.s32.totalorder %s7137_s2, %s7138_s0  ;;  %p7141_p6 = scmp.lt.s32.totalorder %s7137_s2, %s9475_s8 }
 0x158   :  { %p7142_p7 = scmp.lt.s32.totalorder %s7140_s17, %s7138_s0 }
 0x15a   :  { %s629_s1 = sshll.u32 %s9476_s25, 4  ;;  %p7143_p8 = por %p7142_p7, %p7141_p6  ;;  %s630_s1 = int_to_ptr.hbm [resolvable:$true] %s629_s1 }
 0x15c   :  { %p7144_p9 = pnand %p7143_p8, %p7139_p5 }
 0x15e   :  { %7147 = shalt.err (!%p7144_p9)
}
 0x15f   :  { %612 = dma.hbm_to_vmem [thread:$0]  %s608_s3, 16, %s610_s26, [#allocation51]  }
 0x160   :  { %s9477_s9 = sld [smem:[#allocation91_spill]]  ;;  %s7797_s27 = smov [#allocation53]  }
 0x161   :  { %s631_s6 = sshll.u32 %s7797_s27, 4  ;;  %s7160_s10 = sshra.s32 %s630_s1, 4  ;;  %s632_s6 = int_to_ptr.vmem [resolvable:$true] %s631_s6  ;;  %s7161_s10 = int_to_ptr.hbm [resolvable:$true] %s7160_s10 }
 0x162   :  { %s7162_s15 = scalar_lea.hbm %s7161_s10, 1  ;;  %s7164_s29 = scalar_lea.hbm %s9476_s25, 1 }
 0x163   :  { %p7163_p10 = scmp.ne.s32.totalorder %s7161_s10, %s7162_s15  ;;  %p7165_p11 = scmp.lt.s32.totalorder %s7161_s10, %s9476_s25 }
 0x164   :  { %p7166_p12 = scmp.lt.s32.totalorder %s7164_s29, %s7162_s15 }
 0x166   :  { %s210_s7 = sshll.u32 %s9477_s9, 4  ;;  %p7167_p13 = por %p7166_p12, %p7165_p11  ;;  %s211_s7 = int_to_ptr.hbm [resolvable:$true] %s210_s7 }
 0x168   :  { %p7168_p0 = pnand %p7167_p13, %p7163_p10 }
 0x16a   :  { %7171 = shalt.err (!%p7168_p0)
}
 0x16b   :  { %634 = dma.hbm_to_vmem [thread:$0]  %s630_s1, 16, %s632_s6, [#allocation54]  }
 0x16c   :  { %s9478_s5 = sld [smem:[#allocation93_spill]]  ;;  %s7798_s16 = smov [#allocation2]  }
 0x16d   :  { %s212_s4 = sshll.u32 %s7798_s16, 4  ;;  %s7184_s11 = sshra.s32 %s211_s7, 4  ;;  %s213_s4 = int_to_ptr.vmem [resolvable:$true] %s212_s4  ;;  %s7185_s11 = int_to_ptr.hbm [resolvable:$true] %s7184_s11 }
 0x16e   :  { %s7186_s18 = scalar_lea.hbm %s7185_s11, 1  ;;  %s7188_s8 = scalar_lea.hbm %s9477_s9, 1 }
 0x16f   :  { %p7187_p1 = scmp.ne.s32.totalorder %s7185_s11, %s7186_s18  ;;  %p7189_p2 = scmp.lt.s32.totalorder %s7185_s11, %s9477_s9 }
 0x170   :  { %p7190_p3 = scmp.lt.s32.totalorder %s7188_s8, %s7186_s18 }
 0x172   :  { %s234_s14 = sshll.u32 %s9478_s5, 4  ;;  %p7191_p4 = por %p7190_p3, %p7189_p2  ;;  %s235_s14 = int_to_ptr.hbm [resolvable:$true] %s234_s14 }
 0x174   :  { %p7192_p5 = pnand %p7191_p4, %p7187_p1 }
 0x176   :  { %7195 = shalt.err (!%p7192_p5)
}
 0x177   :  { %215 = dma.hbm_to_vmem [thread:$0]  %s211_s7, 16, %s213_s4, [#allocation3]  }
 0x178   :  { %s9479_s3 = sld [smem:[#allocation95_spill]]  ;;  %s7799_s23 = smov [#allocation7]  }
 0x179   :  { %s236_s28 = sshll.u32 %s7799_s23, 4  ;;  %s7208_s21 = sshra.s32 %s235_s14, 4  ;;  %s237_s28 = int_to_ptr.vmem [resolvable:$true] %s236_s28  ;;  %s7209_s21 = int_to_ptr.hbm [resolvable:$true] %s7208_s21 }
 0x17a   :  { %s7210_s24 = scalar_lea.hbm %s7209_s21, 1  ;;  %s7212_s25 = scalar_lea.hbm %s9478_s5, 1 }
 0x17b   :  { %p7211_p6 = scmp.ne.s32.totalorder %s7209_s21, %s7210_s24  ;;  %p7213_p7 = scmp.lt.s32.totalorder %s7209_s21, %s9478_s5 }
 0x17c   :  { %p7214_p8 = scmp.lt.s32.totalorder %s7212_s25, %s7210_s24 }
 0x17e   :  { %s258_s22 = sshll.u32 %s9479_s3, 4  ;;  %p7215_p9 = por %p7214_p8, %p7213_p7  ;;  %s259_s22 = int_to_ptr.hbm [resolvable:$true] %s258_s22 }
 0x180   :  { %p7216_p10 = pnand %p7215_p9, %p7211_p6 }
 0x182   :  { %7219 = shalt.err (!%p7216_p10)
}
 0x183   :  { %239 = dma.hbm_to_vmem [thread:$0]  %s235_s14, 16, %s237_s28, [#allocation6]  }
 0x184   :  { %s9480_s13 = sld [smem:[#allocation97_spill]]  ;;  %s7800_s26 = smov [#allocation10]  }
 0x185   :  { %s260_s1 = sshll.u32 %s7800_s26, 4  ;;  %s7232_s0 = sshra.s32 %s259_s22, 4  ;;  %s261_s1 = int_to_ptr.vmem [resolvable:$true] %s260_s1  ;;  %s7233_s0 = int_to_ptr.hbm [resolvable:$true] %s7232_s0 }
 0x186   :  { %s7234_s17 = scalar_lea.hbm %s7233_s0, 1  ;;  %s7236_s9 = scalar_lea.hbm %s9479_s3, 1 }
 0x187   :  { %p7235_p11 = scmp.ne.s32.totalorder %s7233_s0, %s7234_s17  ;;  %p7237_p12 = scmp.lt.s32.totalorder %s7233_s0, %s9479_s3 }
 0x188   :  { %p7238_p13 = scmp.lt.s32.totalorder %s7236_s9, %s7234_s17 }
 0x18a   :  { %s282_s2 = sshll.u32 %s9480_s13, 4  ;;  %p7239_p0 = por %p7238_p13, %p7237_p12  ;;  %s283_s2 = int_to_ptr.hbm [resolvable:$true] %s282_s2 }
 0x18c   :  { %p7240_p1 = pnand %p7239_p0, %p7235_p11 }
 0x18e   :  { %7243 = shalt.err (!%p7240_p1)
}
 0x18f   :  { %263 = dma.hbm_to_vmem [thread:$0]  %s259_s22, 16, %s261_s1, [#allocation9]  }
 0x190   :  { %s9481_s7 = sld [smem:[#allocation100_spill]]  ;;  %s7801_s6 = smov [#allocation13]  }
 0x191   :  { %s284_s10 = sshll.u32 %s7801_s6, 4  ;;  %s7256_s15 = sshra.s32 %s283_s2, 4  ;;  %s285_s10 = int_to_ptr.vmem [resolvable:$true] %s284_s10  ;;  %s7257_s15 = int_to_ptr.hbm [resolvable:$true] %s7256_s15 }
 0x192   :  { %s7258_s29 = scalar_lea.hbm %s7257_s15, 1  ;;  %s7260_s5 = scalar_lea.hbm %s9480_s13, 1 }
 0x193   :  { %p7259_p2 = scmp.ne.s32.totalorder %s7257_s15, %s7258_s29  ;;  %p7261_p3 = scmp.lt.s32.totalorder %s7257_s15, %s9480_s13 }
 0x194   :  { %p7262_p4 = scmp.lt.s32.totalorder %s7260_s5, %s7258_s29 }
 0x196   :  { %s308_s27 = sshll.u32 %s9481_s7, 4  ;;  %p7263_p5 = por %p7262_p4, %p7261_p3  ;;  %s309_s27 = int_to_ptr.hbm [resolvable:$true] %s308_s27 }
 0x198   :  { %p7264_p6 = pnand %p7263_p5, %p7259_p2 }
 0x19a   :  { %7267 = shalt.err (!%p7264_p6)
}
 0x19b   :  { %287 = dma.hbm_to_vmem [thread:$0]  %s283_s2, 16, %s285_s10, [#allocation12]  }
 0x19c   :  { %s9482_s16 = sld [smem:[#allocation102_spill]]  ;;  %s7802_s4 = smov [#allocation16]  }
 0x19d   :  { %s310_s14 = sshll.u32 %s7802_s4, 4  ;;  %s7280_s18 = sshra.s32 %s309_s27, 4  ;;  %s311_s14 = int_to_ptr.vmem [resolvable:$true] %s310_s14  ;;  %s7281_s18 = int_to_ptr.hbm [resolvable:$true] %s7280_s18 }
 0x19e   :  { %s7282_s8 = scalar_lea.hbm %s7281_s18, 1  ;;  %s7284_s3 = scalar_lea.hbm %s9481_s7, 1 }
 0x19f   :  { %p7283_p7 = scmp.ne.s32.totalorder %s7281_s18, %s7282_s8  ;;  %p7285_p8 = scmp.lt.s32.totalorder %s7281_s18, %s9481_s7 }
 0x1a0   :  { %p7286_p9 = scmp.lt.s32.totalorder %s7284_s3, %s7282_s8 }
 0x1a2   :  { %s332_s11 = sshll.u32 %s9482_s16, 4  ;;  %p7287_p10 = por %p7286_p9, %p7285_p8  ;;  %s333_s11 = int_to_ptr.hbm [resolvable:$true] %s332_s11 }
 0x1a4   :  { %p7288_p11 = pnand %p7287_p10, %p7283_p7 }
 0x1a6   :  { %7291 = shalt.err (!%p7288_p11)
}
 0x1a7   :  { %313 = dma.hbm_to_vmem [thread:$0]  %s309_s27, 16, %s311_s14, [#allocation15]  }
 0x1a8   :  { %s9483_s22 = sld [smem:[#allocation108_spill]]  ;;  %s7803_s28 = smov [#allocation19]  }
 0x1a9   :  { %s334_s21 = sshll.u32 %s7803_s28, 4  ;;  %s7304_s24 = sshra.s32 %s333_s11, 4  ;;  %s335_s21 = int_to_ptr.vmem [resolvable:$true] %s334_s21  ;;  %s7305_s24 = int_to_ptr.hbm [resolvable:$true] %s7304_s24 }
 0x1aa   :  { %s7306_s25 = scalar_lea.hbm %s7305_s24, 1  ;;  %s7308_s13 = scalar_lea.hbm %s9482_s16, 1 }
 0x1ab   :  { %p7307_p12 = scmp.ne.s32.totalorder %s7305_s24, %s7306_s25  ;;  %p7309_p13 = scmp.lt.s32.totalorder %s7305_s24, %s9482_s16 }
 0x1ac   :  { %p7310_p0 = scmp.lt.s32.totalorder %s7308_s13, %s7306_s25 }
 0x1ae   :  { %s364_s23 = sshll.u32 %s9483_s22, 4  ;;  %p7311_p1 = por %p7310_p0, %p7309_p13  ;;  %s365_s23 = int_to_ptr.hbm [resolvable:$true] %s364_s23 }
 0x1b0   :  { %p7312_p2 = pnand %p7311_p1, %p7307_p12 }
 0x1b2   :  { %7315 = shalt.err (!%p7312_p2)
}
 0x1b3   :  { %337 = dma.hbm_to_vmem [thread:$0]  %s333_s11, 16, %s335_s21, [#allocation18]  }
 0x1b4   :  { %s9484_s26 = sld [smem:[#allocation110_spill]]  ;;  %s7804_s1 = smov [#allocation22]  }
 0x1b5   :  { %s366_s2 = sshll.u32 %s7804_s1, 4  ;;  %s7328_s17 = sshra.s32 %s365_s23, 4  ;;  %s367_s2 = int_to_ptr.vmem [resolvable:$true] %s366_s2  ;;  %s7329_s17 = int_to_ptr.hbm [resolvable:$true] %s7328_s17 }
 0x1b6   :  { %s7330_s9 = scalar_lea.hbm %s7329_s17, 1  ;;  %s7332_s7 = scalar_lea.hbm %s9483_s22, 1 }
 0x1b7   :  { %p7331_p3 = scmp.ne.s32.totalorder %s7329_s17, %s7330_s9  ;;  %p7333_p4 = scmp.lt.s32.totalorder %s7329_s17, %s9483_s22 }
 0x1b8   :  { %p7334_p5 = scmp.lt.s32.totalorder %s7332_s7, %s7330_s9 }
 0x1ba   :  { %s388_s0 = sshll.u32 %s9484_s26, 4  ;;  %p7335_p6 = por %p7334_p5, %p7333_p4  ;;  %s389_s0 = int_to_ptr.hbm [resolvable:$true] %s388_s0 }
 0x1bc   :  { %p7336_p7 = pnand %p7335_p6, %p7331_p3 }
 0x1be   :  { %7339 = shalt.err (!%p7336_p7)
}
 0x1bf   :  { %369 = dma.hbm_to_vmem [thread:$0]  %s365_s23, 16, %s367_s2, [#allocation21]  }
 0x1c0   :  { %s9485_s27 = sld [smem:[#allocation115_spill]]  ;;  %s7805_s10 = smov [#allocation25]  }
 0x1c1   :  { %s390_s15 = sshll.u32 %s7805_s10, 4  ;;  %s7352_s29 = sshra.s32 %s389_s0, 4  ;;  %s391_s15 = int_to_ptr.vmem [resolvable:$true] %s390_s15  ;;  %s7353_s29 = int_to_ptr.hbm [resolvable:$true] %s7352_s29 }
 0x1c2   :  { %s7354_s5 = scalar_lea.hbm %s7353_s29, 1  ;;  %s7356_s16 = scalar_lea.hbm %s9484_s26, 1 }
 0x1c3   :  { %p7355_p8 = scmp.ne.s32.totalorder %s7353_s29, %s7354_s5  ;;  %p7357_p9 = scmp.lt.s32.totalorder %s7353_s29, %s9484_s26 }
 0x1c4   :  { %p7358_p10 = scmp.lt.s32.totalorder %s7356_s16, %s7354_s5 }
 0x1c6   :  { %s418_s6 = sshll.u32 %s9485_s27, 4  ;;  %p7359_p11 = por %p7358_p10, %p7357_p9  ;;  %s419_s6 = int_to_ptr.hbm [resolvable:$true] %s418_s6 }
 0x1c8   :  { %p7360_p12 = pnand %p7359_p11, %p7355_p8 }
 0x1ca   :  { %7363 = shalt.err (!%p7360_p12)
}
 0x1cb   :  { %393 = dma.hbm_to_vmem [thread:$0]  %s389_s0, 16, %s391_s15, [#allocation24]  }
 0x1cc   :  { %s9486_s4 = sld [smem:[#allocation116_spill]]  ;;  %s7806_s14 = smov [#allocation28]  }
 0x1cd   :  { %s420_s11 = sshll.u32 %s7806_s14, 4  ;;  %s7376_s8 = sshra.s32 %s419_s6, 4  ;;  %s421_s11 = int_to_ptr.vmem [resolvable:$true] %s420_s11  ;;  %s7377_s8 = int_to_ptr.hbm [resolvable:$true] %s7376_s8 }
 0x1ce   :  { %s7378_s3 = scalar_lea.hbm %s7377_s8, 1  ;;  %s7380_s22 = scalar_lea.hbm %s9485_s27, 1 }
 0x1cf   :  { %p7379_p13 = scmp.ne.s32.totalorder %s7377_s8, %s7378_s3  ;;  %p7381_p0 = scmp.lt.s32.totalorder %s7377_s8, %s9485_s27 }
 0x1d0   :  { %p7382_p1 = scmp.lt.s32.totalorder %s7380_s22, %s7378_s3 }
 0x1d2   :  { %s440_s18 = sshll.u32 %s9486_s4, 4  ;;  %p7383_p2 = por %p7382_p1, %p7381_p0  ;;  %s441_s18 = int_to_ptr.hbm [resolvable:$true] %s440_s18 }
 0x1d4   :  { %p7384_p3 = pnand %p7383_p2, %p7379_p13 }
 0x1d6   :  { %7387 = shalt.err (!%p7384_p3)
}
 0x1d7   :  { %423 = dma.hbm_to_vmem [thread:$0]  %s419_s6, 16, %s421_s11, [#allocation27]  }
 0x1d8   :  { %s9487_s23 = sld [smem:[#allocation120_spill]]  ;;  %s7807_s21 = smov [#allocation31]  }
 0x1d9   :  { %s442_s24 = sshll.u32 %s7807_s21, 4  ;;  %s7400_s25 = sshra.s32 %s441_s18, 4  ;;  %s443_s24 = int_to_ptr.vmem [resolvable:$true] %s442_s24  ;;  %s7401_s25 = int_to_ptr.hbm [resolvable:$true] %s7400_s25 }
 0x1da   :  { %s7402_s13 = scalar_lea.hbm %s7401_s25, 1  ;;  %s7404_s26 = scalar_lea.hbm %s9486_s4, 1 }
 0x1db   :  { %p7403_p4 = scmp.ne.s32.totalorder %s7401_s25, %s7402_s13  ;;  %p7405_p5 = scmp.lt.s32.totalorder %s7401_s25, %s9486_s4 }
 0x1dc   :  { %p7406_p6 = scmp.lt.s32.totalorder %s7404_s26, %s7402_s13 }
 0x1de   :  { %s468_s28 = sshll.u32 %s9487_s23, 4  ;;  %p7407_p7 = por %p7406_p6, %p7405_p5  ;;  %s469_s28 = int_to_ptr.hbm [resolvable:$true] %s468_s28 }
 0x1e0   :  { %p7408_p8 = pnand %p7407_p7, %p7403_p4 }
 0x1e2   :  { %7411 = shalt.err (!%p7408_p8)
}
 0x1e3   :  { %445 = dma.hbm_to_vmem [thread:$0]  %s441_s18, 16, %s443_s24, [#allocation30]  }
 0x1e4   :  { %s9488_s1 = sld [smem:[#allocation125_spill]]  ;;  %s7808_s2 = smov [#allocation34]  }
 0x1e5   :  { %s470_s0 = sshll.u32 %s7808_s2, 4  ;;  %s7424_s9 = sshra.s32 %s469_s28, 4  ;;  %s471_s0 = int_to_ptr.vmem [resolvable:$true] %s470_s0  ;;  %s7425_s9 = int_to_ptr.hbm [resolvable:$true] %s7424_s9 }
 0x1e6   :  { %s7426_s7 = scalar_lea.hbm %s7425_s9, 1  ;;  %s7428_s27 = scalar_lea.hbm %s9487_s23, 1 }
 0x1e7   :  { %p7427_p9 = scmp.ne.s32.totalorder %s7425_s9, %s7426_s7  ;;  %p7429_p10 = scmp.lt.s32.totalorder %s7425_s9, %s9487_s23 }
 0x1e8   :  { %p7430_p11 = scmp.lt.s32.totalorder %s7428_s27, %s7426_s7 }
 0x1ea   :  { %s498_s17 = sshll.u32 %s9488_s1, 4  ;;  %p7431_p12 = por %p7430_p11, %p7429_p10  ;;  %s499_s17 = int_to_ptr.hbm [resolvable:$true] %s498_s17 }
 0x1ec   :  { %p7432_p13 = pnand %p7431_p12, %p7427_p9 }
 0x1ee   :  { %7435 = shalt.err (!%p7432_p13)
}
 0x1ef   :  { %473 = dma.hbm_to_vmem [thread:$0]  %s469_s28, 16, %s471_s0, [#allocation33]  }
 0x1f0   :  { %s9489_s6 = sld [smem:[#allocation126_spill]]  ;;  %s7809_s15 = smov [#allocation37]  }
 0x1f1   :  { %s500_s29 = sshll.u32 %s7809_s15, 4  ;;  %s7448_s5 = sshra.s32 %s499_s17, 4  ;;  %s501_s29 = int_to_ptr.vmem [resolvable:$true] %s500_s29  ;;  %s7449_s5 = int_to_ptr.hbm [resolvable:$true] %s7448_s5 }
 0x1f2   :  { %s7450_s16 = scalar_lea.hbm %s7449_s5, 1  ;;  %s7452_s4 = scalar_lea.hbm %s9488_s1, 1 }
 0x1f3   :  { %p7451_p0 = scmp.ne.s32.totalorder %s7449_s5, %s7450_s16  ;;  %p7453_p1 = scmp.lt.s32.totalorder %s7449_s5, %s9488_s1 }
 0x1f4   :  { %p7454_p2 = scmp.lt.s32.totalorder %s7452_s4, %s7450_s16 }
 0x1f6   :  { %s520_s10 = sshll.u32 %s9489_s6, 4  ;;  %p7455_p3 = por %p7454_p2, %p7453_p1  ;;  %s521_s10 = int_to_ptr.hbm [resolvable:$true] %s520_s10 }
 0x1f8   :  { %p7456_p4 = pnand %p7455_p3, %p7451_p0 }
 0x1fa   :  { %7459 = shalt.err (!%p7456_p4)
}
 0x1fb   :  { %503 = dma.hbm_to_vmem [thread:$0]  %s499_s17, 16, %s501_s29, [#allocation36]  }
 0x1fc   :  { %s9490_s14 = sld [smem:[#allocation130_spill]]  ;;  %s7810_s11 = smov [#allocation40]  }
 0x1fd   :  { %s522_s18 = sshll.u32 %s7810_s11, 4  ;;  %s7472_s3 = sshra.s32 %s521_s10, 4  ;;  %s523_s18 = int_to_ptr.vmem [resolvable:$true] %s522_s18  ;;  %s7473_s3 = int_to_ptr.hbm [resolvable:$true] %s7472_s3 }
 0x1fe   :  { %s7474_s22 = scalar_lea.hbm %s7473_s3, 1  ;;  %s7476_s23 = scalar_lea.hbm %s9489_s6, 1 }
 0x1ff   :  { %p7475_p5 = scmp.ne.s32.totalorder %s7473_s3, %s7474_s22  ;;  %p7477_p6 = scmp.lt.s32.totalorder %s7473_s3, %s9489_s6 }
 0x200   :  { %p7478_p7 = scmp.lt.s32.totalorder %s7476_s23, %s7474_s22 }
 0x202   :  { %s548_s8 = sshll.u32 %s9490_s14, 4  ;;  %p7479_p8 = por %p7478_p7, %p7477_p6  ;;  %s549_s8 = int_to_ptr.hbm [resolvable:$true] %s548_s8 }
 0x204   :  { %p7480_p9 = pnand %p7479_p8, %p7475_p5 }
 0x206   :  { %7483 = shalt.err (!%p7480_p9)
}
 0x207   :  { %525 = dma.hbm_to_vmem [thread:$0]  %s521_s10, 16, %s523_s18, [#allocation39]  }
 0x208   :  { %s9491_s28 = sld [smem:[#allocation132_spill]]  ;;  %s7811_s24 = smov [#allocation43]  }
 0x209   :  { %s550_s25 = sshll.u32 %s7811_s24, 4  ;;  %s7496_s13 = sshra.s32 %s549_s8, 4  ;;  %s551_s25 = int_to_ptr.vmem [resolvable:$true] %s550_s25  ;;  %s7497_s13 = int_to_ptr.hbm [resolvable:$true] %s7496_s13 }
 0x20a   :  { %s7498_s26 = scalar_lea.hbm %s7497_s13, 1  ;;  %s7500_s1 = scalar_lea.hbm %s9490_s14, 1 }
 0x20b   :  { %p7499_p10 = scmp.ne.s32.totalorder %s7497_s13, %s7498_s26  ;;  %p7501_p11 = scmp.lt.s32.totalorder %s7497_s13, %s9490_s14 }
 0x20c   :  { %p7502_p12 = scmp.lt.s32.totalorder %s7500_s1, %s7498_s26 }
 0x20e   :  { %s572_s21 = sshll.u32 %s9491_s28, 4  ;;  %p7503_p13 = por %p7502_p12, %p7501_p11  ;;  %s573_s21 = int_to_ptr.hbm [resolvable:$true] %s572_s21 }
 0x210   :  { %p7504_p0 = pnand %p7503_p13, %p7499_p10 }
 0x212   :  { %7507 = shalt.err (!%p7504_p0)
}
 0x213   :  { %553 = dma.hbm_to_vmem [thread:$0]  %s549_s8, 16, %s551_s25, [#allocation42]  }
 0x214   :  { %s9492_s2 = sld [smem:[#allocation134_spill]]  ;;  %s7812_s0 = smov [#allocation46]  }
 0x215   :  { %s574_s17 = sshll.u32 %s7812_s0, 4  ;;  %s7520_s7 = sshra.s32 %s573_s21, 4  ;;  %s575_s17 = int_to_ptr.vmem [resolvable:$true] %s574_s17  ;;  %s7521_s7 = int_to_ptr.hbm [resolvable:$true] %s7520_s7 }
 0x216   :  { %s7522_s27 = scalar_lea.hbm %s7521_s7, 1  ;;  %s7524_s6 = scalar_lea.hbm %s9491_s28, 1 }
 0x217   :  { %p7523_p1 = scmp.ne.s32.totalorder %s7521_s7, %s7522_s27  ;;  %p7525_p2 = scmp.lt.s32.totalorder %s7521_s7, %s9491_s28 }
 0x218   :  { %p7526_p3 = scmp.lt.s32.totalorder %s7524_s6, %s7522_s27 }
 0x21a   :  { %s594_s9 = sshll.u32 %s9492_s2, 4  ;;  %p7527_p4 = por %p7526_p3, %p7525_p2  ;;  %s595_s9 = int_to_ptr.hbm [resolvable:$true] %s594_s9 }
 0x21c   :  { %p7528_p5 = pnand %p7527_p4, %p7523_p1 }
 0x21e   :  { %7531 = shalt.err (!%p7528_p5)
}
 0x21f   :  { %577 = dma.hbm_to_vmem [thread:$0]  %s573_s21, 16, %s575_s17, [#allocation45]  }
 0x220   :  { %s9493_s10 = sld [smem:[#allocation137_spill]]  ;;  %s7813_s29 = smov [#allocation49]  }
 0x221   :  { %s596_s5 = sshll.u32 %s7813_s29, 4  ;;  %s7544_s16 = sshra.s32 %s595_s9, 4  ;;  %s597_s5 = int_to_ptr.vmem [resolvable:$true] %s596_s5  ;;  %s7545_s16 = int_to_ptr.hbm [resolvable:$true] %s7544_s16 }
 0x222   :  { %s7546_s4 = scalar_lea.hbm %s7545_s16, 1  ;;  %s7548_s14 = scalar_lea.hbm %s9492_s2, 1 }
 0x223   :  { %p7547_p6 = scmp.ne.s32.totalorder %s7545_s16, %s7546_s4  ;;  %p7549_p7 = scmp.lt.s32.totalorder %s7545_s16, %s9492_s2 }
 0x224   :  { %p7550_p8 = scmp.lt.s32.totalorder %s7548_s14, %s7546_s4 }
 0x226   :  { %s618_s15 = sshll.u32 %s9493_s10, 4  ;;  %p7551_p9 = por %p7550_p8, %p7549_p7  ;;  %s619_s15 = int_to_ptr.hbm [resolvable:$true] %s618_s15 }
 0x228   :  { %p7552_p10 = pnand %p7551_p9, %p7547_p6 }
 0x22a   :  { %7555 = shalt.err (!%p7552_p10)
}
 0x22b   :  { %599 = dma.hbm_to_vmem [thread:$0]  %s595_s9, 16, %s597_s5, [#allocation48]  }
 0x22c   :  { %s7814_s11 = smov [#allocation52]   ;;  %s642_s8 = sshll.u32 %s8215_s20, 4  ;;  %s643_s8 = int_to_ptr.hbm [resolvable:$true] %s642_s8 }
 0x22d   :  { %s620_s18 = sshll.u32 %s7814_s11, 4  ;;  %s7568_s3 = sshra.s32 %s619_s15, 4  ;;  %s621_s18 = int_to_ptr.vmem [resolvable:$true] %s620_s18  ;;  %s7569_s3 = int_to_ptr.hbm [resolvable:$true] %s7568_s3 }
 0x22e   :  { %s7570_s22 = scalar_lea.hbm %s7569_s3, 1  ;;  %s7572_s23 = scalar_lea.hbm %s9493_s10, 1 }
 0x22f   :  { %p7571_p11 = scmp.ne.s32.totalorder %s7569_s3, %s7570_s22  ;;  %p7573_p12 = scmp.lt.s32.totalorder %s7569_s3, %s9493_s10 }
 0x230   :  { %p7574_p13 = scmp.lt.s32.totalorder %s7572_s23, %s7570_s22 }
 0x232   :  { %p7575_p0 = por %p7574_p13, %p7573_p12 }
 0x234   :  { %p7576_p1 = pnand %p7575_p0, %p7571_p11 }
 0x236   :  { %7579 = shalt.err (!%p7576_p1)
}
 0x237   :  { %623 = dma.hbm_to_vmem [thread:$0]  %s619_s15, 16, %s621_s18, [#allocation51]  }
 0x238   :  { %s7815_s28 = smov [#allocation55]   ;;  %s7592_s24 = sshra.s32 %s643_s8, 4  ;;  %s7593_s24 = int_to_ptr.hbm [resolvable:$true] %s7592_s24 }
 0x239   :  { %s644_s21 = sshll.u32 %s7815_s28, 4  ;;  %s7594_s25 = scalar_lea.hbm %s7593_s24, 1  ;;  %s645_s21 = int_to_ptr.vmem [resolvable:$true] %s644_s21 }
 0x23a   :  { %p7595_p2 = scmp.ne.s32.totalorder %s7593_s24, %s7594_s25  ;;  %s7596_s13 = scalar_lea.hbm %s8215_s20, 1 }
 0x23b   :  { %p7597_p3 = scmp.lt.s32.totalorder %s7593_s24, %s8215_s20  ;;  %p7598_p4 = scmp.lt.s32.totalorder %s7596_s13, %s7594_s25 }
 0x23d   :  { %p7599_p5 = por %p7598_p4, %p7597_p3 }
 0x23f   :  { %p7600_p6 = pnand %p7599_p5, %p7595_p2 }
 0x241   :  { %7603 = shalt.err (!%p7600_p6)
}
 0x242   :  { %647 = dma.hbm_to_vmem [thread:$0]  %s643_s8, 16, %s645_s21, [#allocation54]  }
 0x243   :  { %7664 = dma.done.wait [#allocation3], 16  }
 0x244   :  { %7665 = vsyncadd [#allocation3], 4294967280 }
 0x245   :  { %7666 = dma.done.wait [#allocation6], 32  }
 0x246   :  { %7667 = vsyncadd [#allocation6], 4294967264 }
 0x247   :  { %7668 = dma.done.wait [#allocation9], 32  }
 0x248   :  { %7669 = vsyncadd [#allocation9], 4294967264 }
 0x249   :  { %7670 = dma.done.wait [#allocation12], 32  }
 0x24a   :  { %7671 = vsyncadd [#allocation12], 4294967264 }
 0x24b   :  { %7672 = dma.done.wait [#allocation15], 32  }
 0x24c   :  { %7673 = vsyncadd [#allocation15], 4294967264 }
 0x24d   :  { %7674 = dma.done.wait [#allocation18], 32  }
 0x24e   :  { %7675 = vsyncadd [#allocation18], 4294967264 }
 0x24f   :  { %7676 = dma.done.wait [#allocation21], 32  }
 0x250   :  { %7677 = vsyncadd [#allocation21], 4294967264 }
 0x251   :  { %7678 = dma.done.wait [#allocation24], 32  }
 0x252   :  { %7679 = vsyncadd [#allocation24], 4294967264 }
 0x253   :  { %7680 = dma.done.wait [#allocation27], 32  }
 0x254   :  { %7681 = vsyncadd [#allocation27], 4294967264 }
 0x255   :  { %7682 = dma.done.wait [#allocation30], 32  }
 0x256   :  { %7683 = vsyncadd [#allocation30], 4294967264 }
 0x257   :  { %7684 = dma.done.wait [#allocation33], 32  }
 0x258   :  { %7685 = vsyncadd [#allocation33], 4294967264 }
 0x259   :  { %7686 = dma.done.wait [#allocation36], 32  }
 0x25a   :  { %7687 = vsyncadd [#allocation36], 4294967264 }
 0x25b   :  { %7688 = dma.done.wait [#allocation39], 32  }
 0x25c   :  { %7689 = vsyncadd [#allocation39], 4294967264 }
 0x25d   :  { %7690 = dma.done.wait [#allocation42], 32  }
 0x25e   :  { %7691 = vsyncadd [#allocation42], 4294967264 }
 0x25f   :  { %7692 = dma.done.wait [#allocation45], 32  }
 0x260   :  { %7693 = vsyncadd [#allocation45], 4294967264 }
 0x261   :  { %7694 = dma.done.wait [#allocation48], 32  }
 0x262   :  { %7695 = vsyncadd [#allocation48], 4294967264 }
 0x263   :  { %7696 = dma.done.wait [#allocation51], 32  }
 0x264   :  { %7697 = vsyncadd [#allocation51], 4294967264 }
 0x265   :  { %7698 = dma.done.wait [#allocation54], 32  }
 0x266   :  { %7699 = vsyncadd [#allocation54], 4294967264  ;;  %s9494_s20 = sld [smem:[#allocation80_spill]]  ;;  %vm823_vm0 = vcmask 392192   ;;  %vm851_vm1 = vcmask 261120   ;;  %v7816_v13 = vmov 32.0  }
 0x267   :  { %s9495_s26 = sld [smem:[#allocation79_spill]]  ;;  %6524 = vrcp.f32 %v7816_v13  ;;  %s7817_s6 = smov 96  }
 0x268   :  { %s9496_s1 = sld [smem:[#allocation81_spill]]  ;;  %s7818_s15 = smov 80  }
 0x269   :  { %s9497_s2 = sld [smem:[#allocation82_spill]]  ;;  %s7819_s29 = smov 64  }
 0x26a   :  { %s9498_s0 = sld [smem:[#allocation83_spill]]  ;;  %s7820_s5 = smov 112  }
 0x26b   :  { %s9499_s17 = sld [smem:[#allocation86_spill]]  ;;  %s7821_s16 = smov 48  }
 0x26c   :  { %v6217_v0 = vld [vmem:[%s9494_s20 + $0x10] sm:$0xff]  ;;  %v6216_v1 = vld [vmem:[%s9494_s20 + $0x8] sm:$0xff]  ;;  %v6215_v2 = vld [vmem:[%s9494_s20] sm:$0xff]  ;;  %s9500_s9 = sld [smem:[#allocation84_spill]]  ;;  %s7822_s14 = smov 16  }
 0x26d   :  { %835 = vmatpush.bf16.msra.mxu0 %v6217_v0  ;;  %v789_v3 = vld [vmem:[%s9495_s26] sm:$0xff]  ;;  %v790_v4 = vld [vmem:[%s9495_s26 + $0x8] sm:$0xff]  ;;  %v6525_v14 = vpop.eup %6524  ;;  %v791_v16 = vld [vmem:[%s9495_s26 + $0x10] sm:$0xff]  ;;  %s9501_s7 = sld [smem:[#allocation85_spill]] }
 0x26e   :  { %v799_v5 = vpack.c.bf16 %v790_v4, %v789_v3  ;;  %v8339_v6 = vld [vmem:[%s9496_s1] ss:$0 sm:$0xff]  ;;  %v865_v15 = vmul.f32 32.0, %v6525_v14  ;;  %v792_v17 = vld [vmem:[%s9495_s26 + $0x18] sm:$0xff]  ;;  %vm869_vm2 = vweird.f32 %v6525_v14  ;;  %s9502_s27 = sld [smem:[#allocation87_spill]]  ;;  %s7824_s26 = smov 32  }
 0x26f   :  { %v800_v18 = vpack.c.bf16 %v792_v17, %v791_v16  ;;  %v8357_v47 = vld [vmem:[%s9497_s2] ss:$0 sm:$0xff]  ;;  %s9503_s10 = sld [smem:[#allocation88_spill]] }
 0x270   :  { %v866_v19 = vsub.f32 1.0, %v865_v15  ;;  %v8360_v51 = vld [vmem:[%s9498_s0] ss:$0 sm:$0xff]  ;;  %s9504_s4 = sld [smem:[#allocation89_spill]] }
 0x271   :  { %836 = vmatpush.bf16.msra.mxu0 %v6216_v1  ;;  %s9505_s11 = sld [smem:[#allocation90_spill]] }
 0x272   :  { %v867_v20 = vmul.f32 %v6525_v14, %v866_v19  ;;  %s9506_s18 = sld [smem:[#allocation92_spill]] }
 0x273   :  { %s9507_s8 = sld [smem:[#allocation94_spill]] }
 0x274   :  { %v868_v21 = vadd.f32 %v6525_v14, %v867_v20  ;;  %v6219_v20 = vld [vmem:[%s9499_s17 + $0x8] sm:$0xff]  ;;  %s9508_s3 = sld [smem:[#allocation96_spill]] }
 0x275   :  { %837 = vmatpush.bf16.msra.mxu0 %v6215_v2  ;;  %1099 = vmatpush.bf16.msra.mxu1 %v6219_v20  ;;  %s9509_s22 = sld [smem:[#allocation98_spill]] }
 0x276   :  { %v8348_v22 = vsel %vm869_vm2, %v6525_v14, %v868_v21  ;;  %s9510_s23 = sld [smem:[#allocation99_spill]] }
 0x277   :  { %s9511_s28 = sld [smem:[#allocation101_spill]] }
 0x278   :  { %5662 = vmatmul.msk.bf16.vlgmr.msra.gmra.mxu0 %vm823_vm0, %v799_v5  ;;  %s9512_s21 = sld [smem:[#allocation103_spill]] }
 0x279   :  { %s9513_s24 = sld [smem:[#allocation105_spill]] }
 0x27a   :  { %s9514_s25 = sld [smem:[#allocation104_spill]] }
 0x27b   :  { %s9515_s13 = sld [smem:[#allocation106_spill]] }
 0x27c   :  { %s9516_s20 = sld [smem:[#allocation107_spill]] }
 0x27d   :  { %s9517_s1 = sld [smem:[#allocation109_spill]] }
 0x27e   :  { %s9518_s2 = sld [smem:[#allocation111_spill]] }
 0x27f   :  { %s9519_s0 = sld [smem:[#allocation112_spill]] }
 0x288   :  { %5663 = vmatmul.msk.bf16.gmra.mxu0 %vm823_vm0, %v800_v18 }
 0x2f5   :  { %v839_v7 = vpop.f32.mrf.mxu0 }
 0x2f6   :  { %v840_v8 = vadd.f32 %v8339_v6, %v839_v7 }
 0x2f8   :  { %v852_v9 = vsel %vm851_vm1, %v840_v8, 0.0 }
 0x2f9   :  { %853 = vadd.xlane.f32.xlu0 %v852_v9 }
 0x2fd   :  { %v841_v10 = vpop.f32.mrf.mxu0 }
 0x2fe   :  { %v842_v11 = vadd.f32 %v8339_v6, %v841_v10 }
 0x300   :  { %v855_v12 = vsel %vm851_vm1, %v842_v11, 0.0 }
 0x301   :  { %856 = vadd.xlane.f32.xlu0 %v855_v12 }
 0x305   :  { %v844_v62 = vpop.f32.mrf.mxu0 }
 0x306   :  { %v845_v0 = vadd.f32 %v8339_v6, %v844_v62  ;;  %v8406_v62 = vld [vmem:[%s9501_s7] ss:$0 sm:$0xff]  ;;  %s9522_s7 = sld [smem:[#allocation117_spill]] }
 0x308   :  { %v858_v1 = vsel %vm851_vm1, %v845_v0, 0.0 }
 0x36c   :  { %v854_v23 = vpop.xlane.xlu0 %853 }
 0x36d   :  { %v871_v24 = vmul.f32 %v8348_v22, %v854_v23 }
 0x36f   :  { %v875_v25 = vsub.f32 %v840_v8, %v871_v24  ;;  %v846_v8 = vpop.f32.mrf.mxu0  ;;  %v6218_v24 = vld [vmem:[%s9499_s17] sm:$0xff]  ;;  %s9520_s17 = sld [smem:[#allocation113_spill]] }
 0x370   :  { %1100 = vmatpush.bf16.msra.mxu1 %v6218_v24 }
 0x371   :  { %v879_v26 = vmul.f32 %v875_v25, %v875_v25 }
 0x373   :  { %v883_v27 = vsel %vm851_vm1, %v879_v26, 0.0 }
 0x374   :  { %884 = vadd.xlane.f32.xlu1 %v883_v27  ;;  %v857_v28 = vpop.xlane.xlu0 %856 }
 0x375   :  { %v872_v29 = vmul.f32 %v8348_v22, %v857_v28 }
 0x377   :  { %v876_v30 = vsub.f32 %v842_v11, %v872_v29  ;;  %v847_v11 = vadd.f32 %v8339_v6, %v846_v8 }
 0x379   :  { %v880_v31 = vmul.f32 %v876_v30, %v876_v30  ;;  %v861_v14 = vsel %vm851_vm1, %v847_v11, 0.0 }
 0x37b   :  { %v886_v32 = vsel %vm851_vm1, %v880_v31, 0.0 }
 0x37c   :  { %887 = vadd.xlane.f32.xlu1 %v886_v32 }
 0x3e7   :  { %v885_v33 = vpop.xlane.xlu1 %884 }
 0x3e8   :  { %v895_v34 = vmul.f32 %v885_v33, %v8348_v22 }
 0x3ea   :  { %v899_v35 = vadd.f32 1e-05, %v895_v34 }
 0x3ec   :  { %6526 = vrsqrt.f32 %v899_v35  ;;  %vm909_vm4 = vweird.f32 %v899_v35 }
 0x3ef   :  { %v888_v36 = vpop.xlane.xlu1 %887 }
 0x3f0   :  { %v896_v37 = vmul.f32 %v888_v36, %v8348_v22 }
 0x3f2   :  { %v6527_v38 = vpop.eup %6526  ;;  %v900_v39 = vadd.f32 1e-05, %v896_v37 }
 0x3f3   :  { %v904_v40 = vmul.f32 %v6527_v38, %v899_v35  ;;  %vm910_vm3 = vweird.f32 %v6527_v38 }
 0x3f4   :  { %6528 = vrsqrt.f32 %v900_v39  ;;  %vm911_vm5 = vmor %vm909_vm4, %vm910_vm3  ;;  %vm919_vm7 = vweird.f32 %v900_v39 }
 0x3f5   :  { %v905_v41 = vmul.f32 %v6527_v38, %v904_v40 }
 0x3f7   :  { %v906_v42 = vmul.f32 0.5, %v905_v41 }
 0x3f9   :  { %v907_v43 = vsub.f32 1.5, %v906_v42 }
 0x3fa   :  { %v6529_v44 = vpop.eup %6528 }
 0x3fb   :  { %v908_v45 = vmul.f32 %v6527_v38, %v907_v43  ;;  %v914_v46 = vmul.f32 %v6529_v44, %v900_v39  ;;  %vm920_vm6 = vweird.f32 %v6529_v44 }
 0x3fc   :  { %vm921_vm8 = vmor %vm919_vm7, %vm920_vm6  ;;  %vm1125_vm7 = vcmask 130048  }
 0x3fd   :  { %v915_v48 = vmul.f32 %v6529_v44, %v914_v46  ;;  %v912_v49 = vsel %vm911_vm5, %v6527_v38, %v908_v45 }
 0x3fe   :  { %v943_v50 = vmul.f32 %v912_v49, %v875_v25 }
 0x3ff   :  { %v916_v52 = vmul.f32 0.5, %v915_v48 }
 0x400   :  { %v950_v53 = vmul.f32 %v8357_v47, %v943_v50 }
 0x401   :  { %v917_v54 = vsub.f32 1.5, %v916_v52 }
 0x402   :  { %v8364_v55 = vadd.f32 %v8360_v51, %v950_v53  ;;  %v8402_v53 = vld [vmem:[%s9500_s9] ss:$0 sm:$0xff]  ;;  %s9521_s9 = sld [smem:[#allocation114_spill]] }
 0x403   :  { %v918_v56 = vmul.f32 %v6529_v44, %v917_v54 }
 0x404   :  { %v963_v57 = vsel %vm851_vm1, %v8364_v55, 0.0 }
 0x405   :  { %964 = vadd.xlane.f32.xlu2 %v963_v57  ;;  %v922_v58 = vsel %vm921_vm8, %v6529_v44, %v918_v56 }
 0x406   :  { %v944_v59 = vmul.f32 %v922_v58, %v876_v30 }
 0x408   :  { %v951_v60 = vmul.f32 %v8357_v47, %v944_v59 }
 0x40a   :  { %v8370_v61 = vadd.f32 %v8360_v51, %v951_v60 }
 0x40c   :  { %v966_v63 = vsel %vm851_vm1, %v8370_v61, 0.0 }
 0x40d   :  { %967 = vadd.xlane.f32.xlu2 %v966_v63 }
 0x415   :  { %859 = vadd.xlane.f32.xlu2 %v858_v1 }
 0x478   :  { %v965_v2 = vpop.xlane.xlu2 %964 }
 0x479   :  { %v975_v3 = vmul.f32 %v965_v2, %v8348_v22 }
 0x47b   :  { %v979_v4 = vsub.f32 %v8364_v55, %v975_v3 }
 0x47d   :  { %v983_v5 = vmul.f32 %v979_v4, %v979_v4 }
 0x47f   :  { %v987_v7 = vsel %vm851_vm1, %v983_v5, 0.0 }
 0x480   :  { %988 = vadd.xlane.f32.xlu0 %v987_v7  ;;  %v968_v9 = vpop.xlane.xlu2 %967 }
 0x481   :  { %v976_v10 = vmul.f32 %v968_v9, %v8348_v22 }
 0x483   :  { %v980_v12 = vsub.f32 %v8370_v61, %v976_v10 }
 0x485   :  { %v984_v13 = vmul.f32 %v980_v12, %v980_v12 }
 0x487   :  { %v990_v15 = vsel %vm851_vm1, %v984_v13, 0.0 }
 0x488   :  { %862 = vadd.xlane.f32.xlu0 %v861_v14  ;;  %991 = vadd.xlane.f32.xlu1 %v990_v15  ;;  %v860_v16 = vpop.xlane.xlu2 %859 }
 0x489   :  { %v873_v17 = vmul.f32 %v8348_v22, %v860_v16 }
 0x48b   :  { %v8385_v18 = vsub.f32 %v845_v0, %v873_v17 }
 0x48d   :  { %v881_v19 = vmul.f32 %v8385_v18, %v8385_v18 }
 0x48f   :  { %v889_v6 = vsel %vm851_vm1, %v881_v19, 0.0 }
 0x490   :  { %890 = vadd.xlane.f32.xlu1 %v889_v6 }
 0x4f3   :  { %v989_v21 = vpop.xlane.xlu0 %988 }
 0x4f4   :  { %v999_v23 = vmul.f32 %v989_v21, %v8348_v22 }
 0x4f6   :  { %v1003_v25 = vadd.f32 1e-05, %v999_v23 }
 0x4f8   :  { %6530 = vrsqrt.f32 %v1003_v25  ;;  %vm1013_vm10 = vweird.f32 %v1003_v25 }
 0x4fb   :  { %v992_v26 = vpop.xlane.xlu1 %991  ;;  %v863_v27 = vpop.xlane.xlu0 %862 }
 0x4fc   :  { %v1000_v28 = vmul.f32 %v992_v26, %v8348_v22  ;;  %v874_v29 = vmul.f32 %v8348_v22, %v863_v27 }
 0x4fe   :  { %v6531_v30 = vpop.eup %6530  ;;  %v1004_v31 = vadd.f32 1e-05, %v1000_v28  ;;  %v8395_v32 = vsub.f32 %v847_v11, %v874_v29 }
 0x4ff   :  { %v1008_v33 = vmul.f32 %v6531_v30, %v1003_v25  ;;  %vm1014_vm9 = vweird.f32 %v6531_v30 }
 0x500   :  { %6532 = vrsqrt.f32 %v1004_v31  ;;  %v882_v34 = vmul.f32 %v8395_v32, %v8395_v32  ;;  %vm1015_vm11 = vmor %vm1013_vm10, %vm1014_vm9  ;;  %vm1023_vm13 = vweird.f32 %v1004_v31 }
 0x501   :  { %v1009_v35 = vmul.f32 %v6531_v30, %v1008_v33 }
 0x502   :  { %v892_v36 = vsel %vm851_vm1, %v882_v34, 0.0 }
 0x503   :  { %v1010_v37 = vmul.f32 0.5, %v1009_v35  ;;  %v891_v38 = vpop.xlane.xlu1 %890  ;;  %893 = vadd.xlane.f32.xlu2 %v892_v36 }
 0x504   :  { %v897_v39 = vmul.f32 %v891_v38, %v8348_v22 }
 0x505   :  { %v1011_v40 = vsub.f32 1.5, %v1010_v37 }
 0x506   :  { %v6533_v41 = vpop.eup %6532  ;;  %v901_v42 = vadd.f32 1e-05, %v897_v39 }
 0x507   :  { %v1012_v43 = vmul.f32 %v6531_v30, %v1011_v40  ;;  %v1018_v44 = vmul.f32 %v6533_v41, %v1004_v31  ;;  %vm1024_vm12 = vweird.f32 %v6533_v41 }
 0x508   :  { %6534 = vrsqrt.f32 %v901_v42  ;;  %vm1025_vm14 = vmor %vm1023_vm13, %vm1024_vm12  ;;  %vm929_vm2 = vweird.f32 %v901_v42 }
 0x509   :  { %v1019_v45 = vmul.f32 %v6533_v41, %v1018_v44  ;;  %v1016_v46 = vsel %vm1015_vm11, %v6531_v30, %v1012_v43  ;;  %v8430_v30 = vld [vmem:[%s9502_s27] ss:$0 sm:$0xff]  ;;  %s9523_s27 = sld [smem:[#allocation118_spill]] }
 0x50a   :  { %v1047_v52 = vmul.f32 %v1016_v46, %v979_v4 }
 0x50b   :  { %v1020_v48 = vmul.f32 0.5, %v1019_v45 }
 0x50c   :  { %v1054_v60 = vmul.f32 %v8402_v53, %v1047_v52 }
 0x50d   :  { %v1021_v49 = vsub.f32 1.5, %v1020_v48 }
 0x50e   :  { %v6535_v50 = vpop.eup %6534  ;;  %v1061_v2 = vadd.f32 %v8406_v62, %v1054_v60 }
 0x50f   :  { %v1022_v54 = vmul.f32 %v6533_v41, %v1021_v49  ;;  %v924_v56 = vmul.f32 %v6535_v50, %v901_v42  ;;  %vm930_vm15 = vweird.f32 %v6535_v50 }
 0x510   :  { %vm931_vm3 = vmor %vm929_vm2, %vm930_vm15 }
 0x511   :  { %v1026_v57 = vsel %vm1025_vm14, %v6533_v41, %v1022_v54  ;;  %v925_v58 = vmul.f32 %v6535_v50, %v924_v56 }
 0x512   :  { %v1048_v59 = vmul.f32 %v1026_v57, %v980_v12 }
 0x513   :  { %v926_v63 = vmul.f32 0.5, %v925_v58 }
 0x514   :  { %v1055_v0 = vmul.f32 %v8402_v53, %v1048_v59 }
 0x515   :  { %v927_v1 = vsub.f32 1.5, %v926_v63  ;;  %v8448_v63 = vld [vmem:[%s9503_s10] sm:$0xff] }
 0x516   :  { %v1062_v3 = vadd.f32 %v8406_v62, %v1055_v0 }
 0x517   :  { %v928_v4 = vmul.f32 %v6535_v50, %v927_v1 }
 0x518   :  { %v1069_v5 = vpack.c.bf16 %v1062_v3, %v1061_v2 }
 0x519   :  { %v932_v7 = vsel %vm931_vm3, %v6535_v50, %v928_v4 }
 0x51a   :  { %5672 = vmatmul.msk.bf16.vlgmr.msra.gmra.mxu1 %vm851_vm1, %v1069_v5  ;;  %v945_v8 = vmul.f32 %v932_v7, %v8385_v18 }
 0x51c   :  { %v952_v9 = vmul.f32 %v8357_v47, %v945_v8 }
 0x51e   :  { %v8415_v10 = vadd.f32 %v8360_v51, %v952_v9 }
 0x520   :  { %v969_v11 = vsel %vm851_vm1, %v8415_v10, 0.0 }
 0x521   :  { %970 = vadd.xlane.f32.xlu0 %v969_v11 }
 0x576   :  { %v894_v12 = vpop.xlane.xlu2 %893 }
 0x577   :  { %v898_v13 = vmul.f32 %v894_v12, %v8348_v22  ;;  %v8453_v12 = vld [vmem:[%s9503_s10 + $0x8] sm:$0xff] }
 0x579   :  { %v902_v14 = vadd.f32 1e-05, %v898_v13 }
 0x57b   :  { %6536 = vrsqrt.f32 %v902_v14  ;;  %vm939_vm5 = vweird.f32 %v902_v14 }
 0x581   :  { %v6537_v15 = vpop.eup %6536 }
 0x582   :  { %v934_v16 = vmul.f32 %v6537_v15, %v902_v14  ;;  %vm940_vm4 = vweird.f32 %v6537_v15 }
 0x583   :  { %vm941_vm6 = vmor %vm939_vm5, %vm940_vm4 }
 0x584   :  { %v935_v17 = vmul.f32 %v6537_v15, %v934_v16 }
 0x586   :  { %v936_v19 = vmul.f32 0.5, %v935_v17 }
 0x588   :  { %v937_v18 = vsub.f32 1.5, %v936_v19 }
 0x58a   :  { %v938_v6 = vmul.f32 %v6537_v15, %v937_v18 }
 0x58c   :  { %v942_v20 = vsel %vm941_vm6, %v6537_v15, %v938_v6 }
 0x58d   :  { %v946_v21 = vmul.f32 %v942_v20, %v8395_v32 }
 0x58f   :  { %v953_v23 = vmul.f32 %v8357_v47, %v946_v21 }
 0x591   :  { %v8423_v24 = vadd.f32 %v8360_v51, %v953_v23 }
 0x593   :  { %v972_v25 = vsel %vm851_vm1, %v8423_v24, 0.0 }
 0x594   :  { %973 = vadd.xlane.f32.xlu1 %v972_v25  ;;  %v971_v26 = vpop.xlane.xlu0 %970 }
 0x595   :  { %v977_v27 = vmul.f32 %v971_v26, %v8348_v22 }
 0x597   :  { %v981_v28 = vsub.f32 %v8415_v10, %v977_v27  ;;  %v1102_v29 = vpop.f32.mrf.mxu1 }
 0x598   :  { %v1103_v47 = vadd.f32 %v8430_v30, %v1102_v29 }
 0x599   :  { %v985_v31 = vmul.f32 %v981_v28, %v981_v28 }
 0x59a   :  { %v1112_v33 = vpack.c.bf16 %v1103_v47, %v1103_v47 }
 0x59b   :  { %v993_v32 = vsel %vm851_vm1, %v985_v31, 0.0 }
 0x59c   :  { %994 = vadd.xlane.f32.xlu0 %v993_v32  ;;  %v1120_v36 = vunpack.c.l.b16 %v1112_v33 }
 0x59f   :  { %v1104_v51 = vpop.f32.mrf.mxu1 }
 0x5a0   :  { %v1105_v34 = vadd.f32 %v8430_v30, %v1104_v51 }
 0x5a2   :  { %v1113_v35 = vpack.c.bf16 %v1105_v34, %v1105_v34 }
 0x5a4   :  { %v1121_v37 = vunpack.c.l.b16 %v1113_v35 }
 0x5a6   :  { %v8435_v38 = vpack.c.b16 %v1121_v37, %v1120_v36 }
 0x5a8   :  { %1123 = vrot.lane.b32.xlu2 %v8435_v38, %s7817_s6 }
 0x602   :  { %v1124_v39 = vpop.permute.xlu2 %1123 }
 0x603   :  { %v1130_v40 = vsel %vm1125_vm7, %v1124_v39, 0 }
 0x604   :  { %1139 = vmatpush.bf16.xpose.msra.mxu2 %v1130_v40 }
 0x607   :  { %v974_v41 = vpop.xlane.xlu1 %973 }
 0x608   :  { %v978_v42 = vmul.f32 %v974_v41, %v8348_v22 }
 0x60a   :  { %v982_v43 = vsub.f32 %v8423_v24, %v978_v42 }
 0x60b   :  { %5674 = vmatmul.msk.bf16.vlgmr.msra.gmra.mxu2 %vm1125_vm7, %v8435_v38 }
 0x60c   :  { %v986_v44 = vmul.f32 %v982_v43, %v982_v43 }
 0x60e   :  { %v996_v45 = vsel %vm851_vm1, %v986_v44, 0.0 }
 0x60f   :  { %997 = vadd.xlane.f32.xlu1 %v996_v45  ;;  %v995_v46 = vpop.xlane.xlu0 %994 }
 0x610   :  { %v1001_v48 = vmul.f32 %v995_v46, %v8348_v22 }
 0x612   :  { %v1005_v49 = vadd.f32 1e-05, %v1001_v48 }
 0x614   :  { %6538 = vrsqrt.f32 %v1005_v49  ;;  %vm1033_vm9 = vweird.f32 %v1005_v49 }
 0x61a   :  { %v6539_v50 = vpop.eup %6538 }
 0x61b   :  { %v1028_v52 = vmul.f32 %v6539_v50, %v1005_v49  ;;  %vm1034_vm8 = vweird.f32 %v6539_v50 }
 0x61c   :  { %vm1035_vm10 = vmor %vm1033_vm9, %vm1034_vm8 }
 0x61d   :  { %v1029_v54 = vmul.f32 %v6539_v50, %v1028_v52 }
 0x61f   :  { %v1030_v59 = vmul.f32 0.5, %v1029_v54 }
 0x621   :  { %v1031_v60 = vsub.f32 1.5, %v1030_v59 }
 0x623   :  { %v1032_v1 = vmul.f32 %v6539_v50, %v1031_v60 }
 0x625   :  { %v1036_v8 = vsel %vm1035_vm10, %v6539_v50, %v1032_v1 }
 0x626   :  { %v1049_v13 = vmul.f32 %v1036_v8, %v981_v28 }
 0x628   :  { %v1056_v6 = vmul.f32 %v8402_v53, %v1049_v13 }
 0x62a   :  { %v1063_v21 = vadd.f32 %v8406_v62, %v1056_v6  ;;  %v5679_v6 = vld [vmem:[%s9503_s10 + $0x18] sm:$0xff] }
 0x682   :  { %v998_v56 = vpop.xlane.xlu1 %997 }
 0x683   :  { %v1002_v57 = vmul.f32 %v998_v56, %v8348_v22 }
 0x685   :  { %v1006_v58 = vadd.f32 1e-05, %v1002_v57 }
 0x687   :  { %6540 = vrsqrt.f32 %v1006_v58  ;;  %vm1043_vm12 = vweird.f32 %v1006_v58 }
 0x68d   :  { %v6541_v0 = vpop.eup %6540 }
 0x68e   :  { %v1038_v2 = vmul.f32 %v6541_v0, %v1006_v58  ;;  %v1141_v3 = vpop.f32.mrf.mxu2  ;;  %vm1044_vm11 = vweird.f32 %v6541_v0 }
 0x68f   :  { %v1142_v4 = vadd.f32 %v1141_v3, %v8448_v63  ;;  %vm1045_vm13 = vmor %vm1043_vm12, %vm1044_vm11 }
 0x690   :  { %v1039_v5 = vmul.f32 %v6541_v0, %v1038_v2 }
 0x691   :  { %v1173_v7 = vsel %vm1125_vm7, %v1142_v4, -inf }
 0x692   :  { %v1040_v9 = vmul.f32 0.5, %v1039_v5  ;;  %1174 = vmax.xlane.f32.xlu0 %v1173_v7  ;;  %v5678_v7 = vld [vmem:[%s9503_s10 + $0x10] sm:$0xff]  ;;  %s9524_s10 = sld [smem:[#allocation119_spill]] }
 0x694   :  { %v1041_v11 = vsub.f32 1.5, %v1040_v9 }
 0x696   :  { %v1042_v14 = vmul.f32 %v6541_v0, %v1041_v11  ;;  %v1143_v15 = vpop.f32.mrf.mxu2 }
 0x697   :  { %v1144_v16 = vadd.f32 %v1143_v15, %v8453_v12 }
 0x698   :  { %v1046_v17 = vsel %vm1045_vm13, %v6541_v0, %v1042_v14 }
 0x699   :  { %v1176_v19 = vsel %vm1125_vm7, %v1144_v16, -inf  ;;  %v1050_v18 = vmul.f32 %v1046_v17, %v982_v43 }
 0x69a   :  { %1177 = vmax.xlane.f32.xlu1 %v1176_v19 }
 0x69b   :  { %v1057_v20 = vmul.f32 %v8402_v53, %v1050_v18 }
 0x69d   :  { %v1064_v23 = vadd.f32 %v8406_v62, %v1057_v20 }
 0x69f   :  { %v1070_v25 = vpack.c.bf16 %v1064_v23, %v1063_v21 }
 0x6a1   :  { %5673 = vmatmul.msk.bf16.gmra.mxu1 %vm851_vm1, %v1070_v25 }
 0x705   :  { %v1175_v26 = vpop.xlane.xlu0 %1174 }
 0x706   :  { %v1185_v27 = vsub.f32 %v1142_v4, %v1175_v26 }
 0x708   :  { %v1189_v28 = vmul.f32 1.442695, %v1185_v27 }
 0x70a   :  { %6542 = vpow2.f32 %v1189_v28 }
 0x70d   :  { %v1178_v29 = vpop.xlane.xlu1 %1177 }
 0x70e   :  { %v1186_v31 = vsub.f32 %v1144_v16, %v1178_v29 }
 0x710   :  { %v6543_v32 = vpop.eup %6542  ;;  %v1191_v47 = vmul.f32 1.442695, %v1186_v31 }
 0x711   :  { %v1197_v51 = vsel %vm1125_vm7, %v6543_v32, 0.0 }
 0x712   :  { %6544 = vpow2.f32 %v1191_v47  ;;  %1198 = vadd.xlane.f32.xlu1 %v1197_v51 }
 0x718   :  { %v6545_v53 = vpop.eup %6544 }
 0x719   :  { %v1200_v33 = vsel %vm1125_vm7, %v6545_v53, 0.0 }
 0x71a   :  { %1201 = vadd.xlane.f32.xlu2 %v1200_v33 }
 0x71e   :  { %v1107_v62 = vpop.f32.mrf.mxu1 }
 0x71f   :  { %v1108_v34 = vadd.f32 %v8430_v30, %v1107_v62 }
 0x721   :  { %v1114_v36 = vpack.c.bf16 %v1108_v34, %v1108_v34 }
 0x723   :  { %v1148_v40 = vunpack.c.l.b16 %v1114_v36 }
 0x726   :  { %v1109_v35 = vpop.f32.mrf.mxu1 }
 0x727   :  { %v1110_v37 = vadd.f32 %v8430_v30, %v1109_v35 }
 0x729   :  { %v1115_v39 = vpack.c.bf16 %v1110_v37, %v1110_v37 }
 0x72b   :  { %v1149_v41 = vunpack.c.l.b16 %v1115_v39  ;;  %1276 = vrot.lane.b32.xlu1 %v8435_v38, %s7818_s15 }
 0x72d   :  { %v8468_v42 = vpack.c.b16 %v1149_v41, %v1148_v40 }
 0x72f   :  { %1151 = vrot.lane.b32.xlu0 %v8468_v42, %s7817_s6 }
 0x733   :  { %1300 = vrot.lane.b32.xlu1 %v8468_v42, %s7818_s15 }
 0x737   :  { %1226 = vrot.lane.b32.xlu0 %v8435_v38, %s7819_s29 }
 0x73f   :  { %1274 = vrot.lane.b32.xlu0 %v8435_v38, %s7820_s5 }
 0x747   :  { %1298 = vrot.lane.b32.xlu0 %v8468_v42, %s7820_s5 }
 0x785   :  { %v1199_v43 = vpop.xlane.xlu1 %1198 }
 0x78d   :  { %v1202_v30 = vpop.xlane.xlu2 %1201 }
 0x78e   :  { %6546 = vrcp.f32 %v1202_v30 }
 0x78f   :  { %6548 = vrcp.f32 %v1199_v43 }
 0x794   :  { %v6547_v44 = vpop.eup %6546 }
 0x795   :  { %v6549_v46 = vpop.eup %6548  ;;  %v1214_v49 = vmul.f32 %v6547_v44, %v6545_v53 }
 0x796   :  { %v1213_v50 = vmul.f32 %v6549_v46, %v6543_v32 }
 0x797   :  { %v1218_v56 = vpack.c.bf16 %v1214_v49, %v1214_v49 }
 0x798   :  { %v1217_v57 = vpack.c.bf16 %v1213_v50, %v1213_v50 }
 0x799   :  { %v1224_v59 = vunpack.c.l.b16 %v1218_v56 }
 0x79a   :  { %v1223_v0 = vunpack.c.l.b16 %v1217_v57 }
 0x79c   :  { %v1225_v2 = vpack.c.b16 %v1224_v59, %v1223_v0 }
 0x79d   :  { %v1277_v45 = vpop.permute.xlu1 %1276 }
 0x79e   :  { %v1282_v48 = vsel %vm1125_vm7, %v1277_v45, 0 }
 0x79f   :  { %1291 = vmatpush.bf16.xpose.msrb.mxu1 %v1282_v48 }
 0x7a1   :  { %v1152_v52 = vpop.permute.xlu0 %1151 }
 0x7a2   :  { %v1157_v54 = vsel %vm1125_vm7, %v1152_v52, 0 }
 0x7a3   :  { %1166 = vmatpush.bf16.xpose.msra.mxu3 %v1157_v54 }
 0x7a5   :  { %v1301_v58 = vpop.permute.xlu1 %1300 }
 0x7a6   :  { %v1306_v1 = vsel %vm1125_vm7, %v1301_v58, 0 }
 0x7a9   :  { %v1227_v60 = vpop.permute.xlu0 %1226 }
 0x7aa   :  { %5675 = vmatmul.msk.bf16.vlgmr.msra.gmra.mxu3 %vm1125_vm7, %v8468_v42  ;;  %1239 = vmatpush.bf16.msrb.mxu2 %v1227_v60 }
 0x7ad   :  { %5676 = vmatmul.msk.bf16.vlgmr.msrb.gmra.mxu2 %vm1125_vm7, %v1225_v2 }
 0x7ae   :  { %1315 = vmatpush.bf16.xpose.msra.mxu2 %v1306_v1 }
 0x7b1   :  { %v1275_v3 = vpop.permute.xlu0 %1274 }
 0x7b2   :  { %5680 = vmatmul.msk.bf16.vlgmr.msrb.gmra.mxu1 %vm1125_vm7, %v1275_v3 }
 0x7b9   :  { %v1299_v4 = vpop.permute.xlu0 %1298 }
 0x7bd   :  { %5681 = vmatmul.msk.bf16.vlgmr.msra.gmra.mxu2 %vm1125_vm7, %v1299_v4 }
 0x82d   :  { %v1168_v5 = vpop.f32.mrf.mxu3 }
 0x82e   :  { %v1169_v8 = vadd.f32 %v1168_v5, %v8448_v63 }
 0x82f   :  { %v1293_v9 = vpop.f32.mrf.mxu1 }
 0x830   :  { %v1294_v11 = vadd.f32 %v5678_v7, %v1293_v9  ;;  %v8490_v13 = vpop.f32.mrf.mxu2  ;;  %v1179_v14 = vsel %vm1125_vm7, %v1169_v8, -inf }
 0x831   :  { %1180 = vmax.xlane.f32.xlu1 %v1179_v14 }
 0x832   :  { %v1322_v15 = vsel %vm1125_vm7, %v1294_v11, -inf }
 0x833   :  { %1323 = vmax.xlane.f32.xlu0 %v1322_v15 }
 0x835   :  { %v1170_v16 = vpop.f32.mrf.mxu3 }
 0x836   :  { %v1171_v17 = vadd.f32 %v1170_v16, %v8453_v12 }
 0x837   :  { %v1295_v20 = vpop.f32.mrf.mxu1 }
 0x838   :  { %v8495_v19 = vpop.f32.mrf.mxu2  ;;  %v1182_v18 = vsel %vm1125_vm7, %v1171_v17, -inf  ;;  %v1296_v63 = vadd.f32 %v5679_v6, %v1295_v20 }
 0x839   :  { %1183 = vmax.xlane.f32.xlu2 %v1182_v18 }
 0x83a   :  { %v1325_v23 = vsel %vm1125_vm7, %v1296_v63, -inf }
 0x840   :  { %v1317_v21 = vpop.f32.mrf.mxu2 }
 0x841   :  { %1326 = vmax.xlane.f32.xlu2 %v1325_v23  ;;  %v1318_v25 = vadd.f32 %v5678_v7, %v1317_v21 }
 0x843   :  { %v1328_v26 = vsel %vm1125_vm7, %v1318_v25, -inf }
 0x848   :  { %v1319_v27 = vpop.f32.mrf.mxu2 }
 0x849   :  { %1329 = vmax.xlane.f32.xlu2 %v1328_v26  ;;  %v1320_v12 = vadd.f32 %v5679_v6, %v1319_v27 }
 0x84a   :  { %1251 = vrot.lane.b32.xlu1 %v8468_v42, %s7819_s29 }
 0x84b   :  { %v1331_v28 = vsel %vm1125_vm7, %v1320_v12, -inf }
 0x851   :  { %1332 = vmax.xlane.f32.xlu2 %v1331_v28 }
 0x852   :  { %1400 = vrot.lane.b32.xlu1 %v8468_v42, %s7821_s16 }
 0x8a4   :  { %v1181_v29 = vpop.xlane.xlu1 %1180 }
 0x8a5   :  { %v1187_v31 = vsub.f32 %v1169_v8, %v1181_v29 }
 0x8a6   :  { %v1324_v32 = vpop.xlane.xlu0 %1323 }
 0x8a7   :  { %v1193_v47 = vmul.f32 1.442695, %v1187_v31  ;;  %v1334_v51 = vsub.f32 %v1294_v11, %v1324_v32 }
 0x8a9   :  { %6550 = vpow2.f32 %v1193_v47  ;;  %v1338_v53 = vmul.f32 1.442695, %v1334_v51 }
 0x8ab   :  { %6552 = vpow2.f32 %v1338_v53 }
 0x8ac   :  { %v1184_v33 = vpop.xlane.xlu2 %1183 }
 0x8ad   :  { %v1188_v62 = vsub.f32 %v1171_v17, %v1184_v33 }
 0x8af   :  { %v6551_v34 = vpop.eup %6550  ;;  %v1195_v35 = vmul.f32 1.442695, %v1188_v62 }
 0x8b0   :  { %v1203_v36 = vsel %vm1125_vm7, %v6551_v34, 0.0 }
 0x8b1   :  { %v6553_v37 = vpop.eup %6552  ;;  %6554 = vpow2.f32 %v1195_v35  ;;  %1204 = vadd.xlane.f32.xlu2 %v1203_v36  ;;  %v6221_v35 = vld [vmem:[%s9504_s4 + $0x8] sm:$0xff] }
 0x8b2   :  { %v1346_v39 = vsel %vm1125_vm7, %v6553_v37, 0.0  ;;  %1470 = vmatpush.bf16.msra.mxu1 %v6221_v35 }
 0x8b3   :  { %1347 = vadd.xlane.f32.xlu0 %v1346_v39 }
 0x8b4   :  { %v1327_v40 = vpop.xlane.xlu2 %1326 }
 0x8b5   :  { %v1335_v41 = vsub.f32 %v1296_v63, %v1327_v40 }
 0x8b7   :  { %v6555_v42 = vpop.eup %6554  ;;  %v1340_v30 = vmul.f32 1.442695, %v1335_v41 }
 0x8b8   :  { %v1206_v43 = vsel %vm1125_vm7, %v6555_v42, 0.0 }
 0x8b9   :  { %6556 = vpow2.f32 %v1340_v30  ;;  %1207 = vadd.xlane.f32.xlu2 %v1206_v43 }
 0x8bc   :  { %v1252_v44 = vpop.permute.xlu1 %1251  ;;  %v1330_v45 = vpop.xlane.xlu2 %1329 }
 0x8bd   :  { %v1336_v46 = vsub.f32 %v1318_v25, %v1330_v45  ;;  %1264 = vmatpush.bf16.msrb.mxu3 %v1252_v44  ;;  %v6220_v44 = vld [vmem:[%s9504_s4] sm:$0xff]  ;;  %s9525_s4 = sld [smem:[#allocation121_spill]] }
 0x8be   :  { %1471 = vmatpush.bf16.msra.mxu1 %v6220_v44 }
 0x8bf   :  { %v6557_v48 = vpop.eup %6556  ;;  %v1342_v49 = vmul.f32 1.442695, %v1336_v46 }
 0x8c0   :  { %v1349_v50 = vsel %vm1125_vm7, %v6557_v48, 0.0 }
 0x8c1   :  { %6558 = vpow2.f32 %v1342_v49  ;;  %1350 = vadd.xlane.f32.xlu2 %v1349_v50 }
 0x8c4   :  { %v1401_v52 = vpop.permute.xlu1 %1400  ;;  %v1333_v54 = vpop.xlane.xlu2 %1332 }
 0x8c5   :  { %v1337_v56 = vsub.f32 %v1320_v12, %v1333_v54  ;;  %1413 = vmatpush.bf16.msrb.mxu0 %v1401_v52 }
 0x8c7   :  { %v6559_v57 = vpop.eup %6558  ;;  %v1344_v58 = vmul.f32 1.442695, %v1337_v56  ;;  %1375 = vrot.lane.b32.xlu0 %v8435_v38, %s7821_s16 }
 0x8c8   :  { %v1352_v59 = vsel %vm1125_vm7, %v6559_v57, 0.0 }
 0x8c9   :  { %6560 = vpow2.f32 %v1344_v58  ;;  %1353 = vadd.xlane.f32.xlu2 %v1352_v59 }
 0x8cf   :  { %v6561_v60 = vpop.eup %6560 }
 0x8d0   :  { %v1355_v0 = vsel %vm1125_vm7, %v6561_v60, 0.0 }
 0x8d1   :  { %1356 = vadd.xlane.f32.xlu2 %v1355_v0  ;;  %v6488_v0 = vld [vmem:[%s9505_s11] ss:$0 sm:$0xff]  ;;  %s9526_s11 = sld [smem:[#allocation122_spill]] }
 0x924   :  { %v1205_v1 = vpop.xlane.xlu2 %1204 }
 0x925   :  { %6562 = vrcp.f32 %v1205_v1 }
 0x926   :  { %v1348_v5 = vpop.xlane.xlu0 %1347 }
 0x92b   :  { %v6563_v3 = vpop.eup %6562 }
 0x92c   :  { %v1208_v2 = vpop.xlane.xlu2 %1207  ;;  %v1215_v4 = vmul.f32 %v6563_v3, %v6551_v34 }
 0x92d   :  { %6564 = vrcp.f32 %v1208_v2 }
 0x92e   :  { %v1219_v8 = vpack.c.bf16 %v1215_v4, %v1215_v4 }
 0x930   :  { %v1248_v14 = vunpack.c.l.b16 %v1219_v8 }
 0x933   :  { %v6565_v7 = vpop.eup %6564 }
 0x934   :  { %v1216_v9 = vmul.f32 %v6565_v7, %v6555_v42  ;;  %v1351_v11 = vpop.xlane.xlu2 %1350 }
 0x935   :  { %6566 = vrcp.f32 %v1351_v11 }
 0x936   :  { %v1220_v38 = vpack.c.bf16 %v1216_v9, %v1216_v9  ;;  %6568 = vrcp.f32 %v1348_v5 }
 0x938   :  { %v1249_v15 = vunpack.c.l.b16 %v1220_v38 }
 0x939   :  { %v1376_v16 = vpop.permute.xlu0 %1375 }
 0x93a   :  { %1388 = vmatpush.bf16.msra.mxu3 %v1376_v16  ;;  %v1250_v17 = vpack.c.b16 %v1249_v15, %v1248_v14 }
 0x93b   :  { %v6567_v18 = vpop.eup %6566 }
 0x93c   :  { %5677 = vmatmul.msk.bf16.vlgmr.msrb.gmra.mxu3 %vm1125_vm7, %v1250_v17  ;;  %v1354_v6 = vpop.xlane.xlu2 %1353  ;;  %v6569_v20 = vpop.eup %6568  ;;  %v1363_v63 = vmul.f32 %v6567_v18, %v6557_v48 }
 0x93d   :  { %6570 = vrcp.f32 %v1354_v6  ;;  %v1362_v21 = vmul.f32 %v6569_v20, %v6553_v37 }
 0x93e   :  { %v1367_v23 = vpack.c.bf16 %v1363_v63, %v1363_v63 }
 0x93f   :  { %v1366_v25 = vpack.c.bf16 %v1362_v21, %v1362_v21 }
 0x940   :  { %v1373_v12 = vunpack.c.l.b16 %v1367_v23 }
 0x941   :  { %v1372_v28 = vunpack.c.l.b16 %v1366_v25 }
 0x943   :  { %v6571_v27 = vpop.eup %6570  ;;  %v1374_v31 = vpack.c.b16 %v1373_v12, %v1372_v28 }
 0x944   :  { %v1357_v26 = vpop.xlane.xlu2 %1356  ;;  %v1364_v29 = vmul.f32 %v6571_v27, %v6559_v57 }
 0x945   :  { %6572 = vrcp.f32 %v1357_v26 }
 0x946   :  { %v1368_v47 = vpack.c.bf16 %v1364_v29, %v1364_v29 }
 0x948   :  { %v1397_v33 = vunpack.c.l.b16 %v1368_v47 }
 0x94b   :  { %v6573_v32 = vpop.eup %6572 }
 0x94c   :  { %v1365_v51 = vmul.f32 %v6573_v32, %v6561_v60  ;;  %5682 = vmatmul.msk.bf16.vlgmr.msra.gmra.mxu3 %vm1125_vm7, %v1374_v31 }
 0x94e   :  { %v1369_v53 = vpack.c.bf16 %v1365_v51, %v1365_v51 }
 0x950   :  { %v1398_v62 = vunpack.c.l.b16 %v1369_v53  ;;  %v6223_v53 = vld [vmem:[%s9506_s18 + $0x8] sm:$0xff] }
 0x951   :  { %1633 = vmatpush.bf16.msrb.mxu2 %v6223_v53 }
 0x952   :  { %v1399_v34 = vpack.c.b16 %v1398_v62, %v1397_v33 }
 0x954   :  { %5683 = vmatmul.msk.bf16.vlgmr.msrb.gmra.mxu0 %vm1125_vm7, %v1399_v34  ;;  %v6222_v34 = vld [vmem:[%s9506_s18] sm:$0xff]  ;;  %s9533_s18 = sld [smem:[#allocation135_spill]] }
 0x955   :  { %1634 = vmatpush.bf16.msrb.mxu2 %v6222_v34 }
 0x9bf   :  { %v1266_v36 = vpop.f32.mrf.mxu3 }
 0x9c7   :  { %v1268_v37 = vpop.f32.mrf.mxu3 }
 0x9cf   :  { %v1390_v39 = vpop.f32.mrf.mxu3 }
 0x9d1   :  { %v1415_v40 = vpop.f32.mrf.mxu0 }
 0x9d7   :  { %v1392_v41 = vpop.f32.mrf.mxu3 }
 0x9d8   :  { %v6462_v42 = vpack.i.bf16 %v1392_v41, %v1390_v39 }
 0x9d9   :  { %v1417_v30 = vpop.f32.mrf.mxu0 }
 0x9da   :  { %v6467_v43 = vpack.i.bf16 %v1417_v30, %v1415_v40  ;;  %6463 = vrot.lane.b32.xlu2 %v6462_v42, %s7822_s14 }
 0x9dc   :  { %6468 = vrot.lane.b32.xlu0 %v6467_v43, %s7822_s14 }
 0xa34   :  { %v6464_v45 = vpop.permute.xlu2 %6463 }
 0xa35   :  { %v6466_v46 = vunpack.i.h.bf16 %v6464_v45  ;;  %v6465_v48 = vunpack.i.l.bf16 %v6464_v45 }
 0xa37   :  { %v1437_v49 = vsel %vm1125_vm7, %v8495_v19, %v6466_v46  ;;  %v1436_v50 = vsel %vm1125_vm7, %v8490_v13, %v6465_v48 }
 0xa38   :  { %v1444_v52 = vpack.c.bf16 %v1437_v49, %v1436_v50 }
 0xa3a   :  { %5692 = vmatmul.msk.bf16.vlgmr.msra.gmra.mxu1 %vm851_vm1, %v1444_v52 }
 0xa4e   :  { %v6469_v54 = vpop.permute.xlu0 %6468 }
 0xa4f   :  { %v6471_v56 = vunpack.i.h.bf16 %v6469_v54  ;;  %v6470_v57 = vunpack.i.l.bf16 %v6469_v54 }
 0xa51   :  { %v1438_v58 = vsel %vm1125_vm7, %v1266_v36, %v6470_v57  ;;  %v1439_v59 = vsel %vm1125_vm7, %v1268_v37, %v6471_v56  ;;  %v6489_v56 = vld [vmem:[#allocation2] ss:$0 sm:$0xff] }
 0xa52   :  { %v1445_v60 = vpack.c.bf16 %v1439_v59, %v1438_v58 }
 0xa54   :  { %5693 = vmatmul.msk.bf16.gmra.mxu1 %vm851_vm1, %v1445_v60 }
 0xab7   :  { %v1473_v1 = vpop.f32.mrf.mxu1 }
 0xab8   :  { %v1483_v19 = vadd.f32 %v1473_v1, %v8364_v55 }
 0xaba   :  { %v8531_v2 = vadd.f32 %v6488_v0, %v1483_v19  ;;  %v6490_v19 = vld [vmem:[#allocation5] ss:$0 sm:$0xff] }
 0xabc   :  { %v1497_v13 = vsel %vm851_vm1, %v8531_v2, 0.0 }
 0xabd   :  { %1498 = vadd.xlane.f32.xlu1 %v1497_v13 }
 0xabf   :  { %v1475_v3 = vpop.f32.mrf.mxu1 }
 0xac0   :  { %v1484_v4 = vadd.f32 %v1475_v3, %v8370_v61 }
 0xac2   :  { %v8536_v5 = vadd.f32 %v6488_v0, %v1484_v4 }
 0xac4   :  { %v1500_v7 = vsel %vm851_vm1, %v8536_v5, 0.0 }
 0xac5   :  { %1501 = vadd.xlane.f32.xlu0 %v1500_v7 }
 0xad1   :  { %v1478_v8 = vpop.f32.mrf.mxu1 }
 0xad2   :  { %v1485_v9 = vadd.f32 %v1478_v8, %v8415_v10 }
 0xad4   :  { %v8541_v11 = vadd.f32 %v6488_v0, %v1485_v9 }
 0xad6   :  { %v1503_v55 = vsel %vm851_vm1, %v8541_v11, 0.0 }
 0xad7   :  { %1504 = vadd.xlane.f32.xlu2 %v1503_v55 }
 0xad9   :  { %v1480_v38 = vpop.f32.mrf.mxu1 }
 0xada   :  { %v1486_v14 = vadd.f32 %v1480_v38, %v8423_v24 }
 0xadc   :  { %v8546_v15 = vadd.f32 %v6488_v0, %v1486_v14 }
 0xade   :  { %v1506_v61 = vsel %vm851_vm1, %v8546_v15, 0.0 }
 0xadf   :  { %1507 = vadd.xlane.f32.xlu1 %v1506_v61 }
 0xb30   :  { %v1499_v16 = vpop.xlane.xlu1 %1498 }
 0xb31   :  { %v1509_v17 = vmul.f32 %v1499_v16, %v8348_v22 }
 0xb33   :  { %v1513_v10 = vsub.f32 %v8531_v2, %v1509_v17 }
 0xb35   :  { %v1517_v18 = vmul.f32 %v1513_v10, %v1513_v10 }
 0xb37   :  { %v1521_v6 = vsel %vm851_vm1, %v1517_v18, 0.0 }
 0xb38   :  { %1522 = vadd.xlane.f32.xlu0 %v1521_v6  ;;  %v1502_v20 = vpop.xlane.xlu0 %1501 }
 0xb39   :  { %v1510_v63 = vmul.f32 %v1502_v20, %v8348_v22 }
 0xb3b   :  { %v1514_v24 = vsub.f32 %v8536_v5, %v1510_v63 }
 0xb3d   :  { %v1518_v21 = vmul.f32 %v1514_v24, %v1514_v24 }
 0xb3f   :  { %v1524_v23 = vsel %vm851_vm1, %v1518_v21, 0.0 }
 0xb40   :  { %1525 = vadd.xlane.f32.xlu1 %v1524_v23 }
 0xb4a   :  { %v1505_v25 = vpop.xlane.xlu2 %1504 }
 0xb4b   :  { %v1511_v26 = vmul.f32 %v1505_v25, %v8348_v22 }
 0xb4d   :  { %v8558_v27 = vsub.f32 %v8541_v11, %v1511_v26 }
 0xb4f   :  { %v1519_v12 = vmul.f32 %v8558_v27, %v8558_v27 }
 0xb51   :  { %v1527_v28 = vsel %vm851_vm1, %v1519_v12, 0.0 }
 0xb52   :  { %1528 = vadd.xlane.f32.xlu0 %v1527_v28  ;;  %v1508_v29 = vpop.xlane.xlu1 %1507 }
 0xb53   :  { %v1512_v31 = vmul.f32 %v1508_v29, %v8348_v22 }
 0xb55   :  { %v8565_v32 = vsub.f32 %v8546_v15, %v1512_v31 }
 0xb57   :  { %v1520_v47 = vmul.f32 %v8565_v32, %v8565_v32 }
 0xb59   :  { %v1530_v51 = vsel %vm851_vm1, %v1520_v47, 0.0 }
 0xb5a   :  { %1531 = vadd.xlane.f32.xlu1 %v1530_v51 }
 0xbab   :  { %v1523_v33 = vpop.xlane.xlu0 %1522 }
 0xbac   :  { %v1533_v62 = vmul.f32 %v1523_v33, %v8348_v22  ;;  %v8580_v33 = vld [vmem:[#allocation7] ss:$0 sm:$0xff] }
 0xbae   :  { %v1537_v35 = vadd.f32 1e-05, %v1533_v62 }
 0xbb0   :  { %6574 = vrsqrt.f32 %v1537_v35  ;;  %vm1547_vm15 = vweird.f32 %v1537_v35 }
 0xbb3   :  { %v1526_v36 = vpop.xlane.xlu1 %1525 }
 0xbb4   :  { %v1534_v37 = vmul.f32 %v1526_v36, %v8348_v22 }
 0xbb6   :  { %v6575_v39 = vpop.eup %6574  ;;  %v1538_v40 = vadd.f32 1e-05, %v1534_v37  ;;  %v6230_v37 = vld [vmem:[%s9507_s8 + $0x30] sm:$0xff] }
 0xbb7   :  { %v1542_v41 = vmul.f32 %v6575_v39, %v1537_v35  ;;  %vm1548_vm14 = vweird.f32 %v6575_v39  ;;  %v6231_v35 = vld [vmem:[%s9507_s8 + $0x38] sm:$0xff] }
 0xbb8   :  { %6576 = vrsqrt.f32 %v1538_v40  ;;  %vm1549_vm2 = vmor %vm1547_vm15, %vm1548_vm14  ;;  %vm1557_vm4 = vweird.f32 %v1538_v40  ;;  %1872 = vmatpush.bf16.msrb.mxu3 %v6231_v35 }
 0xbb9   :  { %v1543_v42 = vmul.f32 %v6575_v39, %v1542_v41 }
 0xbbb   :  { %v1544_v30 = vmul.f32 0.5, %v1543_v42  ;;  %v6229_v42 = vld [vmem:[%s9507_s8 + $0x28] sm:$0xff] }
 0xbbc   :  { %1873 = vmatpush.bf16.msrb.mxu3 %v6230_v37 }
 0xbbd   :  { %v1545_v43 = vsub.f32 1.5, %v1544_v30 }
 0xbbe   :  { %v6577_v44 = vpop.eup %6576 }
 0xbbf   :  { %v1546_v45 = vmul.f32 %v6575_v39, %v1545_v43  ;;  %v1552_v46 = vmul.f32 %v6577_v44, %v1538_v40  ;;  %vm1558_vm3 = vweird.f32 %v6577_v44 }
 0xbc0   :  { %vm1559_vm5 = vmor %vm1557_vm4, %vm1558_vm3  ;;  %1874 = vmatpush.bf16.msrb.mxu3 %v6229_v42 }
 0xbc1   :  { %v1553_v48 = vmul.f32 %v6577_v44, %v1552_v46  ;;  %v1550_v49 = vsel %vm1549_vm2, %v6575_v39, %v1546_v45 }
 0xbc2   :  { %v1581_v57 = vmul.f32 %v1550_v49, %v1513_v10 }
 0xbc3   :  { %v1554_v50 = vmul.f32 0.5, %v1553_v48 }
 0xbc4   :  { %v1588_v1 = vmul.f32 %v6489_v56, %v1581_v57 }
 0xbc5   :  { %v1555_v52 = vsub.f32 1.5, %v1554_v50  ;;  %v1529_v54 = vpop.xlane.xlu0 %1528  ;;  %v6227_v50 = vld [vmem:[%s9507_s8 + $0x18] sm:$0xff] }
 0xbc6   :  { %v1535_v58 = vmul.f32 %v1529_v54, %v8348_v22  ;;  %v1595_v9 = vadd.f32 %v6490_v19, %v1588_v1 }
 0xbc7   :  { %v1556_v59 = vmul.f32 %v6577_v44, %v1555_v52 }
 0xbc8   :  { %v1539_v60 = vadd.f32 1e-05, %v1535_v58  ;;  %v6226_v58 = vld [vmem:[%s9507_s8 + $0x10] sm:$0xff] }
 0xbc9   :  { %v1560_v0 = vsel %vm1559_vm5, %v6577_v44, %v1556_v59  ;;  %v6228_v44 = vld [vmem:[%s9507_s8 + $0x20] sm:$0xff] }
 0xbca   :  { %v1582_v13 = vmul.f32 %v1560_v0, %v1514_v24  ;;  %6578 = vrsqrt.f32 %v1539_v60  ;;  %vm1567_vm8 = vweird.f32 %v1539_v60  ;;  %1875 = vmatpush.bf16.msrb.mxu3 %v6228_v44 }
 0xbcc   :  { %v1589_v3 = vmul.f32 %v6489_v56, %v1582_v13 }
 0xbcd   :  { %v1532_v4 = vpop.xlane.xlu1 %1531 }
 0xbce   :  { %v1596_v7 = vadd.f32 %v6490_v19, %v1589_v3  ;;  %v1536_v8 = vmul.f32 %v1532_v4, %v8348_v22  ;;  %1876 = vmatpush.bf16.msrb.mxu3 %v6227_v50 }
 0xbd0   :  { %v6579_v55 = vpop.eup %6578  ;;  %v1540_v38 = vadd.f32 1e-05, %v1536_v8  ;;  %v1603_v14 = vpack.c.bf16 %v1596_v7, %v1595_v9  ;;  %v6225_v7 = vld [vmem:[%s9507_s8 + $0x8] sm:$0xff] }
 0xbd1   :  { %v1562_v61 = vmul.f32 %v6579_v55, %v1539_v60  ;;  %vm1568_vm6 = vweird.f32 %v6579_v55 }
 0xbd2   :  { %6580 = vrsqrt.f32 %v1540_v38  ;;  %5702 = vmatmul.msk.bf16.vlgmr.msrb.gmra.mxu2 %vm851_vm1, %v1603_v14  ;;  %vm1569_vm9 = vmor %vm1567_vm8, %vm1568_vm6  ;;  %vm1577_vm11 = vweird.f32 %v1540_v38  ;;  %1877 = vmatpush.bf16.msrb.mxu3 %v6226_v58 }
 0xbd3   :  { %v1563_v16 = vmul.f32 %v6579_v55, %v1562_v61 }
 0xbd5   :  { %v1564_v17 = vmul.f32 0.5, %v1563_v16 }
 0xbd6   :  { %1878 = vmatpush.bf16.msrb.mxu3 %v6225_v7 }
 0xbd7   :  { %v1565_v10 = vsub.f32 1.5, %v1564_v17 }
 0xbd8   :  { %v6581_v18 = vpop.eup %6580 }
 0xbd9   :  { %v1566_v6 = vmul.f32 %v6579_v55, %v1565_v10  ;;  %v1572_v20 = vmul.f32 %v6581_v18, %v1540_v38  ;;  %vm1578_vm10 = vweird.f32 %v6581_v18 }
 0xbda   :  { %vm1579_vm12 = vmor %vm1577_vm11, %vm1578_vm10 }
 0xbdb   :  { %v1573_v63 = vmul.f32 %v6581_v18, %v1572_v20  ;;  %v1570_v24 = vsel %vm1569_vm9, %v6579_v55, %v1566_v6 }
 0xbdc   :  { %v1583_v25 = vmul.f32 %v1570_v24, %v8558_v27 }
 0xbdd   :  { %v1574_v21 = vmul.f32 0.5, %v1573_v63 }
 0xbde   :  { %v1590_v29 = vmul.f32 %v6489_v56, %v1583_v25 }
 0xbdf   :  { %v1575_v23 = vsub.f32 1.5, %v1574_v21 }
 0xbe0   :  { %v1597_v47 = vadd.f32 %v6490_v19, %v1590_v29 }
 0xbe1   :  { %v1576_v26 = vmul.f32 %v6581_v18, %v1575_v23 }
 0xbe3   :  { %v1580_v12 = vsel %vm1579_vm12, %v6581_v18, %v1576_v26  ;;  %v6224_v18 = vld [vmem:[%s9507_s8] sm:$0xff] }
 0xbe4   :  { %v1584_v28 = vmul.f32 %v1580_v12, %v8565_v32  ;;  %1879 = vmatpush.bf16.msrb.mxu3 %v6224_v18 }
 0xbe6   :  { %v1591_v31 = vmul.f32 %v6489_v56, %v1584_v28 }
 0xbe8   :  { %v1598_v51 = vadd.f32 %v6490_v19, %v1591_v31 }
 0xbea   :  { %v1604_v53 = vpack.c.bf16 %v1598_v51, %v1597_v47 }
 0xbec   :  { %5703 = vmatmul.msk.bf16.gmra.mxu2 %vm851_vm1, %v1604_v53 }
 0xc55   :  { %v1636_v62 = vpop.f32.mrf.mxu2 }
 0xc56   :  { %v8583_v27 = vadd.f32 %v8580_v33, %v1636_v62 }
 0xc58   :  { %v8586_v34 = vmul.f32 0.70710677, %v8583_v27 }
 0xc5a   :  { %v1662_v32 = vand.u32 2147483647, %v8586_v34  ;;  %vm1654_vm10 = vcmp.ge.f32.partialorder %v8586_v34, 0.0 }
 0xc5c   :  { %v1666_v36 = vmul.f32 0.3275911, %v1662_v32  ;;  %v1770_v9 = vsub.f32 0.0, %v1662_v32 }
 0xc5d   :  { %v1638_v39 = vpop.f32.mrf.mxu2 }
 0xc5e   :  { %v1670_v40 = vadd.f32 1.0, %v1666_v36  ;;  %v8592_v41 = vadd.f32 %v8580_v33, %v1638_v39  ;;  %v1774_v20 = vmul.f32 %v1770_v9, %v1662_v32 }
 0xc60   :  { %6582 = vrcp.f32 %v1670_v40  ;;  %v8596_v30 = vmul.f32 0.70710677, %v8592_v41  ;;  %v1685_v54 = vand.u32 2147483648, %v1670_v40  ;;  %v1683_v57 = vand.u32 2147483647, %v1670_v40 }
 0xc61   :  { %vm1679_vm14 = vweird.f32 %v1670_v40  ;;  %v1778_v31 = vmul.f32 1.442695, %v1774_v20 }
 0xc62   :  { %v8599_v43 = vand.u32 2147483647, %v8596_v30  ;;  %v1686_v60 = vor.u32 1.1754944e-38, %v1685_v54  ;;  %vm1684_vm2 = vcmp.eq.f32.partialorder %v1683_v57, 8.507059e+37 }
 0xc64   :  { %v1667_v45 = vmul.f32 0.3275911, %v8599_v43  ;;  %v1771_v51 = vsub.f32 0.0, %v8599_v43 }
 0xc66   :  { %v6583_v46 = vpop.eup %6582  ;;  %v1671_v49 = vadd.f32 1.0, %v1667_v45  ;;  %v1775_v37 = vmul.f32 %v1771_v51, %v8599_v43 }
 0xc67   :  { %v1675_v48 = vmul.f32 %v6583_v46, %v1670_v40  ;;  %vm1680_vm13 = vweird.f32 %v6583_v46 }
 0xc68   :  { %6584 = vrcp.f32 %v1671_v49  ;;  %vm1681_vm15 = vmor %vm1679_vm14, %vm1680_vm13  ;;  %v1700_v61 = vand.u32 2147483648, %v1671_v49  ;;  %v1698_v17 = vand.u32 2147483647, %v1671_v49  ;;  %vm1694_vm4 = vweird.f32 %v1671_v49 }
 0xc69   :  { %v1676_v52 = vsub.f32 1.0, %v1675_v48  ;;  %v1780_v48 = vmul.f32 1.442695, %v1775_v37  ;;  %vm1655_vm13 = vcmp.ge.f32.partialorder %v8596_v30, 0.0 }
 0xc6a   :  { %v1701_v23 = vor.u32 1.1754944e-38, %v1700_v61  ;;  %vm1699_vm6 = vcmp.eq.f32.partialorder %v1698_v17, 8.507059e+37 }
 0xc6b   :  { %v1677_v56 = vmul.f32 %v6583_v46, %v1676_v52 }
 0xc6d   :  { %v1678_v59 = vadd.f32 %v6583_v46, %v1677_v56 }
 0xc6e   :  { %v6585_v0 = vpop.eup %6584 }
 0xc6f   :  { %v1682_v1 = vsel %vm1681_vm15, %v6583_v46, %v1678_v59  ;;  %v1641_v19 = vpop.f32.mrf.mxu2  ;;  %v1690_v3 = vmul.f32 %v6585_v0, %v1671_v49  ;;  %vm1695_vm3 = vweird.f32 %v6585_v0 }
 0xc70   :  { %v1687_v13 = vsel %vm1684_vm2, %v1686_v60, %v1682_v1  ;;  %v8606_v4 = vadd.f32 %v8580_v33, %v1641_v19  ;;  %vm1696_vm5 = vmor %vm1694_vm4, %vm1695_vm3 }
 0xc71   :  { %v1734_v8 = vmul.f32 1.0614054, %v1687_v13  ;;  %v1691_v55 = vsub.f32 1.0, %v1690_v3 }
 0xc72   :  { %v8610_v38 = vmul.f32 0.70710677, %v8606_v4 }
 0xc73   :  { %v1738_v14 = vadd.f32 -1.4531521, %v1734_v8  ;;  %v1692_v16 = vmul.f32 %v6585_v0, %v1691_v55 }
 0xc74   :  { %v8613_v10 = vand.u32 2147483647, %v8610_v38  ;;  %vm1656_vm4 = vcmp.ge.f32.partialorder %v8610_v38, 0.0 }
 0xc75   :  { %v1742_v6 = vmul.f32 %v1738_v14, %v1687_v13  ;;  %v1693_v63 = vadd.f32 %v6585_v0, %v1692_v16  ;;  %v7823_v16 = vmov -1.0  }
 0xc76   :  { %v1668_v24 = vmul.f32 0.3275911, %v8613_v10  ;;  %v1658_v17 = vsel %vm1654_vm10, 1.0, %v7823_v16  ;;  %v1772_v18 = vsub.f32 0.0, %v8613_v10 }
 0xc77   :  { %v1746_v21 = vadd.f32 1.4214138, %v1742_v6  ;;  %v1643_v25 = vpop.f32.mrf.mxu2  ;;  %v1697_v26 = vsel %vm1696_vm5, %v6585_v0, %v1693_v63 }
 0xc78   :  { %v1672_v12 = vadd.f32 1.0, %v1668_v24  ;;  %v8618_v28 = vadd.f32 %v8580_v33, %v1643_v25  ;;  %v1702_v47 = vsel %vm1699_vm6, %v1701_v23, %v1697_v26 }
 0xc79   :  { %v1750_v29 = vmul.f32 %v1746_v21, %v1687_v13  ;;  %v1735_v53 = vmul.f32 1.0614054, %v1702_v47 }
 0xc7a   :  { %6586 = vrcp.f32 %v1672_v12  ;;  %v8622_v35 = vmul.f32 0.70710677, %v8618_v28  ;;  %v1715_v43 = vand.u32 2147483648, %v1672_v12  ;;  %v1713_v60 = vand.u32 2147483647, %v1672_v12 }
 0xc7b   :  { %v1754_v62 = vadd.f32 -0.28449672, %v1750_v29  ;;  %v1739_v32 = vadd.f32 -1.4531521, %v1735_v53  ;;  %6588 = vpow2.f32 %v1778_v31  ;;  %vm1709_vm9 = vweird.f32 %v1672_v12 }
 0xc7c   :  { %v8626_v39 = vand.u32 2147483647, %v8622_v35  ;;  %v1716_v3 = vor.u32 1.1754944e-38, %v1715_v43  ;;  %vm1714_vm12 = vcmp.eq.f32.partialorder %v1713_v60, 8.507059e+37  ;;  %v1776_v29 = vmul.f32 %v1772_v18, %v8613_v10 }
 0xc7d   :  { %v1758_v36 = vmul.f32 %v1754_v62, %v1687_v13  ;;  %v1743_v33 = vmul.f32 %v1739_v32, %v1702_v47  ;;  %v1646_v62 = vmul.f32 0.5, %v8583_v27  ;;  %vm1657_vm5 = vcmp.ge.f32.partialorder %v8622_v35, 0.0 }
 0xc7e   :  { %v1669_v42 = vmul.f32 0.3275911, %v8626_v39 }
 0xc7f   :  { %v1762_v40 = vadd.f32 0.2548296, %v1758_v36  ;;  %v1747_v45 = vadd.f32 1.4214138, %v1743_v33  ;;  %v1647_v36 = vmul.f32 0.5, %v8592_v41 }
 0xc80   :  { %v6587_v44 = vpop.eup %6586  ;;  %v1673_v50 = vadd.f32 1.0, %v1669_v42  ;;  %v1773_v42 = vsub.f32 0.0, %v8626_v39 }
 0xc81   :  { %v1766_v46 = vmul.f32 %v1762_v40, %v1687_v13  ;;  %v1705_v49 = vmul.f32 %v6587_v44, %v1672_v12  ;;  %v1751_v52 = vmul.f32 %v1747_v45, %v1702_v47  ;;  %v6589_v54 = vpop.eup %6588  ;;  %vm1710_vm8 = vweird.f32 %v6587_v44 }
 0xc82   :  { %6590 = vrcp.f32 %v1673_v50  ;;  %vm1711_vm11 = vmor %vm1709_vm9, %vm1710_vm8  ;;  %v1730_v24 = vand.u32 2147483648, %v1673_v50  ;;  %v1728_v26 = vand.u32 2147483647, %v1673_v50  ;;  %v1659_v12 = vsel %vm1655_vm13, 1.0, %v7823_v16 }
 0xc83   :  { %v1706_v56 = vsub.f32 1.0, %v1705_v49  ;;  %v1786_v57 = vmul.f32 %v6589_v54, %v1766_v46  ;;  %v1755_v58 = vadd.f32 -0.28449672, %v1751_v52  ;;  %6592 = vpow2.f32 %v1780_v48 }
 0xc84   :  { %vm1724_vm15 = vweird.f32 %v1673_v50  ;;  %v1731_v30 = vor.u32 1.1754944e-38, %v1730_v24  ;;  %vm1729_vm3 = vcmp.eq.f32.partialorder %v1728_v26, 8.507059e+37  ;;  %v1782_v40 = vmul.f32 1.442695, %v1776_v29 }
 0xc85   :  { %v1707_v59 = vmul.f32 %v6587_v44, %v1706_v56  ;;  %v1759_v0 = vmul.f32 %v1755_v58, %v1702_v47  ;;  %v1790_v19 = vsub.f32 1.0, %v1786_v57  ;;  %v1777_v27 = vmul.f32 %v1773_v42, %v8626_v39 }
 0xc86   :  { %6594 = vpow2.f32 %v1782_v40  ;;  %v1660_v39 = vsel %vm1656_vm4, 1.0, %v7823_v16 }
 0xc87   :  { %v1708_v1 = vadd.f32 %v6587_v44, %v1707_v59  ;;  %v1763_v13 = vadd.f32 0.2548296, %v1759_v0  ;;  %v1794_v20 = vmul.f32 %v1790_v19, %v1658_v17  ;;  %v1784_v58 = vmul.f32 1.442695, %v1777_v27 }
 0xc88   :  { %v6591_v7 = vpop.eup %6590 }
 0xc89   :  { %v1712_v8 = vsel %vm1711_vm11, %v6587_v44, %v1708_v1  ;;  %v1767_v9 = vmul.f32 %v1763_v13, %v1702_v47  ;;  %v1720_v55 = vmul.f32 %v6591_v7, %v1673_v50  ;;  %v6593_v61 = vpop.eup %6592  ;;  %vm1725_vm14 = vweird.f32 %v6591_v7 }
 0xc8a   :  { %v1717_v14 = vsel %vm1714_vm12, %v1716_v3, %v1712_v8  ;;  %v1798_v47 = vadd.f32 1.0, %v1794_v20  ;;  %vm1726_vm2 = vmor %vm1724_vm15, %vm1725_vm14  ;;  %6596 = vpow2.f32 %v1784_v58  ;;  %v1649_v20 = vmul.f32 0.5, %v8618_v28 }
 0xc8b   :  { %v1736_v6 = vmul.f32 1.0614054, %v1717_v14  ;;  %v1787_v34 = vmul.f32 %v6593_v61, %v1767_v9  ;;  %v1721_v63 = vsub.f32 1.0, %v1720_v55 }
 0xc8c   :  { %v1802_v45 = vmul.f32 %v1798_v47, %v1646_v62  ;;  %v6595_v60 = vpop.eup %6594 }
 0xc8d   :  { %v1740_v21 = vadd.f32 -1.4531521, %v1736_v6  ;;  %v1791_v23 = vsub.f32 1.0, %v1787_v34  ;;  %v1722_v25 = vmul.f32 %v6591_v7, %v1721_v63  ;;  %v1648_v6 = vmul.f32 0.5, %v8606_v4 }
 0xc8f   :  { %v1744_v31 = vmul.f32 %v1740_v21, %v1717_v14  ;;  %v1795_v51 = vmul.f32 %v1791_v23, %v1659_v12  ;;  %v1723_v53 = vadd.f32 %v6591_v7, %v1722_v25  ;;  %v6492_v21 = vld [vmem:[#allocation8] ss:$0 sm:$0xff] }
 0xc90   :  { %v6597_v8 = vpop.eup %6596 }
 0xc91   :  { %v1748_v32 = vadd.f32 1.4214138, %v1744_v31  ;;  %v1799_v37 = vadd.f32 1.0, %v1795_v51  ;;  %v1727_v33 = vsel %vm1726_vm2, %v6591_v7, %v1723_v53 }
 0xc92   :  { %v1732_v44 = vsel %vm1729_vm3, %v1731_v30, %v1727_v33 }
 0xc93   :  { %v1752_v10 = vmul.f32 %v1748_v32, %v1717_v14  ;;  %v1803_v46 = vmul.f32 %v1799_v37, %v1647_v36  ;;  %v1737_v48 = vmul.f32 1.0614054, %v1732_v44 }
 0xc95   :  { %v1756_v49 = vadd.f32 -0.28449672, %v1752_v10  ;;  %v1822_v50 = vpack.c.bf16 %v1803_v46, %v1802_v45  ;;  %v1741_v52 = vadd.f32 -1.4531521, %v1737_v48 }
 0xc97   :  { %v1760_v54 = vmul.f32 %v1756_v49, %v1717_v14  ;;  %1880 = vmatmul.bf16.vlgmr.msrb.gmra.mxu3 %v1822_v50  ;;  %v1745_v41 = vmul.f32 %v1741_v52, %v1732_v44 }
 0xc99   :  { %v1764_v56 = vadd.f32 0.2548296, %v1760_v54  ;;  %v1749_v57 = vadd.f32 1.4214138, %v1745_v41 }
 0xc9b   :  { %v1768_v43 = vmul.f32 %v1764_v56, %v1717_v14  ;;  %v1753_v59 = vmul.f32 %v1749_v57, %v1732_v44  ;;  %v1661_v14 = vsel %vm1657_vm5, 1.0, %v7823_v16  ;;  %v6233_v57 = vld [vmem:[%s9508_s3 + $0x8] sm:$0xff] }
 0xc9c   :  { %2041 = vmatpush.bf16.msra.mxu0 %v6233_v57 }
 0xc9d   :  { %v1757_v0 = vadd.f32 -0.28449672, %v1753_v59  ;;  %v1788_v1 = vmul.f32 %v6595_v60, %v1768_v43  ;;  %v6232_v60 = vld [vmem:[%s9508_s3] sm:$0xff]  ;;  %s5530_s3 = sshll.u32 %s8220_s19, 4  ;;  %s5531_s3 = int_to_ptr.hbm [resolvable:$true] %s5530_s3 }
 0xc9f   :  { %v1761_v19 = vmul.f32 %v1757_v0, %v1732_v44  ;;  %v1792_v3 = vsub.f32 1.0, %v1788_v1 }
 0xca0   :  { %2042 = vmatpush.bf16.msra.mxu0 %v6232_v60 }
 0xca1   :  { %v1765_v13 = vadd.f32 0.2548296, %v1761_v19  ;;  %v1796_v55 = vmul.f32 %v1792_v3, %v1660_v39 }
 0xca3   :  { %v1769_v7 = vmul.f32 %v1765_v13, %v1732_v44  ;;  %v1800_v18 = vadd.f32 1.0, %v1796_v55 }
 0xca5   :  { %v1789_v9 = vmul.f32 %v6597_v8, %v1769_v7  ;;  %v1804_v34 = vmul.f32 %v1800_v18, %v1648_v6 }
 0xca7   :  { %v1793_v61 = vsub.f32 1.0, %v1789_v9 }
 0xca9   :  { %v1797_v17 = vmul.f32 %v1793_v61, %v1661_v14 }
 0xcab   :  { %v1801_v38 = vadd.f32 1.0, %v1797_v17 }
 0xcad   :  { %v1805_v63 = vmul.f32 %v1801_v38, %v1649_v20  ;;  %v6493_v38 = vld [vmem:[#allocation10] ss:$0 sm:$0xff] }
 0xcaf   :  { %v1823_v24 = vpack.c.bf16 %v1805_v63, %v1804_v34 }
 0xcb1   :  { %1885 = vmatmul.bf16.gmra.mxu3 %v1823_v24 }
 0xd1a   :  { %v1881_v23 = vpop.f32.mrf.mxu3 }
 0xd1b   :  { %v1891_v35 = vadd.f32 %v1881_v23, %v8531_v2 }
 0xd1d   :  { %v8646_v25 = vadd.f32 %v6492_v21, %v1891_v35 }
 0xd1f   :  { %v1905_v26 = vsel %vm851_vm1, %v8646_v25, 0.0 }
 0xd20   :  { %1906 = vadd.xlane.f32.xlu2 %v1905_v26  ;;  %v6494_v26 = vld [vmem:[#allocation11] ss:$0 sm:$0xff] }
 0xd22   :  { %v1883_v12 = vpop.f32.mrf.mxu3 }
 0xd23   :  { %v1892_v4 = vadd.f32 %v1883_v12, %v8536_v5 }
 0xd25   :  { %v8651_v29 = vadd.f32 %v6492_v21, %v1892_v4 }
 0xd27   :  { %v1908_v28 = vsel %vm851_vm1, %v8651_v29, 0.0 }
 0xd28   :  { %1909 = vadd.xlane.f32.xlu0 %v1908_v28 }
 0xd34   :  { %v1886_v31 = vpop.f32.mrf.mxu3 }
 0xd35   :  { %v1893_v47 = vadd.f32 %v1886_v31, %v8541_v11 }
 0xd37   :  { %v8656_v51 = vadd.f32 %v6492_v21, %v1893_v47 }
 0xd39   :  { %v1911_v2 = vsel %vm851_vm1, %v8656_v51, 0.0 }
 0xd3a   :  { %1912 = vadd.xlane.f32.xlu1 %v1911_v2 }
 0xd3c   :  { %v1888_v53 = vpop.f32.mrf.mxu3 }
 0xd3d   :  { %v1894_v62 = vadd.f32 %v1888_v53, %v8546_v15 }
 0xd3f   :  { %v8661_v30 = vadd.f32 %v6492_v21, %v1894_v62 }
 0xd41   :  { %v1914_v5 = vsel %vm851_vm1, %v8661_v30, 0.0 }
 0xd42   :  { %1915 = vadd.xlane.f32.xlu2 %v1914_v5 }
 0xd93   :  { %v1907_v32 = vpop.xlane.xlu2 %1906 }
 0xd94   :  { %v1917_v36 = vmul.f32 %v1907_v32, %v8348_v22 }
 0xd96   :  { %v1921_v11 = vsub.f32 %v8646_v25, %v1917_v36 }
 0xd98   :  { %v1925_v37 = vmul.f32 %v1921_v11, %v1921_v11 }
 0xd9a   :  { %v1929_v33 = vsel %vm851_vm1, %v1925_v37, 0.0 }
 0xd9b   :  { %1930 = vadd.xlane.f32.xlu0 %v1929_v33  ;;  %v1910_v40 = vpop.xlane.xlu0 %1909 }
 0xd9c   :  { %v1918_v42 = vmul.f32 %v1910_v40, %v8348_v22 }
 0xd9e   :  { %v1922_v15 = vsub.f32 %v8651_v29, %v1918_v42 }
 0xda0   :  { %v1926_v44 = vmul.f32 %v1922_v15, %v1922_v15 }
 0xda2   :  { %v1932_v10 = vsel %vm851_vm1, %v1926_v44, 0.0 }
 0xda3   :  { %1933 = vadd.xlane.f32.xlu1 %v1932_v10 }
 0xdad   :  { %v1913_v45 = vpop.xlane.xlu1 %1912 }
 0xdae   :  { %v1919_v46 = vmul.f32 %v1913_v45, %v8348_v22 }
 0xdb0   :  { %v8673_v48 = vsub.f32 %v8656_v51, %v1919_v46 }
 0xdb2   :  { %v1927_v49 = vmul.f32 %v8673_v48, %v8673_v48 }
 0xdb4   :  { %v1935_v50 = vsel %vm851_vm1, %v1927_v49, 0.0 }
 0xdb5   :  { %1936 = vadd.xlane.f32.xlu2 %v1935_v50  ;;  %v1916_v52 = vpop.xlane.xlu2 %1915 }
 0xdb6   :  { %v1920_v27 = vmul.f32 %v1916_v52, %v8348_v22 }
 0xdb8   :  { %v8680_v54 = vsub.f32 %v8661_v30, %v1920_v27 }
 0xdba   :  { %v1928_v41 = vmul.f32 %v8680_v54, %v8680_v54 }
 0xdbc   :  { %v1938_v56 = vsel %vm851_vm1, %v1928_v41, 0.0 }
 0xdbd   :  { %1939 = vadd.xlane.f32.xlu0 %v1938_v56 }
 0xe0e   :  { %v1931_v58 = vpop.xlane.xlu0 %1930 }
 0xe0f   :  { %v1941_v43 = vmul.f32 %v1931_v58, %v8348_v22 }
 0xe11   :  { %v1945_v59 = vadd.f32 1e-05, %v1941_v43 }
 0xe13   :  { %6598 = vrsqrt.f32 %v1945_v59  ;;  %vm1955_vm8 = vweird.f32 %v1945_v59 }
 0xe16   :  { %v1934_v0 = vpop.xlane.xlu1 %1933 }
 0xe17   :  { %v1942_v1 = vmul.f32 %v1934_v0, %v8348_v22 }
 0xe19   :  { %v6599_v19 = vpop.eup %6598  ;;  %v1946_v13 = vadd.f32 1e-05, %v1942_v1 }
 0xe1a   :  { %v1950_v3 = vmul.f32 %v6599_v19, %v1945_v59  ;;  %vm1956_vm6 = vweird.f32 %v6599_v19  ;;  %v6495_v59 = vld [vmem:[#allocation13] ss:$0 sm:$0xff] }
 0xe1b   :  { %6600 = vrsqrt.f32 %v1946_v13  ;;  %vm1957_vm9 = vmor %vm1955_vm8, %vm1956_vm6  ;;  %vm1965_vm11 = vweird.f32 %v1946_v13 }
 0xe1c   :  { %v1951_v7 = vmul.f32 %v6599_v19, %v1950_v3 }
 0xe1e   :  { %v1952_v8 = vmul.f32 0.5, %v1951_v7 }
 0xe20   :  { %v1953_v39 = vsub.f32 1.5, %v1952_v8 }
 0xe21   :  { %v6601_v9 = vpop.eup %6600 }
 0xe22   :  { %v1954_v55 = vmul.f32 %v6599_v19, %v1953_v39  ;;  %v1960_v61 = vmul.f32 %v6601_v9, %v1946_v13  ;;  %vm1966_vm10 = vweird.f32 %v6601_v9 }
 0xe23   :  { %vm1967_vm12 = vmor %vm1965_vm11, %vm1966_vm10 }
 0xe24   :  { %v1961_v14 = vmul.f32 %v6601_v9, %v1960_v61  ;;  %v1958_v17 = vsel %vm1957_vm9, %v6599_v19, %v1954_v55 }
 0xe25   :  { %v1989_v34 = vmul.f32 %v1958_v17, %v1921_v11 }
 0xe26   :  { %v1962_v18 = vmul.f32 0.5, %v1961_v14 }
 0xe27   :  { %v1996_v35 = vmul.f32 %v6493_v38, %v1989_v34 }
 0xe28   :  { %v1963_v6 = vsub.f32 1.5, %v1962_v18  ;;  %v1937_v20 = vpop.xlane.xlu2 %1936 }
 0xe29   :  { %v1943_v63 = vmul.f32 %v1937_v20, %v8348_v22  ;;  %v2003_v2 = vadd.f32 %v6494_v26, %v1996_v35 }
 0xe2a   :  { %v1964_v24 = vmul.f32 %v6601_v9, %v1963_v6 }
 0xe2b   :  { %v1947_v21 = vadd.f32 1e-05, %v1943_v63 }
 0xe2c   :  { %v1968_v23 = vsel %vm1967_vm12, %v6601_v9, %v1964_v24 }
 0xe2d   :  { %v1990_v12 = vmul.f32 %v1968_v23, %v1922_v15  ;;  %6602 = vrsqrt.f32 %v1947_v21  ;;  %vm1975_vm14 = vweird.f32 %v1947_v21 }
 0xe2f   :  { %v1997_v4 = vmul.f32 %v6493_v38, %v1990_v12  ;;  %v2058_v12 = vld [vmem:[%s9509_s22] sm:$0xff] }
 0xe30   :  { %v1940_v28 = vpop.xlane.xlu0 %1939 }
 0xe31   :  { %v2004_v31 = vadd.f32 %v6494_v26, %v1997_v4  ;;  %v1944_v47 = vmul.f32 %v1940_v28, %v8348_v22 }
 0xe33   :  { %v6603_v53 = vpop.eup %6602  ;;  %v1948_v62 = vadd.f32 1e-05, %v1944_v47  ;;  %v2011_v5 = vpack.c.bf16 %v2004_v31, %v2003_v2  ;;  %v2059_v47 = vld [vmem:[%s9509_s22 + $0x8] sm:$0xff] }
 0xe34   :  { %v1970_v32 = vmul.f32 %v6603_v53, %v1947_v21  ;;  %vm1976_vm13 = vweird.f32 %v6603_v53 }
 0xe35   :  { %6604 = vrsqrt.f32 %v1948_v62  ;;  %5744 = vmatmul.msk.bf16.vlgmr.msra.gmra.mxu0 %vm851_vm1, %v2011_v5  ;;  %vm1977_vm15 = vmor %vm1975_vm14, %vm1976_vm13  ;;  %vm1985_vm3 = vweird.f32 %v1948_v62 }
 0xe36   :  { %v1971_v36 = vmul.f32 %v6603_v53, %v1970_v32 }
 0xe38   :  { %v1972_v11 = vmul.f32 0.5, %v1971_v36 }
 0xe3a   :  { %v1973_v37 = vsub.f32 1.5, %v1972_v11 }
 0xe3b   :  { %v6605_v33 = vpop.eup %6604 }
 0xe3c   :  { %v1974_v40 = vmul.f32 %v6603_v53, %v1973_v37  ;;  %v1980_v42 = vmul.f32 %v6605_v33, %v1948_v62  ;;  %vm1986_vm2 = vweird.f32 %v6605_v33  ;;  %v5751_v37 = vld [vmem:[%s9509_s22 + $0x18] sm:$0xff] }
 0xe3d   :  { %vm1987_vm4 = vmor %vm1985_vm3, %vm1986_vm2 }
 0xe3e   :  { %v1981_v15 = vmul.f32 %v6605_v33, %v1980_v42  ;;  %v1978_v44 = vsel %vm1977_vm15, %v6603_v53, %v1974_v40 }
 0xe3f   :  { %v1991_v46 = vmul.f32 %v1978_v44, %v8673_v48 }
 0xe40   :  { %v1982_v10 = vmul.f32 0.5, %v1981_v15 }
 0xe41   :  { %v1998_v27 = vmul.f32 %v6493_v38, %v1991_v46 }
 0xe42   :  { %v1983_v45 = vsub.f32 1.5, %v1982_v10 }
 0xe43   :  { %v2005_v56 = vadd.f32 %v6494_v26, %v1998_v27 }
 0xe44   :  { %v1984_v49 = vmul.f32 %v6605_v33, %v1983_v45  ;;  %v5750_v45 = vld [vmem:[%s9509_s22 + $0x10] sm:$0xff]  ;;  %s7628_s22 = sshra.s32 %s5531_s3, 4  ;;  %s7629_s22 = int_to_ptr.hbm [resolvable:$true] %s7628_s22 }
 0xe45   :  { %p7633_p8 = scmp.lt.s32.totalorder %s7629_s22, %s8220_s19 }
 0xe46   :  { %v1988_v50 = vsel %vm1987_vm4, %v6605_v33, %v1984_v49 }
 0xe47   :  { %v1992_v52 = vmul.f32 %v1988_v50, %v8680_v54 }
 0xe49   :  { %v1999_v41 = vmul.f32 %v6493_v38, %v1992_v52 }
 0xe4b   :  { %v2006_v57 = vadd.f32 %v6494_v26, %v1999_v41 }
 0xe4d   :  { %v2012_v58 = vpack.c.bf16 %v2006_v57, %v2005_v56 }
 0xe4f   :  { %5745 = vmatmul.msk.bf16.gmra.mxu0 %vm851_vm1, %v2012_v58 }
 0xeb2   :  { %v2044_v43 = vpop.f32.mrf.mxu0 }
 0xeb3   :  { %v2045_v60 = vadd.f32 %v6495_v59, %v2044_v43 }
 0xeb5   :  { %v2054_v1 = vpack.c.bf16 %v2045_v60, %v2045_v60 }
 0xeb7   :  { %v2062_v13 = vunpack.c.l.b16 %v2054_v1 }
 0xeba   :  { %v2046_v0 = vpop.f32.mrf.mxu0 }
 0xebb   :  { %v2047_v19 = vadd.f32 %v6495_v59, %v2046_v0 }
 0xebd   :  { %v2055_v48 = vpack.c.bf16 %v2047_v19, %v2047_v19 }
 0xebf   :  { %v2063_v3 = vunpack.c.l.b16 %v2055_v48 }
 0xec1   :  { %v8695_v7 = vpack.c.b16 %v2063_v3, %v2062_v13 }
 0xec3   :  { %2065 = vrot.lane.b32.xlu2 %v8695_v7, %s7817_s6  ;;  %2217 = vrot.lane.b32.xlu0 %v8695_v7, %s7818_s15 }
 0xecc   :  { %v2049_v54 = vpop.f32.mrf.mxu0 }
 0xecd   :  { %v2050_v8 = vadd.f32 %v6495_v59, %v2049_v54 }
 0xecf   :  { %v2056_v9 = vpack.c.bf16 %v2050_v8, %v2050_v8 }
 0xed1   :  { %v2089_v14 = vunpack.c.l.b16 %v2056_v9 }
 0xed4   :  { %v2051_v39 = vpop.f32.mrf.mxu0 }
 0xed5   :  { %v2052_v55 = vadd.f32 %v6495_v59, %v2051_v39 }
 0xed7   :  { %v2057_v61 = vpack.c.bf16 %v2052_v55, %v2052_v55 }
 0xed9   :  { %v2090_v17 = vunpack.c.l.b16 %v2057_v61 }
 0xedb   :  { %v8701_v18 = vpack.c.b16 %v2090_v17, %v2089_v14 }
 0xedd   :  { %2239 = vrot.lane.b32.xlu2 %v8701_v18, %s7820_s5  ;;  %2241 = vrot.lane.b32.xlu0 %v8701_v18, %s7818_s15 }
 0xede   :  { %2092 = vrot.lane.b32.xlu1 %v8701_v18, %s7817_s6 }
 0xee6   :  { %2215 = vrot.lane.b32.xlu1 %v8695_v7, %s7820_s5 }
 0xf1d   :  { %v2066_v6 = vpop.permute.xlu2 %2065 }
 0xf1e   :  { %v2071_v20 = vsel %vm1125_vm7, %v2066_v6, 0 }
 0xf1f   :  { %2080 = vmatpush.bf16.xpose.msrb.mxu1 %v2071_v20 }
 0xf26   :  { %5746 = vmatmul.msk.bf16.vlgmr.msrb.gmra.mxu1 %vm1125_vm7, %v8695_v7 }
 0xf35   :  { %v2218_v38 = vpop.permute.xlu0 %2217 }
 0xf36   :  { %v2223_v23 = vsel %vm1125_vm7, %v2218_v38, 0 }
 0xf37   :  { %v2240_v35 = vpop.permute.xlu2 %2239 }
 0xf4f   :  { %v2242_v34 = vpop.permute.xlu0 %2241 }
 0xf50   :  { %v2247_v63 = vsel %vm1125_vm7, %v2242_v34, 0  ;;  %v2093_v24 = vpop.permute.xlu1 %2092 }
 0xf51   :  { %v2098_v21 = vsel %vm1125_vm7, %v2093_v24, 0  ;;  %2256 = vmatpush.bf16.xpose.msra.mxu3 %v2247_v63 }
 0xf52   :  { %2107 = vmatpush.bf16.xpose.msra.mxu2 %v2098_v21 }
 0xf58   :  { %5753 = vmatmul.msk.bf16.vlgmr.msra.gmra.mxu3 %vm1125_vm7, %v2240_v35  ;;  %v2216_v26 = vpop.permute.xlu1 %2215 }
 0xf59   :  { %5747 = vmatmul.msk.bf16.vlgmr.msra.gmra.mxu2 %vm1125_vm7, %v8701_v18 }
 0xf5a   :  { %2232 = vmatpush.bf16.xpose.msrb.mxu2 %v2223_v23 }
 0xf69   :  { %5752 = vmatmul.msk.bf16.vlgmr.msrb.gmra.mxu2 %vm1125_vm7, %v2216_v26 }
 0xfa3   :  { %v2082_v4 = vpop.f32.mrf.mxu1 }
 0xfa4   :  { %v2083_v28 = vadd.f32 %v2082_v4, %v2058_v12 }
 0xfa6   :  { %v2114_v31 = vsel %vm1125_vm7, %v2083_v28, -inf }
 0xfa7   :  { %2115 = vmax.xlane.f32.xlu1 %v2114_v31 }
 0xfab   :  { %v2084_v2 = vpop.f32.mrf.mxu1 }
 0xfac   :  { %v2085_v53 = vadd.f32 %v2084_v2, %v2059_v47 }
 0xfae   :  { %v2117_v62 = vsel %vm1125_vm7, %v2085_v53, -inf }
 0xfaf   :  { %2118 = vmax.xlane.f32.xlu0 %v2117_v62 }
 0xfdb   :  { %v2258_v5 = vpop.f32.mrf.mxu3 }
 0xfdc   :  { %v2109_v32 = vpop.f32.mrf.mxu2  ;;  %v2259_v46 = vadd.f32 %v5750_v45, %v2258_v5 }
 0xfdd   :  { %v2110_v36 = vadd.f32 %v2109_v32, %v2058_v12 }
 0xfde   :  { %v2269_v27 = vsel %vm1125_vm7, %v2259_v46, -inf }
 0xfdf   :  { %v2120_v11 = vsel %vm1125_vm7, %v2110_v36, -inf }
 0xfe0   :  { %2121 = vmax.xlane.f32.xlu2 %v2120_v11 }
 0xfe3   :  { %v2260_v33 = vpop.f32.mrf.mxu3 }
 0xfe4   :  { %v2111_v40 = vpop.f32.mrf.mxu2  ;;  %v2261_v42 = vadd.f32 %v5751_v37, %v2260_v33 }
 0xfe5   :  { %v2112_v15 = vadd.f32 %v2111_v40, %v2059_v47 }
 0xfe6   :  { %v2272_v44 = vsel %vm1125_vm7, %v2261_v42, -inf }
 0xfe7   :  { %v2123_v10 = vsel %vm1125_vm7, %v2112_v15, -inf  ;;  %2273 = vmax.xlane.f32.xlu0 %v2272_v44 }
 0xfe8   :  { %2124 = vmax.xlane.f32.xlu1 %v2123_v10 }
 0xfec   :  { %v2234_v49 = vpop.f32.mrf.mxu2 }
 0xfed   :  { %v2235_v50 = vadd.f32 %v5750_v45, %v2234_v49 }
 0xfef   :  { %v2263_v52 = vsel %vm1125_vm7, %v2235_v50, -inf }
 0xff0   :  { %2264 = vmax.xlane.f32.xlu0 %v2263_v52  ;;  %2270 = vmax.xlane.f32.xlu1 %v2269_v27 }
 0xff4   :  { %v2236_v41 = vpop.f32.mrf.mxu2 }
 0xff5   :  { %v2237_v56 = vadd.f32 %v5751_v37, %v2236_v41 }
 0xff7   :  { %v2266_v57 = vsel %vm1125_vm7, %v2237_v56, -inf }
 0xff8   :  { %2267 = vmax.xlane.f32.xlu2 %v2266_v57 }
0x1004   :  { %2167 = vrot.lane.b32.xlu0 %v8695_v7, %s7819_s29 }
0x100c   :  { %2316 = vrot.lane.b32.xlu0 %v8695_v7, %s7821_s16 }
0x101a   :  { %v2116_v58 = vpop.xlane.xlu1 %2115 }
0x101b   :  { %v2126_v43 = vsub.f32 %v2083_v28, %v2116_v58 }
0x101d   :  { %v2130_v59 = vmul.f32 1.442695, %v2126_v43 }
0x101f   :  { %6606 = vpow2.f32 %v2130_v59 }
0x1022   :  { %v2119_v60 = vpop.xlane.xlu0 %2118 }
0x1023   :  { %v2127_v0 = vsub.f32 %v2085_v53, %v2119_v60 }
0x1025   :  { %v6607_v1 = vpop.eup %6606  ;;  %v2132_v19 = vmul.f32 1.442695, %v2127_v0 }
0x1026   :  { %v2138_v48 = vsel %vm1125_vm7, %v6607_v1, 0.0 }
0x1027   :  { %6608 = vpow2.f32 %v2132_v19  ;;  %2139 = vadd.xlane.f32.xlu2 %v2138_v48 }
0x102d   :  { %v6609_v13 = vpop.eup %6608 }
0x102e   :  { %v2141_v3 = vsel %vm1125_vm7, %v6609_v13, 0.0 }
0x102f   :  { %2142 = vadd.xlane.f32.xlu1 %v2141_v3 }
0x1053   :  { %v2122_v54 = vpop.xlane.xlu2 %2121 }
0x1054   :  { %v2128_v8 = vsub.f32 %v2110_v36, %v2122_v54 }
0x1056   :  { %v2134_v39 = vmul.f32 1.442695, %v2128_v8 }
0x1058   :  { %6610 = vpow2.f32 %v2134_v39 }
0x105a   :  { %v2274_v7 = vpop.xlane.xlu0 %2273 }
0x105b   :  { %v2125_v9 = vpop.xlane.xlu1 %2124  ;;  %v2278_v55 = vsub.f32 %v2261_v42, %v2274_v7 }
0x105c   :  { %v2129_v61 = vsub.f32 %v2112_v15, %v2125_v9 }
0x105d   :  { %v2285_v14 = vmul.f32 1.442695, %v2278_v55 }
0x105e   :  { %v6611_v17 = vpop.eup %6610  ;;  %v2136_v6 = vmul.f32 1.442695, %v2129_v61 }
0x105f   :  { %6612 = vpow2.f32 %v2285_v14  ;;  %v2144_v20 = vsel %vm1125_vm7, %v6611_v17, 0.0 }
0x1060   :  { %6614 = vpow2.f32 %v2136_v6  ;;  %2145 = vadd.xlane.f32.xlu2 %v2144_v20 }
0x1063   :  { %v2265_v38 = vpop.xlane.xlu0 %2264  ;;  %v2271_v34 = vpop.xlane.xlu1 %2270 }
0x1064   :  { %v2275_v63 = vsub.f32 %v2235_v50, %v2265_v38  ;;  %v2277_v24 = vsub.f32 %v2259_v46, %v2271_v34 }
0x1065   :  { %v8740_v21 = vpop.eup %6612 }
0x1066   :  { %v6615_v23 = vpop.eup %6614  ;;  %v2279_v35 = vmul.f32 1.442695, %v2275_v63  ;;  %v2283_v26 = vmul.f32 1.442695, %v2277_v24  ;;  %v2296_v12 = vsel %vm1125_vm7, %v8740_v21, 0.0 }
0x1067   :  { %2297 = vadd.xlane.f32.xlu0 %v2296_v12  ;;  %v2147_v4 = vsel %vm1125_vm7, %v6615_v23, 0.0 }
0x1068   :  { %6616 = vpow2.f32 %v2279_v35  ;;  %2148 = vadd.xlane.f32.xlu1 %v2147_v4 }
0x1069   :  { %6618 = vpow2.f32 %v2283_v26 }
0x106b   :  { %v2268_v28 = vpop.xlane.xlu2 %2267 }
0x106c   :  { %v2276_v31 = vsub.f32 %v2237_v56, %v2268_v28 }
0x106e   :  { %v6617_v47 = vpop.eup %6616  ;;  %v2281_v2 = vmul.f32 1.442695, %v2276_v31  ;;  %v6235_v31 = vld [vmem:[%s9510_s23 + $0x8] sm:$0xff] }
0x106f   :  { %v8745_v53 = vpop.eup %6618  ;;  %v2287_v62 = vsel %vm1125_vm7, %v6617_v47, 0.0  ;;  %2411 = vmatpush.bf16.msra.mxu2 %v6235_v31 }
0x1070   :  { %6620 = vpow2.f32 %v2281_v2  ;;  %v2293_v5 = vsel %vm1125_vm7, %v8745_v53, 0.0  ;;  %2288 = vadd.xlane.f32.xlu2 %v2287_v62 }
0x1071   :  { %2294 = vadd.xlane.f32.xlu1 %v2293_v5 }
0x1076   :  { %v6621_v32 = vpop.eup %6620  ;;  %v2168_v36 = vpop.permute.xlu0 %2167 }
0x1077   :  { %2180 = vmatpush.bf16.msrb.mxu0 %v2168_v36  ;;  %v2290_v11 = vsel %vm1125_vm7, %v6621_v32, 0.0 }
0x1079   :  { %2291 = vadd.xlane.f32.xlu1 %v2290_v11 }
0x107e   :  { %v2317_v37 = vpop.permute.xlu0 %2316 }
0x107f   :  { %2329 = vmatpush.bf16.msra.mxu0 %v2317_v37  ;;  %v6234_v37 = vld [vmem:[%s9510_s23] sm:$0xff]  ;;  %s7630_s23 = scalar_lea.hbm %s7629_s22, 2 }
0x1080   :  { %2412 = vmatpush.bf16.msra.mxu2 %v6234_v37  ;;  %p7631_p7 = scmp.ne.s32.totalorder %s7629_s22, %s7630_s23 }
0x1088   :  { %2192 = vrot.lane.b32.xlu2 %v8701_v18, %s7819_s29 }
0x1092   :  { %2341 = vrot.lane.b32.xlu1 %v8701_v18, %s7821_s16 }
0x109a   :  { %v2140_v33 = vpop.xlane.xlu2 %2139 }
0x109b   :  { %6622 = vrcp.f32 %v2140_v33 }
0x10a1   :  { %v6623_v42 = vpop.eup %6622 }
0x10a2   :  { %v2143_v40 = vpop.xlane.xlu1 %2142  ;;  %v2154_v15 = vmul.f32 %v6623_v42, %v6607_v1 }
0x10a3   :  { %6624 = vrcp.f32 %v2143_v40 }
0x10a4   :  { %v2158_v10 = vpack.c.bf16 %v2154_v15, %v2154_v15 }
0x10a6   :  { %v2164_v49 = vunpack.c.l.b16 %v2158_v10 }
0x10a9   :  { %v6625_v44 = vpop.eup %6624 }
0x10aa   :  { %v2155_v45 = vmul.f32 %v6625_v44, %v6609_v13 }
0x10ac   :  { %v2159_v46 = vpack.c.bf16 %v2155_v45, %v2155_v45 }
0x10ae   :  { %v2165_v50 = vunpack.c.l.b16 %v2159_v46 }
0x10b0   :  { %v2166_v52 = vpack.c.b16 %v2165_v50, %v2164_v49 }
0x10b2   :  { %5748 = vmatmul.msk.bf16.vlgmr.msrb.gmra.mxu0 %vm1125_vm7, %v2166_v52 }
0x10d3   :  { %v2146_v27 = vpop.xlane.xlu2 %2145 }
0x10d4   :  { %6626 = vrcp.f32 %v2146_v27 }
0x10da   :  { %v6627_v18 = vpop.eup %6626  ;;  %v2298_v8 = vpop.xlane.xlu0 %2297 }
0x10db   :  { %v2149_v41 = vpop.xlane.xlu1 %2148  ;;  %v2156_v57 = vmul.f32 %v6627_v18, %v6611_v17 }
0x10dc   :  { %6628 = vrcp.f32 %v2149_v41  ;;  %v6496_v41 = vld [vmem:[#allocation14] ss:$0 sm:$0xff] }
0x10dd   :  { %v2160_v0 = vpack.c.bf16 %v2156_v57, %v2156_v57 }
0x10df   :  { %v2189_v19 = vunpack.c.l.b16 %v2160_v0 }
0x10e2   :  { %v6629_v56 = vpop.eup %6628 }
0x10e3   :  { %v2157_v58 = vmul.f32 %v6629_v56, %v6615_v23  ;;  %v2289_v43 = vpop.xlane.xlu2 %2288 }
0x10e4   :  { %v2295_v59 = vpop.xlane.xlu1 %2294  ;;  %6630 = vrcp.f32 %v2289_v43 }
0x10e5   :  { %v2161_v60 = vpack.c.bf16 %v2157_v58, %v2157_v58 }
0x10e7   :  { %v2190_v1 = vunpack.c.l.b16 %v2161_v60 }
0x10e9   :  { %v2191_v54 = vpack.c.b16 %v2190_v1, %v2189_v19 }
0x10ea   :  { %v6631_v3 = vpop.eup %6630 }
0x10eb   :  { %v2193_v48 = vpop.permute.xlu2 %2192  ;;  %v2303_v39 = vmul.f32 %v6631_v3, %v6617_v47 }
0x10ec   :  { %v2292_v13 = vpop.xlane.xlu1 %2291  ;;  %2205 = vmatpush.bf16.msra.mxu1 %v2193_v48 }
0x10ed   :  { %6632 = vrcp.f32 %v2292_v13  ;;  %v2307_v9 = vpack.c.bf16 %v2303_v39, %v2303_v39 }
0x10ee   :  { %6634 = vrcp.f32 %v2295_v59 }
0x10ef   :  { %5749 = vmatmul.msk.bf16.vlgmr.msra.gmra.mxu1 %vm1125_vm7, %v2191_v54  ;;  %6636 = vrcp.f32 %v2298_v8  ;;  %v2313_v17 = vunpack.c.l.b16 %v2307_v9 }
0x10f3   :  { %v6633_v7 = vpop.eup %6632 }
0x10f4   :  { %v2304_v55 = vmul.f32 %v6633_v7, %v6621_v32  ;;  %v6635_v14 = vpop.eup %6634 }
0x10f5   :  { %v6637_v20 = vpop.eup %6636  ;;  %v2305_v38 = vmul.f32 %v6635_v14, %v8745_v53 }
0x10f6   :  { %v2308_v61 = vpack.c.bf16 %v2304_v55, %v2304_v55  ;;  %v2306_v63 = vmul.f32 %v6637_v20, %v8740_v21 }
0x10f7   :  { %v2309_v24 = vpack.c.bf16 %v2305_v38, %v2305_v38 }
0x10f8   :  { %v2314_v6 = vunpack.c.l.b16 %v2308_v61  ;;  %v2310_v23 = vpack.c.bf16 %v2306_v63, %v2306_v63 }
0x10f9   :  { %v2338_v35 = vunpack.c.l.b16 %v2309_v24 }
0x10fa   :  { %v2315_v34 = vpack.c.b16 %v2314_v6, %v2313_v17  ;;  %v2339_v26 = vunpack.c.l.b16 %v2310_v23 }
0x10fc   :  { %5754 = vmatmul.msk.bf16.vlgmr.msra.gmra.mxu0 %vm1125_vm7, %v2315_v34  ;;  %v2340_v4 = vpack.c.b16 %v2339_v26, %v2338_v35 }
0x1104   :  { %v2342_v12 = vpop.permute.xlu1 %2341 }
0x1105   :  { %2354 = vmatpush.bf16.msrb.mxu1 %v2342_v12 }
0x1108   :  { %5755 = vmatmul.msk.bf16.vlgmr.msrb.gmra.mxu1 %vm1125_vm7, %v2340_v4  ;;  %v6237_v4 = vld [vmem:[%s9511_s28 + $0x8] sm:$0xff] }
0x1109   :  { %2574 = vmatpush.bf16.msrb.mxu3 %v6237_v4 }
0x112f   :  { %v2182_v28 = vpop.f32.mrf.mxu0 }
0x1137   :  { %v2184_v47 = vpop.f32.mrf.mxu0 }
0x116c   :  { %v2207_v2 = vpop.f32.mrf.mxu1 }
0x1174   :  { %v2209_v62 = vpop.f32.mrf.mxu1 }
0x1179   :  { %v2331_v53 = vpop.f32.mrf.mxu0 }
0x1181   :  { %v2333_v21 = vpop.f32.mrf.mxu0 }
0x1182   :  { %v6472_v5 = vpack.i.bf16 %v2333_v21, %v2331_v53 }
0x1184   :  { %6473 = vrot.lane.b32.xlu2 %v6472_v5, %s7822_s14 }
0x1185   :  { %v2356_v32 = vpop.f32.mrf.mxu1 }
0x118d   :  { %v2358_v36 = vpop.f32.mrf.mxu1 }
0x118e   :  { %v6477_v11 = vpack.i.bf16 %v2358_v36, %v2356_v32 }
0x1190   :  { %6478 = vrot.lane.b32.xlu2 %v6477_v11, %s7822_s14 }
0x11de   :  { %v6474_v33 = vpop.permute.xlu2 %6473 }
0x11df   :  { %v6476_v40 = vunpack.i.h.bf16 %v6474_v33  ;;  %v6475_v42 = vunpack.i.l.bf16 %v6474_v33 }
0x11e1   :  { %v2378_v15 = vsel %vm1125_vm7, %v2184_v47, %v6476_v40  ;;  %v2377_v44 = vsel %vm1125_vm7, %v2182_v28, %v6475_v42  ;;  %v6236_v47 = vld [vmem:[%s9511_s28] sm:$0xff]  ;;  %s7632_s28 = scalar_lea.hbm %s8220_s19, 2 }
0x11e2   :  { %v2385_v10 = vpack.c.bf16 %v2378_v15, %v2377_v44  ;;  %2575 = vmatpush.bf16.msrb.mxu3 %v6236_v47  ;;  %p7634_p9 = scmp.lt.s32.totalorder %s7632_s28, %s7630_s23 }
0x11e4   :  { %5764 = vmatmul.msk.bf16.vlgmr.msra.gmra.mxu2 %vm851_vm1, %v2385_v10  ;;  %p7635_p10 = por %p7634_p9, %p7633_p8 }
0x11e6   :  { %p7636_p11 = pnand %p7635_p10, %p7631_p7 }
0x11ea   :  { %v6479_v45 = vpop.permute.xlu2 %6478 }
0x11eb   :  { %v6481_v46 = vunpack.i.h.bf16 %v6479_v45  ;;  %v6480_v49 = vunpack.i.l.bf16 %v6479_v45 }
0x11ed   :  { %v2379_v50 = vsel %vm1125_vm7, %v2207_v2, %v6480_v49  ;;  %v2380_v52 = vsel %vm1125_vm7, %v2209_v62, %v6481_v46 }
0x11ee   :  { %v2386_v27 = vpack.c.bf16 %v2380_v52, %v2379_v50 }
0x11f4   :  { %5765 = vmatmul.msk.bf16.gmra.mxu2 %vm851_vm1, %v2386_v27 }
0x1267   :  { %v2414_v18 = vpop.f32.mrf.mxu2 }
0x1268   :  { %v2424_v56 = vadd.f32 %v2414_v18, %v8646_v25  ;;  %v6497_v18 = vld [vmem:[#allocation16] ss:$0 sm:$0xff] }
0x126a   :  { %v8772_v57 = vadd.f32 %v6496_v41, %v2424_v56 }
0x126c   :  { %v2438_v58 = vsel %vm851_vm1, %v8772_v57, 0.0 }
0x126d   :  { %2439 = vadd.xlane.f32.xlu1 %v2438_v58 }
0x126f   :  { %v2416_v43 = vpop.f32.mrf.mxu2 }
0x1270   :  { %v2425_v59 = vadd.f32 %v2416_v43, %v8651_v29 }
0x1272   :  { %v8777_v60 = vadd.f32 %v6496_v41, %v2425_v59 }
0x1274   :  { %v2441_v0 = vsel %vm851_vm1, %v8777_v60, 0.0 }
0x1275   :  { %2442 = vadd.xlane.f32.xlu2 %v2441_v0 }
0x1277   :  { %v2419_v1 = vpop.f32.mrf.mxu2 }
0x1278   :  { %v2426_v19 = vadd.f32 %v2419_v1, %v8656_v51 }
0x127a   :  { %v8782_v48 = vadd.f32 %v6496_v41, %v2426_v19  ;;  %v6498_v19 = vld [vmem:[#allocation17] ss:$0 sm:$0xff] }
0x127c   :  { %v2444_v25 = vsel %vm851_vm1, %v8782_v48, 0.0 }
0x127d   :  { %2445 = vadd.xlane.f32.xlu0 %v2444_v25 }
0x127f   :  { %v2421_v13 = vpop.f32.mrf.mxu2 }
0x1280   :  { %v2427_v3 = vadd.f32 %v2421_v13, %v8661_v30 }
0x1282   :  { %v8787_v54 = vadd.f32 %v6496_v41, %v2427_v3 }
0x1284   :  { %v2447_v29 = vsel %vm851_vm1, %v8787_v54, 0.0 }
0x1285   :  { %2448 = vadd.xlane.f32.xlu0 %v2447_v29 }
0x12e0   :  { %v2440_v8 = vpop.xlane.xlu1 %2439 }
0x12e1   :  { %v2450_v39 = vmul.f32 %v2440_v8, %v8348_v22 }
0x12e3   :  { %v2454_v51 = vsub.f32 %v8772_v57, %v2450_v39 }
0x12e5   :  { %v2458_v7 = vmul.f32 %v2454_v51, %v2454_v51 }
0x12e7   :  { %v2462_v9 = vsel %vm851_vm1, %v2458_v7, 0.0 }
0x12e8   :  { %v2443_v55 = vpop.xlane.xlu2 %2442  ;;  %2463 = vadd.xlane.f32.xlu0 %v2462_v9 }
0x12e9   :  { %v2451_v61 = vmul.f32 %v2443_v55, %v8348_v22 }
0x12eb   :  { %v8796_v30 = vsub.f32 %v8777_v60, %v2451_v61 }
0x12ed   :  { %v2459_v14 = vmul.f32 %v8796_v30, %v8796_v30 }
0x12ef   :  { %v2465_v17 = vsel %vm851_vm1, %v2459_v14, 0.0 }
0x12f0   :  { %v2446_v6 = vpop.xlane.xlu0 %2445  ;;  %2466 = vadd.xlane.f32.xlu0 %v2465_v17 }
0x12f1   :  { %v2452_v20 = vmul.f32 %v2446_v6, %v8348_v22 }
0x12f3   :  { %v8803_v38 = vsub.f32 %v8782_v48, %v2452_v20 }
0x12f5   :  { %v2460_v34 = vmul.f32 %v8803_v38, %v8803_v38 }
0x12f7   :  { %v2468_v63 = vsel %vm851_vm1, %v2460_v34, 0.0 }
0x12f8   :  { %2469 = vadd.xlane.f32.xlu1 %v2468_v63  ;;  %v2449_v24 = vpop.xlane.xlu0 %2448 }
0x12f9   :  { %v2453_v23 = vmul.f32 %v2449_v24, %v8348_v22 }
0x12fb   :  { %v8810_v35 = vsub.f32 %v8787_v54, %v2453_v23 }
0x12fd   :  { %v2461_v26 = vmul.f32 %v8810_v35, %v8810_v35 }
0x12ff   :  { %v2471_v12 = vsel %vm851_vm1, %v2461_v26, 0.0 }
0x1300   :  { %2472 = vadd.xlane.f32.xlu2 %v2471_v12 }
0x135b   :  { %v2464_v28 = vpop.xlane.xlu0 %2463 }
0x135c   :  { %v2474_v31 = vmul.f32 %v2464_v28, %v8348_v22  ;;  %v6499_v28 = vld [vmem:[#allocation19] ss:$0 sm:$0xff] }
0x135e   :  { %v2478_v2 = vadd.f32 1e-05, %v2474_v31 }
0x1360   :  { %6638 = vrsqrt.f32 %v2478_v2  ;;  %vm2488_vm6 = vweird.f32 %v2478_v2 }
0x1363   :  { %v2467_v53 = vpop.xlane.xlu0 %2466 }
0x1364   :  { %v2475_v62 = vmul.f32 %v2467_v53, %v8348_v22 }
0x1366   :  { %v6639_v21 = vpop.eup %6638  ;;  %v2479_v5 = vadd.f32 1e-05, %v2475_v62  ;;  %v6244_v62 = vld [vmem:[%s9512_s21 + $0x30] sm:$0xff] }
0x1367   :  { %v2483_v32 = vmul.f32 %v6639_v21, %v2478_v2  ;;  %vm2489_vm5 = vweird.f32 %v6639_v21  ;;  %v6245_v2 = vld [vmem:[%s9512_s21 + $0x38] sm:$0xff] }
0x1368   :  { %6640 = vrsqrt.f32 %v2479_v5  ;;  %vm2490_vm8 = vmor %vm2488_vm6, %vm2489_vm5  ;;  %vm2498_vm10 = vweird.f32 %v2479_v5  ;;  %2813 = vmatpush.bf16.msrb.mxu0 %v6245_v2 }
0x1369   :  { %v2484_v36 = vmul.f32 %v6639_v21, %v2483_v32 }
0x136b   :  { %v2485_v11 = vmul.f32 0.5, %v2484_v36  ;;  %v2470_v37 = vpop.xlane.xlu1 %2469  ;;  %v6243_v36 = vld [vmem:[%s9512_s21 + $0x28] sm:$0xff] }
0x136c   :  { %v2476_v33 = vmul.f32 %v2470_v37, %v8348_v22  ;;  %2814 = vmatpush.bf16.msrb.mxu0 %v6244_v62 }
0x136d   :  { %v2486_v40 = vsub.f32 1.5, %v2485_v11 }
0x136e   :  { %v6641_v42 = vpop.eup %6640  ;;  %v2480_v15 = vadd.f32 1e-05, %v2476_v33  ;;  %v6242_v33 = vld [vmem:[%s9512_s21 + $0x20] sm:$0xff] }
0x136f   :  { %v2487_v44 = vmul.f32 %v6639_v21, %v2486_v40  ;;  %v2493_v10 = vmul.f32 %v6641_v42, %v2479_v5  ;;  %vm2499_vm9 = vweird.f32 %v6641_v42 }
0x1370   :  { %6642 = vrsqrt.f32 %v2480_v15  ;;  %vm2500_vm11 = vmor %vm2498_vm10, %vm2499_vm9  ;;  %vm2508_vm13 = vweird.f32 %v2480_v15  ;;  %2815 = vmatpush.bf16.msrb.mxu0 %v6243_v36 }
0x1371   :  { %v2494_v45 = vmul.f32 %v6641_v42, %v2493_v10  ;;  %v2491_v46 = vsel %vm2490_vm8, %v6639_v21, %v2487_v44 }
0x1372   :  { %v2522_v56 = vmul.f32 %v2491_v46, %v2454_v51 }
0x1373   :  { %v2495_v49 = vmul.f32 0.5, %v2494_v45  ;;  %v2473_v50 = vpop.xlane.xlu2 %2472 }
0x1374   :  { %v2477_v52 = vmul.f32 %v2473_v50, %v8348_v22  ;;  %v2529_v25 = vmul.f32 %v6497_v18, %v2522_v56  ;;  %2816 = vmatpush.bf16.msrb.mxu0 %v6242_v33 }
0x1375   :  { %v2496_v27 = vsub.f32 1.5, %v2495_v49  ;;  %v6241_v49 = vld [vmem:[%s9512_s21 + $0x18] sm:$0xff] }
0x1376   :  { %v6643_v41 = vpop.eup %6642  ;;  %v2481_v58 = vadd.f32 1e-05, %v2477_v52  ;;  %v2536_v39 = vadd.f32 %v6498_v19, %v2529_v25 }
0x1377   :  { %v2497_v43 = vmul.f32 %v6641_v42, %v2496_v27  ;;  %v2503_v59 = vmul.f32 %v6643_v41, %v2480_v15  ;;  %vm2509_vm12 = vweird.f32 %v6643_v41 }
0x1378   :  { %6644 = vrsqrt.f32 %v2481_v58  ;;  %vm2510_vm14 = vmor %vm2508_vm13, %vm2509_vm12  ;;  %vm2518_vm2 = vweird.f32 %v2481_v58  ;;  %2817 = vmatpush.bf16.msrb.mxu0 %v6241_v49 }
0x1379   :  { %v2501_v0 = vsel %vm2500_vm11, %v6641_v42, %v2497_v43  ;;  %v2504_v1 = vmul.f32 %v6643_v41, %v2503_v59 }
0x137a   :  { %v2523_v13 = vmul.f32 %v2501_v0, %v8796_v30 }
0x137b   :  { %v2505_v3 = vmul.f32 0.5, %v2504_v1 }
0x137c   :  { %v2530_v29 = vmul.f32 %v6497_v18, %v2523_v13 }
0x137d   :  { %v2506_v22 = vsub.f32 1.5, %v2505_v3 }
0x137e   :  { %v6645_v8 = vpop.eup %6644  ;;  %v2537_v7 = vadd.f32 %v6498_v19, %v2530_v29 }
0x137f   :  { %v2507_v9 = vmul.f32 %v6643_v41, %v2506_v22  ;;  %v2513_v51 = vmul.f32 %v6645_v8, %v2481_v58  ;;  %vm2519_vm15 = vweird.f32 %v6645_v8  ;;  %v6240_v58 = vld [vmem:[%s9512_s21 + $0x10] sm:$0xff]  ;;  %v6239_v22 = vld [vmem:[%s9512_s21 + $0x8] sm:$0xff] }
0x1380   :  { %v2544_v55 = vpack.c.bf16 %v2537_v7, %v2536_v39  ;;  %vm2520_vm3 = vmor %vm2518_vm2, %vm2519_vm15  ;;  %2818 = vmatpush.bf16.msrb.mxu0 %v6240_v58 }
0x1381   :  { %v2514_v61 = vmul.f32 %v6645_v8, %v2513_v51  ;;  %v2511_v14 = vsel %vm2510_vm14, %v6643_v41, %v2507_v9 }
0x1382   :  { %5774 = vmatmul.msk.bf16.vlgmr.msrb.gmra.mxu3 %vm851_vm1, %v2544_v55  ;;  %v2524_v30 = vmul.f32 %v2511_v14, %v8803_v38 }
0x1383   :  { %v2515_v17 = vmul.f32 0.5, %v2514_v61 }
0x1384   :  { %v2531_v24 = vmul.f32 %v6497_v18, %v2524_v30  ;;  %2819 = vmatpush.bf16.msrb.mxu0 %v6239_v22 }
0x1385   :  { %v2516_v6 = vsub.f32 1.5, %v2515_v17 }
0x1386   :  { %v2538_v26 = vadd.f32 %v6498_v19, %v2531_v24 }
0x1387   :  { %v2517_v20 = vmul.f32 %v6645_v8, %v2516_v6  ;;  %v6238_v6 = vld [vmem:[%s9512_s21] sm:$0xff] }
0x1388   :  { %2820 = vmatpush.bf16.msrb.mxu0 %v6238_v6 }
0x1389   :  { %v2521_v34 = vsel %vm2520_vm3, %v6645_v8, %v2517_v20 }
0x138a   :  { %v2525_v63 = vmul.f32 %v2521_v34, %v8810_v35 }
0x138c   :  { %v2532_v23 = vmul.f32 %v6497_v18, %v2525_v63 }
0x138e   :  { %v2539_v12 = vadd.f32 %v6498_v19, %v2532_v23 }
0x1390   :  { %v2545_v4 = vpack.c.bf16 %v2539_v12, %v2538_v26 }
0x1392   :  { %5775 = vmatmul.msk.bf16.gmra.mxu3 %vm851_vm1, %v2545_v4 }
0x1405   :  { %v2577_v31 = vpop.f32.mrf.mxu3 }
0x1406   :  { %v8826_v47 = vadd.f32 %v6499_v28, %v2577_v31 }
0x1408   :  { %v8829_v38 = vmul.f32 0.70710677, %v8826_v47 }
0x140a   :  { %v2603_v53 = vand.u32 2147483647, %v8829_v38 }
0x140c   :  { %v2607_v35 = vmul.f32 0.3275911, %v2603_v53  ;;  %v2711_v39 = vsub.f32 0.0, %v2603_v53 }
0x140d   :  { %v2579_v21 = vpop.f32.mrf.mxu3 }
0x140e   :  { %v2611_v5 = vadd.f32 1.0, %v2607_v35  ;;  %v8834_v32 = vadd.f32 %v6499_v28, %v2579_v21  ;;  %v2715_v20 = vmul.f32 %v2711_v39, %v2603_v53 }
0x1410   :  { %6646 = vrcp.f32 %v2611_v5  ;;  %v8838_v11 = vmul.f32 0.70710677, %v8834_v32  ;;  %v2626_v52 = vand.u32 2147483648, %v2611_v5  ;;  %v2624_v18 = vand.u32 2147483647, %v2611_v5 }
0x1411   :  { %vm2620_vm5 = vweird.f32 %v2611_v5  ;;  %v2719_v35 = vmul.f32 1.442695, %v2715_v20 }
0x1412   :  { %v8841_v37 = vand.u32 2147483647, %v8838_v11  ;;  %v2627_v0 = vor.u32 1.1754944e-38, %v2626_v52  ;;  %vm2625_vm8 = vcmp.eq.f32.partialorder %v2624_v18, 8.507059e+37 }
0x1414   :  { %v2608_v40 = vmul.f32 0.3275911, %v8841_v37 }
0x1415   :  { %v2582_v42 = vpop.f32.mrf.mxu3 }
0x1416   :  { %v6647_v15 = vpop.eup %6646  ;;  %v8845_v44 = vadd.f32 %v6499_v28, %v2582_v42  ;;  %v2612_v45 = vadd.f32 1.0, %v2608_v40 }
0x1417   :  { %v2616_v10 = vmul.f32 %v6647_v15, %v2611_v5  ;;  %vm2621_vm4 = vweird.f32 %v6647_v15 }
0x1418   :  { %v8848_v46 = vmul.f32 0.70710677, %v8845_v44  ;;  %6648 = vrcp.f32 %v2612_v45  ;;  %vm2622_vm6 = vmor %vm2620_vm5, %vm2621_vm4  ;;  %v2641_v55 = vand.u32 2147483648, %v2612_v45  ;;  %v2639_v14 = vand.u32 2147483647, %v2612_v45 }
0x1419   :  { %v2617_v50 = vsub.f32 1.0, %v2616_v10  ;;  %vm2635_vm10 = vweird.f32 %v2612_v45  ;;  %vm2595_vm5 = vcmp.ge.f32.partialorder %v8829_v38, 0.0 }
0x141a   :  { %v8852_v27 = vand.u32 2147483647, %v8848_v46  ;;  %v2642_v26 = vor.u32 1.1754944e-38, %v2641_v55  ;;  %vm2640_vm12 = vcmp.eq.f32.partialorder %v2639_v14, 8.507059e+37 }
0x141b   :  { %v2618_v41 = vmul.f32 %v6647_v15, %v2617_v50 }
0x141c   :  { %v2609_v56 = vmul.f32 0.3275911, %v8852_v27 }
0x141d   :  { %v2619_v43 = vadd.f32 %v6647_v15, %v2618_v41  ;;  %v2584_v59 = vpop.f32.mrf.mxu3 }
0x141e   :  { %v2613_v1 = vadd.f32 1.0, %v2609_v56  ;;  %v8856_v19 = vadd.f32 %v6499_v28, %v2584_v59  ;;  %v6649_v25 = vpop.eup %6648  ;;  %v2712_v28 = vsub.f32 0.0, %v8841_v37 }
0x141f   :  { %v2623_v13 = vsel %vm2622_vm6, %v6647_v15, %v2619_v43  ;;  %v2631_v29 = vmul.f32 %v6649_v25, %v2612_v45  ;;  %vm2636_vm9 = vweird.f32 %v6649_v25 }
0x1420   :  { %v2628_v3 = vsel %vm2625_vm8, %v2627_v0, %v2623_v13  ;;  %6650 = vrcp.f32 %v2613_v1  ;;  %v8860_v9 = vmul.f32 0.70710677, %v8856_v19  ;;  %vm2637_vm11 = vmor %vm2635_vm10, %vm2636_vm9  ;;  %v2656_v5 = vand.u32 2147483648, %v2613_v1 }
0x1421   :  { %v2675_v8 = vmul.f32 1.0614054, %v2628_v3  ;;  %v2632_v7 = vsub.f32 1.0, %v2631_v29  ;;  %v2654_v40 = vand.u32 2147483647, %v2613_v1  ;;  %v2716_v15 = vmul.f32 %v2712_v28, %v8841_v37 }
0x1422   :  { %v8863_v17 = vand.u32 2147483647, %v8860_v9  ;;  %vm2650_vm14 = vweird.f32 %v2613_v1  ;;  %v2657_v50 = vor.u32 1.1754944e-38, %v2656_v5  ;;  %v2713_v37 = vsub.f32 0.0, %v8852_v27 }
0x1423   :  { %v2679_v51 = vadd.f32 -1.4531521, %v2675_v8  ;;  %v2633_v61 = vmul.f32 %v6649_v25, %v2632_v7  ;;  %vm2655_vm2 = vcmp.eq.f32.partialorder %v2654_v40, 8.507059e+37  ;;  %v2721_v58 = vmul.f32 1.442695, %v2716_v15 }
0x1424   :  { %v2610_v24 = vmul.f32 0.3275911, %v8863_v17  ;;  %v2717_v6 = vmul.f32 %v2713_v37, %v8852_v27  ;;  %v2714_v28 = vsub.f32 0.0, %v8863_v17  ;;  %v2599_v27 = vsel %vm2595_vm5, 1.0, %v7823_v16 }
0x1425   :  { %v2683_v30 = vmul.f32 %v2679_v51, %v2628_v3  ;;  %v2634_v63 = vadd.f32 %v6649_v25, %v2633_v61  ;;  %vm2596_vm9 = vcmp.ge.f32.partialorder %v8838_v11, 0.0  ;;  %vm2597_vm10 = vcmp.ge.f32.partialorder %v8848_v46, 0.0 }
0x1426   :  { %v6651_v34 = vpop.eup %6650  ;;  %v2614_v31 = vadd.f32 1.0, %v2610_v24 }
0x1427   :  { %v2687_v23 = vadd.f32 1.4214138, %v2683_v30  ;;  %v2646_v12 = vmul.f32 %v6651_v34, %v2613_v1  ;;  %v2638_v4 = vsel %vm2637_vm11, %v6649_v25, %v2634_v63  ;;  %vm2651_vm13 = vweird.f32 %v6651_v34 }
0x1428   :  { %v2643_v62 = vsel %vm2640_vm12, %v2642_v26, %v2638_v4  ;;  %6652 = vrcp.f32 %v2614_v31  ;;  %vm2652_vm15 = vmor %vm2650_vm14, %vm2651_vm13  ;;  %v2671_v7 = vand.u32 2147483648, %v2614_v31  ;;  %v2669_v55 = vand.u32 2147483647, %v2614_v31 }
0x1429   :  { %v2691_v2 = vmul.f32 %v2687_v23, %v2628_v3  ;;  %v2647_v21 = vsub.f32 1.0, %v2646_v12  ;;  %v2676_v53 = vmul.f32 1.0614054, %v2643_v62  ;;  %6654 = vpow2.f32 %v2719_v35 }
0x142a   :  { %6656 = vpow2.f32 %v2721_v58  ;;  %vm2665_vm4 = vweird.f32 %v2614_v31  ;;  %v2672_v63 = vor.u32 1.1754944e-38, %v2671_v7  ;;  %vm2670_vm8 = vcmp.eq.f32.partialorder %v2669_v55, 8.507059e+37 }
0x142b   :  { %v2695_v36 = vadd.f32 -0.28449672, %v2691_v2  ;;  %v2648_v33 = vmul.f32 %v6651_v34, %v2647_v21  ;;  %v2680_v42 = vadd.f32 -1.4531521, %v2676_v53  ;;  %v2723_v4 = vmul.f32 1.442695, %v2717_v6 }
0x142c   :  { %vm2598_vm11 = vcmp.ge.f32.partialorder %v8860_v9, 0.0  ;;  %v2589_v55 = vmul.f32 0.5, %v8845_v44  ;;  %vm2953_vm12 = vcmask 523264   ;;  %vm2955_vm13 = vcmask 785408  }
0x142d   :  { %v2699_v10 = vmul.f32 %v2695_v36, %v2628_v3  ;;  %v2649_v45 = vadd.f32 %v6651_v34, %v2648_v33  ;;  %v2684_v49 = vmul.f32 %v2680_v42, %v2643_v62  ;;  %6658 = vpow2.f32 %v2723_v4 }
0x142e   :  { %v6653_v18 = vpop.eup %6652  ;;  %v2718_v33 = vmul.f32 %v2714_v28, %v8863_v17 }
0x142f   :  { %v2703_v52 = vadd.f32 0.2548296, %v2699_v10  ;;  %v2653_v41 = vsel %vm2652_vm15, %v6651_v34, %v2649_v45  ;;  %v2688_v56 = vadd.f32 1.4214138, %v2684_v49  ;;  %v2661_v0 = vmul.f32 %v6653_v18, %v2614_v31  ;;  %v6655_v29 = vpop.eup %6654 }
0x1430   :  { %v2658_v43 = vsel %vm2655_vm2, %v2657_v50, %v2653_v41  ;;  %vm2666_vm3 = vweird.f32 %v6653_v18  ;;  %v6657_v26 = vpop.eup %6656  ;;  %v2587_v50 = vmul.f32 0.5, %v8826_v47  ;;  %v2725_v41 = vmul.f32 1.442695, %v2718_v33 }
0x1431   :  { %v2707_v59 = vmul.f32 %v2703_v52, %v2628_v3  ;;  %v2677_v25 = vmul.f32 1.0614054, %v2658_v43  ;;  %v2692_v13 = vmul.f32 %v2688_v56, %v2643_v62  ;;  %v2662_v22 = vsub.f32 1.0, %v2661_v0  ;;  %vm2667_vm6 = vmor %vm2665_vm4, %vm2666_vm3 }
0x1432   :  { %v2588_v52 = vmul.f32 0.5, %v8834_v32  ;;  %6660 = vpow2.f32 %v2725_v41  ;;  %v2601_v32 = vsel %vm2597_vm10, 1.0, %v7823_v16  ;;  %vm3252_vm10 = vcmask 27648  }
0x1433   :  { %v2681_v1 = vadd.f32 -1.4531521, %v2677_v25  ;;  %v2727_v8 = vmul.f32 %v6655_v29, %v2707_v59  ;;  %v2696_v39 = vadd.f32 -0.28449672, %v2692_v13  ;;  %v2663_v51 = vmul.f32 %v6653_v18, %v2662_v22  ;;  %v6659_v56 = vpop.eup %6658 }
0x1435   :  { %v2685_v61 = vmul.f32 %v2681_v1, %v2658_v43  ;;  %v2700_v14 = vmul.f32 %v2696_v39, %v2643_v62  ;;  %v2664_v3 = vadd.f32 %v6653_v18, %v2663_v51  ;;  %v2731_v20 = vsub.f32 1.0, %v2727_v8 }
0x1436   :  { %v2602_v39 = vsel %vm2598_vm11, 1.0, %v7823_v16  ;;  %vm3279_vm11 = vcmask 31744  }
0x1437   :  { %v2689_v30 = vadd.f32 1.4214138, %v2685_v61  ;;  %v2704_v34 = vadd.f32 0.2548296, %v2700_v14  ;;  %v2668_v24 = vsel %vm2667_vm6, %v6653_v18, %v2664_v3  ;;  %v2735_v21 = vmul.f32 %v2731_v20, %v2599_v27 }
0x1438   :  { %v2673_v2 = vsel %vm2670_vm8, %v2672_v63, %v2668_v24  ;;  %v6661_v47 = vpop.eup %6660  ;;  %v2590_v61 = vmul.f32 0.5, %v8856_v19  ;;  %v6500_v63 = vld [vmem:[#allocation20] ss:$0 sm:$0xff] }
0x1439   :  { %v2693_v23 = vmul.f32 %v2689_v30, %v2658_v43  ;;  %v2708_v12 = vmul.f32 %v2704_v34, %v2643_v62  ;;  %v2678_v35 = vmul.f32 1.0614054, %v2673_v2  ;;  %v2600_v62 = vsel %vm2596_vm9, 1.0, %v7823_v16 }
0x143a   :  { %v2739_v15 = vadd.f32 1.0, %v2735_v21  ;;  %vm3283_vm9 = vcmask 1041408  }
0x143b   :  { %v2697_v31 = vadd.f32 -0.28449672, %v2693_v23  ;;  %v2728_v38 = vmul.f32 %v6657_v26, %v2708_v12  ;;  %v2682_v53 = vadd.f32 -1.4531521, %v2678_v35 }
0x143c   :  { %v2743_v58 = vmul.f32 %v2739_v15, %v2587_v50 }
0x143d   :  { %v2701_v5 = vmul.f32 %v2697_v31, %v2658_v43  ;;  %v2732_v36 = vsub.f32 1.0, %v2728_v38  ;;  %v2686_v40 = vmul.f32 %v2682_v53, %v2673_v2 }
0x143f   :  { %v2705_v42 = vadd.f32 0.2548296, %v2701_v5  ;;  %v2736_v10 = vmul.f32 %v2732_v36, %v2600_v62  ;;  %v2690_v45 = vadd.f32 1.4214138, %v2686_v40  ;;  %v7825_v62 = vmov 128.0   ;;  %v6253_v40 = vld [vmem:[%s9517_s1 + $0x38] sm:$0xff] }
0x1440   :  { %6662 = vrcp.f32 %v7825_v62  ;;  %3059 = vmatpush.bf16.msra.mxu3 %v6253_v40  ;;  %v6257_v62 = vld [vmem:[%s9518_s2 + $0x14] sm:$0xf0]  ;;  %v6256_v40 = vld [vmem:[%s9518_s2 + $0x14] sm:$0xf] }
0x1441   :  { %v2709_v49 = vmul.f32 %v2705_v42, %v2658_v43  ;;  %v2740_v11 = vadd.f32 1.0, %v2736_v10  ;;  %v2694_v18 = vmul.f32 %v2690_v45, %v2673_v2 }
0x1443   :  { %v2744_v59 = vmul.f32 %v2740_v11, %v2588_v52  ;;  %v2698_v0 = vadd.f32 -0.28449672, %v2694_v18  ;;  %v2729_v17 = vmul.f32 %v6659_v56, %v2709_v49  ;;  %v6252_v56 = vld [vmem:[%s9517_s1 + $0x30] sm:$0xff] }
0x1444   :  { %3060 = vmatpush.bf16.msra.mxu3 %v6252_v56 }
0x1445   :  { %v2763_v25 = vpack.c.bf16 %v2744_v59, %v2743_v58  ;;  %v2702_v13 = vmul.f32 %v2698_v0, %v2673_v2  ;;  %v2733_v43 = vsub.f32 1.0, %v2729_v17  ;;  %v6251_v58 = vld [vmem:[%s9517_s1 + $0x28] sm:$0xff]  ;;  %v6250_v59 = vld [vmem:[%s9517_s1 + $0x20] sm:$0xff]  ;;  %v6249_v0 = vld [vmem:[%s9517_s1 + $0x18] sm:$0xff] }
0x1446   :  { %v6663_v42 = vpop.eup %6662  ;;  %v6248_v17 = vld [vmem:[%s9517_s1 + $0x10] sm:$0xff] }
0x1447   :  { %2821 = vmatmul.bf16.vlgmr.msrb.gmra.mxu0 %v2763_v25  ;;  %v2706_v37 = vadd.f32 0.2548296, %v2702_v13  ;;  %v2737_v1 = vmul.f32 %v2733_v43, %v2601_v32  ;;  %v2962_v15 = vmul.f32 128.0, %v6663_v42  ;;  %vm2966_vm14 = vweird.f32 %v6663_v42  ;;  %v6247_v25 = vld [vmem:[%s9517_s1 + $0x8] sm:$0xff]  ;;  %v6246_v13 = vld [vmem:[%s9517_s1] sm:$0xff] }
0x1448   :  { %3061 = vmatpush.bf16.msra.mxu3 %v6251_v58 }
0x1449   :  { %v2710_v29 = vmul.f32 %v2706_v37, %v2673_v2  ;;  %v2741_v51 = vadd.f32 1.0, %v2737_v1  ;;  %v2868_v2 = vld [vmem:[%s9513_s24] sm:$0xff]  ;;  %v2963_v10 = vsub.f32 1.0, %v2962_v15  ;;  %v5856_v15 = vld [vmem:[%s9518_s2 + $0x18] sm:$0xf0] }
0x144b   :  { %v2730_v22 = vmul.f32 %v6661_v47, %v2710_v29  ;;  %v2745_v14 = vmul.f32 %v2741_v51, %v2589_v55  ;;  %v2964_v45 = vmul.f32 %v6663_v42, %v2963_v10  ;;  %v5859_v10 = vor.u32 %v6256_v40, %v5856_v15 }
0x144c   :  { %3062 = vmatpush.bf16.msra.mxu3 %v6250_v59 }
0x144d   :  { %v2734_v8 = vsub.f32 1.0, %v2730_v22  ;;  %v2965_v49 = vadd.f32 %v6663_v42, %v2964_v45  ;;  %v5846_v45 = vld [vmem:[%s9518_s2] sm:$0xf] }
0x144f   :  { %v2738_v7 = vmul.f32 %v2734_v8, %v2602_v39  ;;  %v2967_v50 = vsel %vm2966_vm14, %v6663_v42, %v2965_v49  ;;  %v6255_v49 = vld [vmem:[%s9518_s2 + $0x4] sm:$0xf0] }
0x1450   :  { %3063 = vmatpush.bf16.msra.mxu3 %v6249_v0 }
0x1451   :  { %v2742_v46 = vadd.f32 1.0, %v2738_v7  ;;  %v6501_v7 = vld [vmem:[#allocation22] ss:$0 sm:$0xff] }
0x1453   :  { %v2746_v6 = vmul.f32 %v2742_v46, %v2590_v61  ;;  %v6502_v61 = vld [vmem:[#allocation23] ss:$0 sm:$0xff] }
0x1454   :  { %3064 = vmatpush.bf16.msra.mxu3 %v6248_v17 }
0x1455   :  { %v2764_v3 = vpack.c.bf16 %v2746_v6, %v2745_v14 }
0x1457   :  { %2826 = vmatmul.bf16.gmra.mxu0 %v2764_v3 }
0x1458   :  { %3065 = vmatpush.bf16.msra.mxu3 %v6247_v25 }
0x145c   :  { %3066 = vmatpush.bf16.msra.mxu3 %v6246_v13 }
0x14c4   :  { %v2822_v30 = vpop.f32.mrf.mxu0 }
0x14c5   :  { %v2832_v19 = vadd.f32 %v2822_v30, %v8772_v57  ;;  %v2892_v57 = vld [vmem:[%s9515_s13] sm:$0xff] }
0x14c7   :  { %v2840_v28 = vadd.f32 %v6500_v63, %v2832_v19 }
0x14cc   :  { %v2824_v20 = vpop.f32.mrf.mxu0 }
0x14cd   :  { %v2833_v44 = vadd.f32 %v2824_v20, %v8777_v60  ;;  %v2916_v60 = vld [vmem:[%s9516_s20] sm:$0xff] }
0x14cf   :  { %v2841_v4 = vadd.f32 %v6500_v63, %v2833_v44 }
0x14d4   :  { %v2827_v34 = vpop.f32.mrf.mxu0 }
0x14d5   :  { %v2834_v24 = vadd.f32 %v2827_v34, %v8782_v48  ;;  %v2844_v48 = vld [vmem:[%s9514_s25] sm:$0xff]  ;;  %v7826_v34 = vmov 64.0  }
0x14d7   :  { %v2842_v12 = vadd.f32 %v6500_v63, %v2834_v24 }
0x14dc   :  { %v2829_v9 = vpop.f32.mrf.mxu0 }
0x14dd   :  { %v2835_v23 = vadd.f32 %v2829_v9, %v8787_v54 }
0x14df   :  { %v2843_v26 = vadd.f32 %v6500_v63, %v2835_v23 }
0x14e1   :  { %2860 = vmatpush.msrb.mxu2 %v2843_v26  ;;  %2884 = vmatpush.msra.mxu1 %v2843_v26 }
0x14e3   :  { %2861 = vmatpush.msrb.mxu2 %v2842_v12  ;;  %2885 = vmatpush.msra.mxu1 %v2842_v12 }
0x14e5   :  { %2862 = vmatpush.msrb.mxu2 %v2841_v4  ;;  %2886 = vmatpush.msra.mxu1 %v2841_v4 }
0x14e7   :  { %2863 = vmatpush.msrb.mxu2 %v2840_v28  ;;  %2887 = vmatpush.msra.mxu1 %v2840_v28 }
0x14e8   :  { %5809 = vmatmul.msk.f32.vlgmr.msra.gmra.mxu1 %vm851_vm1, %v2868_v2  ;;  %5808 = vmatmul.msk.f32.vlgmr.msrb.gmra.mxu2 %vm851_vm1, %v2844_v48  ;;  %v5870_v48 = vld [vmem:[%s9518_s2 + $0x30] sm:$0xf] }
0x14e9   :  { %2932 = vmatpush.msra.mxu2 %v2843_v26  ;;  %2908 = vmatpush.msrb.mxu1 %v2843_v26 }
0x14eb   :  { %2933 = vmatpush.msra.mxu2 %v2842_v12  ;;  %2909 = vmatpush.msrb.mxu1 %v2842_v12 }
0x14ed   :  { %2934 = vmatpush.msra.mxu2 %v2841_v4  ;;  %2910 = vmatpush.msrb.mxu1 %v2841_v4 }
0x14ef   :  { %2935 = vmatpush.msra.mxu2 %v2840_v28  ;;  %2911 = vmatpush.msrb.mxu1 %v2840_v28 }
0x14f0   :  { %5810 = vmatmul.msk.f32.vlgmr.msrb.gmra.mxu1 %vm851_vm1, %v2892_v57  ;;  %5811 = vmatmul.msk.f32.vlgmr.msra.gmra.mxu2 %vm851_vm1, %v2916_v60  ;;  %v6261_v57 = vld [vmem:[%s9518_s2 + $0x34] sm:$0xf0]  ;;  %v6260_v60 = vld [vmem:[%s9518_s2 + $0x34] sm:$0xf] }
0x1565   :  { %v2889_v54 = vpop.f32.mrf.mxu1 }
0x1566   :  { %2941 = vrot.lane.b32.xlu0 %v2889_v54, %s7824_s26  ;;  %v5871_v54 = vor.u32 %v6261_v57, %v5870_v48 }
0x1568   :  { %3173 = vmatpush.bf16.msra.mxu1 %v5871_v54 }
0x156b   :  { %v2865_v27 = vpop.f32.mrf.mxu2 }
0x156d   :  { %v2913_v35 = vpop.f32.mrf.mxu1 }
0x156e   :  { %2945 = vrot.lane.b32.xlu1 %v2913_v35, %s7819_s29 }
0x1573   :  { %v2937_v31 = vpop.f32.mrf.mxu2 }
0x1574   :  { %2949 = vrot.lane.b32.xlu2 %v2937_v31, %s7817_s6  ;;  %v5862_v31 = vld [vmem:[%s9518_s2 + $0x20] sm:$0xf] }
0x15ce   :  { %v2950_v38 = vpop.permute.xlu2 %2949 }
0x15d8   :  { %v2942_v21 = vpop.permute.xlu0 %2941 }
0x15d9   :  { %v2952_v53 = vsel %vm851_vm1, %v2865_v27, %v2942_v21  ;;  %v5872_v27 = vld [vmem:[%s9518_s2 + $0x38] sm:$0xf0]  ;;  %v6259_v21 = vld [vmem:[%s9518_s2 + $0x24] sm:$0xf0] }
0x15da   :  { %v5875_v35 = vor.u32 %v6260_v60, %v5872_v27 }
0x15dc   :  { %3186 = vmatpush.bf16.msrb.mxu2 %v5875_v35 }
0x15e0   :  { %v2946_v5 = vpop.permute.xlu1 %2945 }
0x15e1   :  { %v2954_v36 = vsel %vm2953_vm12, %v2952_v53, %v2946_v5  ;;  %v5863_v53 = vor.u32 %v6259_v21, %v5862_v31  ;;  %v5864_v5 = vld [vmem:[%s9518_s2 + $0x28] sm:$0xf0] }
0x15e2   :  { %v2956_v33 = vsel %vm2955_vm13, %v2954_v36, %v2950_v38  ;;  %v6258_v38 = vld [vmem:[%s9518_s2 + $0x24] sm:$0xf] }
0x15e3   :  { %2959 = vadd.xlane.f32.xlu0 %v2956_v33  ;;  %v5867_v36 = vor.u32 %v6258_v38, %v5864_v5  ;;  %3174 = vmatpush.bf16.msra.mxu1 %v5863_v53 }
0x15e5   :  { %3187 = vmatpush.bf16.msrb.mxu2 %v5867_v36 }
0x15e9   :  { %3188 = vmatpush.bf16.msrb.mxu2 %v5859_v10 }
0x1656   :  { %v2960_v52 = vpop.xlane.xlu0 %2959 }
0x1657   :  { %v2968_v11 = vmul.f32 %v2967_v50, %v2960_v52  ;;  %v5847_v52 = vor.u32 %v6255_v49, %v5846_v45 }
0x1659   :  { %v2969_v41 = vsub.f32 %v2956_v33, %v2968_v11  ;;  %v5854_v33 = vld [vmem:[%s9518_s2 + $0x10] sm:$0xf]  ;;  %v5848_v11 = vld [vmem:[%s9518_s2 + $0x8] sm:$0xf0] }
0x165a   :  { %v5855_v42 = vor.u32 %v6257_v62, %v5854_v33 }
0x165b   :  { %v2970_v18 = vmul.f32 %v2969_v41, %v2969_v41 }
0x165c   :  { %3175 = vmatpush.bf16.msra.mxu1 %v5855_v42 }
0x165d   :  { %2971 = vadd.xlane.f32.xlu2 %v2970_v18 }
0x1660   :  { %3176 = vmatpush.bf16.msra.mxu1 %v5847_v52 }
0x16d0   :  { %v2972_v37 = vpop.xlane.xlu2 %2971 }
0x16d1   :  { %v2973_v43 = vmul.f32 %v2972_v37, %v2967_v50  ;;  %v6254_v50 = vld [vmem:[%s9518_s2 + $0x4] sm:$0xf] }
0x16d3   :  { %v2974_v29 = vadd.f32 1e-05, %v2973_v43  ;;  %v6503_v43 = vld [vmem:[#allocation25] ss:$0 sm:$0xff] }
0x16d5   :  { %6664 = vrsqrt.f32 %v2974_v29  ;;  %vm2981_vm2 = vweird.f32 %v2974_v29 }
0x16d6   :  { %6666 = vrcp.f32 %v7826_v34 }
0x16db   :  { %v6665_v47 = vpop.eup %6664 }
0x16dc   :  { %v2976_v32 = vmul.f32 %v6665_v47, %v2974_v29  ;;  %vm2982_vm15 = vweird.f32 %v6665_v47  ;;  %v6667_v9 = vpop.eup %6666 }
0x16dd   :  { %vm2983_vm3 = vmor %vm2981_vm2, %vm2982_vm15  ;;  %v3078_v63 = vmul.f32 64.0, %v6667_v9  ;;  %vm3082_vm4 = vweird.f32 %v6667_v9 }
0x16de   :  { %v2977_v22 = vmul.f32 %v6665_v47, %v2976_v32  ;;  %v6504_v32 = vld [vmem:[#allocation26] ss:$0 sm:$0xff] }
0x16df   :  { %v3079_v24 = vsub.f32 1.0, %v3078_v63 }
0x16e0   :  { %v2978_v1 = vmul.f32 0.5, %v2977_v22 }
0x16e1   :  { %v3080_v23 = vmul.f32 %v6667_v9, %v3079_v24 }
0x16e2   :  { %v2979_v8 = vsub.f32 1.5, %v2978_v1 }
0x16e3   :  { %v3081_v44 = vadd.f32 %v6667_v9, %v3080_v23 }
0x16e4   :  { %v2980_v39 = vmul.f32 %v6665_v47, %v2979_v8 }
0x16e5   :  { %v8914_v26 = vsel %vm3082_vm4, %v6667_v9, %v3081_v44 }
0x16e6   :  { %v2984_v51 = vsel %vm2983_vm3, %v6665_v47, %v2980_v39  ;;  %v3120_v39 = vld [vmem:[%s9519_s0] sm:$0x3] }
0x16e7   :  { %v2985_v55 = vmul.f32 %v2984_v51, %v2969_v41  ;;  %v5851_v41 = vor.u32 %v6254_v50, %v5848_v11  ;;  %v3203_v11 = vld [vmem:[%s9520_s17] sm:$0xf] }
0x16e9   :  { %v2989_v46 = vmul.f32 %v6501_v7, %v2985_v55  ;;  %3189 = vmatpush.bf16.msrb.mxu2 %v5851_v41  ;;  %v3122_v7 = vperm.slane %v3120_v39, 0 }
0x16eb   :  { %v2993_v14 = vadd.f32 %v6502_v61, %v2989_v46 }
0x16ed   :  { %v3010_v6 = vpack.c.bf16 %v2993_v14, %v2993_v14  ;;  %v3123_v14 = vperm.slane %v3120_v39, 1 }
0x16ef   :  { %3067 = vmatmul.bf16.vlgmr.msra.gmra.mxu3 %v3010_v6 }
0x1772   :  { %v8910_v3 = vpop.f32.mrf.mxu3 }
0x1773   :  { %v3074_v30 = vsel %vm2953_vm12, %v8910_v3, 0.0 }
0x1774   :  { %3075 = vadd.xlane.f32.xlu1 %v3074_v30 }
0x177a   :  { %v3070_v20 = vpop.f32.mrf.mxu3 }
0x17e7   :  { %v3076_v19 = vpop.xlane.xlu1 %3075 }
0x17e8   :  { %v3084_v12 = vmul.f32 %v8914_v26, %v3076_v19 }
0x17ea   :  { %v3085_v4 = vsub.f32 %v8910_v3, %v3084_v12 }
0x17ec   :  { %v3086_v28 = vmul.f32 %v3085_v4, %v3085_v4 }
0x17ee   :  { %v3087_v2 = vsel %vm2953_vm12, %v3086_v28, 0.0 }
0x17ef   :  { %3088 = vadd.xlane.f32.xlu0 %v3087_v2 }
0x1862   :  { %v3089_v18 = vpop.xlane.xlu0 %3088 }
0x1863   :  { %v3090_v56 = vmul.f32 %v3089_v18, %v8914_v26 }
0x1865   :  { %v3091_v58 = vadd.f32 1e-05, %v3090_v56 }
0x1867   :  { %6668 = vrsqrt.f32 %v3091_v58  ;;  %vm3098_vm6 = vweird.f32 %v3091_v58 }
0x186d   :  { %v6669_v59 = vpop.eup %6668 }
0x186e   :  { %v3093_v0 = vmul.f32 %v6669_v59, %v3091_v58  ;;  %vm3099_vm5 = vweird.f32 %v6669_v59 }
0x186f   :  { %vm3100_vm8 = vmor %vm3098_vm6, %vm3099_vm5 }
0x1870   :  { %v3094_v17 = vmul.f32 %v6669_v59, %v3093_v0 }
0x1872   :  { %v3095_v25 = vmul.f32 0.5, %v3094_v17 }
0x1874   :  { %v3096_v13 = vsub.f32 1.5, %v3095_v25  ;;  %v5882_v25 = vld [vmem:[%s9520_s17 + $0x4] sm:$0xf] }
0x1876   :  { %v3097_v37 = vmul.f32 %v6669_v59, %v3096_v13 }
0x1878   :  { %v3101_v29 = vsel %vm3100_vm8, %v6669_v59, %v3097_v37 }
0x1879   :  { %v3102_v47 = vmul.f32 %v3101_v29, %v3085_v4 }
0x187b   :  { %v3106_v22 = vmul.f32 %v6503_v43, %v3102_v47 }
0x187d   :  { %v3110_v1 = vadd.f32 %v6504_v32, %v3106_v22 }
0x187f   :  { %v3119_v8 = vpack.c.bf16 %v3110_v1, %v3110_v1 }
0x1881   :  { %5876 = vmatmul.msk.bf16.vlgmr.msra.gmra.mxu1 %vm2953_vm12, %v3119_v8  ;;  %5877 = vmatmul.msk.bf16.vlgmr.msrb.gmra.mxu2 %vm2953_vm12, %v3119_v8  ;;  %v5887_v8 = vld [vmem:[%s9520_s17 + $0x8] sm:$0xf] }
0x18fe   :  { %v3178_v51 = vpop.f32.mrf.mxu1 }
0x18ff   :  { %v3179_v55 = vadd.f32 %v3178_v51, %v3122_v7 }
0x1901   :  { %v3196_v61 = vrot.slane %v3179_v55, 4  ;;  %v3201_v46 = vpack.c.bf16 %v3179_v55, %v3179_v55 }
0x1903   :  { %v3202_v6 = vpack.c.bf16 %v3196_v61, %v3196_v61  ;;  %v3205_v30 = vunpack.c.l.b16 %v3201_v46 }
0x1904   :  { %v3191_v20 = vpop.f32.mrf.mxu2 }
0x1905   :  { %v3206_v34 = vpack.c.b16 %v3205_v30, %v3205_v30  ;;  %v3229_v9 = vunpack.c.l.b16 %v3202_v6  ;;  %v3192_v63 = vadd.f32 %v3191_v20, %v3123_v14  ;;  %v5892_v30 = vld [vmem:[%s9520_s17 + $0xc] sm:$0xf] }
0x1906   :  { %v3180_v24 = vpop.f32.mrf.mxu1 }
0x1907   :  { %v3230_v23 = vpack.c.b16 %v3229_v9, %v3229_v9  ;;  %v3199_v44 = vrot.slane %v3192_v63, 4  ;;  %v8939_v19 = vpack.c.bf16 %v3192_v63, %v3192_v63  ;;  %3323 = vrot.lane.b32.xlu1 %v3206_v34, %s7821_s16  ;;  %3207 = vrot.lane.b32.xlu2 %v3206_v34, %s7819_s29 }
0x1909   :  { %v8943_v12 = vpack.c.bf16 %v3199_v44, %v3199_v44  ;;  %3231 = vrot.lane.b32.xlu0 %v3230_v23, %s7819_s29  ;;  %v3285_v4 = vsel %vm3283_vm9, %v8939_v19, 0 }
0x190a   :  { %3294 = vmatpush.bf16.msrb.mxu1 %v3285_v4 }
0x190b   :  { %v3304_v28 = vsel %vm3283_vm9, %v8943_v12, 0 }
0x190c   :  { %v3193_v2 = vpop.f32.mrf.mxu2  ;;  %3313 = vmatpush.bf16.msra.mxu2 %v3304_v28 }
0x190d   :  { %v3416_v2 = vunpack.c.l.b16 %v8943_v12 }
0x190f   :  { %3321 = vrot.lane.b32.xlu2 %v3206_v34, %s7820_s5  ;;  %3344 = vrot.lane.b32.xlu1 %v3230_v23, %s7820_s5 }
0x1911   :  { %3346 = vrot.lane.b32.xlu0 %v3230_v23, %s7821_s16 }
0x1917   :  { %3466 = vrot.lane.b32.xlu2 %v3230_v23, %s7824_s26  ;;  %3441 = vrot.lane.b32.xlu1 %v3206_v34, %s7817_s6 }
0x1919   :  { %3443 = vrot.lane.b32.xlu0 %v3206_v34, %s7824_s26 }
0x191f   :  { %3557 = vrot.lane.b32.xlu2 %v3206_v34, %s7822_s14  ;;  %3580 = vrot.lane.b32.xlu1 %v3230_v23, %s7822_s14 }
0x1921   :  { %3464 = vrot.lane.b32.xlu0 %v3230_v23, %s7817_s6 }
0x1927   :  { %3578 = vrot.lane.b32.xlu2 %v3230_v23, %s7818_s15 }
0x1929   :  { %3555 = vrot.lane.b32.xlu0 %v3206_v34, %s7818_s15 }
0x1961   :  { %v3208_v48 = vpop.permute.xlu2 %3207 }
0x1962   :  { %v3213_v57 = vsel %vm1125_vm7, %v3208_v48, 0  ;;  %v3417_v48 = vpack.c.b16 %v3416_v2, %v3416_v2 }
0x1963   :  { %3222 = vmatpush.bf16.xpose.msrb.mxu3 %v3213_v57 }
0x1969   :  { %v3322_v60 = vpop.permute.xlu2 %3321 }
0x196a   :  { %5878 = vmatmul.msk.bf16.vlgmr.msrb.gmra.mxu3 %vm1125_vm7, %v3201_v46 }
0x1971   :  { %v3467_v21 = vpop.permute.xlu2 %3466 }
0x1972   :  { %v3472_v36 = vsel %vm1125_vm7, %v3467_v21, 0 }
0x1979   :  { %v3324_v54 = vpop.permute.xlu1 %3323  ;;  %v3558_v62 = vpop.permute.xlu2 %3557 }
0x197a   :  { %v3329_v27 = vsel %vm1125_vm7, %v3324_v54, 0  ;;  %v3563_v15 = vsel %vm1125_vm7, %v3558_v62, 0 }
0x197b   :  { %3338 = vmatpush.bf16.xpose.msra.mxu3 %v3329_v27  ;;  %v3232_v35 = vpop.permute.xlu0 %3231 }
0x197c   :  { %v3237_v31 = vsel %vm1125_vm7, %v3232_v35, 0 }
0x197d   :  { %3246 = vmatpush.bf16.xpose.msra.mxu0 %v3237_v31 }
0x1981   :  { %v3345_v38 = vpop.permute.xlu1 %3344  ;;  %v3579_v52 = vpop.permute.xlu2 %3578 }
0x1982   :  { %5883 = vmatmul.msk.bf16.vlgmr.msra.gmra.mxu3 %vm1125_vm7, %v3322_v60 }
0x1983   :  { %v3347_v53 = vpop.permute.xlu0 %3346 }
0x1984   :  { %v3352_v5 = vsel %vm1125_vm7, %v3347_v53, 0  ;;  %5879 = vmatmul.msk.bf16.vlgmr.msra.gmra.mxu0 %vm1125_vm7, %v3202_v6 }
0x1985   :  { %3361 = vmatpush.bf16.xpose.msrb.mxu0 %v3352_v5 }
0x1989   :  { %v3442_v33 = vpop.permute.xlu1 %3441 }
0x198b   :  { %v3444_v40 = vpop.permute.xlu0 %3443 }
0x198c   :  { %v3449_v42 = vsel %vm1125_vm7, %v3444_v40, 0 }
0x198d   :  { %3481 = vmatpush.bf16.xpose.msra.mxu0 %v3472_v36  ;;  %3458 = vmatpush.bf16.xpose.msrb.mxu3 %v3449_v42 }
0x1991   :  { %v3581_v10 = vpop.permute.xlu1 %3580 }
0x1992   :  { %v3586_v45 = vsel %vm1125_vm7, %v3581_v10, 0 }
0x1993   :  { %v3465_v49 = vpop.permute.xlu0 %3464 }
0x1994   :  { %5884 = vmatmul.msk.bf16.vlgmr.msrb.gmra.mxu0 %vm1125_vm7, %v3345_v38  ;;  %5888 = vmatmul.msk.bf16.vlgmr.msrb.gmra.mxu3 %vm1125_vm7, %v3442_v33 }
0x1995   :  { %3572 = vmatpush.bf16.xpose.msra.mxu3 %v3563_v15  ;;  %3595 = vmatpush.bf16.xpose.msrb.mxu0 %v3586_v45  ;;  %v3392_v15 = vunpack.c.l.b16 %v8939_v19 }
0x1997   :  { %v3393_v10 = vpack.c.b16 %v3392_v15, %v3392_v15 }
0x199b   :  { %v3556_v50 = vpop.permute.xlu0 %3555 }
0x19a4   :  { %5889 = vmatmul.msk.bf16.vlgmr.msra.gmra.mxu0 %vm1125_vm7, %v3465_v49  ;;  %5893 = vmatmul.msk.bf16.vlgmr.msra.gmra.mxu3 %vm1125_vm7, %v3556_v50 }
0x19b4   :  { %5894 = vmatmul.msk.bf16.vlgmr.msrb.gmra.mxu0 %vm1125_vm7, %v3579_v52 }
0x19ed   :  { %v3224_v41 = vpop.f32.mrf.mxu3 }
0x19ee   :  { %v3225_v18 = vadd.f32 %v3224_v41, %v3203_v11 }
0x19f0   :  { %v3253_v56 = vsel %vm3252_vm10, %v3225_v18, -inf }
0x19f1   :  { %3254 = vmax.xlane.f32.xlu0 %v3253_v56 }
0x19f5   :  { %v3226_v58 = vpop.f32.mrf.mxu3 }
0x1a01   :  { %v3248_v59 = vpop.f32.mrf.mxu0 }
0x1a02   :  { %v3249_v0 = vadd.f32 %v3248_v59, %v3203_v11 }
0x1a04   :  { %v3256_v17 = vsel %vm3252_vm10, %v3249_v0, -inf }
0x1a05   :  { %3257 = vmax.xlane.f32.xlu1 %v3256_v17  ;;  %v3340_v13 = vpop.f32.mrf.mxu3 }
0x1a06   :  { %v3341_v37 = vadd.f32 %v5882_v25, %v3340_v13 }
0x1a08   :  { %v3367_v29 = vsel %vm3252_vm10, %v3341_v37, -inf }
0x1a09   :  { %v3250_v43 = vpop.f32.mrf.mxu0 }
0x1a0d   :  { %v3342_v47 = vpop.f32.mrf.mxu3  ;;  %3368 = vmax.xlane.f32.xlu1 %v3367_v29 }
0x1a11   :  { %v3363_v32 = vpop.f32.mrf.mxu0 }
0x1a12   :  { %v8982_v22 = vadd.f32 %v5882_v25, %v3363_v32 }
0x1a14   :  { %v3370_v1 = vsel %vm3252_vm10, %v8982_v22, -inf }
0x1a15   :  { %3371 = vmax.xlane.f32.xlu2 %v3370_v1 }
0x1a17   :  { %v3460_v39 = vpop.f32.mrf.mxu3 }
0x1a18   :  { %v3461_v7 = vadd.f32 %v5887_v8, %v3460_v39 }
0x1a19   :  { %v3365_v51 = vpop.f32.mrf.mxu0 }
0x1a1a   :  { %v3487_v55 = vsel %vm3252_vm10, %v3461_v7, -inf }
0x1a1d   :  { %3488 = vmax.xlane.f32.xlu2 %v3487_v55 }
0x1a1f   :  { %v3462_v61 = vpop.f32.mrf.mxu3 }
0x1a21   :  { %v3483_v46 = vpop.f32.mrf.mxu0 }
0x1a22   :  { %v3484_v14 = vadd.f32 %v5887_v8, %v3483_v46 }
0x1a24   :  { %v3490_v6 = vsel %vm3252_vm10, %v3484_v14, -inf }
0x1a25   :  { %3491 = vmax.xlane.f32.xlu0 %v3490_v6 }
0x1a27   :  { %v3574_v20 = vpop.f32.mrf.mxu3 }
0x1a28   :  { %v8990_v34 = vadd.f32 %v5892_v30, %v3574_v20 }
0x1a29   :  { %v3485_v9 = vpop.f32.mrf.mxu0 }
0x1a2a   :  { %v3601_v63 = vsel %vm3252_vm10, %v8990_v34, -inf }
0x1a2b   :  { %3602 = vmax.xlane.f32.xlu2 %v3601_v63 }
0x1a2f   :  { %v3576_v24 = vpop.f32.mrf.mxu3 }
0x1a31   :  { %v3597_v23 = vpop.f32.mrf.mxu0 }
0x1a32   :  { %v3598_v44 = vadd.f32 %v5892_v30, %v3597_v23 }
0x1a34   :  { %v3604_v4 = vsel %vm3252_vm10, %v3598_v44, -inf }
0x1a35   :  { %3605 = vmax.xlane.f32.xlu1 %v3604_v4 }
0x1a39   :  { %v3599_v28 = vpop.f32.mrf.mxu0 }
0x1a43   :  { %3532 = vrot.lane.b32.xlu2 %v3417_v48, %s7817_s6 }
0x1a64   :  { %v3255_v57 = vpop.xlane.xlu0 %3254 }
0x1a65   :  { %v3259_v60 = vsub.f32 %v3225_v18, %v3255_v57 }
0x1a67   :  { %v3261_v54 = vmul.f32 1.442695, %v3259_v60 }
0x1a69   :  { %6670 = vpow2.f32 %v3261_v54 }
0x1a6f   :  { %v6671_v27 = vpop.eup %6670 }
0x1a70   :  { %v3265_v35 = vsel %vm3252_vm10, %v6671_v27, 0.0 }
0x1a71   :  { %3266 = vadd.xlane.f32.xlu1 %v3265_v35 }
0x1a78   :  { %v3258_v31 = vpop.xlane.xlu1 %3257 }
0x1a79   :  { %v3260_v21 = vsub.f32 %v3249_v0, %v3258_v31 }
0x1a7b   :  { %v3263_v38 = vmul.f32 1.442695, %v3260_v21 }
0x1a7d   :  { %6672 = vpow2.f32 %v3263_v38 }
0x1a80   :  { %v3369_v53 = vpop.xlane.xlu1 %3368 }
0x1a81   :  { %v3373_v5 = vsub.f32 %v3341_v37, %v3369_v53 }
0x1a83   :  { %v6673_v36 = vpop.eup %6672  ;;  %v3375_v33 = vmul.f32 1.442695, %v3373_v5 }
0x1a84   :  { %v3268_v12 = vsel %vm3252_vm10, %v6673_v36, 0.0 }
0x1a85   :  { %6674 = vpow2.f32 %v3375_v33  ;;  %3269 = vadd.xlane.f32.xlu0 %v3268_v12 }
0x1a88   :  { %v3372_v42 = vpop.xlane.xlu2 %3371 }
0x1a89   :  { %v3374_v25 = vsub.f32 %v8982_v22, %v3372_v42 }
0x1a8a   :  { %3418 = vrot.lane.b32.xlu1 %v3417_v48, %s7820_s5 }
0x1a8b   :  { %v9000_v62 = vpop.eup %6674  ;;  %v3377_v43 = vmul.f32 1.442695, %v3374_v25 }
0x1a8c   :  { %v3379_v40 = vsel %vm3252_vm10, %v9000_v62, 0.0 }
0x1a8d   :  { %3380 = vadd.xlane.f32.xlu2 %v3379_v40 }
0x1a90   :  { %v3489_v45 = vpop.xlane.xlu2 %3488 }
0x1a91   :  { %v3493_v52 = vsub.f32 %v3461_v7, %v3489_v45 }
0x1a93   :  { %v3495_v41 = vmul.f32 1.442695, %v3493_v52 }
0x1a98   :  { %v3492_v49 = vpop.xlane.xlu0 %3491 }
0x1a99   :  { %v3494_v50 = vsub.f32 %v3484_v14, %v3492_v49  ;;  %3394 = vrot.lane.b32.xlu0 %v3393_v10, %s7820_s5 }
0x1a9b   :  { %v3497_v11 = vmul.f32 1.442695, %v3494_v50 }
0x1a9d   :  { %6676 = vpow2.f32 %v3497_v11 }
0x1a9e   :  { %6678 = vpow2.f32 %v3495_v41  ;;  %v3603_v1 = vpop.xlane.xlu2 %3602 }
0x1a9f   :  { %v3607_v7 = vsub.f32 %v8990_v34, %v3603_v1 }
0x1aa1   :  { %v3609_v51 = vmul.f32 1.442695, %v3607_v7 }
0x1aa3   :  { %v9006_v18 = vpop.eup %6676 }
0x1aa4   :  { %v3502_v56 = vsel %vm3252_vm10, %v9006_v18, 0.0  ;;  %v9010_v59 = vpop.eup %6678 }
0x1aa5   :  { %3503 = vadd.xlane.f32.xlu2 %v3502_v56  ;;  %v3499_v17 = vsel %vm3252_vm10, %v9010_v59, 0.0 }
0x1aa6   :  { %v3533_v55 = vpop.permute.xlu2 %3532 }
0x1aa7   :  { %v3538_v24 = vsel %vm3283_vm9, %v3533_v55, 0 }
0x1aa8   :  { %v3606_v58 = vpop.xlane.xlu1 %3605 }
0x1aa9   :  { %v3608_v19 = vsub.f32 %v3598_v44, %v3606_v58 }
0x1aab   :  { %v3611_v0 = vmul.f32 1.442695, %v3608_v19 }
0x1aad   :  { %6680 = vpow2.f32 %v3611_v0  ;;  %3500 = vadd.xlane.f32.xlu2 %v3499_v17 }
0x1aae   :  { %6682 = vpow2.f32 %v3377_v43 }
0x1ab3   :  { %v9015_v13 = vpop.eup %6680 }
0x1ab4   :  { %v3616_v37 = vsel %vm3252_vm10, %v9015_v13, 0.0  ;;  %v6683_v29 = vpop.eup %6682 }
0x1ab5   :  { %3617 = vadd.xlane.f32.xlu1 %v3616_v37  ;;  %v3382_v47 = vsel %vm3252_vm10, %v6683_v29, 0.0 }
0x1ac3   :  { %3383 = vadd.xlane.f32.xlu0 %v3382_v47 }
0x1ac5   :  { %3646 = vrot.lane.b32.xlu2 %v3417_v48, %s7818_s15 }
0x1acd   :  { %3625 = vrot.lane.b32.xlu2 %v3393_v10, %s7818_s15 }
0x1ad7   :  { %3511 = vrot.lane.b32.xlu0 %v3393_v10, %s7817_s6 }
0x1ae4   :  { %v3267_v32 = vpop.xlane.xlu1 %3266 }
0x1ae5   :  { %6684 = vrcp.f32 %v3267_v32 }
0x1ae6   :  { %6686 = vpow2.f32 %v3609_v51 }
0x1aeb   :  { %v6685_v22 = vpop.eup %6684 }
0x1aec   :  { %v3273_v8 = vmul.f32 %v6685_v22, %v6671_v27  ;;  %v6687_v14 = vpop.eup %6686 }
0x1aed   :  { %v3613_v63 = vsel %vm3252_vm10, %v6687_v14, 0.0 }
0x1aee   :  { %v3275_v39 = vpack.c.bf16 %v3273_v8, %v3273_v8 }
0x1af0   :  { %5880 = vmatmul.msk.bf16.vlgmr.msrb.gmra.mxu1 %vm3279_vm11, %v3275_v39 }
0x1af8   :  { %v3270_v61 = vpop.xlane.xlu0 %3269 }
0x1af9   :  { %6688 = vrcp.f32 %v3270_v61  ;;  %v6265_v61 = vld [vmem:[%s9521_s9 + $0x18] sm:$0xff] }
0x1afa   :  { %3744 = vmatpush.bf16.msrb.mxu3 %v6265_v61  ;;  %v3800_v61 = vld [vmem:[%s9523_s27] sm:$0x3] }
0x1afc   :  { %v3419_v46 = vpop.permute.xlu1 %3418 }
0x1afd   :  { %v3424_v6 = vsel %vm3283_vm9, %v3419_v46, 0  ;;  %v6264_v46 = vld [vmem:[%s9521_s9 + $0x10] sm:$0xff] }
0x1afe   :  { %3433 = vmatpush.bf16.msrb.mxu2 %v3424_v6  ;;  %3745 = vmatpush.bf16.msrb.mxu3 %v6264_v46  ;;  %v6262_v6 = vld [vmem:[%s9521_s9] sm:$0xff]  ;;  %v6281_v46 = vld [vmem:[%s9524_s10 + $0x38] sm:$0xff] }
0x1aff   :  { %v6689_v30 = vpop.eup %6688 }
0x1b00   :  { %v3274_v20 = vmul.f32 %v6689_v30, %v6673_v36  ;;  %v3381_v9 = vpop.xlane.xlu2 %3380 }
0x1b01   :  { %6690 = vrcp.f32 %v3381_v9  ;;  %3614 = vadd.xlane.f32.xlu0 %v3613_v63 }
0x1b02   :  { %v3276_v34 = vpack.c.bf16 %v3274_v20, %v3274_v20 }
0x1b04   :  { %5881 = vmatmul.msk.bf16.vlgmr.msra.gmra.mxu2 %vm3279_vm11, %v3276_v34 }
0x1b05   :  { %3547 = vmatpush.bf16.msra.mxu2 %v3538_v24 }
0x1b07   :  { %v6691_v23 = vpop.eup %6690 }
0x1b08   :  { %v3387_v44 = vmul.f32 %v6691_v23, %v9000_v62 }
0x1b0a   :  { %v3389_v2 = vpack.c.bf16 %v3387_v44, %v3387_v44  ;;  %v6505_v44 = vld [vmem:[#allocation28] ss:$0 sm:$0xff] }
0x1b0b   :  { %v3395_v4 = vpop.permute.xlu0 %3394 }
0x1b0c   :  { %v3400_v28 = vsel %vm3283_vm9, %v3395_v4, 0 }
0x1b0d   :  { %3409 = vmatpush.bf16.msra.mxu1 %v3400_v28 }
0x1b10   :  { %5885 = vmatmul.msk.bf16.vlgmr.msra.gmra.mxu1 %vm3279_vm11, %v3389_v2 }
0x1b18   :  { %v3504_v48 = vpop.xlane.xlu2 %3503 }
0x1b20   :  { %v3501_v57 = vpop.xlane.xlu2 %3500 }
0x1b28   :  { %v3647_v27 = vpop.permute.xlu2 %3646  ;;  %v3618_v10 = vpop.xlane.xlu1 %3617 }
0x1b29   :  { %v3652_v21 = vsel %vm3283_vm9, %v3647_v27, 0 }
0x1b30   :  { %v3626_v5 = vpop.permute.xlu2 %3625 }
0x1b31   :  { %v3631_v62 = vsel %vm3283_vm9, %v3626_v5, 0  ;;  %v5942_v5 = vld [vmem:[%s9522_s7 + $0x38] sm:$0xf0] }
0x1b36   :  { %v3384_v60 = vpop.xlane.xlu0 %3383 }
0x1b37   :  { %6692 = vrcp.f32 %v3384_v60 }
0x1b38   :  { %6694 = vrcp.f32 %v3501_v57 }
0x1b39   :  { %6696 = vrcp.f32 %v3504_v48 }
0x1b3a   :  { %6698 = vrcp.f32 %v3618_v10  ;;  %v5924_v10 = vld [vmem:[%s9522_s7 + $0x10] sm:$0xf] }
0x1b3d   :  { %v6693_v54 = vpop.eup %6692 }
0x1b3e   :  { %v3388_v35 = vmul.f32 %v6693_v54, %v6683_v29  ;;  %v6695_v38 = vpop.eup %6694 }
0x1b3f   :  { %v3507_v53 = vmul.f32 %v6695_v38, %v9010_v59  ;;  %v6697_v36 = vpop.eup %6696  ;;  %v6272_v38 = vld [vmem:[%s9522_s7 + $0x34] sm:$0xf] }
0x1b40   :  { %v3390_v31 = vpack.c.bf16 %v3388_v35, %v3388_v35  ;;  %v3508_v40 = vmul.f32 %v6697_v36, %v9006_v18  ;;  %v6699_v45 = vpop.eup %6698  ;;  %v5945_v36 = vor.u32 %v6272_v38, %v5942_v5  ;;  %v6277_v5 = vld [vmem:[%s9524_s10 + $0x18] sm:$0xff] }
0x1b41   :  { %v3509_v42 = vpack.c.bf16 %v3507_v53, %v3507_v53  ;;  %v3622_v49 = vmul.f32 %v6699_v45, %v9015_v13  ;;  %v6269_v45 = vld [vmem:[%s9522_s7 + $0x14] sm:$0xf0] }
0x1b42   :  { %5886 = vmatmul.msk.bf16.vlgmr.msrb.gmra.mxu2 %vm3279_vm11, %v3390_v31  ;;  %v3510_v15 = vpack.c.bf16 %v3508_v40, %v3508_v40 }
0x1b43   :  { %3661 = vmatpush.bf16.msrb.mxu2 %v3652_v21  ;;  %v3624_v50 = vpack.c.bf16 %v3622_v49, %v3622_v49  ;;  %v6273_v21 = vld [vmem:[%s9522_s7 + $0x34] sm:$0xf0]  ;;  %v6268_v49 = vld [vmem:[%s9522_s7 + $0x14] sm:$0xf] }
0x1b49   :  { %v3512_v33 = vpop.permute.xlu0 %3511 }
0x1b4a   :  { %v3517_v12 = vsel %vm3283_vm9, %v3512_v33, 0  ;;  %v5932_v33 = vld [vmem:[%s9522_s7 + $0x20] sm:$0xf] }
0x1b4b   :  { %3526 = vmatpush.bf16.msrb.mxu1 %v3517_v12  ;;  %v6271_v12 = vld [vmem:[%s9522_s7 + $0x24] sm:$0xf0] }
0x1b4c   :  { %v5933_v40 = vor.u32 %v6271_v12, %v5932_v33  ;;  %v6276_v33 = vld [vmem:[%s9524_s10 + $0x10] sm:$0xff] }
0x1b4d   :  { %v6284_v12 = vld [vmem:[%s9524_s10 + $0x50] sm:$0xff] }
0x1b4e   :  { %5890 = vmatmul.msk.bf16.vlgmr.msrb.gmra.mxu1 %vm3279_vm11, %v3509_v42  ;;  %v5934_v42 = vld [vmem:[%s9522_s7 + $0x28] sm:$0xf0] }
0x1b4f   :  { %3640 = vmatpush.bf16.msra.mxu1 %v3631_v62  ;;  %v6270_v62 = vld [vmem:[%s9522_s7 + $0x24] sm:$0xf] }
0x1b52   :  { %5891 = vmatmul.msk.bf16.vlgmr.msra.gmra.mxu2 %vm3279_vm11, %v3510_v15  ;;  %v5937_v15 = vor.u32 %v6270_v62, %v5934_v42 }
0x1b53   :  { %3866 = vmatpush.bf16.msrb.mxu1 %v5945_v36  ;;  %4085 = vmatpush.bf16.msra.mxu2 %v6281_v46  ;;  %v6285_v36 = vld [vmem:[%s9524_s10 + $0x58] sm:$0xff] }
0x1b57   :  { %3867 = vmatpush.bf16.msrb.mxu1 %v5937_v15 }
0x1b62   :  { %5896 = vmatmul.msk.bf16.vlgmr.msrb.gmra.mxu2 %vm3279_vm11, %v3624_v50  ;;  %v5925_v50 = vor.u32 %v6269_v45, %v5924_v10  ;;  %v6275_v10 = vld [vmem:[%s9524_s10 + $0x8] sm:$0xff] }
0x1b63   :  { %v6283_v45 = vld [vmem:[%s9524_s10 + $0x48] sm:$0xff] }
0x1b6d   :  { %v3296_v52 = vpop.f32.mrf.mxu1 }
0x1b6e   :  { %3669 = vst [vmem:[#allocation1] ss:$2 sm:$0xff] %v3296_v52  ;;  %v5926_v52 = vld [vmem:[%s9522_s7 + $0x18] sm:$0xf0] }
0x1b74   :  { %v3615_v11 = vpop.xlane.xlu0 %3614 }
0x1b75   :  { %6700 = vrcp.f32 %v3615_v11  ;;  %v3298_v41 = vpop.f32.mrf.mxu1  ;;  %v5929_v11 = vor.u32 %v6268_v49, %v5926_v52 }
0x1b76   :  { %v5916_v41 = vld [vmem:[%s9522_s7] sm:$0xf] }
0x1b77   :  { %3868 = vmatpush.bf16.msrb.mxu1 %v5929_v11 }
0x1b7b   :  { %v6701_v18 = vpop.eup %6700 }
0x1b7c   :  { %v3621_v56 = vmul.f32 %v6701_v18, %v6687_v14  ;;  %v6263_v14 = vld [vmem:[%s9521_s9 + $0x8] sm:$0xff] }
0x1b7d   :  { %3746 = vmatpush.bf16.msrb.mxu3 %v6263_v14  ;;  %v6267_v18 = vld [vmem:[%s9522_s7 + $0x4] sm:$0xf0]  ;;  %v6289_v14 = vld [vmem:[%s9524_s10 + $0x78] sm:$0xff] }
0x1b7e   :  { %v3623_v58 = vpack.c.bf16 %v3621_v56, %v3621_v56  ;;  %v6266_v56 = vld [vmem:[%s9522_s7 + $0x4] sm:$0xf] }
0x1b80   :  { %5895 = vmatmul.msk.bf16.vlgmr.msra.gmra.mxu1 %vm3279_vm11, %v3623_v58  ;;  %v5917_v58 = vor.u32 %v6267_v18, %v5916_v41 }
0x1b81   :  { %3747 = vmatpush.bf16.msrb.mxu3 %v6262_v6  ;;  %v3802_v6 = vperm.slane %v3800_v61, 0 }
0x1b85   :  { %4098 = vmatpush.bf16.msra.mxu3 %v6289_v14 }
0x1b87   :  { %v3315_v59 = vpop.f32.mrf.mxu2 }
0x1b88   :  { %3671 = vst [vmem:[#allocation1 + $0x1] ss:$2 sm:$0xff] %v3315_v59  ;;  %v5918_v59 = vld [vmem:[%s9522_s7 + $0x8] sm:$0xf0] }
0x1b8d   :  { %v3411_v19 = vpop.f32.mrf.mxu1 }
0x1b8f   :  { %v3672_v0 = vld.sshfl [vmem:[#allocation1] sm:$0xff pattern:$0x75316420]  ;;  %v3317_v17 = vpop.f32.mrf.mxu2 }
0x1b90   :  { %3676 = vst [vmem:[#allocation1] ss:$2 sm:$0xff] %v3411_v19  ;;  %v5921_v19 = vor.u32 %v6266_v56, %v5918_v59  ;;  %v6274_v59 = vld [vmem:[%s9524_s10] sm:$0xff] }
0x1b92   :  { %3869 = vmatpush.bf16.msrb.mxu1 %v5921_v19  ;;  %v6282_v19 = vld [vmem:[%s9524_s10 + $0x40] sm:$0xff] }
0x1b95   :  { %v3413_v25 = vpop.f32.mrf.mxu1 }
0x1bc5   :  { %v3435_v13 = vpop.f32.mrf.mxu2 }
0x1bc6   :  { %3678 = vst [vmem:[#allocation1 + $0x1] ss:$2 sm:$0xff] %v3435_v13 }
0x1bcb   :  { %v3528_v37 = vpop.f32.mrf.mxu1 }
0x1bcd   :  { %v3679_v43 = vld.sshfl [vmem:[#allocation1] sm:$0xff pattern:$0x75316420]  ;;  %v3437_v29 = vpop.f32.mrf.mxu2 }
0x1bce   :  { %3685 = vst [vmem:[#allocation1] ss:$2 sm:$0xff] %v3528_v37  ;;  %3680 = vrot.lane.b32.xlu2 %v3679_v43, %s7822_s14 }
0x1bd3   :  { %v3530_v47 = vpop.f32.mrf.mxu1 }
0x1bd5   :  { %v3549_v32 = vpop.f32.mrf.mxu2 }
0x1bd6   :  { %3687 = vst [vmem:[#allocation1 + $0x1] ss:$2 sm:$0xff] %v3549_v32 }
0x1bdd   :  { %v3551_v22 = vpop.f32.mrf.mxu2  ;;  %v3688_v1 = vld.sshfl [vmem:[#allocation1] sm:$0xff pattern:$0x75316420] }
0x1bde   :  { %3689 = vrot.lane.b32.xlu1 %v3688_v1, %s7824_s26  ;;  %v6506_v22 = vld [vmem:[#allocation29] ss:$0 sm:$0xff] }
0x1be5   :  { %v3663_v8 = vpop.f32.mrf.mxu2 }
0x1be6   :  { %3696 = vst [vmem:[#allocation1 + $0x1] ss:$2 sm:$0xff] %v3663_v8  ;;  %v6507_v8 = vld [vmem:[#allocation31] ss:$0 sm:$0xff] }
0x1bed   :  { %v3665_v39 = vpop.f32.mrf.mxu2 }
0x1bfd   :  { %v3642_v7 = vpop.f32.mrf.mxu1 }
0x1bfe   :  { %3694 = vst [vmem:[#allocation1] ss:$2 sm:$0xff] %v3642_v7 }
0x1c05   :  { %v3644_v51 = vpop.f32.mrf.mxu1  ;;  %v3697_v55 = vld.sshfl [vmem:[#allocation1] sm:$0xff pattern:$0x75316420] }
0x1c06   :  { %3698 = vrot.lane.b32.xlu2 %v3697_v55, %s7821_s16 }
0x1c28   :  { %v3681_v30 = vpop.permute.xlu2 %3680 }
0x1c29   :  { %v3701_v9 = vsel %vm1125_vm7, %v3672_v0, %v3681_v30  ;;  %v3803_v30 = vperm.slane %v3800_v61, 1 }
0x1c50   :  { %v3690_v20 = vpop.permute.xlu1 %3689 }
0x1c51   :  { %v3702_v63 = vsel %vm851_vm1, %v3701_v9, %v3690_v20  ;;  %v6280_v20 = vld [vmem:[%s9524_s10 + $0x30] sm:$0xff] }
0x1c52   :  { %v6288_v9 = vld [vmem:[%s9524_s10 + $0x70] sm:$0xff]  ;;  %4086 = vmatpush.bf16.msra.mxu2 %v6280_v20 }
0x1c53   :  { %4099 = vmatpush.bf16.msra.mxu3 %v6288_v9 }
0x1c60   :  { %v3699_v34 = vpop.permute.xlu2 %3698 }
0x1c61   :  { %v3703_v24 = vsel %vm823_vm0, %v3702_v63, %v3699_v34 }
0x1c62   :  { %v3712_v23 = vpack.c.bf16 %v3703_v24, %v3703_v24 }
0x1c64   :  { %5913 = vmatmul.msk.bf16.vlgmr.msrb.gmra.mxu3 %vm2953_vm12, %v3712_v23 }
0x1ce7   :  { %v3749_v4 = vpop.f32.mrf.mxu3 }
0x1ce8   :  { %v3753_v28 = vadd.f32 %v3749_v4, %v8910_v3  ;;  %v5940_v3 = vld [vmem:[%s9522_s7 + $0x30] sm:$0xf] }
0x1ce9   :  { %v5941_v53 = vor.u32 %v6273_v21, %v5940_v3  ;;  %v6278_v3 = vld [vmem:[%s9524_s10 + $0x20] sm:$0xff] }
0x1cea   :  { %v9055_v2 = vadd.f32 %v6505_v44, %v3753_v28  ;;  %v6279_v28 = vld [vmem:[%s9524_s10 + $0x28] sm:$0xff]  ;;  %v6286_v21 = vld [vmem:[%s9524_s10 + $0x60] sm:$0xff] }
0x1ceb   :  { %3853 = vmatpush.bf16.msra.mxu0 %v5941_v53  ;;  %4087 = vmatpush.bf16.msra.mxu2 %v6279_v28 }
0x1cec   :  { %v3761_v48 = vsel %vm2953_vm12, %v9055_v2, 0.0 }
0x1ced   :  { %3762 = vadd.xlane.f32.xlu0 %v3761_v48  ;;  %v6287_v48 = vld [vmem:[%s9524_s10 + $0x68] sm:$0xff] }
0x1cee   :  { %4100 = vmatpush.bf16.msra.mxu3 %v6287_v48 }
0x1cef   :  { %v3751_v57 = vpop.f32.mrf.mxu3  ;;  %3854 = vmatpush.bf16.msra.mxu0 %v5933_v40  ;;  %4088 = vmatpush.bf16.msra.mxu2 %v6278_v3 }
0x1cf2   :  { %4101 = vmatpush.bf16.msra.mxu3 %v6286_v21 }
0x1cf3   :  { %3855 = vmatpush.bf16.msra.mxu0 %v5925_v50  ;;  %4089 = vmatpush.bf16.msra.mxu2 %v6277_v5 }
0x1cf6   :  { %4102 = vmatpush.bf16.msra.mxu3 %v6285_v36 }
0x1cf7   :  { %3856 = vmatpush.bf16.msra.mxu0 %v5917_v58  ;;  %4090 = vmatpush.bf16.msra.mxu2 %v6276_v33 }
0x1cfa   :  { %4103 = vmatpush.bf16.msra.mxu3 %v6284_v12 }
0x1cfb   :  { %4091 = vmatpush.bf16.msra.mxu2 %v6275_v10 }
0x1cfe   :  { %4104 = vmatpush.bf16.msra.mxu3 %v6283_v45 }
0x1cff   :  { %4092 = vmatpush.bf16.msra.mxu2 %v6274_v59 }
0x1d02   :  { %4105 = vmatpush.bf16.msra.mxu3 %v6282_v19 }
0x1d60   :  { %v3763_v60 = vpop.xlane.xlu0 %3762 }
0x1d61   :  { %v3764_v54 = vmul.f32 %v3763_v60, %v8914_v26 }
0x1d63   :  { %v3765_v27 = vsub.f32 %v9055_v2, %v3764_v54 }
0x1d65   :  { %v3766_v35 = vmul.f32 %v3765_v27, %v3765_v27 }
0x1d67   :  { %v3767_v31 = vsel %vm2953_vm12, %v3766_v35, 0.0 }
0x1d68   :  { %3768 = vadd.xlane.f32.xlu2 %v3767_v31 }
0x1ddb   :  { %v3769_v0 = vpop.xlane.xlu2 %3768 }
0x1ddc   :  { %v3770_v17 = vmul.f32 %v3769_v0, %v8914_v26 }
0x1dde   :  { %v3771_v25 = vadd.f32 1e-05, %v3770_v17 }
0x1de0   :  { %6702 = vrsqrt.f32 %v3771_v25  ;;  %vm3778_vm14 = vweird.f32 %v3771_v25 }
0x1de6   :  { %v6703_v13 = vpop.eup %6702 }
0x1de7   :  { %v3773_v37 = vmul.f32 %v6703_v13, %v3771_v25  ;;  %vm3779_vm13 = vweird.f32 %v6703_v13 }
0x1de8   :  { %vm3780_vm15 = vmor %vm3778_vm14, %vm3779_vm13 }
0x1de9   :  { %v3774_v43 = vmul.f32 %v6703_v13, %v3773_v37 }
0x1deb   :  { %v3775_v29 = vmul.f32 0.5, %v3774_v43 }
0x1ded   :  { %v3776_v47 = vsub.f32 1.5, %v3775_v29 }
0x1def   :  { %v3777_v32 = vmul.f32 %v6703_v13, %v3776_v47 }
0x1df1   :  { %v3781_v1 = vsel %vm3780_vm15, %v6703_v13, %v3777_v32 }
0x1df2   :  { %v3782_v39 = vmul.f32 %v3781_v1, %v3765_v27 }
0x1df4   :  { %v3786_v7 = vmul.f32 %v6506_v22, %v3782_v39 }
0x1df6   :  { %v3790_v51 = vadd.f32 %v6507_v8, %v3786_v7 }
0x1df8   :  { %v3799_v55 = vpack.c.bf16 %v3790_v51, %v3790_v51 }
0x1dfa   :  { %5946 = vmatmul.msk.bf16.vlgmr.msra.gmra.mxu0 %vm2953_vm12, %v3799_v55  ;;  %5947 = vmatmul.msk.bf16.vlgmr.msrb.gmra.mxu1 %vm2953_vm12, %v3799_v55 }
0x1e77   :  { %v3858_v63 = vpop.f32.mrf.mxu0  ;;  %v3871_v34 = vpop.f32.mrf.mxu1 }
0x1e78   :  { %v9086_v24 = vadd.f32 %v3858_v63, %v3802_v6  ;;  %v9088_v23 = vadd.f32 %v3871_v34, %v3803_v30 }
0x1e7a   :  { %v9091_v44 = vmul.f32 0.70710677, %v9086_v24  ;;  %v9094_v4 = vmul.f32 0.70710677, %v9088_v23 }
0x1e7c   :  { %v9099_v57 = vand.u32 2147483647, %v9091_v44  ;;  %v9102_v60 = vand.u32 2147483647, %v9094_v4  ;;  %vm3879_vm15 = vcmp.ge.f32.partialorder %v9091_v44, 0.0 }
0x1e7d   :  { %v3881_v5 = vsel %vm3879_vm15, 1.0, %v7823_v16 }
0x1e7e   :  { %v3885_v54 = vmul.f32 0.3275911, %v9099_v57  ;;  %v3886_v27 = vmul.f32 0.3275911, %v9102_v60  ;;  %v3937_v29 = vsub.f32 0.0, %v9099_v57  ;;  %v3938_v1 = vsub.f32 0.0, %v9102_v60 }
0x1e7f   :  { %v3860_v35 = vpop.f32.mrf.mxu0  ;;  %v3873_v31 = vpop.f32.mrf.mxu1 }
0x1e80   :  { %v3887_v38 = vadd.f32 1.0, %v3885_v54  ;;  %v3888_v53 = vadd.f32 1.0, %v3886_v27  ;;  %v3939_v7 = vmul.f32 %v3937_v29, %v9099_v57  ;;  %v3940_v61 = vmul.f32 %v3938_v1, %v9102_v60  ;;  %v6040_v29 = vld [vmem:[%s9525_s4 + $0x38] sm:$0xf0]  ;;  %v6294_v1 = vld [vmem:[%s9525_s4 + $0x24] sm:$0xf] }
0x1e82   :  { %6704 = vrcp.f32 %v3887_v38  ;;  %v3900_v50 = vand.u32 2147483648, %v3887_v38  ;;  %v3898_v41 = vand.u32 2147483647, %v3887_v38  ;;  %v3915_v18 = vand.u32 2147483648, %v3888_v53 }
0x1e83   :  { %6706 = vrcp.f32 %v3888_v53  ;;  %v3913_v58 = vand.u32 2147483647, %v3888_v53  ;;  %vm3894_vm4 = vweird.f32 %v3887_v38  ;;  %vm3909_vm6 = vweird.f32 %v3888_v53 }
0x1e84   :  { %v3901_v17 = vor.u32 1.1754944e-38, %v3900_v50  ;;  %vm3899_vm8 = vcmp.eq.f32.partialorder %v3898_v41, 8.507059e+37  ;;  %v3916_v37 = vor.u32 1.1754944e-38, %v3915_v18  ;;  %v3941_v6 = vmul.f32 1.442695, %v3939_v7 }
0x1e85   :  { %vm3914_vm14 = vcmp.eq.f32.partialorder %v3913_v58, 8.507059e+37  ;;  %v3943_v9 = vmul.f32 1.442695, %v3940_v61  ;;  %v6508_v41 = vld [vmem:[#allocation32] ss:$0 sm:$0xff] }
0x1e86   :  { %6708 = vpow2.f32 %v3941_v6  ;;  %v6292_v61 = vld [vmem:[%s9525_s4 + $0x14] sm:$0xf] }
0x1e87   :  { %6710 = vpow2.f32 %v3943_v9  ;;  %v6290_v9 = vld [vmem:[%s9525_s4 + $0x4] sm:$0xf] }
0x1e88   :  { %v6705_v62 = vpop.eup %6704 }
0x1e89   :  { %v6707_v40 = vpop.eup %6706  ;;  %v3890_v42 = vmul.f32 %v6705_v62, %v3887_v38  ;;  %vm3895_vm2 = vweird.f32 %v6705_v62 }
0x1e8a   :  { %v3905_v15 = vmul.f32 %v6707_v40, %v3888_v53  ;;  %vm3910_vm3 = vweird.f32 %v6707_v40  ;;  %vm3896_vm5 = vmor %vm3894_vm4, %vm3895_vm2  ;;  %vm3880_vm2 = vcmp.ge.f32.partialorder %v9094_v4, 0.0 }
0x1e8b   :  { %v3891_v49 = vsub.f32 1.0, %v3890_v42  ;;  %vm3911_vm13 = vmor %vm3909_vm6, %vm3910_vm3  ;;  %v3882_v12 = vsel %vm3880_vm2, 1.0, %v7823_v16 }
0x1e8c   :  { %v3906_v52 = vsub.f32 1.0, %v3905_v15  ;;  %v6709_v31 = vpop.eup %6708  ;;  %v3876_v15 = vmul.f32 0.5, %v9088_v23 }
0x1e8d   :  { %v3892_v11 = vmul.f32 %v6705_v62, %v3891_v49  ;;  %v6711_v21 = vpop.eup %6710 }
0x1e8e   :  { %v3907_v56 = vmul.f32 %v6707_v40, %v3906_v52 }
0x1e8f   :  { %v3893_v0 = vadd.f32 %v6705_v62, %v3892_v11 }
0x1e90   :  { %v3908_v25 = vadd.f32 %v6707_v40, %v3907_v56 }
0x1e91   :  { %v3897_v13 = vsel %vm3896_vm5, %v6705_v62, %v3893_v0 }
0x1e92   :  { %v3902_v43 = vsel %vm3899_vm8, %v3901_v17, %v3897_v13  ;;  %v3912_v47 = vsel %vm3911_vm13, %v6707_v40, %v3908_v25  ;;  %v3875_v40 = vmul.f32 0.5, %v9086_v24  ;;  %v6038_v25 = vld [vmem:[%s9525_s4 + $0x30] sm:$0xf]  ;;  %v6297_v13 = vld [vmem:[%s9525_s4 + $0x34] sm:$0xf0] }
0x1e93   :  { %v3919_v32 = vmul.f32 1.0614054, %v3902_v43  ;;  %v3917_v22 = vsel %vm3914_vm14, %v3916_v37, %v3912_v47  ;;  %v6296_v37 = vld [vmem:[%s9525_s4 + $0x34] sm:$0xf] }
0x1e94   :  { %v3920_v8 = vmul.f32 1.0614054, %v3917_v22  ;;  %v6043_v47 = vor.u32 %v6296_v37, %v6040_v29 }
0x1e95   :  { %v3921_v39 = vadd.f32 -1.4531521, %v3919_v32  ;;  %v6030_v32 = vld [vmem:[%s9525_s4 + $0x20] sm:$0xf] }
0x1e96   :  { %v3922_v51 = vadd.f32 -1.4531521, %v3920_v8  ;;  %4224 = vmatpush.bf16.msra.mxu1 %v6043_v47 }
0x1e97   :  { %v3923_v55 = vmul.f32 %v3921_v39, %v3902_v43  ;;  %v6032_v39 = vld [vmem:[%s9525_s4 + $0x28] sm:$0xf0] }
0x1e98   :  { %v3924_v46 = vmul.f32 %v3922_v51, %v3917_v22  ;;  %v6035_v7 = vor.u32 %v6294_v1, %v6032_v39  ;;  %v6022_v51 = vld [vmem:[%s9525_s4 + $0x10] sm:$0xf] }
0x1e99   :  { %v3925_v14 = vadd.f32 1.4214138, %v3923_v55  ;;  %v6293_v55 = vld [vmem:[%s9525_s4 + $0x14] sm:$0xf0] }
0x1e9a   :  { %v3926_v30 = vadd.f32 1.4214138, %v3924_v46  ;;  %4225 = vmatpush.bf16.msra.mxu1 %v6035_v7  ;;  %v6023_v46 = vor.u32 %v6293_v55, %v6022_v51 }
0x1e9b   :  { %v3927_v20 = vmul.f32 %v3925_v14, %v3902_v43  ;;  %v6024_v14 = vld [vmem:[%s9525_s4 + $0x18] sm:$0xf0] }
0x1e9c   :  { %v3928_v63 = vmul.f32 %v3926_v30, %v3917_v22  ;;  %v6027_v6 = vor.u32 %v6292_v61, %v6024_v14  ;;  %v6014_v30 = vld [vmem:[%s9525_s4] sm:$0xf] }
0x1e9d   :  { %v3929_v34 = vadd.f32 -0.28449672, %v3927_v20  ;;  %v6291_v20 = vld [vmem:[%s9525_s4 + $0x4] sm:$0xf0] }
0x1e9e   :  { %v3930_v28 = vadd.f32 -0.28449672, %v3928_v63  ;;  %4226 = vmatpush.bf16.msra.mxu1 %v6027_v6  ;;  %v6015_v63 = vor.u32 %v6291_v20, %v6014_v30 }
0x1e9f   :  { %v3931_v48 = vmul.f32 %v3929_v34, %v3902_v43  ;;  %v6016_v34 = vld [vmem:[%s9525_s4 + $0x8] sm:$0xf0] }
0x1ea0   :  { %v3932_v54 = vmul.f32 %v3930_v28, %v3917_v22  ;;  %v6019_v28 = vor.u32 %v6290_v9, %v6016_v34 }
0x1ea1   :  { %v3933_v27 = vadd.f32 0.2548296, %v3931_v48 }
0x1ea2   :  { %v3934_v35 = vadd.f32 0.2548296, %v3932_v54  ;;  %4227 = vmatpush.bf16.msra.mxu1 %v6019_v28 }
0x1ea3   :  { %v3935_v57 = vmul.f32 %v3933_v27, %v3902_v43  ;;  %v6039_v43 = vor.u32 %v6297_v13, %v6038_v25 }
0x1ea4   :  { %v3936_v3 = vmul.f32 %v3934_v35, %v3917_v22  ;;  %v6295_v22 = vld [vmem:[%s9525_s4 + $0x24] sm:$0xf0] }
0x1ea5   :  { %v3945_v60 = vmul.f32 %v6709_v31, %v3935_v57  ;;  %4211 = vmatpush.bf16.msrb.mxu0 %v6039_v43  ;;  %v6031_v8 = vor.u32 %v6295_v22, %v6030_v32 }
0x1ea6   :  { %v3946_v38 = vmul.f32 %v6711_v21, %v3936_v3 }
0x1ea7   :  { %v3947_v53 = vsub.f32 1.0, %v3945_v60 }
0x1ea8   :  { %v3948_v36 = vsub.f32 1.0, %v3946_v38  ;;  %v6509_v38 = vld [vmem:[#allocation34] ss:$0 sm:$0xff] }
0x1ea9   :  { %v3949_v33 = vmul.f32 %v3947_v53, %v3881_v5  ;;  %4212 = vmatpush.bf16.msrb.mxu0 %v6031_v8  ;;  %v6510_v5 = vld [vmem:[#allocation35] ss:$0 sm:$0xff] }
0x1eaa   :  { %v3950_v62 = vmul.f32 %v3948_v36, %v3882_v12 }
0x1eab   :  { %v3951_v42 = vadd.f32 1.0, %v3949_v33 }
0x1eac   :  { %v3952_v10 = vadd.f32 1.0, %v3950_v62 }
0x1ead   :  { %v3953_v45 = vmul.f32 %v3951_v42, %v3875_v40  ;;  %4213 = vmatpush.bf16.msrb.mxu0 %v6023_v46  ;;  %v4158_v40 = vld [vmem:[%s9526_s11] sm:$0x3] }
0x1eae   :  { %v3954_v44 = vmul.f32 %v3952_v10, %v3876_v15  ;;  %v4160_v42 = vperm.slane %v4158_v40, 0  ;;  %v4161_v15 = vperm.slane %v4158_v40, 1 }
0x1eaf   :  { %v3987_v49 = vpack.c.bf16 %v3953_v45, %v3953_v45 }
0x1eb0   :  { %v3988_v50 = vpack.c.bf16 %v3954_v44, %v3954_v44 }
0x1eb1   :  { %4093 = vmatmul.bf16.vlgmr.msra.gmra.mxu2 %v3987_v49  ;;  %4214 = vmatpush.bf16.msrb.mxu0 %v6015_v63 }
0x1eb2   :  { %4106 = vmatmul.bf16.vlgmr.msra.gmra.mxu3 %v3988_v50 }
0x1f34   :  { %v4094_v4 = vpop.f32.mrf.mxu2 }
0x1f35   :  { %v4107_v52 = vpop.f32.mrf.mxu3 }
0x1f36   :  { %v4108_v11 = vadd.f32 %v4107_v52, %v4094_v4 }
0x1f38   :  { %v4111_v18 = vadd.f32 %v4108_v11, %v9055_v2 }
0x1f3a   :  { %v9127_v24 = vadd.f32 %v6508_v41, %v4111_v18 }
0x1f3c   :  { %v4096_v23 = vpop.f32.mrf.mxu2  ;;  %v4119_v56 = vsel %vm2953_vm12, %v9127_v24, 0.0 }
0x1f3d   :  { %v4109_v58 = vpop.f32.mrf.mxu3  ;;  %4120 = vadd.xlane.f32.xlu0 %v4119_v56 }
0x1fb0   :  { %v4121_v59 = vpop.xlane.xlu0 %4120 }
0x1fb1   :  { %v4122_v19 = vmul.f32 %v4121_v59, %v8914_v26 }
0x1fb3   :  { %v4123_v0 = vsub.f32 %v9127_v24, %v4122_v19 }
0x1fb5   :  { %v4124_v17 = vmul.f32 %v4123_v0, %v4123_v0 }
0x1fb7   :  { %v4125_v2 = vsel %vm2953_vm12, %v4124_v17, 0.0 }
0x1fb8   :  { %4126 = vadd.xlane.f32.xlu0 %v4125_v2 }
0x202b   :  { %v4127_v48 = vpop.xlane.xlu0 %4126 }
0x202c   :  { %v4128_v54 = vmul.f32 %v4127_v48, %v8914_v26 }
0x202e   :  { %v4129_v27 = vadd.f32 1e-05, %v4128_v54 }
0x2030   :  { %6712 = vrsqrt.f32 %v4129_v27  ;;  %vm4136_vm4 = vweird.f32 %v4129_v27 }
0x2036   :  { %v6713_v35 = vpop.eup %6712 }
0x2037   :  { %v4131_v57 = vmul.f32 %v6713_v35, %v4129_v27  ;;  %vm4137_vm3 = vweird.f32 %v6713_v35 }
0x2038   :  { %vm4138_vm5 = vmor %vm4136_vm4, %vm4137_vm3 }
0x2039   :  { %v4132_v31 = vmul.f32 %v6713_v35, %v4131_v57 }
0x203b   :  { %v4133_v3 = vmul.f32 0.5, %v4132_v31 }
0x203d   :  { %v4134_v21 = vsub.f32 1.5, %v4133_v3 }
0x203f   :  { %v4135_v60 = vmul.f32 %v6713_v35, %v4134_v21 }
0x2041   :  { %v4139_v53 = vsel %vm4138_vm5, %v6713_v35, %v4135_v60 }
0x2042   :  { %v4140_v36 = vmul.f32 %v4139_v53, %v4123_v0 }
0x2044   :  { %v4144_v33 = vmul.f32 %v6509_v38, %v4140_v36 }
0x2046   :  { %v4148_v12 = vadd.f32 %v6510_v5, %v4144_v33 }
0x2048   :  { %v4157_v62 = vpack.c.bf16 %v4148_v12, %v4148_v12 }
0x204a   :  { %6044 = vmatmul.msk.bf16.vlgmr.msrb.gmra.mxu0 %vm2953_vm12, %v4157_v62  ;;  %6045 = vmatmul.msk.bf16.vlgmr.msra.gmra.mxu1 %vm2953_vm12, %v4157_v62 }
0x20c7   :  { %v4216_v10 = vpop.f32.mrf.mxu0  ;;  %v4229_v45 = vpop.f32.mrf.mxu1 }
0x20c8   :  { %v4217_v44 = vadd.f32 %v4216_v10, %v4160_v42  ;;  %v4230_v49 = vadd.f32 %v4229_v45, %v4161_v15 }
0x20ca   :  { %v4234_v50 = vrot.slane %v4217_v44, 4  ;;  %v4239_v4 = vpack.c.bf16 %v4217_v44, %v4217_v44  ;;  %v4237_v52 = vrot.slane %v4230_v49, 4  ;;  %v9154_v11 = vpack.c.bf16 %v4230_v49, %v4230_v49 }
0x20cc   :  { %v4240_v41 = vpack.c.bf16 %v4234_v50, %v4234_v50  ;;  %v4243_v18 = vunpack.c.l.b16 %v4239_v4  ;;  %v9156_v23 = vpack.c.bf16 %v4237_v52, %v4237_v52  ;;  %v4320_v56 = vsel %vm3283_vm9, %v9154_v11, 0 }
0x20cd   :  { %4329 = vmatpush.bf16.msrb.mxu2 %v4320_v56  ;;  %v4427_v44 = vunpack.c.l.b16 %v9154_v11 }
0x20ce   :  { %v4244_v58 = vpack.c.b16 %v4243_v18, %v4243_v18  ;;  %v4267_v59 = vunpack.c.l.b16 %v4240_v41  ;;  %v4339_v17 = vsel %vm3283_vm9, %v9156_v23, 0 }
0x20cf   :  { %v4218_v19 = vpop.f32.mrf.mxu0  ;;  %v4231_v0 = vpop.f32.mrf.mxu1  ;;  %4348 = vmatpush.bf16.msrb.mxu3 %v4339_v17 }
0x20d0   :  { %v4268_v2 = vpack.c.b16 %v4267_v59, %v4267_v59  ;;  %4478 = vrot.lane.b32.xlu2 %v4244_v58, %s7824_s26  ;;  %4245 = vrot.lane.b32.xlu1 %v4244_v58, %s7819_s29 }
0x20d2   :  { %4269 = vrot.lane.b32.xlu0 %v4268_v2, %s7819_s29  ;;  %s9527_s29 = sld [smem:[#allocation123_spill]] }
0x20d8   :  { %4613 = vrot.lane.b32.xlu2 %v4268_v2, %s7818_s15  ;;  %4358 = vrot.lane.b32.xlu1 %v4244_v58, %s7821_s16  ;;  %v4241_v34 = vld [vmem:[%s9527_s29] sm:$0xf]  ;;  %v6050_v21 = vld [vmem:[%s9527_s29 + $0x4] sm:$0xf] }
0x20d9   :  { %v6055_v40 = vld [vmem:[%s9527_s29 + $0x8] sm:$0xf]  ;;  %v6060_v56 = vld [vmem:[%s9527_s29 + $0xc] sm:$0xf] }
0x20da   :  { %4356 = vrot.lane.b32.xlu0 %v4244_v58, %s7820_s5 }
0x20e0   :  { %4381 = vrot.lane.b32.xlu1 %v4268_v2, %s7821_s16 }
0x20e2   :  { %4501 = vrot.lane.b32.xlu0 %v4268_v2, %s7824_s26 }
0x20e8   :  { %4379 = vrot.lane.b32.xlu1 %v4268_v2, %s7820_s5 }
0x20ea   :  { %4499 = vrot.lane.b32.xlu0 %v4268_v2, %s7817_s6 }
0x20f0   :  { %4476 = vrot.lane.b32.xlu1 %v4244_v58, %s7817_s6 }
0x20f2   :  { %4615 = vrot.lane.b32.xlu0 %v4268_v2, %s7822_s14 }
0x20f8   :  { %4592 = vrot.lane.b32.xlu1 %v4244_v58, %s7822_s14 }
0x2100   :  { %4590 = vrot.lane.b32.xlu1 %v4244_v58, %s7818_s15 }
0x212a   :  { %v4479_v29 = vpop.permute.xlu2 %4478 }
0x212b   :  { %v4484_v1 = vsel %vm1125_vm7, %v4479_v29, 0 }
0x2132   :  { %v4614_v63 = vpop.permute.xlu2 %4613 }
0x2142   :  { %v4246_v25 = vpop.permute.xlu1 %4245 }
0x2143   :  { %v4251_v13 = vsel %vm1125_vm7, %v4246_v25, 0 }
0x2144   :  { %v4270_v37 = vpop.permute.xlu0 %4269  ;;  %4260 = vmatpush.bf16.xpose.msra.mxu0 %v4251_v13 }
0x2145   :  { %v4275_v43 = vsel %vm1125_vm7, %v4270_v37, 0 }
0x2146   :  { %4284 = vmatpush.bf16.xpose.msrb.mxu1 %v4275_v43 }
0x214a   :  { %v4359_v47 = vpop.permute.xlu1 %4358 }
0x214b   :  { %v4364_v32 = vsel %vm1125_vm7, %v4359_v47, 0  ;;  %6046 = vmatmul.msk.bf16.vlgmr.msra.gmra.mxu0 %vm1125_vm7, %v4239_v4  ;;  %v9211_v4 = vpack.c.b16 %v4427_v44, %v4427_v44 }
0x214c   :  { %v4357_v22 = vpop.permute.xlu0 %4356  ;;  %4373 = vmatpush.bf16.xpose.msrb.mxu0 %v4364_v32 }
0x214d   :  { %6047 = vmatmul.msk.bf16.vlgmr.msrb.gmra.mxu1 %vm1125_vm7, %v4240_v41 }
0x2152   :  { %v4382_v8 = vpop.permute.xlu1 %4381 }
0x2153   :  { %v4387_v39 = vsel %vm1125_vm7, %v4382_v8, 0 }
0x2154   :  { %4493 = vmatpush.bf16.xpose.msra.mxu0 %v4484_v1  ;;  %v4502_v7 = vpop.permute.xlu0 %4501  ;;  %4396 = vmatpush.bf16.xpose.msra.mxu1 %v4387_v39 }
0x2155   :  { %v4507_v51 = vsel %vm1125_vm7, %v4502_v7, 0 }
0x215a   :  { %v4380_v55 = vpop.permute.xlu1 %4379 }
0x215b   :  { %6051 = vmatmul.msk.bf16.vlgmr.msrb.gmra.mxu0 %vm1125_vm7, %v4357_v22 }
0x215c   :  { %4516 = vmatpush.bf16.xpose.msrb.mxu1 %v4507_v51  ;;  %v4500_v61 = vpop.permute.xlu0 %4499 }
0x215d   :  { %6052 = vmatmul.msk.bf16.vlgmr.msra.gmra.mxu1 %vm1125_vm7, %v4380_v55 }
0x2162   :  { %v4477_v46 = vpop.permute.xlu1 %4476 }
0x2164   :  { %v4616_v14 = vpop.permute.xlu0 %4615 }
0x2165   :  { %v4621_v6 = vsel %vm1125_vm7, %v4616_v14, 0 }
0x2166   :  { %4630 = vmatpush.bf16.xpose.msra.mxu1 %v4621_v6 }
0x216a   :  { %v4593_v30 = vpop.permute.xlu1 %4592 }
0x216b   :  { %v4598_v20 = vsel %vm1125_vm7, %v4593_v30, 0  ;;  %6056 = vmatmul.msk.bf16.vlgmr.msra.gmra.mxu0 %vm1125_vm7, %v4477_v46 }
0x216c   :  { %4607 = vmatpush.bf16.xpose.msrb.mxu0 %v4598_v20 }
0x216d   :  { %6057 = vmatmul.msk.bf16.vlgmr.msrb.gmra.mxu1 %vm1125_vm7, %v4500_v61  ;;  %v4451_v61 = vunpack.c.l.b16 %v9156_v23 }
0x216f   :  { %v4452_v6 = vpack.c.b16 %v4451_v61, %v4451_v61 }
0x2172   :  { %v4591_v9 = vpop.permute.xlu1 %4590 }
0x217b   :  { %6061 = vmatmul.msk.bf16.vlgmr.msrb.gmra.mxu0 %vm1125_vm7, %v4591_v9 }
0x217d   :  { %6062 = vmatmul.msk.bf16.vlgmr.msra.gmra.mxu1 %vm1125_vm7, %v4614_v63 }
0x21c8   :  { %v4262_v28 = vpop.f32.mrf.mxu0 }
0x21c9   :  { %v4263_v48 = vadd.f32 %v4262_v28, %v4241_v34 }
0x21ca   :  { %v4286_v54 = vpop.f32.mrf.mxu1 }
0x21cb   :  { %v4287_v27 = vadd.f32 %v4286_v54, %v4241_v34  ;;  %v4290_v35 = vsel %vm3252_vm10, %v4263_v48, -inf }
0x21cc   :  { %4291 = vmax.xlane.f32.xlu0 %v4290_v35 }
0x21cd   :  { %v4293_v57 = vsel %vm3252_vm10, %v4287_v27, -inf }
0x21ce   :  { %4294 = vmax.xlane.f32.xlu1 %v4293_v57 }
0x21d0   :  { %v4264_v31 = vpop.f32.mrf.mxu0 }
0x21d2   :  { %v4288_v3 = vpop.f32.mrf.mxu1 }
0x21d8   :  { %v4375_v60 = vpop.f32.mrf.mxu0 }
0x21d9   :  { %v4376_v38 = vadd.f32 %v6050_v21, %v4375_v60 }
0x21da   :  { %v4398_v53 = vpop.f32.mrf.mxu1 }
0x21db   :  { %v9196_v5 = vadd.f32 %v6050_v21, %v4398_v53  ;;  %v4402_v36 = vsel %vm3252_vm10, %v4376_v38, -inf }
0x21dc   :  { %4403 = vmax.xlane.f32.xlu2 %v4402_v36 }
0x21dd   :  { %v4405_v33 = vsel %vm3252_vm10, %v9196_v5, -inf }
0x21de   :  { %4406 = vmax.xlane.f32.xlu0 %v4405_v33 }
0x21e0   :  { %v4377_v12 = vpop.f32.mrf.mxu0 }
0x21e2   :  { %v4400_v62 = vpop.f32.mrf.mxu1 }
0x21e8   :  { %v4495_v42 = vpop.f32.mrf.mxu0 }
0x21e9   :  { %v9202_v15 = vadd.f32 %v6055_v40, %v4495_v42 }
0x21ea   :  { %v4518_v10 = vpop.f32.mrf.mxu1 }
0x21eb   :  { %v9204_v45 = vadd.f32 %v6055_v40, %v4518_v10  ;;  %v4522_v49 = vsel %vm3252_vm10, %v9202_v15, -inf }
0x21ec   :  { %4523 = vmax.xlane.f32.xlu1 %v4522_v49 }
0x21ed   :  { %v4525_v50 = vsel %vm3252_vm10, %v9204_v45, -inf }
0x21ee   :  { %4526 = vmax.xlane.f32.xlu2 %v4525_v50 }
0x21f0   :  { %v4497_v52 = vpop.f32.mrf.mxu0 }
0x21f2   :  { %4429 = vrot.lane.b32.xlu0 %v9211_v4, %s7820_s5  ;;  %v4520_v41 = vpop.f32.mrf.mxu1 }
0x21f8   :  { %v4609_v18 = vpop.f32.mrf.mxu0 }
0x21f9   :  { %v4610_v17 = vadd.f32 %v6060_v56, %v4609_v18 }
0x21fa   :  { %v4632_v58 = vpop.f32.mrf.mxu1 }
0x21fb   :  { %v4633_v59 = vadd.f32 %v6060_v56, %v4632_v58  ;;  %v4636_v2 = vsel %vm3252_vm10, %v4610_v17, -inf }
0x21fd   :  { %v4639_v11 = vsel %vm3252_vm10, %v4633_v59, -inf }
0x21fe   :  { %4640 = vmax.xlane.f32.xlu1 %v4639_v11 }
0x2200   :  { %v4611_v19 = vpop.f32.mrf.mxu0 }
0x2202   :  { %v4634_v0 = vpop.f32.mrf.mxu1 }
0x221c   :  { %4637 = vmax.xlane.f32.xlu0 %v4636_v2 }
0x223f   :  { %v4292_v25 = vpop.xlane.xlu0 %4291 }
0x2240   :  { %v4296_v13 = vsub.f32 %v4263_v48, %v4292_v25 }
0x2241   :  { %v4295_v37 = vpop.xlane.xlu1 %4294 }
0x2242   :  { %v4297_v43 = vsub.f32 %v4287_v27, %v4295_v37  ;;  %v4298_v29 = vmul.f32 1.442695, %v4296_v13 }
0x2244   :  { %v4300_v47 = vmul.f32 1.442695, %v4297_v43  ;;  %6714 = vpow2.f32 %v4298_v29 }
0x2246   :  { %6716 = vpow2.f32 %v4300_v47 }
0x224a   :  { %v9218_v32 = vpop.eup %6714 }
0x224b   :  { %v4302_v1 = vsel %vm3252_vm10, %v9218_v32, 0.0 }
0x224c   :  { %v9220_v22 = vpop.eup %6716  ;;  %4303 = vadd.xlane.f32.xlu2 %v4302_v1 }
0x224d   :  { %v4305_v8 = vsel %vm3252_vm10, %v9220_v22, 0.0 }
0x224e   :  { %4306 = vadd.xlane.f32.xlu0 %v4305_v8 }
0x224f   :  { %v4404_v39 = vpop.xlane.xlu2 %4403 }
0x2250   :  { %v4408_v7 = vsub.f32 %v4376_v38, %v4404_v39 }
0x2251   :  { %v4407_v46 = vpop.xlane.xlu0 %4406 }
0x2252   :  { %v4410_v51 = vmul.f32 1.442695, %v4408_v7  ;;  %v4409_v34 = vsub.f32 %v9196_v5, %v4407_v46 }
0x2254   :  { %6718 = vpow2.f32 %v4410_v51  ;;  %v4412_v48 = vmul.f32 1.442695, %v4409_v34 }
0x225a   :  { %v9226_v55 = vpop.eup %6718 }
0x225b   :  { %v4414_v14 = vsel %vm3252_vm10, %v9226_v55, 0.0 }
0x225c   :  { %4415 = vadd.xlane.f32.xlu1 %v4414_v14 }
0x225f   :  { %v4524_v9 = vpop.xlane.xlu1 %4523 }
0x2260   :  { %v4528_v54 = vsub.f32 %v9202_v15, %v4524_v9 }
0x2261   :  { %v4527_v57 = vpop.xlane.xlu2 %4526 }
0x2262   :  { %4567 = vrot.lane.b32.xlu0 %v4452_v6, %s7817_s6  ;;  %v4530_v35 = vmul.f32 1.442695, %v4528_v54  ;;  %v4529_v21 = vsub.f32 %v9204_v45, %v4527_v57 }
0x2264   :  { %v4430_v30 = vpop.permute.xlu0 %4429  ;;  %4546 = vrot.lane.b32.xlu2 %v9211_v4, %s7817_s6  ;;  %v4532_v53 = vmul.f32 1.442695, %v4529_v21  ;;  %s9528_s6 = sld [smem:[#allocation124_spill]] }
0x2265   :  { %v4435_v20 = vsel %vm3283_vm9, %v4430_v30, 0 }
0x2266   :  { %4444 = vmatpush.bf16.msra.mxu2 %v4435_v20 }
0x2271   :  { %v4641_v63 = vpop.xlane.xlu1 %4640 }
0x2272   :  { %v4643_v23 = vsub.f32 %v4633_v59, %v4641_v63 }
0x2274   :  { %v4646_v28 = vmul.f32 1.442695, %v4643_v23 }
0x2275   :  { %4453 = vrot.lane.b32.xlu1 %v4452_v6, %s7820_s5  ;;  %s9530_s5 = sld [smem:[#allocation128_spill]] }
0x2276   :  { %6720 = vpow2.f32 %v4646_v28 }
0x2277   :  { %6722 = vpow2.f32 %v4412_v48 }
0x2278   :  { %6724 = vpow2.f32 %v4530_v35 }
0x2279   :  { %6726 = vpow2.f32 %v4532_v53 }
0x227c   :  { %v9238_v27 = vpop.eup %6720 }
0x227d   :  { %v6723_v31 = vpop.eup %6722  ;;  %v4651_v3 = vsel %vm3252_vm10, %v9238_v27, 0.0 }
0x227e   :  { %v4417_v60 = vsel %vm3252_vm10, %v6723_v31, 0.0  ;;  %v6725_v36 = vpop.eup %6724 }
0x227f   :  { %v4534_v12 = vsel %vm3252_vm10, %v6725_v36, 0.0  ;;  %v6727_v62 = vpop.eup %6726 }
0x2280   :  { %v4537_v42 = vsel %vm3252_vm10, %v6727_v62, 0.0 }
0x228c   :  { %4652 = vadd.xlane.f32.xlu0 %v4651_v3 }
0x228d   :  { %4418 = vadd.xlane.f32.xlu2 %v4417_v60 }
0x228f   :  { %v4638_v38 = vpop.xlane.xlu0 %4637 }
0x2290   :  { %v4642_v5 = vsub.f32 %v4610_v17, %v4638_v38 }
0x2292   :  { %v4644_v33 = vmul.f32 1.442695, %v4642_v5 }
0x2294   :  { %6728 = vpow2.f32 %v4644_v33 }
0x2295   :  { %4535 = vadd.xlane.f32.xlu2 %v4534_v12 }
0x229a   :  { %v6729_v40 = vpop.eup %6728 }
0x229b   :  { %v4648_v15 = vsel %vm3252_vm10, %v6729_v40, 0.0 }
0x229d   :  { %4538 = vadd.xlane.f32.xlu2 %v4537_v42 }
0x229f   :  { %4649 = vadd.xlane.f32.xlu1 %v4648_v15 }
0x22b5   :  { %4660 = vrot.lane.b32.xlu2 %v9211_v4, %s7818_s15 }
0x22bd   :  { %4681 = vrot.lane.b32.xlu2 %v4452_v6, %s7818_s15  ;;  %s9529_s15 = sld [smem:[#allocation127_spill]] }
0x22bf   :  { %v4304_v10 = vpop.xlane.xlu2 %4303 }
0x22c0   :  { %6730 = vrcp.f32 %v4304_v10 }
0x22c1   :  { %v4307_v45 = vpop.xlane.xlu0 %4306 }
0x22c2   :  { %6732 = vrcp.f32 %v4307_v45  ;;  %v6301_v45 = vld [vmem:[%s9528_s6 + $0x18] sm:$0xff] }
0x22c3   :  { %4779 = vmatpush.bf16.msra.mxu0 %v6301_v45  ;;  %v4835_v45 = vld [vmem:[%s9530_s5] sm:$0x3] }
0x22c6   :  { %v6731_v44 = vpop.eup %6730 }
0x22c7   :  { %v4310_v50 = vmul.f32 %v6731_v44, %v9218_v32  ;;  %v4547_v41 = vpop.permute.xlu2 %4546  ;;  %v6300_v44 = vld [vmem:[%s9528_s6 + $0x10] sm:$0xff] }
0x22c8   :  { %v6733_v49 = vpop.eup %6732  ;;  %v4552_v58 = vsel %vm3283_vm9, %v4547_v41, 0  ;;  %4780 = vmatpush.bf16.msra.mxu0 %v6300_v44 }
0x22c9   :  { %v4311_v52 = vmul.f32 %v6733_v49, %v9220_v22  ;;  %v4312_v18 = vpack.c.bf16 %v4310_v50, %v4310_v50  ;;  %v6299_v49 = vld [vmem:[%s9528_s6 + $0x8] sm:$0xff]  ;;  %v6298_v50 = vld [vmem:[%s9528_s6] sm:$0xff] }
0x22cb   :  { %v4313_v56 = vpack.c.bf16 %v4311_v52, %v4311_v52  ;;  %6048 = vmatmul.msk.bf16.vlgmr.msrb.gmra.mxu2 %vm3279_vm11, %v4312_v18 }
0x22cc   :  { %4561 = vmatpush.bf16.msrb.mxu2 %v4552_v58  ;;  %4781 = vmatpush.bf16.msra.mxu0 %v6299_v49  ;;  %v4837_v49 = vperm.slane %v4835_v45, 0 }
0x22cd   :  { %6049 = vmatmul.msk.bf16.vlgmr.msrb.gmra.mxu3 %vm3279_vm11, %v4313_v56 }
0x22cf   :  { %v4416_v4 = vpop.xlane.xlu1 %4415 }
0x22d0   :  { %6734 = vrcp.f32 %v4416_v4  ;;  %4782 = vmatpush.bf16.msra.mxu0 %v6298_v50 }
0x22d4   :  { %v4568_v0 = vpop.permute.xlu0 %4567 }
0x22d5   :  { %v4573_v25 = vsel %vm3283_vm9, %v4568_v0, 0 }
0x22d6   :  { %v6735_v59 = vpop.eup %6734 }
0x22d7   :  { %v4422_v11 = vmul.f32 %v6735_v59, %v9226_v55 }
0x22d9   :  { %v4424_v19 = vpack.c.bf16 %v4422_v11, %v4422_v11  ;;  %v6511_v11 = vld [vmem:[#allocation37] ss:$0 sm:$0xff] }
0x22db   :  { %6053 = vmatmul.msk.bf16.vlgmr.msra.gmra.mxu2 %vm3279_vm11, %v4424_v19 }
0x22e7   :  { %v4454_v17 = vpop.permute.xlu1 %4453 }
0x22e8   :  { %v4459_v2 = vsel %vm3283_vm9, %v4454_v17, 0 }
0x22e9   :  { %4468 = vmatpush.bf16.msra.mxu3 %v4459_v2 }
0x22ed   :  { %4582 = vmatpush.bf16.msrb.mxu3 %v4573_v25 }
0x22ff   :  { %v4653_v46 = vpop.xlane.xlu0 %4652 }
0x2300   :  { %v4419_v13 = vpop.xlane.xlu2 %4418 }
0x2301   :  { %6736 = vrcp.f32 %v4419_v13 }
0x2307   :  { %v6737_v37 = vpop.eup %6736 }
0x2308   :  { %v4423_v43 = vmul.f32 %v6737_v37, %v6723_v31  ;;  %v4536_v29 = vpop.xlane.xlu2 %4535 }
0x2309   :  { %6738 = vrcp.f32 %v4536_v29 }
0x230a   :  { %v4425_v47 = vpack.c.bf16 %v4423_v43, %v4423_v43 }
0x230c   :  { %6054 = vmatmul.msk.bf16.vlgmr.msra.gmra.mxu3 %vm3279_vm11, %v4425_v47 }
0x230f   :  { %v6739_v32 = vpop.eup %6738 }
0x2310   :  { %v4542_v22 = vmul.f32 %v6739_v32, %v6725_v36  ;;  %v4539_v1 = vpop.xlane.xlu2 %4538  ;;  %v6309_v32 = vld [vmem:[%s9529_s15 + $0x34] sm:$0xf0] }
0x2311   :  { %6740 = vrcp.f32 %v4539_v1 }
0x2312   :  { %v4544_v8 = vpack.c.bf16 %v4542_v22, %v4542_v22  ;;  %v4650_v39 = vpop.xlane.xlu1 %4649  ;;  %v6308_v22 = vld [vmem:[%s9529_s15 + $0x34] sm:$0xf] }
0x2313   :  { %6742 = vrcp.f32 %v4650_v39 }
0x2314   :  { %6058 = vmatmul.msk.bf16.vlgmr.msrb.gmra.mxu2 %vm3279_vm11, %v4544_v8  ;;  %6744 = vrcp.f32 %v4653_v46  ;;  %v6110_v8 = vld [vmem:[%s9529_s15 + $0x38] sm:$0xf0]  ;;  %v6102_v46 = vld [vmem:[%s9529_s15 + $0x28] sm:$0xf0] }
0x2315   :  { %v6113_v39 = vor.u32 %v6308_v22, %v6110_v8 }
0x2317   :  { %v6741_v7 = vpop.eup %6740 }
0x2318   :  { %v4543_v51 = vmul.f32 %v6741_v7, %v6727_v62  ;;  %v4661_v55 = vpop.permute.xlu2 %4660  ;;  %v6100_v7 = vld [vmem:[%s9529_s15 + $0x20] sm:$0xf] }
0x2319   :  { %v4666_v61 = vsel %vm3283_vm9, %v4661_v55, 0  ;;  %v6743_v6 = vpop.eup %6742  ;;  %v6306_v55 = vld [vmem:[%s9529_s15 + $0x24] sm:$0xf] }
0x231a   :  { %v4545_v14 = vpack.c.bf16 %v4543_v51, %v4543_v51  ;;  %4675 = vmatpush.bf16.msra.mxu2 %v4666_v61  ;;  %v4656_v30 = vmul.f32 %v6743_v6, %v6729_v40  ;;  %v6745_v23 = vpop.eup %6744  ;;  %v6307_v51 = vld [vmem:[%s9529_s15 + $0x24] sm:$0xf0]  ;;  %v6092_v6 = vld [vmem:[%s9529_s15 + $0x10] sm:$0xf] }
0x231b   :  { %v4657_v34 = vmul.f32 %v6745_v23, %v9238_v27  ;;  %v6101_v61 = vor.u32 %v6307_v51, %v6100_v7 }
0x231c   :  { %6059 = vmatmul.msk.bf16.vlgmr.msrb.gmra.mxu3 %vm3279_vm11, %v4545_v14  ;;  %v4658_v63 = vpack.c.bf16 %v4656_v30, %v4656_v30  ;;  %v6105_v14 = vor.u32 %v6306_v55, %v6102_v46  ;;  %v6305_v30 = vld [vmem:[%s9529_s15 + $0x14] sm:$0xf0] }
0x231d   :  { %v4659_v28 = vpack.c.bf16 %v4657_v34, %v4657_v34  ;;  %v6084_v34 = vld [vmem:[%s9529_s15] sm:$0xf] }
0x231e   :  { %4901 = vmatpush.bf16.msrb.mxu2 %v6113_v39 }
0x2320   :  { %v4682_v20 = vpop.permute.xlu2 %4681 }
0x2321   :  { %v4687_v9 = vsel %vm3283_vm9, %v4682_v20, 0  ;;  %v6304_v20 = vld [vmem:[%s9529_s15 + $0x14] sm:$0xf] }
0x2322   :  { %4696 = vmatpush.bf16.msra.mxu3 %v4687_v9  ;;  %4902 = vmatpush.bf16.msrb.mxu2 %v6105_v14  ;;  %v6093_v9 = vor.u32 %v6305_v30, %v6092_v6 }
0x2324   :  { %6063 = vmatmul.msk.bf16.vlgmr.msra.gmra.mxu2 %vm3279_vm11, %v4658_v63  ;;  %v6094_v63 = vld [vmem:[%s9529_s15 + $0x18] sm:$0xf0] }
0x2325   :  { %v6097_v23 = vor.u32 %v6304_v20, %v6094_v63 }
0x2327   :  { %4903 = vmatpush.bf16.msrb.mxu2 %v6097_v23 }
0x232c   :  { %6064 = vmatmul.msk.bf16.vlgmr.msra.gmra.mxu3 %vm3279_vm11, %v4659_v28  ;;  %v6303_v28 = vld [vmem:[%s9529_s15 + $0x4] sm:$0xf0] }
0x234e   :  { %v4331_v48 = vpop.f32.mrf.mxu2 }
0x234f   :  { %4704 = vst [vmem:[#allocation1] ss:$2 sm:$0xff] %v4331_v48  ;;  %v6302_v48 = vld [vmem:[%s9529_s15 + $0x4] sm:$0xf] }
0x2350   :  { %v4350_v54 = vpop.f32.mrf.mxu3 }
0x2351   :  { %4706 = vst [vmem:[#allocation1 + $0x1] ss:$2 sm:$0xff] %v4350_v54  ;;  %v6085_v54 = vor.u32 %v6303_v28, %v6084_v34 }
0x2356   :  { %v4333_v35 = vpop.f32.mrf.mxu2 }
0x2357   :  { %v6086_v35 = vld [vmem:[%s9529_s15 + $0x8] sm:$0xf0] }
0x2358   :  { %v4352_v57 = vpop.f32.mrf.mxu3  ;;  %v4707_v3 = vld.sshfl [vmem:[#allocation1] sm:$0xff pattern:$0x75316420] }
0x2359   :  { %v6089_v57 = vor.u32 %v6302_v48, %v6086_v35 }
0x235b   :  { %4904 = vmatpush.bf16.msrb.mxu2 %v6089_v57 }
0x235e   :  { %v4446_v31 = vpop.f32.mrf.mxu2 }
0x235f   :  { %4711 = vst [vmem:[#allocation1] ss:$2 sm:$0xff] %v4446_v31 }
0x2366   :  { %v4448_v21 = vpop.f32.mrf.mxu2 }
0x238f   :  { %v4470_v60 = vpop.f32.mrf.mxu3 }
0x2390   :  { %4713 = vst [vmem:[#allocation1 + $0x1] ss:$2 sm:$0xff] %v4470_v60 }
0x2397   :  { %v4472_v38 = vpop.f32.mrf.mxu3  ;;  %v4563_v53 = vpop.f32.mrf.mxu2  ;;  %v4714_v5 = vld.sshfl [vmem:[#allocation1] sm:$0xff pattern:$0x75316420] }
0x2398   :  { %4715 = vrot.lane.b32.xlu2 %v4714_v5, %s7822_s14  ;;  %4720 = vst [vmem:[#allocation1] ss:$2 sm:$0xff] %v4563_v53  ;;  %s9532_s14 = sld [smem:[#allocation131_spill]] }
0x239f   :  { %v4565_v27 = vpop.f32.mrf.mxu2  ;;  %v4584_v36 = vpop.f32.mrf.mxu3 }
0x23a0   :  { %4722 = vst [vmem:[#allocation1 + $0x1] ss:$2 sm:$0xff] %v4584_v36 }
0x23a7   :  { %v4586_v33 = vpop.f32.mrf.mxu3  ;;  %v4677_v12 = vpop.f32.mrf.mxu2  ;;  %v4723_v62 = vld.sshfl [vmem:[#allocation1] sm:$0xff pattern:$0x75316420] }
0x23a8   :  { %4724 = vrot.lane.b32.xlu2 %v4723_v62, %s7824_s26  ;;  %4729 = vst [vmem:[#allocation1] ss:$2 sm:$0xff] %v4677_v12  ;;  %v6512_v33 = vld [vmem:[#allocation38] ss:$0 sm:$0xff]  ;;  %v6513_v62 = vld [vmem:[#allocation40] ss:$0 sm:$0xff] }
0x23af   :  { %v4679_v40 = vpop.f32.mrf.mxu2  ;;  %v4698_v42 = vpop.f32.mrf.mxu3 }
0x23b0   :  { %4731 = vst [vmem:[#allocation1 + $0x1] ss:$2 sm:$0xff] %v4698_v42 }
0x23b7   :  { %v4700_v15 = vpop.f32.mrf.mxu3  ;;  %v4732_v10 = vld.sshfl [vmem:[#allocation1] sm:$0xff pattern:$0x75316420] }
0x23b8   :  { %4733 = vrot.lane.b32.xlu1 %v4732_v10, %s7821_s16  ;;  %s9531_s16 = sld [smem:[#allocation129_spill]] }
0x23be   :  { %v6317_v44 = vld [vmem:[%s9531_s16 + $0x38] sm:$0xff]  ;;  %v6316_v50 = vld [vmem:[%s9531_s16 + $0x30] sm:$0xff]  ;;  %v6319_v48 = vld [vmem:[%s9531_s16 + $0x48] sm:$0xff] }
0x23bf   :  { %5120 = vmatpush.bf16.msrb.mxu3 %v6317_v44  ;;  %v6312_v8 = vld [vmem:[%s9531_s16 + $0x10] sm:$0xff]  ;;  %v6321_v51 = vld [vmem:[%s9531_s16 + $0x58] sm:$0xff] }
0x23c0   :  { %v6320_v6 = vld [vmem:[%s9531_s16 + $0x50] sm:$0xff] }
0x23c3   :  { %5121 = vmatpush.bf16.msrb.mxu3 %v6316_v50 }
0x23f2   :  { %v4716_v52 = vpop.permute.xlu2 %4715 }
0x23f3   :  { %v4736_v18 = vsel %vm1125_vm7, %v4707_v3, %v4716_v52 }
0x2402   :  { %v4725_v41 = vpop.permute.xlu2 %4724 }
0x2403   :  { %v4737_v56 = vsel %vm851_vm1, %v4736_v18, %v4725_v41  ;;  %v6325_v18 = vld [vmem:[%s9531_s16 + $0x78] sm:$0xff] }
0x2404   :  { %5133 = vmatpush.bf16.msrb.mxu0 %v6325_v18 }
0x242a   :  { %v4734_v58 = vpop.permute.xlu1 %4733 }
0x242b   :  { %v4738_v4 = vsel %vm823_vm0, %v4737_v56, %v4734_v58  ;;  %v4838_v58 = vperm.slane %v4835_v45, 1 }
0x242c   :  { %v4747_v59 = vpack.c.bf16 %v4738_v4, %v4738_v4  ;;  %v6315_v4 = vld [vmem:[%s9531_s16 + $0x28] sm:$0xff] }
0x242d   :  { %5122 = vmatpush.bf16.msrb.mxu3 %v6315_v4 }
0x242e   :  { %6081 = vmatmul.msk.bf16.vlgmr.msra.gmra.mxu0 %vm2953_vm12, %v4747_v59 }
0x24ab   :  { %v4784_v19 = vpop.f32.mrf.mxu0 }
0x24ac   :  { %v4788_v0 = vadd.f32 %v4784_v19, %v9127_v24  ;;  %v6108_v24 = vld [vmem:[%s9529_s15 + $0x30] sm:$0xf] }
0x24ad   :  { %v6109_v1 = vor.u32 %v6309_v32, %v6108_v24  ;;  %v6322_v32 = vld [vmem:[%s9531_s16 + $0x60] sm:$0xff] }
0x24ae   :  { %v9279_v17 = vadd.f32 %v6511_v11, %v4788_v0  ;;  %v6324_v11 = vld [vmem:[%s9531_s16 + $0x70] sm:$0xff] }
0x24af   :  { %4888 = vmatpush.bf16.msrb.mxu1 %v6109_v1  ;;  %5134 = vmatpush.bf16.msrb.mxu0 %v6324_v11 }
0x24b0   :  { %v4796_v2 = vsel %vm2953_vm12, %v9279_v17, 0.0 }
0x24b1   :  { %4797 = vadd.xlane.f32.xlu0 %v4796_v2 }
0x24b3   :  { %v4786_v25 = vpop.f32.mrf.mxu0  ;;  %4889 = vmatpush.bf16.msrb.mxu1 %v6101_v61  ;;  %v6311_v61 = vld [vmem:[%s9531_s16 + $0x8] sm:$0xff] }
0x24b4   :  { %v6314_v25 = vld [vmem:[%s9531_s16 + $0x20] sm:$0xff] }
0x24b5   :  { %5123 = vmatpush.bf16.msrb.mxu3 %v6314_v25 }
0x24b7   :  { %4890 = vmatpush.bf16.msrb.mxu1 %v6093_v9  ;;  %v6310_v9 = vld [vmem:[%s9531_s16] sm:$0xff] }
0x24bb   :  { %4891 = vmatpush.bf16.msrb.mxu1 %v6085_v54 }
0x2524   :  { %v4798_v13 = vpop.xlane.xlu0 %4797 }
0x2525   :  { %v4799_v37 = vmul.f32 %v4798_v13, %v8914_v26 }
0x2527   :  { %v4800_v43 = vsub.f32 %v9279_v17, %v4799_v37 }
0x2529   :  { %v4801_v29 = vmul.f32 %v4800_v43, %v4800_v43 }
0x252b   :  { %v4802_v47 = vsel %vm2953_vm12, %v4801_v29, 0.0  ;;  %v6323_v29 = vld [vmem:[%s9531_s16 + $0x68] sm:$0xff] }
0x252c   :  { %4803 = vadd.xlane.f32.xlu2 %v4802_v47  ;;  %5135 = vmatpush.bf16.msrb.mxu0 %v6323_v29  ;;  %v6313_v47 = vld [vmem:[%s9531_s16 + $0x18] sm:$0xff] }
0x252d   :  { %5124 = vmatpush.bf16.msrb.mxu3 %v6313_v47 }
0x2530   :  { %5136 = vmatpush.bf16.msrb.mxu0 %v6322_v32 }
0x2531   :  { %5125 = vmatpush.bf16.msrb.mxu3 %v6312_v8 }
0x2534   :  { %5137 = vmatpush.bf16.msrb.mxu0 %v6321_v51 }
0x2535   :  { %5126 = vmatpush.bf16.msrb.mxu3 %v6311_v61 }
0x2538   :  { %5138 = vmatpush.bf16.msrb.mxu0 %v6320_v6 }
0x2539   :  { %5127 = vmatpush.bf16.msrb.mxu3 %v6310_v9 }
0x253c   :  { %5139 = vmatpush.bf16.msrb.mxu0 %v6319_v48 }
0x259f   :  { %v4804_v31 = vpop.xlane.xlu2 %4803 }
0x25a0   :  { %v4805_v3 = vmul.f32 %v4804_v31, %v8914_v26 }
0x25a2   :  { %v4806_v21 = vadd.f32 1e-05, %v4805_v3 }
0x25a4   :  { %6746 = vrsqrt.f32 %v4806_v21  ;;  %vm4813_vm7 = vweird.f32 %v4806_v21 }
0x25aa   :  { %v6747_v60 = vpop.eup %6746 }
0x25ab   :  { %v4808_v38 = vmul.f32 %v6747_v60, %v4806_v21  ;;  %vm4814_vm1 = vweird.f32 %v6747_v60 }
0x25ac   :  { %vm4815_vm9 = vmor %vm4813_vm7, %vm4814_vm1 }
0x25ad   :  { %v4809_v53 = vmul.f32 %v6747_v60, %v4808_v38 }
0x25af   :  { %v4810_v5 = vmul.f32 0.5, %v4809_v53  ;;  %v6318_v53 = vld [vmem:[%s9531_s16 + $0x40] sm:$0xff] }
0x25b0   :  { %5140 = vmatpush.bf16.msrb.mxu0 %v6318_v53  ;;  %v6329_v53 = vld [vmem:[%s9532_s14 + $0x18] sm:$0xff] }
0x25b1   :  { %v4811_v27 = vsub.f32 1.5, %v4810_v5  ;;  %5263 = vmatpush.bf16.msra.mxu1 %v6329_v53 }
0x25b3   :  { %v4812_v36 = vmul.f32 %v6747_v60, %v4811_v27 }
0x25b5   :  { %v4816_v12 = vsel %vm4815_vm9, %v6747_v60, %v4812_v36  ;;  %vm5187_vm9 = vcmask 519168  }
0x25b6   :  { %v4817_v40 = vmul.f32 %v4816_v12, %v4800_v43 }
0x25b8   :  { %v4821_v42 = vmul.f32 %v6512_v33, %v4817_v40 }
0x25ba   :  { %v4825_v15 = vadd.f32 %v6513_v62, %v4821_v42 }
0x25bc   :  { %v4834_v10 = vpack.c.bf16 %v4825_v15, %v4825_v15 }
0x25be   :  { %6114 = vmatmul.msk.bf16.vlgmr.msrb.gmra.mxu1 %vm2953_vm12, %v4834_v10  ;;  %6115 = vmatmul.msk.bf16.vlgmr.msrb.gmra.mxu2 %vm2953_vm12, %v4834_v10 }
0x263b   :  { %v4893_v52 = vpop.f32.mrf.mxu1 }
0x263c   :  { %v9308_v41 = vadd.f32 %v4893_v52, %v4837_v49 }
0x263e   :  { %v9312_v56 = vmul.f32 0.70710677, %v9308_v41 }
0x2640   :  { %v4918_v59 = vand.u32 2147483647, %v9312_v56  ;;  %vm4914_vm3 = vcmp.ge.f32.partialorder %v9312_v56, 0.0 }
0x2641   :  { %v4906_v19 = vpop.f32.mrf.mxu2  ;;  %v4916_v32 = vsel %vm4914_vm3, 1.0, %v7823_v16 }
0x2642   :  { %v4920_v0 = vmul.f32 0.3275911, %v4918_v59  ;;  %v9317_v2 = vadd.f32 %v4906_v19, %v4838_v58  ;;  %v4972_v57 = vsub.f32 0.0, %v4918_v59 }
0x2643   :  { %v4895_v13 = vpop.f32.mrf.mxu1 }
0x2644   :  { %v4922_v37 = vadd.f32 1.0, %v4920_v0  ;;  %v9321_v43 = vmul.f32 0.70710677, %v9317_v2  ;;  %v4974_v27 = vmul.f32 %v4972_v57, %v4918_v59  ;;  %v4911_v6 = vmul.f32 0.5, %v9317_v2 }
0x2646   :  { %6748 = vrcp.f32 %v4922_v37  ;;  %v4919_v24 = vand.u32 2147483647, %v9321_v43  ;;  %v4935_v14 = vand.u32 2147483648, %v4922_v37  ;;  %v4933_v20 = vand.u32 2147483647, %v4922_v37 }
0x2647   :  { %vm4929_vm11 = vweird.f32 %v4922_v37  ;;  %v4976_v10 = vmul.f32 1.442695, %v4974_v27  ;;  %vm4915_vm4 = vcmp.ge.f32.partialorder %v9321_v43, 0.0 }
0x2648   :  { %v4921_v22 = vmul.f32 0.3275911, %v4919_v24  ;;  %v4936_v34 = vor.u32 1.1754944e-38, %v4935_v14  ;;  %vm4934_vm8 = vcmp.eq.f32.partialorder %v4933_v20, 8.507059e+37  ;;  %v4973_v15 = vsub.f32 0.0, %v4919_v24 }
0x2649   :  { %v4908_v1 = vpop.f32.mrf.mxu2  ;;  %v4917_v56 = vsel %vm4915_vm4, 1.0, %v7823_v16 }
0x264a   :  { %v4923_v39 = vadd.f32 1.0, %v4921_v22  ;;  %v4975_v52 = vmul.f32 %v4973_v15, %v4919_v24 }
0x264c   :  { %v6749_v7 = vpop.eup %6748  ;;  %6750 = vrcp.f32 %v4923_v39  ;;  %v4950_v21 = vand.u32 2147483648, %v4923_v39  ;;  %v4948_v38 = vand.u32 2147483647, %v4923_v39  ;;  %vm4944_vm14 = vweird.f32 %v4923_v39 }
0x264d   :  { %v4925_v55 = vmul.f32 %v6749_v7, %v4922_v37  ;;  %vm4930_vm10 = vweird.f32 %v6749_v7  ;;  %6752 = vpow2.f32 %v4976_v10  ;;  %v4978_v11 = vmul.f32 1.442695, %v4975_v52 }
0x264e   :  { %vm4931_vm6 = vmor %vm4929_vm11, %vm4930_vm10  ;;  %v4951_v12 = vor.u32 1.1754944e-38, %v4950_v21  ;;  %vm4949_vm2 = vcmp.eq.f32.partialorder %v4948_v38, 8.507059e+37  ;;  %vm5229_vm11 = vcmask 1041409  }
0x264f   :  { %v4926_v46 = vsub.f32 1.0, %v4925_v55  ;;  %6754 = vpow2.f32 %v4978_v11 }
0x2651   :  { %v4927_v30 = vmul.f32 %v6749_v7, %v4926_v46 }
0x2652   :  { %v6751_v63 = vpop.eup %6750 }
0x2653   :  { %v4928_v23 = vadd.f32 %v6749_v7, %v4927_v30  ;;  %v4940_v28 = vmul.f32 %v6751_v63, %v4923_v39  ;;  %vm4945_vm13 = vweird.f32 %v6751_v63  ;;  %v6753_v25 = vpop.eup %6752  ;;  %v4910_v39 = vmul.f32 0.5, %v9308_v41 }
0x2654   :  { %vm4946_vm15 = vmor %vm4944_vm14, %vm4945_vm13 }
0x2655   :  { %v4932_v54 = vsel %vm4931_vm6, %v6749_v7, %v4928_v23  ;;  %v4941_v31 = vsub.f32 1.0, %v4940_v28  ;;  %v6755_v8 = vpop.eup %6754  ;;  %vm5519_vm6 = vcmask 517120  }
0x2656   :  { %v4937_v35 = vsel %vm4934_vm8, %v4936_v34, %v4932_v54  ;;  %v6514_v34 = vld [vmem:[#allocation41] ss:$0 sm:$0xff]  ;;  %vm5274_vm8 = vcmask 386048  }
0x2657   :  { %v4954_v3 = vmul.f32 1.0614054, %v4937_v35  ;;  %v4942_v60 = vmul.f32 %v6751_v63, %v4941_v31 }
0x2659   :  { %v4956_v5 = vadd.f32 -1.4531521, %v4954_v3  ;;  %v4943_v36 = vadd.f32 %v6751_v63, %v4942_v60 }
0x265b   :  { %v4958_v33 = vmul.f32 %v4956_v5, %v4937_v35  ;;  %v4947_v62 = vsel %vm4946_vm15, %v6751_v63, %v4943_v36  ;;  %v6328_v5 = vld [vmem:[%s9532_s14 + $0x10] sm:$0xff]  ;;  %v6327_v36 = vld [vmem:[%s9532_s14 + $0x8] sm:$0xff] }
0x265c   :  { %v4952_v42 = vsel %vm4949_vm2, %v4951_v12, %v4947_v62  ;;  %5264 = vmatpush.bf16.msra.mxu1 %v6328_v5  ;;  %v7827_v12 = vmov 4.0  }
0x265d   :  { %v4960_v40 = vadd.f32 1.4214138, %v4958_v33  ;;  %v4955_v45 = vmul.f32 1.0614054, %v4952_v42 }
0x265f   :  { %v4962_v44 = vmul.f32 %v4960_v40, %v4937_v35  ;;  %v4957_v49 = vadd.f32 -1.4531521, %v4955_v45  ;;  %v6326_v40 = vld [vmem:[%s9532_s14] sm:$0xff]  ;;  %v6515_v45 = vld [vmem:[#allocation43] ss:$0 sm:$0xff] }
0x2660   :  { %5265 = vmatpush.bf16.msra.mxu1 %v6327_v36 }
0x2661   :  { %v4964_v50 = vadd.f32 -0.28449672, %v4962_v44  ;;  %v4959_v18 = vmul.f32 %v4957_v49, %v4952_v42  ;;  %v6516_v49 = vld [vmem:[#allocation44] ss:$0 sm:$0xff] }
0x2663   :  { %v4966_v58 = vmul.f32 %v4964_v50, %v4937_v35  ;;  %v4961_v4 = vadd.f32 1.4214138, %v4959_v18 }
0x2664   :  { %5266 = vmatpush.bf16.msra.mxu1 %v6326_v40 }
0x2665   :  { %v4968_v59 = vadd.f32 0.2548296, %v4966_v58  ;;  %v4963_v19 = vmul.f32 %v4961_v4, %v4952_v42 }
0x2667   :  { %v4970_v0 = vmul.f32 %v4968_v59, %v4937_v35  ;;  %v4965_v13 = vadd.f32 -0.28449672, %v4963_v19 }
0x2669   :  { %v4980_v37 = vmul.f32 %v6753_v25, %v4970_v0  ;;  %v4967_v29 = vmul.f32 %v4965_v13, %v4952_v42 }
0x266b   :  { %v4982_v47 = vsub.f32 1.0, %v4980_v37  ;;  %v4969_v22 = vadd.f32 0.2548296, %v4967_v29 }
0x266d   :  { %v4984_v24 = vmul.f32 %v4982_v47, %v4916_v32  ;;  %v4971_v1 = vmul.f32 %v4969_v22, %v4952_v42 }
0x266f   :  { %v4986_v7 = vadd.f32 1.0, %v4984_v24  ;;  %v4981_v51 = vmul.f32 %v6755_v8, %v4971_v1 }
0x2671   :  { %v4988_v55 = vmul.f32 %v4986_v7, %v4910_v39  ;;  %v4983_v61 = vsub.f32 1.0, %v4981_v51 }
0x2673   :  { %v5022_v46 = vpack.c.bf16 %v4988_v55, %v4988_v55  ;;  %v4985_v14 = vmul.f32 %v4983_v61, %v4917_v56 }
0x2675   :  { %5128 = vmatmul.bf16.vlgmr.msrb.gmra.mxu3 %v5022_v46  ;;  %v4987_v30 = vadd.f32 1.0, %v4985_v14 }
0x2677   :  { %v4989_v20 = vmul.f32 %v4987_v30, %v4911_v6 }
0x2679   :  { %v5023_v9 = vpack.c.bf16 %v4989_v20, %v4989_v20 }
0x267b   :  { %5141 = vmatmul.bf16.vlgmr.msrb.gmra.mxu0 %v5023_v9 }
0x26f8   :  { %v5129_v63 = vpop.f32.mrf.mxu3  ;;  %v5142_v23 = vpop.f32.mrf.mxu0 }
0x26f9   :  { %v5143_v41 = vadd.f32 %v5142_v23, %v5129_v63  ;;  %v6517_v23 = vld [vmem:[#allocation46] ss:$0 sm:$0xff] }
0x26fb   :  { %v5146_v43 = vadd.f32 %v5143_v41, %v9279_v17 }
0x26fd   :  { %v5151_v28 = vadd.f32 %v6514_v34, %v5146_v43 }
0x26ff   :  { %v5154_v48 = vsel %vm2953_vm12, %v5151_v28, 0.0 }
0x2700   :  { %v5131_v54 = vpop.f32.mrf.mxu3  ;;  %v5144_v35 = vpop.f32.mrf.mxu0  ;;  %5155 = vadd.xlane.f32.xlu0 %v5154_v48  ;;  %v7828_v48 = vmov 48.0  }
0x2773   :  { %v5156_v2 = vpop.xlane.xlu0 %5155 }
0x2774   :  { %v5157_v57 = vmul.f32 %v5156_v2, %v8914_v26 }
0x2776   :  { %v5158_v31 = vsub.f32 %v5151_v28, %v5157_v57 }
0x2778   :  { %v5159_v3 = vmul.f32 %v5158_v31, %v5158_v31 }
0x277a   :  { %v5160_v21 = vsel %vm2953_vm12, %v5159_v3, 0.0 }
0x277b   :  { %5161 = vadd.xlane.f32.xlu0 %v5160_v21 }
0x27ee   :  { %v5162_v60 = vpop.xlane.xlu0 %5161 }
0x27ef   :  { %v5163_v17 = vmul.f32 %v5162_v60, %v8914_v26 }
0x27f1   :  { %v5164_v38 = vadd.f32 1e-05, %v5163_v17 }
0x27f3   :  { %6756 = vrsqrt.f32 %v5164_v38  ;;  %vm5171_vm1 = vweird.f32 %v5164_v38 }
0x27f4   :  { %6758 = vrcp.f32 %v7827_v12 }
0x27f5   :  { %6760 = vrcp.f32 %v7828_v48 }
0x27f9   :  { %v6757_v27 = vpop.eup %6756 }
0x27fa   :  { %v5166_v33 = vmul.f32 %v6757_v27, %v5164_v38  ;;  %vm5172_vm5 = vweird.f32 %v6757_v27  ;;  %v6759_v10 = vpop.eup %6758 }
0x27fb   :  { %vm5173_vm7 = vmor %vm5171_vm1, %vm5172_vm5  ;;  %v5203_v50 = vmul.f32 4.0, %v6759_v10  ;;  %vm5207_vm10 = vweird.f32 %v6759_v10  ;;  %v6761_v54 = vpop.eup %6760 }
0x27fc   :  { %v5167_v62 = vmul.f32 %v6757_v27, %v5166_v33  ;;  %v5279_v35 = vmul.f32 48.0, %v6761_v54  ;;  %vm5283_vm13 = vweird.f32 %v6761_v54 }
0x27fd   :  { %v5204_v58 = vsub.f32 1.0, %v5203_v50 }
0x27fe   :  { %v5168_v42 = vmul.f32 0.5, %v5167_v62  ;;  %v5280_v2 = vsub.f32 1.0, %v5279_v35  ;;  %v6520_v35 = vld [vmem:[#allocation50] ss:$0 sm:$0xff] }
0x27ff   :  { %v5205_v0 = vmul.f32 %v6759_v10, %v5204_v58 }
0x2800   :  { %v5169_v15 = vsub.f32 1.5, %v5168_v42  ;;  %v5281_v57 = vmul.f32 %v6761_v54, %v5280_v2 }
0x2801   :  { %v5206_v32 = vadd.f32 %v6759_v10, %v5205_v0  ;;  %v6331_v0 = vld [vmem:[%s9533_s18 + $0x8] sm:$0xff] }
0x2802   :  { %v5170_v26 = vmul.f32 %v6757_v27, %v5169_v15 }
0x2803   :  { %v5208_v39 = vsel %vm5207_vm10, %v6759_v10, %v5206_v32  ;;  %v6518_v10 = vld [vmem:[#allocation47] ss:$0 sm:$0xff] }
0x2804   :  { %v5174_v44 = vsel %vm5173_vm7, %v6757_v27, %v5170_v26  ;;  %vm5399_vm7 = vcmask 189440  }
0x2805   :  { %v5175_v52 = vmul.f32 %v5174_v44, %v5158_v31  ;;  %v5282_v31 = vadd.f32 %v6761_v54, %v5281_v57 }
0x2807   :  { %v5179_v18 = vmul.f32 %v6515_v45, %v5175_v52  ;;  %v5284_v3 = vsel %vm5283_vm13, %v6761_v54, %v5282_v31  ;;  %v6519_v45 = vld [vmem:[#allocation49] ss:$0 sm:$0xff] }
0x2809   :  { %v5183_v4 = vadd.f32 %v6516_v49, %v5179_v18 }
0x280b   :  { %v5185_v59 = vrot.slane %v5183_v4, 4  ;;  %v5188_v11 = vsel %vm5187_vm9, %v5183_v4, 0.0 }
0x280c   :  { %v5189_v19 = vrot.slane %v5188_v11, 4 }
0x280d   :  { %v5195_v25 = vsel %vm5187_vm9, %v5185_v59, 0.0  ;;  %v6332_v59 = vld [vmem:[%s9533_s18 + $0x10] sm:$0xff] }
0x280e   :  { %v5190_v13 = vadd.f32 %v5189_v19, %v5188_v11  ;;  %v5196_v37 = vrot.slane %v5195_v25, 4  ;;  %5389 = vmatpush.bf16.msra.mxu2 %v6332_v59 }
0x2810   :  { %v5191_v29 = vrot.slane %v5190_v13, 2  ;;  %v5197_v47 = vadd.f32 %v5196_v37, %v5195_v25 }
0x2812   :  { %v5192_v22 = vadd.f32 %v5191_v29, %v5190_v13  ;;  %v5198_v24 = vrot.slane %v5197_v47, 2  ;;  %5390 = vmatpush.bf16.msra.mxu2 %v6331_v0 }
0x2814   :  { %v5193_v1 = vrot.slane %v5192_v22, 1  ;;  %v5199_v8 = vadd.f32 %v5198_v24, %v5197_v47  ;;  %v6330_v47 = vld [vmem:[%s9533_s18] sm:$0xff] }
0x2816   :  { %v5194_v7 = vadd.f32 %v5193_v1, %v5192_v22  ;;  %v5200_v51 = vrot.slane %v5199_v8, 1  ;;  %5391 = vmatpush.bf16.msra.mxu2 %v6330_v47 }
0x2818   :  { %v5201_v55 = vadd.f32 %v5200_v51, %v5199_v8  ;;  %v5209_v61 = vmul.f32 %v5208_v39, %v5194_v7 }
0x281a   :  { %v5210_v46 = vmul.f32 %v5208_v39, %v5201_v55  ;;  %v5219_v56 = vpack.c.bf16 %v5209_v61, %v5209_v61 }
0x281c   :  { %v5220_v14 = vpack.c.bf16 %v5210_v46, %v5210_v46  ;;  %v5517_v6 = vsel %vm5229_vm11, %v5210_v46, %v5209_v61  ;;  %v5227_v30 = vunpack.c.l.b16 %v5219_v56 }
0x281d   :  { %5520 = vst.msk [vmem:[#allocation56] sm:$0x3] %vm5519_vm6, %v5517_v6  ;;  %vm5498_vm6 = vcmask 1043456  }
0x281e   :  { %v5228_v20 = vunpack.c.l.b16 %v5220_v14 }
0x2820   :  { %v5230_v9 = vsel %vm5229_vm11, %v5228_v20, %v5227_v30 }
0x2821   :  { %v5231_v63 = vpack.c.b16 %v5230_v9, %v5230_v9 }
0x2823   :  { %6196 = vmatmul.msk.bf16.vlgmr.msra.gmra.mxu1 %vm2953_vm12, %v5231_v63 }
0x28a0   :  { %v5268_v41 = vpop.f32.mrf.mxu1 }
0x28a1   :  { %v5269_v34 = vadd.f32 %v6517_v23, %v5268_v41 }
0x28a3   :  { %v5275_v43 = vsel %vm5274_vm8, %v5269_v34, 0.0 }
0x28a4   :  { %5276 = vadd.xlane.f32.xlu1 %v5275_v43 }
0x28a8   :  { %v5270_v28 = vpop.f32.mrf.mxu1 }
0x2917   :  { %v5277_v21 = vpop.xlane.xlu1 %5276 }
0x2918   :  { %v5285_v60 = vmul.f32 %v5284_v3, %v5277_v21  ;;  %v7829_v21 = vmov 24.0  }
0x291a   :  { %v5286_v17 = vsub.f32 %v5269_v34, %v5285_v60 }
0x291c   :  { %v5287_v38 = vmul.f32 %v5286_v17, %v5286_v17 }
0x291e   :  { %v5288_v53 = vsel %vm5274_vm8, %v5287_v38, 0.0 }
0x291f   :  { %5289 = vadd.xlane.f32.xlu0 %v5288_v53 }
0x2992   :  { %v5290_v5 = vpop.xlane.xlu0 %5289 }
0x2993   :  { %v5291_v27 = vmul.f32 %v5290_v5, %v5284_v3 }
0x2995   :  { %v5292_v36 = vadd.f32 1e-05, %v5291_v27 }
0x2997   :  { %6762 = vrsqrt.f32 %v5292_v36  ;;  %vm5299_vm14 = vweird.f32 %v5292_v36 }
0x299d   :  { %v6763_v33 = vpop.eup %6762 }
0x299e   :  { %v5294_v12 = vmul.f32 %v6763_v33, %v5292_v36  ;;  %vm5300_vm12 = vweird.f32 %v6763_v33 }
0x299f   :  { %vm5301_vm15 = vmor %vm5299_vm14, %vm5300_vm12 }
0x29a0   :  { %v5295_v62 = vmul.f32 %v6763_v33, %v5294_v12 }
0x29a2   :  { %v5296_v40 = vmul.f32 0.5, %v5295_v62 }
0x29a4   :  { %v5297_v42 = vsub.f32 1.5, %v5296_v40 }
0x29a6   :  { %v5298_v15 = vmul.f32 %v6763_v33, %v5297_v42 }
0x29a8   :  { %v5302_v26 = vsel %vm5301_vm15, %v6763_v33, %v5298_v15 }
0x29a9   :  { %v5303_v44 = vmul.f32 %v5302_v26, %v5286_v17 }
0x29ab   :  { %v5307_v49 = vmul.f32 %v6518_v10, %v5303_v44 }
0x29ad   :  { %v5311_v50 = vadd.f32 %v6519_v45, %v5307_v49 }
0x29af   :  { %v5313_v52 = vmul.f32 0.70710677, %v5311_v50  ;;  %v5312_v43 = vmul.f32 0.5, %v5311_v50 }
0x29b1   :  { %v5316_v18 = vand.u32 2147483647, %v5313_v52  ;;  %vm5314_vm1 = vcmp.ge.f32.partialorder %v5313_v52, 0.0 }
0x29b2   :  { %v5315_v41 = vsel %vm5314_vm1, 1.0, %v7823_v16 }
0x29b3   :  { %v5317_v58 = vmul.f32 0.3275911, %v5316_v18  ;;  %v5343_v8 = vsub.f32 0.0, %v5316_v18 }
0x29b5   :  { %v5318_v4 = vadd.f32 1.0, %v5317_v58  ;;  %v5344_v51 = vmul.f32 %v5343_v8, %v5316_v18  ;;  %v6521_v18 = vld [vmem:[#allocation52] ss:$0 sm:$0xff] }
0x29b7   :  { %6764 = vrcp.f32 %v5318_v4  ;;  %v5330_v13 = vand.u32 2147483648, %v5318_v4  ;;  %v5328_v29 = vand.u32 2147483647, %v5318_v4  ;;  %vm5324_vm3 = vweird.f32 %v5318_v4 }
0x29b8   :  { %v5345_v46 = vmul.f32 1.442695, %v5344_v51 }
0x29b9   :  { %v5331_v22 = vor.u32 1.1754944e-38, %v5330_v13  ;;  %vm5329_vm5 = vcmp.eq.f32.partialorder %v5328_v29, 8.507059e+37  ;;  %v5479_v29 = vld [vmem:[%s8210_s12 + $0x8] sm:$0xf] }
0x29ba   :  { %6766 = vpow2.f32 %v5345_v46  ;;  %v5490_v47 = vunpack.c.l.b16 %v5479_v29 }
0x29bb   :  { %6768 = vrcp.f32 %v7829_v21 }
0x29bd   :  { %v6765_v11 = vpop.eup %6764 }
0x29be   :  { %v5320_v19 = vmul.f32 %v6765_v11, %v5318_v4  ;;  %vm5325_vm2 = vweird.f32 %v6765_v11  ;;  %v6522_v4 = vld [vmem:[#allocation53] ss:$0 sm:$0xff] }
0x29bf   :  { %vm5326_vm4 = vmor %vm5324_vm3, %vm5325_vm2  ;;  %vm5494_vm2 = vcmask 195584  }
0x29c0   :  { %v5321_v25 = vsub.f32 1.0, %v5320_v19  ;;  %v6767_v9 = vpop.eup %6766 }
0x29c1   :  { %v6769_v60 = vpop.eup %6768 }
0x29c2   :  { %v5322_v37 = vmul.f32 %v6765_v11, %v5321_v25  ;;  %v5404_v17 = vmul.f32 24.0, %v6769_v60  ;;  %vm5408_vm9 = vweird.f32 %v6769_v60 }
0x29c4   :  { %v5323_v32 = vadd.f32 %v6765_v11, %v5322_v37  ;;  %v5405_v38 = vsub.f32 1.0, %v5404_v17 }
0x29c6   :  { %v5327_v24 = vsel %vm5326_vm4, %v6765_v11, %v5323_v32  ;;  %v5406_v53 = vmul.f32 %v6769_v60, %v5405_v38 }
0x29c7   :  { %v5332_v1 = vsel %vm5329_vm5, %v5331_v22, %v5327_v24  ;;  %v5492_v22 = vpack.c.b16 %v5490_v47, %v5490_v47 }
0x29c8   :  { %v5334_v39 = vmul.f32 1.0614054, %v5332_v1  ;;  %v5407_v5 = vadd.f32 %v6769_v60, %v5406_v53 }
0x29ca   :  { %v5335_v7 = vadd.f32 -1.4531521, %v5334_v39  ;;  %v5409_v27 = vsel %vm5408_vm9, %v6769_v60, %v5407_v5 }
0x29cc   :  { %v5336_v55 = vmul.f32 %v5335_v7, %v5332_v1 }
0x29ce   :  { %v5337_v61 = vadd.f32 1.4214138, %v5336_v55  ;;  %v6333_v55 = vld [vmem:[%s8210_s12] sm:$0xff]  ;;  %s7830_s12 = smov [#allocation56]  }
0x29cf   :  { %s5528_s8 = sshll.u32 %s7830_s12, 4  ;;  %s5529_s8 = int_to_ptr.vmem [resolvable:$true] %s5528_s8 }
0x29d0   :  { %v5338_v56 = vmul.f32 %v5337_v61, %v5332_v1 }
0x29d2   :  { %v5339_v14 = vadd.f32 -0.28449672, %v5338_v56 }
0x29d4   :  { %v5340_v6 = vmul.f32 %v5339_v14, %v5332_v1 }
0x29d6   :  { %v5341_v30 = vadd.f32 0.2548296, %v5340_v6 }
0x29d8   :  { %v5342_v20 = vmul.f32 %v5341_v30, %v5332_v1  ;;  %v5500_v1 = vsel %vm5498_vm6, %v5492_v22, 0 }
0x29d9   :  { %5508 = vmatpush.bf16.msrb.mxu1 %v5500_v1 }
0x29da   :  { %v5347_v63 = vmul.f32 %v6767_v9, %v5342_v20 }
0x29dc   :  { %v5348_v23 = vsub.f32 1.0, %v5347_v63 }
0x29dd   :  { %5509 = vmatpush.bf16.msrb.mxu1 %v6333_v55 }
0x29de   :  { %v5349_v34 = vmul.f32 %v5348_v23, %v5315_v41 }
0x29e0   :  { %v5350_v28 = vadd.f32 1.0, %v5349_v34 }
0x29e2   :  { %v5351_v48 = vmul.f32 %v5350_v28, %v5312_v43 }
0x29e4   :  { %v5358_v54 = vpack.c.bf16 %v5351_v48, %v5351_v48 }
0x29e6   :  { %6209 = vmatmul.msk.bf16.vlgmr.msra.gmra.mxu2 %vm823_vm0, %v5358_v54 }
0x2a69   :  { %v5393_v2 = vpop.f32.mrf.mxu2 }
0x2a6a   :  { %v5394_v57 = vadd.f32 %v6520_v35, %v5393_v2 }
0x2a6c   :  { %v5400_v31 = vsel %vm5399_vm7, %v5394_v57, 0.0 }
0x2a6d   :  { %5401 = vadd.xlane.f32.xlu0 %v5400_v31 }
0x2a71   :  { %v5395_v3 = vpop.f32.mrf.mxu2 }
0x2ae0   :  { %v5402_v36 = vpop.xlane.xlu0 %5401 }
0x2ae1   :  { %v5410_v33 = vmul.f32 %v5409_v27, %v5402_v36 }
0x2ae3   :  { %v5411_v12 = vsub.f32 %v5394_v57, %v5410_v33 }
0x2ae5   :  { %v5412_v62 = vmul.f32 %v5411_v12, %v5411_v12 }
0x2ae7   :  { %v5413_v40 = vsel %vm5399_vm7, %v5412_v62, 0.0 }
0x2ae8   :  { %5414 = vadd.xlane.f32.xlu0 %v5413_v40 }
0x2b5b   :  { %v5415_v42 = vpop.xlane.xlu0 %5414 }
0x2b5c   :  { %v5416_v15 = vmul.f32 %v5415_v42, %v5409_v27 }
0x2b5e   :  { %v5417_v10 = vadd.f32 1e-05, %v5416_v15 }
0x2b60   :  { %6770 = vrsqrt.f32 %v5417_v10  ;;  %vm5424_vm10 = vweird.f32 %v5417_v10 }
0x2b66   :  { %v6771_v26 = vpop.eup %6770 }
0x2b67   :  { %v5419_v45 = vmul.f32 %v6771_v26, %v5417_v10  ;;  %vm5425_vm0 = vweird.f32 %v6771_v26 }
0x2b68   :  { %vm5426_vm11 = vmor %vm5424_vm10, %vm5425_vm0 }
0x2b69   :  { %v5420_v44 = vmul.f32 %v6771_v26, %v5419_v45 }
0x2b6b   :  { %v5421_v49 = vmul.f32 0.5, %v5420_v44 }
0x2b6d   :  { %v5422_v50 = vsub.f32 1.5, %v5421_v49 }
0x2b6f   :  { %v5423_v52 = vmul.f32 %v6771_v26, %v5422_v50 }
0x2b71   :  { %v5427_v58 = vsel %vm5426_vm11, %v6771_v26, %v5423_v52 }
0x2b72   :  { %v5428_v59 = vmul.f32 %v5427_v58, %v5411_v12 }
0x2b74   :  { %v5432_v11 = vmul.f32 %v6521_v18, %v5428_v59 }
0x2b76   :  { %v5436_v19 = vadd.f32 %v6522_v4, %v5432_v11 }
0x2b78   :  { %v5438_v0 = vmul.f32 0.70710677, %v5436_v19  ;;  %v5437_v21 = vmul.f32 0.5, %v5436_v19 }
0x2b7a   :  { %v5441_v25 = vand.u32 2147483647, %v5438_v0  ;;  %vm5439_vm15 = vcmp.ge.f32.partialorder %v5438_v0, 0.0 }
0x2b7b   :  { %v5440_v31 = vsel %vm5439_vm15, 1.0, %v7823_v16 }
0x2b7c   :  { %v5442_v13 = vmul.f32 0.3275911, %v5441_v25  ;;  %v5468_v6 = vsub.f32 0.0, %v5441_v25 }
0x2b7e   :  { %v5443_v37 = vadd.f32 1.0, %v5442_v13  ;;  %v5469_v9 = vmul.f32 %v5468_v6, %v5441_v25 }
0x2b80   :  { %6772 = vrcp.f32 %v5443_v37  ;;  %v5455_v39 = vand.u32 2147483648, %v5443_v37  ;;  %v5453_v51 = vand.u32 2147483647, %v5443_v37  ;;  %vm5449_vm13 = vweird.f32 %v5443_v37 }
0x2b81   :  { %v5470_v41 = vmul.f32 1.442695, %v5469_v9 }
0x2b82   :  { %v5456_v46 = vor.u32 1.1754944e-38, %v5455_v39  ;;  %vm5454_vm14 = vcmp.eq.f32.partialorder %v5453_v51, 8.507059e+37 }
0x2b83   :  { %6774 = vpow2.f32 %v5470_v41 }
0x2b86   :  { %v6773_v32 = vpop.eup %6772 }
0x2b87   :  { %v5445_v24 = vmul.f32 %v6773_v32, %v5443_v37  ;;  %vm5450_vm8 = vweird.f32 %v6773_v32 }
0x2b88   :  { %vm5451_vm12 = vmor %vm5449_vm13, %vm5450_vm8 }
0x2b89   :  { %v5446_v8 = vsub.f32 1.0, %v5445_v24  ;;  %v6775_v35 = vpop.eup %6774 }
0x2b8b   :  { %v5447_v7 = vmul.f32 %v6773_v32, %v5446_v8 }
0x2b8d   :  { %v5448_v61 = vadd.f32 %v6773_v32, %v5447_v7 }
0x2b8f   :  { %v5452_v56 = vsel %vm5451_vm12, %v6773_v32, %v5448_v61 }
0x2b90   :  { %v5457_v14 = vsel %vm5454_vm14, %v5456_v46, %v5452_v56 }
0x2b91   :  { %v5459_v30 = vmul.f32 1.0614054, %v5457_v14 }
0x2b93   :  { %v5460_v20 = vadd.f32 -1.4531521, %v5459_v30 }
0x2b95   :  { %v5461_v63 = vmul.f32 %v5460_v20, %v5457_v14 }
0x2b97   :  { %v5462_v23 = vadd.f32 1.4214138, %v5461_v63 }
0x2b99   :  { %v5463_v34 = vmul.f32 %v5462_v23, %v5457_v14 }
0x2b9b   :  { %v5464_v43 = vadd.f32 -0.28449672, %v5463_v34 }
0x2b9d   :  { %v5465_v28 = vmul.f32 %v5464_v43, %v5457_v14 }
0x2b9f   :  { %v5466_v48 = vadd.f32 0.2548296, %v5465_v28 }
0x2ba1   :  { %v5467_v54 = vmul.f32 %v5466_v48, %v5457_v14 }
0x2ba3   :  { %v5472_v2 = vmul.f32 %v6775_v35, %v5467_v54 }
0x2ba5   :  { %v5473_v57 = vsub.f32 1.0, %v5472_v2 }
0x2ba7   :  { %v5474_v3 = vmul.f32 %v5473_v57, %v5440_v31 }
0x2ba9   :  { %v5475_v60 = vadd.f32 1.0, %v5474_v3 }
0x2bab   :  { %v5476_v17 = vmul.f32 %v5475_v60, %v5437_v21 }
0x2bad   :  { %v5480_v38 = vpack.c.bf16 %v5476_v17, %v5476_v17 }
0x2baf   :  { %6214 = vmatmul.msk.bf16.vlgmr.msrb.gmra.mxu1 %vm5494_vm2, %v5480_v38 }
0x2bb0   :  { %7639 = shalt.err (!%p7636_p11)
}
0x2bb1   :  { %5533 = dma.vmem_to_hbm [thread:$0]  %s5529_s8, 32, %s5531_s3, [#allocation4]   ;;  %v6523_v16 = vld [vmem:[#allocation55] ss:$0 sm:$0xff]  ;;  %vm5521_vm3 = vcmask 17408  }
0x2bb2   :  { %s7831_s21 = smov [#allocation57]   ;;  %s5541_s25 = sshll.u32 %s8225_s30, 4  ;;  %s5542_s25 = int_to_ptr.hbm [resolvable:$true] %s5541_s25 }
0x2bb3   :  { %s5539_s24 = sshll.u32 %s7831_s21, 4  ;;  %s7652_s13 = sshra.s32 %s5542_s25, 4  ;;  %s5540_s24 = int_to_ptr.vmem [resolvable:$true] %s5539_s24  ;;  %s7653_s13 = int_to_ptr.hbm [resolvable:$true] %s7652_s13 }
0x2bb4   :  { %s7654_s19 = scalar_lea.hbm %s7653_s13, 2  ;;  %s7656_s20 = scalar_lea.hbm %s8225_s30, 2 }
0x2bb5   :  { %p7655_p12 = scmp.ne.s32.totalorder %s7653_s13, %s7654_s19  ;;  %p7657_p13 = scmp.lt.s32.totalorder %s7653_s13, %s8225_s30 }
0x2bb6   :  { %p7658_p0 = scmp.lt.s32.totalorder %s7656_s20, %s7654_s19 }
0x2bb8   :  { %p7659_p1 = por %p7658_p0, %p7657_p13 }
0x2bba   :  { %p7660_p2 = pnand %p7659_p1, %p7655_p12 }
0x2c2c   :  { %v5511_v53 = vpop.f32.mrf.mxu1 }
0x2c2d   :  { %v5512_v5 = vadd.f32 %v6523_v16, %v5511_v53 }
0x2c2f   :  { %5522 = vst.msk [vmem:[#allocation57] sm:$0x3] %vm5521_vm3, %v5512_v5 }
0x2c30   :  { %7663 = shalt.err (!%p7660_p2)
}
0x2c31   :  { %5544 = dma.vmem_to_hbm [thread:$0]  %s5540_s24, 32, %s5542_s25, [#allocation58]  }
0x2c34   :  { %v5513_v27 = vpop.f32.mrf.mxu1 }
0x2c35   :  { %7700 = dma.done.wait [#allocation4], 32  }
0x2c36   :  { %7701 = vsyncadd [#allocation4], 4294967264 }
0x2c37   :  { %7702 = dma.done.wait [#allocation58], 32  }
0x2c38   :  { %7703 = vsyncadd [#allocation58], 4294967264 }
0x2c39   :  { %5553 = vsyncpa [#allocation3], 1 }
0x2c3a   :  { %5554 = vsyncpa [#allocation6], 1 }
0x2c3b   :  { %5555 = vsyncpa [#allocation9], 1 }
0x2c3c   :  { %5556 = vsyncpa [#allocation12], 1 }
0x2c3d   :  { %5557 = vsyncpa [#allocation15], 1 }
0x2c3e   :  { %5558 = vsyncpa [#allocation18], 1 }
0x2c3f   :  { %5559 = vsyncpa [#allocation21], 1 }
0x2c40   :  { %5560 = vsyncpa [#allocation24], 1 }
0x2c41   :  { %5561 = vsyncpa [#allocation27], 1 }
0x2c42   :  { %5562 = vsyncpa [#allocation30], 1 }
0x2c43   :  { %5563 = vsyncpa [#allocation33], 1 }
0x2c44   :  { %5564 = vsyncpa [#allocation36], 1 }
0x2c45   :  { %5565 = vsyncpa [#allocation39], 1 }
0x2c46   :  { %5566 = vsyncpa [#allocation42], 1 }
0x2c47   :  { %5567 = vsyncpa [#allocation45], 1 }
0x2c48   :  { %5568 = vsyncpa [#allocation48], 1 }
0x2c49   :  { %5569 = vsyncpa [#allocation51], 1 }
0x2c4a   :  { %5570 = vsyncpa [#allocation54], 1 }
0x2c4b   :  { %5571 = vsyncpa [#allocation4], 1 }
0x2c4c   :  { %5572 = vsyncpa [#allocation58], 1 }

</bundles_post_ra>
